<compile_context>
chip_gen: v7x
topology: tpu7x:2x2x1
jax: 0.10.0
libtpu: 0.0.40
codegen_flags: <defaults>
</compile_context>

<pallas_src>
import functools

import jax
import jax.numpy as jnp
from jax.experimental import pallas as pl
from jax.experimental.pallas import tpu as pltpu

LANE = 128  # lane-width padding for channels / K
SUB = 8     # sublane padding for flattened output positions (M)


def _pad_to(x, mult, axis):
    pad = (-x.shape[axis]) % mult
    if pad == 0:
        return x
    widths = [(0, 0)] * x.ndim
    widths[axis] = (0, pad)
    return jnp.pad(x, widths)


# ----------------------------------------------------------------------------
# Kernel 1: fused conv-matmul + batch stats + batchnorm affine + LeakyReLU
# ----------------------------------------------------------------------------
def bn_block_kernel(p_ref, w_ref, g_ref, b_ref, o_ref, *, inv_m, eps, slope):
    # im2col conv: bf16 operands, f32 accumulation on the MXU.
    y = jnp.dot(p_ref[...], w_ref[...], preferred_element_type=jnp.float32)
    # Batch statistics over the real M rows; zero-padded rows contribute 0.
    s = jnp.sum(y, axis=0, keepdims=True)              # (1, Cn)
    ss = jnp.sum(y * y, axis=0, keepdims=True)         # (1, Cn)
    mean = s * inv_m
    var = ss * inv_m - mean * mean                     # biased (training-mode BN)
    scale = g_ref[...] * jax.lax.rsqrt(var + eps)
    x = (y - mean) * scale + b_ref[...]
    o_ref[...] = jnp.where(x >= 0, x, slope * x).astype(o_ref.dtype)


def bn_block_call(patches, weight, gamma2d, beta2d, m_real, eps, slope):
    """patches: (Mp, Kp) bf16; weight: (Kp, Cn) bf16; gamma/beta: (1, Cn) f32."""
    Mp, Kp = patches.shape
    Cn = weight.shape[1]
    kern = functools.partial(bn_block_kernel,
                             inv_m=1.0 / m_real, eps=eps, slope=slope)
    return pl.pallas_call(
        kern,
        out_shape=jax.ShapeDtypeStruct((Mp, Cn), jnp.bfloat16),
        grid=(1,),
        in_specs=[pl.BlockSpec((Mp, Kp), lambda i: (0, 0)),
                  pl.BlockSpec((Kp, Cn), lambda i: (0, 0)),
                  pl.BlockSpec((1, Cn), lambda i: (0, 0)),
                  pl.BlockSpec((1, Cn), lambda i: (0, 0))],
        out_specs=pl.BlockSpec((Mp, Cn), lambda i: (0, 0)),
        compiler_params=pltpu.CompilerParams(
            dimension_semantics=("arbitrary",)),
    )(patches, weight, gamma2d, beta2d)


# ----------------------------------------------------------------------------
# Kernel 2: final layer = conv-matmul with the bias fused into the epilogue
# ----------------------------------------------------------------------------
def final_block_kernel(p_ref, w_ref, b_ref, o_ref):
    y = jnp.dot(p_ref[...], w_ref[...], preferred_element_type=jnp.float32)
    o_ref[...] = (y + b_ref[...]).astype(o_ref.dtype)


def final_block_call(patches, weight, bias2d):
    Mp, Kp = patches.shape
    Cn = weight.shape[1]
    return pl.pallas_call(
        final_block_kernel,
        out_shape=jax.ShapeDtypeStruct((Mp, Cn), jnp.float32),
        grid=(1,),
        in_specs=[pl.BlockSpec((Mp, Kp), lambda i: (0, 0)),
                  pl.BlockSpec((Kp, Cn), lambda i: (0, 0)),
                  pl.BlockSpec((1, Cn), lambda i: (0, 0))],
        out_specs=pl.BlockSpec((Mp, Cn), lambda i: (0, 0)),
        compiler_params=pltpu.CompilerParams(
            dimension_semantics=("arbitrary",)),
    )(patches, weight, bias2d)


# ----------------------------------------------------------------------------
# Glue: im2col patch extraction, one classifier block, full forward
# ----------------------------------------------------------------------------
def im2col(x_nhwc, kh, kw, stride):
    N, H, W, C = x_nhwc.shape
    oh = (H - kh) // stride + 1
    ow = (W - kw) // stride + 1
    cols = []
    for i in range(kh):
        for j in range(kw):
            cols.append(x_nhwc[:, i:i + stride * (oh - 1) + 1:stride,
                               j:j + stride * (ow - 1) + 1:stride, :])
    p = jnp.stack(cols, axis=3)  # (N, oh, ow, kh*kw, C)
    return p.reshape(N * oh * ow, kh * kw * C), oh, ow


def classifier_block(x_nhwc, w, b, gamma, beta, stride, final_layer,
                     eps=1e-5, slope=0.2):
    """x_nhwc: (N, H, W, Cin); w: (Cout, Cin, kh, kw) (PyTorch layout)."""
    cout, cin, kh, kw = w.shape
    N = x_nhwc.shape[0]

    # bf16 activations/operands for the MXU; cast before im2col so the 16x
    # replicated patch matrix is half the bytes.
    patches, oh, ow = im2col(x_nhwc.astype(jnp.bfloat16), kh, kw, stride)
    M = patches.shape[0]

    # PyTorch weight (Cout, Cin, kh, kw) -> (kh*kw*Cin, Cout) matching patch order.
    wm = jnp.transpose(w, (2, 3, 1, 0)).reshape(kh * kw * cin, cout)

    patches_p = _pad_to(_pad_to(patches, SUB, 0), LANE, 1)          # bf16
    wm_p = _pad_to(_pad_to(wm, LANE, 0), LANE, 1).astype(jnp.bfloat16)
    Cn = wm_p.shape[1]

    if final_layer:
        bias2d = _pad_to(b, LANE, 0).reshape(1, Cn).astype(jnp.float32)
        out = final_block_call(patches_p, wm_p, bias2d)             # f32
    else:
        # Conv bias is deliberately omitted: it cancels in training-mode BN,
        # and omitting it keeps zero-padded rows from corrupting the stats.
        gamma2d = _pad_to(gamma, LANE, 0).reshape(1, Cn).astype(jnp.float32)
        beta2d = _pad_to(beta, LANE, 0).reshape(1, Cn).astype(jnp.float32)
        out = bn_block_call(patches_p, wm_p, gamma2d, beta2d, M, eps, slope)

    return out[:M, :cout].reshape(N, oh, ow, cout)


def classifier_forward(image_nchw, params):
    x = jnp.transpose(image_nchw, (0, 2, 3, 1))  # NCHW -> NHWC
    strides = (2, 2, 3, 2)
    finals = (False, False, False, True)
    for p, s, f in zip(params, strides, finals):
        x = classifier_block(x, p["w"], p["b"], p["gamma"], p["beta"], s, f)
    N = x.shape[0]
    return x.reshape(N, -1)


def init_params(key, im_chan=3, n_classes=4, hidden_dim=16):
    dims = [(im_chan, hidden_dim),
            (hidden_dim, hidden_dim * 2),
            (hidden_dim * 2, hidden_dim * 4),
            (hidden_dim * 4, n_classes)]
    params = []
    for cin, cout in dims:
        key, k1, k2 = jax.random.split(key, 3)
        fan_in = cin * 4 * 4
        bound = 1.0 / (fan_in ** 0.5)
        w = jax.random.uniform(k1, (cout, cin, 4, 4), jnp.float32, -bound, bound)
        b = jax.random.uniform(k2, (cout,), jnp.float32, -bound, bound)
        params.append(dict(w=w, b=b,
                           gamma=jnp.ones((cout,), jnp.float32),
                           beta=jnp.zeros((cout,), jnp.float32)))
    return params


if __name__ == "__main__":
    key = jax.random.PRNGKey(0)
    key, kimg = jax.random.split(key)

    # Small CelebA-style input: batch=2, 3 channels, 64x64 so the stride
    # sequence (2,2,3,2) with 4x4 kernels reduces to 1x1 spatial at the end.
    image = jax.random.normal(kimg, (2, 3, 64, 64), jnp.float32)
    params = init_params(key, im_chan=3, n_classes=4, hidden_dim=16)

    fwd = jax.jit(classifier_forward)
    out = fwd(image, params)
    out = jax.block_until_ready(out)
    assert out.shape == (2, 4), out.shape
    print("KERNEL_OK")
</pallas_src>

<mosaic_0001>
module attributes {stable_mosaic.version = 11 : i64} {
  func.func @bn_block_kernel(%arg0: i32, %arg1: memref<1928x128xbf16, #tpu.memory_space<vmem>>, %arg2: memref<128x128xbf16, #tpu.memory_space<vmem>>, %arg3: memref<1x128xf32, #tpu.memory_space<vmem>>, %arg4: memref<1x128xf32, #tpu.memory_space<vmem>>, %arg5: memref<1928x128xbf16, #tpu.memory_space<vmem>>) attributes {dimension_semantics = [#tpu.dimension_semantics<arbitrary>], iteration_bounds = array<i64: 1>, scalar_prefetch = 0 : i64, scratch_operands = 0 : i64, tpu.core_type = #tpu.core_type<tc>, window_params = [{pipeline_mode = #tpu.pipeline_mode<synchronous>, transform_indices = @transform_0, window_bounds = array<i64: 1928, 128>}, {pipeline_mode = #tpu.pipeline_mode<synchronous>, transform_indices = @transform_1, window_bounds = array<i64: 128, 128>}, {pipeline_mode = #tpu.pipeline_mode<synchronous>, transform_indices = @transform_2, window_bounds = array<i64: 1, 128>}, {pipeline_mode = #tpu.pipeline_mode<synchronous>, transform_indices = @transform_3, window_bounds = array<i64: 1, 128>}, {pipeline_mode = #tpu.pipeline_mode<synchronous>, transform_indices = @transform_4, window_bounds = array<i64: 1928, 128>}]} {
    %c0 = arith.constant 0 : index
    %c0_0 = arith.constant 0 : index
    %0 = vector.load %arg1[%c0, %c0_0] : memref<1928x128xbf16, #tpu.memory_space<vmem>>, vector<1928x128xbf16>
    %c0_1 = arith.constant 0 : index
    %c0_2 = arith.constant 0 : index
    %1 = vector.load %arg2[%c0_1, %c0_2] : memref<128x128xbf16, #tpu.memory_space<vmem>>, vector<128x128xbf16>
    %cst = arith.constant dense<0.000000e+00> : vector<1928x128xf32>
    %2 = tpu.matmul %0, %1, %cst {dimension_numbers = #tpu.dot_dimension_numbers<[1], [0], [0], [1], [0, 0, 1, 1], [], []>} : vector<1928x128xbf16>, vector<128x128xbf16>, vector<1928x128xf32> -> vector<1928x128xf32>
    %cst_3 = arith.constant dense<0.000000e+00> : vector<128xf32>
    %3 = vector.multi_reduction <add>, %2, %cst_3 [0] : vector<1928x128xf32> to vector<128xf32>
    %4 = vector.shape_cast %3 : vector<128xf32> to vector<1x128xf32>
    %5 = arith.mulf %2, %2 : vector<1928x128xf32>
    %cst_4 = arith.constant dense<0.000000e+00> : vector<128xf32>
    %6 = vector.multi_reduction <add>, %5, %cst_4 [0] : vector<1928x128xf32> to vector<128xf32>
    %7 = vector.shape_cast %6 : vector<128xf32> to vector<1x128xf32>
    %cst_5 = arith.constant 5.20291389E-4 : f32
    %8 = vector.broadcast %cst_5 : f32 to vector<1x128xf32>
    %9 = arith.mulf %4, %8 : vector<1x128xf32>
    %cst_6 = arith.constant 5.20291389E-4 : f32
    %10 = vector.broadcast %cst_6 : f32 to vector<1x128xf32>
    %11 = arith.mulf %7, %10 : vector<1x128xf32>
    %12 = arith.mulf %9, %9 : vector<1x128xf32>
    %13 = arith.subf %11, %12 : vector<1x128xf32>
    %c0_7 = arith.constant 0 : index
    %c0_8 = arith.constant 0 : index
    %14 = vector.load %arg3[%c0_7, %c0_8] : memref<1x128xf32, #tpu.memory_space<vmem>>, vector<1x128xf32>
    %cst_9 = arith.constant 9.99999974E-6 : f32
    %15 = vector.broadcast %cst_9 : f32 to vector<1x128xf32>
    %16 = arith.addf %13, %15 : vector<1x128xf32>
    %17 = math.rsqrt %16 : vector<1x128xf32>
    %18 = arith.mulf %14, %17 : vector<1x128xf32>
    %19 = vector.broadcast %9 : vector<1x128xf32> to vector<1928x128xf32>
    %20 = arith.subf %2, %19 : vector<1928x128xf32>
    %21 = vector.broadcast %18 : vector<1x128xf32> to vector<1928x128xf32>
    %22 = arith.mulf %20, %21 : vector<1928x128xf32>
    %c0_10 = arith.constant 0 : index
    %c0_11 = arith.constant 0 : index
    %23 = vector.load %arg4[%c0_10, %c0_11] : memref<1x128xf32, #tpu.memory_space<vmem>>, vector<1x128xf32>
    %24 = vector.broadcast %23 : vector<1x128xf32> to vector<1928x128xf32>
    %25 = arith.addf %22, %24 : vector<1928x128xf32>
    %cst_12 = arith.constant 0.000000e+00 : f32
    %26 = vector.broadcast %cst_12 : f32 to vector<1928x128xf32>
    %27 = arith.cmpf oge, %25, %26 : vector<1928x128xf32>
    %cst_13 = arith.constant 2.000000e-01 : f32
    %28 = vector.broadcast %cst_13 : f32 to vector<1928x128xf32>
    %29 = arith.mulf %28, %25 : vector<1928x128xf32>
    %30 = arith.select %27, %25, %29 : vector<1928x128xi1>, vector<1928x128xf32>
    %31 = arith.truncf %30 : vector<1928x128xf32> to vector<1928x128xbf16>
    %c0_14 = arith.constant 0 : index
    %c0_15 = arith.constant 0 : index
    %32 = vector.load %arg5[%c0_14, %c0_15] : memref<1928x128xbf16, #tpu.memory_space<vmem>>, vector<1928x128xbf16>
    tpu.vector_store %arg5[%c0_14, %c0_15], %31 {strides = array<i32>} : memref<1928x128xbf16, #tpu.memory_space<vmem>>, vector<1928x128xbf16>,
    return
  }
  func.func @transform_0(%arg0: i32) -> (i32, i32) {
    %c0_i32 = arith.constant 0 : i32
    %c0_i32_0 = arith.constant 0 : i32
    %c0_i32_1 = arith.constant 0 : i32
    return %c0_i32, %c0_i32_0 : i32, i32
  }
  func.func @transform_1(%arg0: i32) -> (i32, i32) {
    %c0_i32 = arith.constant 0 : i32
    %c0_i32_0 = arith.constant 0 : i32
    %c0_i32_1 = arith.constant 0 : i32
    return %c0_i32, %c0_i32_0 : i32, i32
  }
  func.func @transform_2(%arg0: i32) -> (i32, i32) {
    %c0_i32 = arith.constant 0 : i32
    %c0_i32_0 = arith.constant 0 : i32
    %c0_i32_1 = arith.constant 0 : i32
    return %c0_i32, %c0_i32_0 : i32, i32
  }
  func.func @transform_3(%arg0: i32) -> (i32, i32) {
    %c0_i32 = arith.constant 0 : i32
    %c0_i32_0 = arith.constant 0 : i32
    %c0_i32_1 = arith.constant 0 : i32
    return %c0_i32, %c0_i32_0 : i32, i32
  }
  func.func @transform_4(%arg0: i32) -> (i32, i32) {
    %c0_i32 = arith.constant 0 : i32
    %c0_i32_0 = arith.constant 0 : i32
    %c0_i32_1 = arith.constant 0 : i32
    return %c0_i32, %c0_i32_0 : i32, i32
  }
}

module attributes {stable_mosaic.version = 11 : i64} {
  func.func @bn_block_kernel(%arg0: i32, %arg1: memref<392x256xbf16, #tpu.memory_space<vmem>>, %arg2: memref<256x128xbf16, #tpu.memory_space<vmem>>, %arg3: memref<1x128xf32, #tpu.memory_space<vmem>>, %arg4: memref<1x128xf32, #tpu.memory_space<vmem>>, %arg5: memref<392x128xbf16, #tpu.memory_space<vmem>>) attributes {dimension_semantics = [#tpu.dimension_semantics<arbitrary>], iteration_bounds = array<i64: 1>, scalar_prefetch = 0 : i64, scratch_operands = 0 : i64, tpu.core_type = #tpu.core_type<tc>, window_params = [{pipeline_mode = #tpu.pipeline_mode<synchronous>, transform_indices = @transform_0, window_bounds = array<i64: 392, 256>}, {pipeline_mode = #tpu.pipeline_mode<synchronous>, transform_indices = @transform_1, window_bounds = array<i64: 256, 128>}, {pipeline_mode = #tpu.pipeline_mode<synchronous>, transform_indices = @transform_2, window_bounds = array<i64: 1, 128>}, {pipeline_mode = #tpu.pipeline_mode<synchronous>, transform_indices = @transform_3, window_bounds = array<i64: 1, 128>}, {pipeline_mode = #tpu.pipeline_mode<synchronous>, transform_indices = @transform_4, window_bounds = array<i64: 392, 128>}]} {
    %c0 = arith.constant 0 : index
    %c0_0 = arith.constant 0 : index
    %0 = vector.load %arg1[%c0, %c0_0] : memref<392x256xbf16, #tpu.memory_space<vmem>>, vector<392x256xbf16>
    %c0_1 = arith.constant 0 : index
    %c0_2 = arith.constant 0 : index
    %1 = vector.load %arg2[%c0_1, %c0_2] : memref<256x128xbf16, #tpu.memory_space<vmem>>, vector<256x128xbf16>
    %cst = arith.constant dense<0.000000e+00> : vector<392x128xf32>
    %2 = tpu.matmul %0, %1, %cst {dimension_numbers = #tpu.dot_dimension_numbers<[1], [0], [0], [1], [0, 0, 1, 1], [], []>} : vector<392x256xbf16>, vector<256x128xbf16>, vector<392x128xf32> -> vector<392x128xf32>
    %cst_3 = arith.constant dense<0.000000e+00> : vector<128xf32>
    %3 = vector.multi_reduction <add>, %2, %cst_3 [0] : vector<392x128xf32> to vector<128xf32>
    %4 = vector.shape_cast %3 : vector<128xf32> to vector<1x128xf32>
    %5 = arith.mulf %2, %2 : vector<392x128xf32>
    %cst_4 = arith.constant dense<0.000000e+00> : vector<128xf32>
    %6 = vector.multi_reduction <add>, %5, %cst_4 [0] : vector<392x128xf32> to vector<128xf32>
    %7 = vector.shape_cast %6 : vector<128xf32> to vector<1x128xf32>
    %cst_5 = arith.constant 0.00255102036 : f32
    %8 = vector.broadcast %cst_5 : f32 to vector<1x128xf32>
    %9 = arith.mulf %4, %8 : vector<1x128xf32>
    %cst_6 = arith.constant 0.00255102036 : f32
    %10 = vector.broadcast %cst_6 : f32 to vector<1x128xf32>
    %11 = arith.mulf %7, %10 : vector<1x128xf32>
    %12 = arith.mulf %9, %9 : vector<1x128xf32>
    %13 = arith.subf %11, %12 : vector<1x128xf32>
    %c0_7 = arith.constant 0 : index
    %c0_8 = arith.constant 0 : index
    %14 = vector.load %arg3[%c0_7, %c0_8] : memref<1x128xf32, #tpu.memory_space<vmem>>, vector<1x128xf32>
    %cst_9 = arith.constant 9.99999974E-6 : f32
    %15 = vector.broadcast %cst_9 : f32 to vector<1x128xf32>
    %16 = arith.addf %13, %15 : vector<1x128xf32>
    %17 = math.rsqrt %16 : vector<1x128xf32>
    %18 = arith.mulf %14, %17 : vector<1x128xf32>
    %19 = vector.broadcast %9 : vector<1x128xf32> to vector<392x128xf32>
    %20 = arith.subf %2, %19 : vector<392x128xf32>
    %21 = vector.broadcast %18 : vector<1x128xf32> to vector<392x128xf32>
    %22 = arith.mulf %20, %21 : vector<392x128xf32>
    %c0_10 = arith.constant 0 : index
    %c0_11 = arith.constant 0 : index
    %23 = vector.load %arg4[%c0_10, %c0_11] : memref<1x128xf32, #tpu.memory_space<vmem>>, vector<1x128xf32>
    %24 = vector.broadcast %23 : vector<1x128xf32> to vector<392x128xf32>
    %25 = arith.addf %22, %24 : vector<392x128xf32>
    %cst_12 = arith.constant 0.000000e+00 : f32
    %26 = vector.broadcast %cst_12 : f32 to vector<392x128xf32>
    %27 = arith.cmpf oge, %25, %26 : vector<392x128xf32>
    %cst_13 = arith.constant 2.000000e-01 : f32
    %28 = vector.broadcast %cst_13 : f32 to vector<392x128xf32>
    %29 = arith.mulf %28, %25 : vector<392x128xf32>
    %30 = arith.select %27, %25, %29 : vector<392x128xi1>, vector<392x128xf32>
    %31 = arith.truncf %30 : vector<392x128xf32> to vector<392x128xbf16>
    %c0_14 = arith.constant 0 : index
    %c0_15 = arith.constant 0 : index
    %32 = vector.load %arg5[%c0_14, %c0_15] : memref<392x128xbf16, #tpu.memory_space<vmem>>, vector<392x128xbf16>
    tpu.vector_store %arg5[%c0_14, %c0_15], %31 {strides = array<i32>} : memref<392x128xbf16, #tpu.memory_space<vmem>>, vector<392x128xbf16>,
    return
  }
  func.func @transform_0(%arg0: i32) -> (i32, i32) {
    %c0_i32 = arith.constant 0 : i32
    %c0_i32_0 = arith.constant 0 : i32
    %c0_i32_1 = arith.constant 0 : i32
    return %c0_i32, %c0_i32_0 : i32, i32
  }
  func.func @transform_1(%arg0: i32) -> (i32, i32) {
    %c0_i32 = arith.constant 0 : i32
    %c0_i32_0 = arith.constant 0 : i32
    %c0_i32_1 = arith.constant 0 : i32
    return %c0_i32, %c0_i32_0 : i32, i32
  }
  func.func @transform_2(%arg0: i32) -> (i32, i32) {
    %c0_i32 = arith.constant 0 : i32
    %c0_i32_0 = arith.constant 0 : i32
    %c0_i32_1 = arith.constant 0 : i32
    return %c0_i32, %c0_i32_0 : i32, i32
  }
  func.func @transform_3(%arg0: i32) -> (i32, i32) {
    %c0_i32 = arith.constant 0 : i32
    %c0_i32_0 = arith.constant 0 : i32
    %c0_i32_1 = arith.constant 0 : i32
    return %c0_i32, %c0_i32_0 : i32, i32
  }
  func.func @transform_4(%arg0: i32) -> (i32, i32) {
    %c0_i32 = arith.constant 0 : i32
    %c0_i32_0 = arith.constant 0 : i32
    %c0_i32_1 = arith.constant 0 : i32
    return %c0_i32, %c0_i32_0 : i32, i32
  }
}

module attributes {stable_mosaic.version = 11 : i64} {
  func.func @bn_block_kernel(%arg0: i32, %arg1: memref<32x512xbf16, #tpu.memory_space<vmem>>, %arg2: memref<512x128xbf16, #tpu.memory_space<vmem>>, %arg3: memref<1x128xf32, #tpu.memory_space<vmem>>, %arg4: memref<1x128xf32, #tpu.memory_space<vmem>>, %arg5: memref<32x128xbf16, #tpu.memory_space<vmem>>) attributes {dimension_semantics = [#tpu.dimension_semantics<arbitrary>], iteration_bounds = array<i64: 1>, scalar_prefetch = 0 : i64, scratch_operands = 0 : i64, tpu.core_type = #tpu.core_type<tc>, window_params = [{pipeline_mode = #tpu.pipeline_mode<synchronous>, transform_indices = @transform_0, window_bounds = array<i64: 32, 512>}, {pipeline_mode = #tpu.pipeline_mode<synchronous>, transform_indices = @transform_1, window_bounds = array<i64: 512, 128>}, {pipeline_mode = #tpu.pipeline_mode<synchronous>, transform_indices = @transform_2, window_bounds = array<i64: 1, 128>}, {pipeline_mode = #tpu.pipeline_mode<synchronous>, transform_indices = @transform_3, window_bounds = array<i64: 1, 128>}, {pipeline_mode = #tpu.pipeline_mode<synchronous>, transform_indices = @transform_4, window_bounds = array<i64: 32, 128>}]} {
    %c0 = arith.constant 0 : index
    %c0_0 = arith.constant 0 : index
    %0 = vector.load %arg1[%c0, %c0_0] : memref<32x512xbf16, #tpu.memory_space<vmem>>, vector<32x512xbf16>
    %c0_1 = arith.constant 0 : index
    %c0_2 = arith.constant 0 : index
    %1 = vector.load %arg2[%c0_1, %c0_2] : memref<512x128xbf16, #tpu.memory_space<vmem>>, vector<512x128xbf16>
    %cst = arith.constant dense<0.000000e+00> : vector<32x128xf32>
    %2 = tpu.matmul %0, %1, %cst {dimension_numbers = #tpu.dot_dimension_numbers<[1], [0], [0], [1], [0, 0, 1, 1], [], []>} : vector<32x512xbf16>, vector<512x128xbf16>, vector<32x128xf32> -> vector<32x128xf32>
    %cst_3 = arith.constant dense<0.000000e+00> : vector<128xf32>
    %3 = vector.multi_reduction <add>, %2, %cst_3 [0] : vector<32x128xf32> to vector<128xf32>
    %4 = vector.shape_cast %3 : vector<128xf32> to vector<1x128xf32>
    %5 = arith.mulf %2, %2 : vector<32x128xf32>
    %cst_4 = arith.constant dense<0.000000e+00> : vector<128xf32>
    %6 = vector.multi_reduction <add>, %5, %cst_4 [0] : vector<32x128xf32> to vector<128xf32>
    %7 = vector.shape_cast %6 : vector<128xf32> to vector<1x128xf32>
    %cst_5 = arith.constant 3.125000e-02 : f32
    %8 = vector.broadcast %cst_5 : f32 to vector<1x128xf32>
    %9 = arith.mulf %4, %8 : vector<1x128xf32>
    %cst_6 = arith.constant 3.125000e-02 : f32
    %10 = vector.broadcast %cst_6 : f32 to vector<1x128xf32>
    %11 = arith.mulf %7, %10 : vector<1x128xf32>
    %12 = arith.mulf %9, %9 : vector<1x128xf32>
    %13 = arith.subf %11, %12 : vector<1x128xf32>
    %c0_7 = arith.constant 0 : index
    %c0_8 = arith.constant 0 : index
    %14 = vector.load %arg3[%c0_7, %c0_8] : memref<1x128xf32, #tpu.memory_space<vmem>>, vector<1x128xf32>
    %cst_9 = arith.constant 9.99999974E-6 : f32
    %15 = vector.broadcast %cst_9 : f32 to vector<1x128xf32>
    %16 = arith.addf %13, %15 : vector<1x128xf32>
    %17 = math.rsqrt %16 : vector<1x128xf32>
    %18 = arith.mulf %14, %17 : vector<1x128xf32>
    %19 = vector.broadcast %9 : vector<1x128xf32> to vector<32x128xf32>
    %20 = arith.subf %2, %19 : vector<32x128xf32>
    %21 = vector.broadcast %18 : vector<1x128xf32> to vector<32x128xf32>
    %22 = arith.mulf %20, %21 : vector<32x128xf32>
    %c0_10 = arith.constant 0 : index
    %c0_11 = arith.constant 0 : index
    %23 = vector.load %arg4[%c0_10, %c0_11] : memref<1x128xf32, #tpu.memory_space<vmem>>, vector<1x128xf32>
    %24 = vector.broadcast %23 : vector<1x128xf32> to vector<32x128xf32>
    %25 = arith.addf %22, %24 : vector<32x128xf32>
    %cst_12 = arith.constant 0.000000e+00 : f32
    %26 = vector.broadcast %cst_12 : f32 to vector<32x128xf32>
    %27 = arith.cmpf oge, %25, %26 : vector<32x128xf32>
    %cst_13 = arith.constant 2.000000e-01 : f32
    %28 = vector.broadcast %cst_13 : f32 to vector<32x128xf32>
    %29 = arith.mulf %28, %25 : vector<32x128xf32>
    %30 = arith.select %27, %25, %29 : vector<32x128xi1>, vector<32x128xf32>
    %31 = arith.truncf %30 : vector<32x128xf32> to vector<32x128xbf16>
    %c0_14 = arith.constant 0 : index
    %c0_15 = arith.constant 0 : index
    %32 = vector.load %arg5[%c0_14, %c0_15] : memref<32x128xbf16, #tpu.memory_space<vmem>>, vector<32x128xbf16>
    tpu.vector_store %arg5[%c0_14, %c0_15], %31 {strides = array<i32>} : memref<32x128xbf16, #tpu.memory_space<vmem>>, vector<32x128xbf16>,
    return
  }
  func.func @transform_0(%arg0: i32) -> (i32, i32) {
    %c0_i32 = arith.constant 0 : i32
    %c0_i32_0 = arith.constant 0 : i32
    %c0_i32_1 = arith.constant 0 : i32
    return %c0_i32, %c0_i32_0 : i32, i32
  }
  func.func @transform_1(%arg0: i32) -> (i32, i32) {
    %c0_i32 = arith.constant 0 : i32
    %c0_i32_0 = arith.constant 0 : i32
    %c0_i32_1 = arith.constant 0 : i32
    return %c0_i32, %c0_i32_0 : i32, i32
  }
  func.func @transform_2(%arg0: i32) -> (i32, i32) {
    %c0_i32 = arith.constant 0 : i32
    %c0_i32_0 = arith.constant 0 : i32
    %c0_i32_1 = arith.constant 0 : i32
    return %c0_i32, %c0_i32_0 : i32, i32
  }
  func.func @transform_3(%arg0: i32) -> (i32, i32) {
    %c0_i32 = arith.constant 0 : i32
    %c0_i32_0 = arith.constant 0 : i32
    %c0_i32_1 = arith.constant 0 : i32
    return %c0_i32, %c0_i32_0 : i32, i32
  }
  func.func @transform_4(%arg0: i32) -> (i32, i32) {
    %c0_i32 = arith.constant 0 : i32
    %c0_i32_0 = arith.constant 0 : i32
    %c0_i32_1 = arith.constant 0 : i32
    return %c0_i32, %c0_i32_0 : i32, i32
  }
}

module attributes {stable_mosaic.version = 11 : i64} {
  func.func @final_block_kernel(%arg0: i32, %arg1: memref<8x1024xbf16, #tpu.memory_space<vmem>>, %arg2: memref<1024x128xbf16, #tpu.memory_space<vmem>>, %arg3: memref<1x128xf32, #tpu.memory_space<vmem>>, %arg4: memref<8x128xf32, #tpu.memory_space<vmem>>) attributes {dimension_semantics = [#tpu.dimension_semantics<arbitrary>], iteration_bounds = array<i64: 1>, scalar_prefetch = 0 : i64, scratch_operands = 0 : i64, tpu.core_type = #tpu.core_type<tc>, window_params = [{pipeline_mode = #tpu.pipeline_mode<synchronous>, transform_indices = @transform_0, window_bounds = array<i64: 8, 1024>}, {pipeline_mode = #tpu.pipeline_mode<synchronous>, transform_indices = @transform_1, window_bounds = array<i64: 1024, 128>}, {pipeline_mode = #tpu.pipeline_mode<synchronous>, transform_indices = @transform_2, window_bounds = array<i64: 1, 128>}, {pipeline_mode = #tpu.pipeline_mode<synchronous>, transform_indices = @transform_3, window_bounds = array<i64: 8, 128>}]} {
    %c0 = arith.constant 0 : index
    %c0_0 = arith.constant 0 : index
    %0 = vector.load %arg1[%c0, %c0_0] : memref<8x1024xbf16, #tpu.memory_space<vmem>>, vector<8x1024xbf16>
    %c0_1 = arith.constant 0 : index
    %c0_2 = arith.constant 0 : index
    %1 = vector.load %arg2[%c0_1, %c0_2] : memref<1024x128xbf16, #tpu.memory_space<vmem>>, vector<1024x128xbf16>
    %cst = arith.constant dense<0.000000e+00> : vector<8x128xf32>
    %2 = tpu.matmul %0, %1, %cst {dimension_numbers = #tpu.dot_dimension_numbers<[1], [0], [0], [1], [0, 0, 1, 1], [], []>} : vector<8x1024xbf16>, vector<1024x128xbf16>, vector<8x128xf32> -> vector<8x128xf32>
    %c0_3 = arith.constant 0 : index
    %c0_4 = arith.constant 0 : index
    %3 = vector.load %arg3[%c0_3, %c0_4] : memref<1x128xf32, #tpu.memory_space<vmem>>, vector<1x128xf32>
    %4 = vector.broadcast %3 : vector<1x128xf32> to vector<8x128xf32>
    %5 = arith.addf %2, %4 : vector<8x128xf32>
    %c0_5 = arith.constant 0 : index
    %c0_6 = arith.constant 0 : index
    %6 = vector.load %arg4[%c0_5, %c0_6] : memref<8x128xf32, #tpu.memory_space<vmem>>, vector<8x128xf32>
    tpu.vector_store %arg4[%c0_5, %c0_6], %5 {strides = array<i32>} : memref<8x128xf32, #tpu.memory_space<vmem>>, vector<8x128xf32>,
    return
  }
  func.func @transform_0(%arg0: i32) -> (i32, i32) {
    %c0_i32 = arith.constant 0 : i32
    %c0_i32_0 = arith.constant 0 : i32
    %c0_i32_1 = arith.constant 0 : i32
    return %c0_i32, %c0_i32_0 : i32, i32
  }
  func.func @transform_1(%arg0: i32) -> (i32, i32) {
    %c0_i32 = arith.constant 0 : i32
    %c0_i32_0 = arith.constant 0 : i32
    %c0_i32_1 = arith.constant 0 : i32
    return %c0_i32, %c0_i32_0 : i32, i32
  }
  func.func @transform_2(%arg0: i32) -> (i32, i32) {
    %c0_i32 = arith.constant 0 : i32
    %c0_i32_0 = arith.constant 0 : i32
    %c0_i32_1 = arith.constant 0 : i32
    return %c0_i32, %c0_i32_0 : i32, i32
  }
  func.func @transform_3(%arg0: i32) -> (i32, i32) {
    %c0_i32 = arith.constant 0 : i32
    %c0_i32_0 = arith.constant 0 : i32
    %c0_i32_1 = arith.constant 0 : i32
    return %c0_i32, %c0_i32_0 : i32, i32
  }
}

</mosaic_0001>

<bundles_post_ra>
// kernel: classifier_forward.4
= control target key start
LH: loop header
LB: loop body
LE: loop exit
PB: predicated region body
PF: predicated region fallthrough
CT: control target
= control target key end

     0   :  { %v15325_v0 = vmov 0.0   ;;  %vm7567_vm0 = vmmov 0   ;;  %s15320_s1 = inlined_call_operand.vmem [shape: bf16[128,128], index: 1, kind: input, shape index: {}]   ;;  %s15321_s0 = inlined_call_operand.vmem [shape: bf16[1928,128], index: 0, kind: input, shape index: {}]   ;;  %s15322_s2 = inlined_call_operand.vmem [shape: f32[1,128], index: 2, kind: input, shape index: {}]   ;;  %s15323_s3 = inlined_call_operand.vmem [shape: f32[1,128], index: 3, kind: input, shape index: {}]   ;;  %s15324_s4 = inlined_call_operand.vmem [shape: bf16[1928,128], index: 4, kind: output, shape index: {}]  }
   0x1   :  { %6917 = vmatprep.subr.bf16.mxu0 %v15325_v0  ;;  %v7435_v1 = vld [vmem:[%s15320_s1] sm:$0xff]   ;;  %6933 = vmatprep.mubr.msk.bf16.mxu0 %vm7567_vm0, %v15325_v0  ;;  %v7436_v2 = vld [vmem:[%s15320_s1 + $0x8] sm:$0xff]   ;;  %v7437_v3 = vld [vmem:[%s15320_s1 + $0x10] sm:$0xff]  }
   0x2   :  { %7417 = vmatprep.subr.bf16.mxu1 %v15325_v0  ;;  %7177 = vmatprep.mubr.msk.bf16.mxu1 %vm7567_vm0, %v15325_v0  ;;  %v7438_v4 = vld [vmem:[%s15320_s1 + $0x18] sm:$0xff]   ;;  %v7439_v5 = vld [vmem:[%s15320_s1 + $0x20] sm:$0xff]   ;;  %v7440_v6 = vld [vmem:[%s15320_s1 + $0x28] sm:$0xff]  }
   0x3   :  { %6918 = vmatpush3.bf16.msra.mxu0 %v7435_v1  ;;  %7425 = vmatpush3.bf16.msra.mxu1 %v7435_v1  ;;  %v7441_v7 = vld [vmem:[%s15320_s1 + $0x30] sm:$0xff]   ;;  %v7442_v8 = vld [vmem:[%s15320_s1 + $0x38] sm:$0xff]   ;;  %v7443_v9 = vld [vmem:[%s15321_s0] sm:$0xff]  }
   0x4   :  { %6919 = vmatprep.subr.bf16.mxu0 %v15325_v0  ;;  %7418 = vmatprep.subr.bf16.mxu1 %v15325_v0  ;;  %v7444_v10 = vld [vmem:[%s15321_s0 + $0x8] sm:$0xff]   ;;  %v7445_v11 = vld [vmem:[%s15321_s0 + $0x10] sm:$0xff]   ;;  %v7446_v12 = vld [vmem:[%s15321_s0 + $0x18] sm:$0xff]  }
   0x5   :  { %v7447_v13 = vld [vmem:[%s15321_s0 + $0x20] sm:$0xff]   ;;  %v7448_v14 = vld [vmem:[%s15321_s0 + $0x28] sm:$0xff]   ;;  %v7449_v15 = vld [vmem:[%s15321_s0 + $0x30] sm:$0xff]  }
   0x6   :  { %v7450_v16 = vld [vmem:[%s15321_s0 + $0x38] sm:$0xff]   ;;  %v7451_v17 = vld [vmem:[%s15321_s0 + $0x40] sm:$0xff]   ;;  %v7452_v18 = vld [vmem:[%s15321_s0 + $0x48] sm:$0xff]  }
   0x7   :  { %6920 = vmatpush3.bf16.msra.mxu0 %v7436_v2  ;;  %7426 = vmatpush3.bf16.msra.mxu1 %v7436_v2  ;;  %v7453_v19 = vld [vmem:[%s15321_s0 + $0x50] sm:$0xff]   ;;  %v7454_v20 = vld [vmem:[%s15321_s0 + $0x58] sm:$0xff]   ;;  %v7455_v21 = vld [vmem:[%s15321_s0 + $0x60] sm:$0xff]  }
   0x8   :  { %6921 = vmatprep.subr.bf16.mxu0 %v15325_v0  ;;  %7419 = vmatprep.subr.bf16.mxu1 %v15325_v0  ;;  %v7456_v22 = vld [vmem:[%s15321_s0 + $0x68] sm:$0xff]   ;;  %v7457_v23 = vld [vmem:[%s15321_s0 + $0x70] sm:$0xff]   ;;  %v7458_v25 = vld [vmem:[%s15321_s0 + $0x78] sm:$0xff]  }
   0x9   :  { %v7474_v24 = vld [vmem:[%s15321_s0 + $0x1e8] sm:$0xff]   ;;  %v7476_v26 = vld [vmem:[%s15321_s0 + $0x1f0] sm:$0xff]   ;;  %v7459_v27 = vld [vmem:[%s15321_s0 + $0x80] sm:$0xff]  }
   0xa   :  { %v7478_v28 = vld [vmem:[%s15321_s0 + $0x1f8] sm:$0xff]   ;;  %v7460_v29 = vld [vmem:[%s15321_s0 + $0x88] sm:$0xff]   ;;  %v7480_v30 = vld [vmem:[%s15321_s0 + $0x200] sm:$0xff]  }
   0xb   :  { %6922 = vmatpush3.bf16.msra.mxu0 %v7437_v3  ;;  %7427 = vmatpush3.bf16.msra.mxu1 %v7437_v3  ;;  %v7461_v31 = vld [vmem:[%s15321_s0 + $0x90] sm:$0xff]   ;;  %v7482_v32 = vld [vmem:[%s15321_s0 + $0x208] sm:$0xff]   ;;  %v7462_v33 = vld [vmem:[%s15321_s0 + $0x98] sm:$0xff]  }
   0xc   :  { %6923 = vmatprep.subr.bf16.mxu0 %v15325_v0  ;;  %7420 = vmatprep.subr.bf16.mxu1 %v15325_v0  ;;  %v7484_v34 = vld [vmem:[%s15321_s0 + $0x210] sm:$0xff]   ;;  %v7463_v35 = vld [vmem:[%s15321_s0 + $0xa0] sm:$0xff]   ;;  %v7486_v36 = vld [vmem:[%s15321_s0 + $0x218] sm:$0xff]  }
   0xd   :  { %v7464_v37 = vld [vmem:[%s15321_s0 + $0xa8] sm:$0xff]   ;;  %v7488_v38 = vld [vmem:[%s15321_s0 + $0x220] sm:$0xff]   ;;  %v7465_v39 = vld [vmem:[%s15321_s0 + $0xb0] sm:$0xff]  }
   0xe   :  { %v7490_v40 = vld [vmem:[%s15321_s0 + $0x228] sm:$0xff]   ;;  %v7466_v41 = vld [vmem:[%s15321_s0 + $0xb8] sm:$0xff]   ;;  %v7492_v42 = vld [vmem:[%s15321_s0 + $0x230] sm:$0xff]  }
   0xf   :  { %6924 = vmatpush3.bf16.msra.mxu0 %v7438_v4  ;;  %7428 = vmatpush3.bf16.msra.mxu1 %v7438_v4  ;;  %v7467_v43 = vld [vmem:[%s15321_s0 + $0xc0] sm:$0xff]   ;;  %v7494_v44 = vld [vmem:[%s15321_s0 + $0x238] sm:$0xff]   ;;  %v7468_v45 = vld [vmem:[%s15321_s0 + $0xc8] sm:$0xff]  }
  0x10   :  { %6925 = vmatprep.subr.bf16.mxu0 %v15325_v0  ;;  %7421 = vmatprep.subr.bf16.mxu1 %v15325_v0  ;;  %v7496_v46 = vld [vmem:[%s15321_s0 + $0x240] sm:$0xff]   ;;  %v7469_v47 = vld [vmem:[%s15321_s0 + $0xd0] sm:$0xff]   ;;  %v7498_v49 = vld [vmem:[%s15321_s0 + $0x248] sm:$0xff]  }
  0x11   :  { %v7470_v51 = vld [vmem:[%s15321_s0 + $0xd8] sm:$0xff]   ;;  %v7500_v59 = vld [vmem:[%s15321_s0 + $0x250] sm:$0xff]   ;;  %v7471_v63 = vld [vmem:[%s15321_s0 + $0xe0] sm:$0xff]  }
  0x13   :  { %6926 = vmatpush3.bf16.msra.mxu0 %v7439_v5  ;;  %7429 = vmatpush3.bf16.msra.mxu1 %v7439_v5 }
  0x14   :  { %6927 = vmatprep.subr.bf16.mxu0 %v15325_v0  ;;  %7422 = vmatprep.subr.bf16.mxu1 %v15325_v0 }
  0x17   :  { %6928 = vmatpush3.bf16.msra.mxu0 %v7440_v6  ;;  %7430 = vmatpush3.bf16.msra.mxu1 %v7440_v6 }
  0x18   :  { %6929 = vmatprep.subr.bf16.mxu0 %v15325_v0  ;;  %7423 = vmatprep.subr.bf16.mxu1 %v15325_v0 }
  0x1b   :  { %6930 = vmatpush3.bf16.msra.mxu0 %v7441_v7  ;;  %7431 = vmatpush3.bf16.msra.mxu1 %v7441_v7 }
  0x1c   :  { %6931 = vmatprep.subr.bf16.mxu0 %v15325_v0  ;;  %7424 = vmatprep.subr.bf16.mxu1 %v15325_v0 }
  0x1f   :  { %6932 = vmatpush3.bf16.msra.mxu0 %v7442_v8  ;;  %7432 = vmatpush3.bf16.msra.mxu1 %v7442_v8  ;;  %v7502_v8 = vld [vmem:[%s15321_s0 + $0x258] sm:$0xff]  }
  0x22   :  { %6934 = vmatmul.mubr.bf16.vlgmr.msra.gmra.mrb[0].mxu0 %v7443_v9  ;;  %7178 = vmatmul.mubr.bf16.vlgmr.msra.gmra.mrb[0].mxu1 %v7474_v24  ;;  %v7473_v24 = vld [vmem:[%s15321_s0 + $0xf0] sm:$0xff]  }
  0x23   :  { %6937 = vmatprep.mubr.msk.bf16.mxu0 %vm7567_vm0, %v15325_v0  ;;  %7181 = vmatprep.mubr.msk.bf16.mxu1 %vm7567_vm0, %v15325_v0 }
  0x2a   :  { %6938 = vmatmul.mubr.bf16.gmra.mrb[4].mxu0 %v7444_v10  ;;  %7182 = vmatmul.mubr.bf16.gmra.mrb[4].mxu1 %v7476_v26 }
  0x2b   :  { %6941 = vmatprep.mubr.msk.bf16.mxu0 %vm7567_vm0, %v15325_v0  ;;  %7185 = vmatprep.mubr.msk.bf16.mxu1 %vm7567_vm0, %v15325_v0 }
  0x32   :  { %6942 = vmatmul.mubr.bf16.gmra.mrb[8].mxu0 %v7445_v11  ;;  %7186 = vmatmul.mubr.bf16.gmra.mrb[8].mxu1 %v7478_v28 }
  0x33   :  { %6945 = vmatprep.mubr.msk.bf16.mxu0 %vm7567_vm0, %v15325_v0  ;;  %7189 = vmatprep.mubr.msk.bf16.mxu1 %vm7567_vm0, %v15325_v0 }
  0x3a   :  { %6946 = vmatmul.mubr.bf16.gmra.mrb[12].mxu0 %v7446_v12  ;;  %7190 = vmatmul.mubr.bf16.gmra.mrb[12].mxu1 %v7480_v30  ;;  %v7472_v12 = vld [vmem:[%s15321_s0 + $0xe8] sm:$0xff]  }
  0x3b   :  { %6949 = vmatprep.mubr.msk.bf16.mxu0 %vm7567_vm0, %v15325_v0  ;;  %7193 = vmatprep.mubr.msk.bf16.mxu1 %vm7567_vm0, %v15325_v0 }
  0x42   :  { %6950 = vmatmul.mubr.bf16.gmra.mrb[16].mxu0 %v7447_v13  ;;  %7194 = vmatmul.mubr.bf16.gmra.mrb[16].mxu1 %v7482_v32  ;;  %v7506_v32 = vld [vmem:[%s15321_s0 + $0x268] sm:$0xff]  }
  0x43   :  { %6953 = vmatprep.mubr.msk.bf16.mxu0 %vm7567_vm0, %v15325_v0  ;;  %7197 = vmatprep.mubr.msk.bf16.mxu1 %vm7567_vm0, %v15325_v0 }
  0x4a   :  { %6954 = vmatmul.mubr.bf16.gmra.mrb[20].mxu0 %v7448_v14  ;;  %7198 = vmatmul.mubr.bf16.gmra.mrb[20].mxu1 %v7484_v34 }
  0x4b   :  { %6957 = vmatprep.mubr.msk.bf16.mxu0 %vm7567_vm0, %v15325_v0  ;;  %7201 = vmatprep.mubr.msk.bf16.mxu1 %vm7567_vm0, %v15325_v0 }
  0x52   :  { %6958 = vmatmul.mubr.bf16.gmra.mrb[24].mxu0 %v7449_v15  ;;  %7202 = vmatmul.mubr.bf16.gmra.mrb[24].mxu1 %v7486_v36  ;;  %v7475_v36 = vld [vmem:[%s15321_s0 + $0xf8] sm:$0xff]  }
  0x53   :  { %6961 = vmatprep.mubr.msk.bf16.mxu0 %vm7567_vm0, %v15325_v0  ;;  %7205 = vmatprep.mubr.msk.bf16.mxu1 %vm7567_vm0, %v15325_v0 }
  0x5a   :  { %6962 = vmatmul.mubr.bf16.gmra.mrb[28].mxu0 %v7450_v16  ;;  %7206 = vmatmul.mubr.bf16.gmra.mrb[28].mxu1 %v7488_v38 }
  0x5b   :  { %6965 = vmatprep.mubr.msk.bf16.mxu0 %vm7567_vm0, %v15325_v0  ;;  %7209 = vmatprep.mubr.msk.bf16.mxu1 %vm7567_vm0, %v15325_v0 }
  0x62   :  { %6966 = vmatmul.mubr.bf16.gmra.mrb[32].mxu0 %v7451_v17  ;;  %7210 = vmatmul.mubr.bf16.gmra.mrb[32].mxu1 %v7490_v40 }
  0x63   :  { %6969 = vmatprep.mubr.msk.bf16.mxu0 %vm7567_vm0, %v15325_v0  ;;  %7213 = vmatprep.mubr.msk.bf16.mxu1 %vm7567_vm0, %v15325_v0 }
  0x6a   :  { %6970 = vmatmul.mubr.bf16.gmra.mrb[36].mxu0 %v7452_v18  ;;  %7214 = vmatmul.mubr.bf16.gmra.mrb[36].mxu1 %v7492_v42 }
  0x6b   :  { %6973 = vmatprep.mubr.msk.bf16.mxu0 %vm7567_vm0, %v15325_v0  ;;  %7217 = vmatprep.mubr.msk.bf16.mxu1 %vm7567_vm0, %v15325_v0 }
  0x72   :  { %6974 = vmatmul.mubr.bf16.gmra.mrb[40].mxu0 %v7453_v19  ;;  %7218 = vmatmul.mubr.bf16.gmra.mrb[40].mxu1 %v7494_v44  ;;  %v7508_v44 = vld [vmem:[%s15321_s0 + $0x270] sm:$0xff]  }
  0x73   :  { %6977 = vmatprep.mubr.msk.bf16.mxu0 %vm7567_vm0, %v15325_v0  ;;  %7221 = vmatprep.mubr.msk.bf16.mxu1 %vm7567_vm0, %v15325_v0 }
  0x7a   :  { %6978 = vmatmul.mubr.bf16.gmra.mrb[44].mxu0 %v7454_v20  ;;  %7222 = vmatmul.mubr.bf16.gmra.mrb[44].mxu1 %v7496_v46  ;;  %v7504_v20 = vld [vmem:[%s15321_s0 + $0x260] sm:$0xff]  }
  0x7b   :  { %6981 = vmatprep.mubr.msk.bf16.mxu0 %vm7567_vm0, %v15325_v0  ;;  %7225 = vmatprep.mubr.msk.bf16.mxu1 %vm7567_vm0, %v15325_v0 }
  0x82   :  { %6982 = vmatmul.mubr.bf16.gmra.mrb[48].mxu0 %v7455_v21  ;;  %7226 = vmatmul.mubr.bf16.gmra.mrb[48].mxu1 %v7498_v49  ;;  %v7477_v49 = vld [vmem:[%s15321_s0 + $0x100] sm:$0xff]  }
  0x83   :  { %6985 = vmatprep.mubr.msk.bf16.mxu0 %vm7567_vm0, %v15325_v0  ;;  %7229 = vmatprep.mubr.msk.bf16.mxu1 %vm7567_vm0, %v15325_v0 }
  0x8a   :  { %6986 = vmatmul.mubr.bf16.gmra.mrb[52].mxu0 %v7456_v22  ;;  %7230 = vmatmul.mubr.bf16.gmra.mrb[52].mxu1 %v7500_v59  ;;  %v7510_v59 = vld [vmem:[%s15321_s0 + $0x278] sm:$0xff]  }
  0x8b   :  { %6989 = vmatprep.mubr.msk.bf16.mxu0 %vm7567_vm0, %v15325_v0  ;;  %7233 = vmatprep.mubr.msk.bf16.mxu1 %vm7567_vm0, %v15325_v0 }
  0x92   :  { %6990 = vmatmul.mubr.bf16.gmra.mrb[56].mxu0 %v7457_v23  ;;  %7234 = vmatmul.mubr.bf16.gmra.mrb[56].mxu1 %v7502_v8 }
  0x93   :  { %6993 = vmatprep.mubr.msk.bf16.mxu0 %vm7567_vm0, %v15325_v0  ;;  %7237 = vmatprep.mubr.msk.bf16.mxu1 %vm7567_vm0, %v15325_v0 }
  0x9a   :  { %6994 = vmatmul.mubr.bf16.gmra.mrb[60].mxu0 %v7458_v25  ;;  %7238 = vmatmul.mubr.bf16.gmra.mrb[60].mxu1 %v7504_v20 }
  0x9b   :  { %6997 = vmatprep.mubr.msk.bf16.mxu0 %vm7567_vm0, %v15325_v0  ;;  %7241 = vmatprep.mubr.msk.bf16.mxu1 %vm7567_vm0, %v15325_v0 }
  0xa2   :  { %6998 = vmatmul.mubr.bf16.gmra.mrb[64].mxu0 %v7459_v27  ;;  %7242 = vmatmul.mubr.bf16.gmra.mrb[64].mxu1 %v7506_v32 }
  0xa3   :  { %7001 = vmatprep.mubr.msk.bf16.mxu0 %vm7567_vm0, %v15325_v0  ;;  %7245 = vmatprep.mubr.msk.bf16.mxu1 %vm7567_vm0, %v15325_v0 }
  0xaa   :  { %7002 = vmatmul.mubr.bf16.gmra.mrb[68].mxu0 %v7460_v29  ;;  %7246 = vmatmul.mubr.bf16.gmra.mrb[68].mxu1 %v7508_v44  ;;  %v7485_v44 = vld [vmem:[%s15321_s0 + $0x120] sm:$0xff]  }
  0xab   :  { %7005 = vmatprep.mubr.msk.bf16.mxu0 %vm7567_vm0, %v15325_v0  ;;  %7249 = vmatprep.mubr.msk.bf16.mxu1 %vm7567_vm0, %v15325_v0 }
  0xb2   :  { %7006 = vmatmul.mubr.bf16.gmra.mrb[72].mxu0 %v7461_v31  ;;  %7250 = vmatmul.mubr.bf16.gmra.mrb[72].mxu1 %v7510_v59 }
  0xb3   :  { %7009 = vmatprep.mubr.msk.bf16.mxu0 %vm7567_vm0, %v15325_v0  ;;  %7253 = vmatprep.mubr.msk.bf16.mxu1 %vm7567_vm0, %v15325_v0 }
  0xba   :  { %7010 = vmatmul.mubr.bf16.gmra.mrb[76].mxu0 %v7462_v33 }
  0xbb   :  { %7013 = vmatprep.mubr.msk.bf16.mxu0 %vm7567_vm0, %v15325_v0 }
  0xc2   :  { %7014 = vmatmul.mubr.bf16.gmra.mrb[80].mxu0 %v7463_v35 }
  0xc3   :  { %7017 = vmatprep.mubr.msk.bf16.mxu0 %vm7567_vm0, %v15325_v0 }
  0xca   :  { %7018 = vmatmul.mubr.bf16.gmra.mrb[84].mxu0 %v7464_v37 }
  0xcb   :  { %7021 = vmatprep.mubr.msk.bf16.mxu0 %vm7567_vm0, %v15325_v0 }
  0xd2   :  { %7022 = vmatmul.mubr.bf16.gmra.mrb[88].mxu0 %v7465_v39 }
  0xd3   :  { %7025 = vmatprep.mubr.msk.bf16.mxu0 %vm7567_vm0, %v15325_v0 }
  0xda   :  { %7026 = vmatmul.mubr.bf16.gmra.mrb[92].mxu0 %v7466_v41 }
  0xdb   :  { %7029 = vmatprep.mubr.msk.bf16.mxu0 %vm7567_vm0, %v15325_v0 }
  0xe2   :  { %7030 = vmatmul.mubr.bf16.gmra.mrb[96].mxu0 %v7467_v43 }
  0xe3   :  { %7033 = vmatprep.mubr.msk.bf16.mxu0 %vm7567_vm0, %v15325_v0 }
  0xea   :  { %7034 = vmatmul.mubr.bf16.gmra.mrb[100].mxu0 %v7468_v45 }
  0xeb   :  { %7037 = vmatprep.mubr.msk.bf16.mxu0 %vm7567_vm0, %v15325_v0 }
  0xf2   :  { %7038 = vmatmul.mubr.bf16.gmra.mrb[104].mxu0 %v7469_v47 }
  0xf3   :  { %7041 = vmatprep.mubr.msk.bf16.mxu0 %vm7567_vm0, %v15325_v0 }
  0xf5   :  { %v7832_v48 = vpop.f32.mrb[0].mxu0 }
  0xf6   :  { %15991 = vst [vmem:[#allocation2_spill] sm:$0xff] %v7832_v48  ;;  %v6935_v50 = vpop.f32.mrb[1].mxu0  ;;  %v2293_v53 = vmul.f32 %v7832_v48, %v7832_v48 }
  0xf7   :  { %v7840_v52 = vpop.f32.mrb[2].mxu0 }
  0xf8   :  { %15992 = vst [vmem:[#allocation3_spill] sm:$0xff] %v7840_v52  ;;  %v2047_v54 = vadd.f32 %v7840_v52, %v7832_v48  ;;  %v2294_v55 = vmul.f32 %v7840_v52, %v7840_v52  ;;  %v6936_v56 = vpop.f32.mrb[3].mxu0 }
  0xfa   :  { %v2534_v57 = vadd.f32 %v2294_v55, %v2293_v53  ;;  %7042 = vmatmul.mubr.bf16.gmra.mrb[108].mxu0 %v7470_v51 }
  0xfb   :  { %7045 = vmatprep.mubr.msk.bf16.mxu0 %vm7567_vm0, %v15325_v0 }
  0xfd   :  { %v7852_v58 = vpop.f32.mrb[4].mxu0 }
  0xfe   :  { %15993 = vst [vmem:[#allocation4_spill] sm:$0xff] %v7852_v58  ;;  %v2048_v60 = vadd.f32 %v2047_v54, %v7852_v58  ;;  %v2295_v61 = vmul.f32 %v7852_v58, %v7852_v58  ;;  %v6939_v62 = vpop.f32.mrb[5].mxu0 }
  0xff   :  { %v7863_v1 = vpop.f32.mrb[6].mxu0 }
 0x100   :  { %15994 = vst [vmem:[#allocation5_spill] sm:$0xff] %v7863_v1  ;;  %v2535_v2 = vadd.f32 %v2534_v57, %v2295_v61  ;;  %v2049_v3 = vadd.f32 %v2048_v60, %v7863_v1  ;;  %v2296_v4 = vmul.f32 %v7863_v1, %v7863_v1  ;;  %v6940_v5 = vpop.f32.mrb[7].mxu0 }
 0x102   :  { %v2536_v6 = vadd.f32 %v2535_v2, %v2296_v4  ;;  %7046 = vmatmul.mubr.bf16.gmra.mrb[112].mxu0 %v7471_v63  ;;  %v7479_v63 = vld [vmem:[%s15321_s0 + $0x108] sm:$0xff]  }
 0x103   :  { %7049 = vmatprep.mubr.msk.bf16.mxu0 %vm7567_vm0, %v15325_v0 }
 0x105   :  { %v7872_v7 = vpop.f32.mrb[8].mxu0 }
 0x106   :  { %15995 = vst [vmem:[#allocation6_spill] sm:$0xff] %v7872_v7  ;;  %v2050_v9 = vadd.f32 %v2049_v3, %v7872_v7  ;;  %v2297_v10 = vmul.f32 %v7872_v7, %v7872_v7  ;;  %v6943_v11 = vpop.f32.mrb[9].mxu0 }
 0x107   :  { %v7883_v13 = vpop.f32.mrb[10].mxu0 }
 0x108   :  { %15996 = vst [vmem:[#allocation7_spill] sm:$0xff] %v7883_v13  ;;  %v2537_v14 = vadd.f32 %v2536_v6, %v2297_v10  ;;  %v2051_v15 = vadd.f32 %v2050_v9, %v7883_v13  ;;  %v2298_v16 = vmul.f32 %v7883_v13, %v7883_v13  ;;  %v6944_v17 = vpop.f32.mrb[11].mxu0  ;;  %v7512_v10 = vld [vmem:[%s15321_s0 + $0x280] sm:$0xff]  }
 0x109   :  { %7254 = vmatmul.mubr.bf16.gmra.mrb[76].mxu1 %v7512_v10  ;;  %v7520_v10 = vld [vmem:[%s15321_s0 + $0x2a0] sm:$0xff]  }
 0x10a   :  { %v2538_v18 = vadd.f32 %v2537_v14, %v2298_v16  ;;  %7050 = vmatmul.mubr.bf16.gmra.mrb[116].mxu0 %v7472_v12  ;;  %7257 = vmatprep.mubr.msk.bf16.mxu1 %vm7567_vm0, %v15325_v0 }
 0x10b   :  { %7053 = vmatprep.mubr.msk.bf16.mxu0 %vm7567_vm0, %v15325_v0 }
 0x10d   :  { %v7892_v19 = vpop.f32.mrb[12].mxu0 }
 0x10e   :  { %15997 = vst [vmem:[#allocation8_spill] sm:$0xff] %v7892_v19  ;;  %v2052_v21 = vadd.f32 %v2051_v15, %v7892_v19  ;;  %v2299_v22 = vmul.f32 %v7892_v19, %v7892_v19  ;;  %v6947_v23 = vpop.f32.mrb[13].mxu0  ;;  %v7481_v15 = vld [vmem:[%s15321_s0 + $0x110] sm:$0xff]  }
 0x10f   :  { %v7903_v25 = vpop.f32.mrb[14].mxu0 }
 0x110   :  { %15998 = vst [vmem:[#allocation9_spill] sm:$0xff] %v7903_v25  ;;  %v2539_v26 = vadd.f32 %v2538_v18, %v2299_v22  ;;  %v2053_v27 = vadd.f32 %v2052_v21, %v7903_v25  ;;  %v2300_v28 = vmul.f32 %v7903_v25, %v7903_v25  ;;  %v6948_v29 = vpop.f32.mrb[15].mxu0 }
 0x111   :  { %v7483_v29 = vld [vmem:[%s15321_s0 + $0x118] sm:$0xff]  }
 0x112   :  { %v2540_v30 = vadd.f32 %v2539_v26, %v2300_v28  ;;  %7054 = vmatmul.mubr.bf16.gmra.mrb[120].mxu0 %v7473_v24  ;;  %v7514_v24 = vld [vmem:[%s15321_s0 + $0x288] sm:$0xff]  }
 0x113   :  { %7057 = vmatprep.mubr.msk.bf16.mxu0 %vm7567_vm0, %v15325_v0  ;;  %7258 = vmatmul.mubr.bf16.gmra.mrb[80].mxu1 %v7514_v24 }
 0x114   :  { %7261 = vmatprep.mubr.msk.bf16.mxu1 %vm7567_vm0, %v15325_v0 }
 0x115   :  { %v7912_v31 = vpop.f32.mrb[16].mxu0 }
 0x116   :  { %15999 = vst [vmem:[#allocation10_spill] sm:$0xff] %v7912_v31  ;;  %v2054_v33 = vadd.f32 %v2053_v27, %v7912_v31  ;;  %v2301_v34 = vmul.f32 %v7912_v31, %v7912_v31  ;;  %v6951_v35 = vpop.f32.mrb[17].mxu0 }
 0x117   :  { %v7923_v37 = vpop.f32.mrb[18].mxu0 }
 0x118   :  { %16000 = vst [vmem:[#allocation11_spill] sm:$0xff] %v7923_v37  ;;  %v2541_v38 = vadd.f32 %v2540_v30, %v2301_v34  ;;  %v2055_v39 = vadd.f32 %v2054_v33, %v7923_v37  ;;  %v2302_v40 = vmul.f32 %v7923_v37, %v7923_v37  ;;  %v6952_v41 = vpop.f32.mrb[19].mxu0 }
 0x11a   :  { %v2542_v42 = vadd.f32 %v2541_v38, %v2302_v40  ;;  %7058 = vmatmul.mubr.bf16.gmra.mrb[124].mxu0 %v7475_v36 }
 0x11b   :  { %7061 = vmatprep.mubr.msk.bf16.mxu0 %vm7567_vm0, %v15325_v0 }
 0x11d   :  { %v7932_v43 = vpop.f32.mrb[20].mxu0 }
 0x11e   :  { %16001 = vst [vmem:[#allocation12_spill] sm:$0xff] %v7932_v43  ;;  %v2056_v45 = vadd.f32 %v2055_v39, %v7932_v43  ;;  %v2303_v46 = vmul.f32 %v7932_v43, %v7932_v43  ;;  %v6955_v47 = vpop.f32.mrb[21].mxu0  ;;  %v7516_v39 = vld [vmem:[%s15321_s0 + $0x290] sm:$0xff]  }
 0x11f   :  { %v7943_v50 = vpop.f32.mrb[22].mxu0  ;;  %7262 = vmatmul.mubr.bf16.gmra.mrb[84].mxu1 %v7516_v39 }
 0x120   :  { %16002 = vst [vmem:[#allocation13_spill] sm:$0xff] %v7943_v50  ;;  %v2543_v51 = vadd.f32 %v2542_v42, %v2303_v46  ;;  %v2057_v53 = vadd.f32 %v2056_v45, %v7943_v50  ;;  %v2304_v54 = vmul.f32 %v7943_v50, %v7943_v50  ;;  %v6956_v55 = vpop.f32.mrb[23].mxu0  ;;  %7265 = vmatprep.mubr.msk.bf16.mxu1 %vm7567_vm0, %v15325_v0 }
 0x121   :  { %v7518_v55 = vld [vmem:[%s15321_s0 + $0x298] sm:$0xff]  }
 0x122   :  { %v2544_v56 = vadd.f32 %v2543_v51, %v2304_v54  ;;  %7062 = vmatmul.mubr.bf16.gmra.mrb[128].mxu0 %v7477_v49 }
 0x123   :  { %7065 = vmatprep.mubr.msk.bf16.mxu0 %vm7567_vm0, %v15325_v0 }
 0x125   :  { %v7952_v57 = vpop.f32.mrb[24].mxu0 }
 0x126   :  { %16003 = vst [vmem:[#allocation14_spill] sm:$0xff] %v7952_v57  ;;  %v2058_v60 = vadd.f32 %v2057_v53, %v7952_v57  ;;  %v2305_v61 = vmul.f32 %v7952_v57, %v7952_v57  ;;  %v6959_v62 = vpop.f32.mrb[25].mxu0 }
 0x127   :  { %v7963_v2 = vpop.f32.mrb[26].mxu0  ;;  %7266 = vmatmul.mubr.bf16.gmra.mrb[88].mxu1 %v7518_v55 }
 0x128   :  { %16004 = vst [vmem:[#allocation15_spill] sm:$0xff] %v7963_v2  ;;  %v2545_v3 = vadd.f32 %v2544_v56, %v2305_v61  ;;  %v2059_v4 = vadd.f32 %v2058_v60, %v7963_v2  ;;  %v2306_v5 = vmul.f32 %v7963_v2, %v7963_v2  ;;  %v6960_v6 = vpop.f32.mrb[27].mxu0  ;;  %v7487_v61 = vld [vmem:[%s15321_s0 + $0x128] sm:$0xff]   ;;  %7269 = vmatprep.mubr.msk.bf16.mxu1 %vm7567_vm0, %v15325_v0 }
 0x12a   :  { %v2546_v8 = vadd.f32 %v2545_v3, %v2306_v5  ;;  %7066 = vmatmul.mubr.bf16.gmra.mrb[132].mxu0 %v7479_v63 }
 0x12b   :  { %7069 = vmatprep.mubr.msk.bf16.mxu0 %vm7567_vm0, %v15325_v0 }
 0x12d   :  { %v7972_v9 = vpop.f32.mrb[28].mxu0 }
 0x12e   :  { %16005 = vst [vmem:[#allocation16_spill] sm:$0xff] %v7972_v9  ;;  %v2060_v11 = vadd.f32 %v2059_v4, %v7972_v9  ;;  %v2307_v12 = vmul.f32 %v7972_v9, %v7972_v9  ;;  %v6963_v14 = vpop.f32.mrb[29].mxu0 }
 0x12f   :  { %v7983_v16 = vpop.f32.mrb[30].mxu0  ;;  %7270 = vmatmul.mubr.bf16.gmra.mrb[92].mxu1 %v7520_v10  ;;  %v7495_v10 = vld [vmem:[%s15321_s0 + $0x148] sm:$0xff]  }
 0x130   :  { %16006 = vst [vmem:[#allocation17_spill] sm:$0xff] %v7983_v16  ;;  %v2547_v17 = vadd.f32 %v2546_v8, %v2307_v12  ;;  %v2061_v18 = vadd.f32 %v2060_v11, %v7983_v16  ;;  %v2308_v20 = vmul.f32 %v7983_v16, %v7983_v16  ;;  %v6964_v21 = vpop.f32.mrb[31].mxu0  ;;  %7273 = vmatprep.mubr.msk.bf16.mxu1 %vm7567_vm0, %v15325_v0 }
 0x132   :  { %v2548_v22 = vadd.f32 %v2547_v17, %v2308_v20  ;;  %7070 = vmatmul.mubr.bf16.gmra.mrb[136].mxu0 %v7481_v15  ;;  %v7489_v15 = vld [vmem:[%s15321_s0 + $0x130] sm:$0xff]  }
 0x133   :  { %7073 = vmatprep.mubr.msk.bf16.mxu0 %vm7567_vm0, %v15325_v0 }
 0x135   :  { %v7992_v23 = vpop.f32.mrb[32].mxu0 }
 0x136   :  { %16007 = vst [vmem:[#allocation18_spill] sm:$0xff] %v7992_v23  ;;  %v2062_v26 = vadd.f32 %v2061_v18, %v7992_v23  ;;  %v2309_v27 = vmul.f32 %v7992_v23, %v7992_v23  ;;  %v6967_v28 = vpop.f32.mrb[33].mxu0 }
 0x137   :  { %v8003_v30 = vpop.f32.mrb[34].mxu0 }
 0x138   :  { %16008 = vst [vmem:[#allocation19_spill] sm:$0xff] %v8003_v30  ;;  %v2549_v32 = vadd.f32 %v2548_v22, %v2309_v27  ;;  %v2063_v33 = vadd.f32 %v2062_v26, %v8003_v30  ;;  %v2310_v34 = vmul.f32 %v8003_v30, %v8003_v30  ;;  %v6968_v35 = vpop.f32.mrb[35].mxu0  ;;  %v7522_v27 = vld [vmem:[%s15321_s0 + $0x2a8] sm:$0xff]  }
 0x139   :  { %7274 = vmatmul.mubr.bf16.gmra.mrb[96].mxu1 %v7522_v27 }
 0x13a   :  { %v2550_v36 = vadd.f32 %v2549_v32, %v2310_v34  ;;  %7074 = vmatmul.mubr.bf16.gmra.mrb[140].mxu0 %v7483_v29  ;;  %7277 = vmatprep.mubr.msk.bf16.mxu1 %vm7567_vm0, %v15325_v0 }
 0x13b   :  { %7077 = vmatprep.mubr.msk.bf16.mxu0 %vm7567_vm0, %v15325_v0 }
 0x13d   :  { %v8012_v38 = vpop.f32.mrb[36].mxu0 }
 0x13e   :  { %16009 = vst [vmem:[#allocation20_spill] sm:$0xff] %v8012_v38  ;;  %v2064_v40 = vadd.f32 %v2063_v33, %v8012_v38  ;;  %v2311_v41 = vmul.f32 %v8012_v38, %v8012_v38  ;;  %v6971_v42 = vpop.f32.mrb[37].mxu0  ;;  %v7491_v33 = vld [vmem:[%s15321_s0 + $0x138] sm:$0xff]  }
 0x13f   :  { %v8023_v45 = vpop.f32.mrb[38].mxu0 }
 0x140   :  { %16010 = vst [vmem:[#allocation21_spill] sm:$0xff] %v8023_v45  ;;  %v2551_v46 = vadd.f32 %v2550_v36, %v2311_v41  ;;  %v2065_v47 = vadd.f32 %v2064_v40, %v8023_v45  ;;  %v2312_v49 = vmul.f32 %v8023_v45, %v8023_v45  ;;  %v6972_v51 = vpop.f32.mrb[39].mxu0 }
 0x141   :  { %v7493_v51 = vld [vmem:[%s15321_s0 + $0x140] sm:$0xff]  }
 0x142   :  { %v2552_v53 = vadd.f32 %v2551_v46, %v2312_v49  ;;  %7078 = vmatmul.mubr.bf16.gmra.mrb[144].mxu0 %v7485_v44  ;;  %v7524_v44 = vld [vmem:[%s15321_s0 + $0x2b0] sm:$0xff]  }
 0x143   :  { %7081 = vmatprep.mubr.msk.bf16.mxu0 %vm7567_vm0, %v15325_v0  ;;  %7278 = vmatmul.mubr.bf16.gmra.mrb[100].mxu1 %v7524_v44 }
 0x144   :  { %7281 = vmatprep.mubr.msk.bf16.mxu1 %vm7567_vm0, %v15325_v0 }
 0x145   :  { %v8032_v54 = vpop.f32.mrb[40].mxu0 }
 0x146   :  { %16011 = vst [vmem:[#allocation22_spill] sm:$0xff] %v8032_v54  ;;  %v2066_v56 = vadd.f32 %v2065_v47, %v8032_v54  ;;  %v2313_v59 = vmul.f32 %v8032_v54, %v8032_v54  ;;  %v6975_v60 = vpop.f32.mrb[41].mxu0 }
 0x147   :  { %v8043_v62 = vpop.f32.mrb[42].mxu0 }
 0x148   :  { %16012 = vst [vmem:[#allocation23_spill] sm:$0xff] %v8043_v62  ;;  %v2553_v63 = vadd.f32 %v2552_v53, %v2313_v59  ;;  %v2067_v3 = vadd.f32 %v2066_v56, %v8043_v62  ;;  %v2314_v4 = vmul.f32 %v8043_v62, %v8043_v62  ;;  %v6976_v5 = vpop.f32.mrb[43].mxu0 }
 0x14a   :  { %v2554_v6 = vadd.f32 %v2553_v63, %v2314_v4  ;;  %7082 = vmatmul.mubr.bf16.gmra.mrb[148].mxu0 %v7487_v61 }
 0x14b   :  { %7085 = vmatprep.mubr.msk.bf16.mxu0 %vm7567_vm0, %v15325_v0 }
 0x14d   :  { %v8052_v8 = vpop.f32.mrb[44].mxu0 }
 0x14e   :  { %16013 = vst [vmem:[#allocation24_spill] sm:$0xff] %v8052_v8  ;;  %v2068_v11 = vadd.f32 %v2067_v3, %v8052_v8  ;;  %v2315_v12 = vmul.f32 %v8052_v8, %v8052_v8  ;;  %v6979_v14 = vpop.f32.mrb[45].mxu0  ;;  %v7526_v3 = vld [vmem:[%s15321_s0 + $0x2b8] sm:$0xff]  }
 0x14f   :  { %v8063_v17 = vpop.f32.mrb[46].mxu0  ;;  %7282 = vmatmul.mubr.bf16.gmra.mrb[104].mxu1 %v7526_v3 }
 0x150   :  { %16014 = vst [vmem:[#allocation25_spill] sm:$0xff] %v8063_v17  ;;  %v2555_v18 = vadd.f32 %v2554_v6, %v2315_v12  ;;  %v2069_v20 = vadd.f32 %v2068_v11, %v8063_v17  ;;  %v2316_v21 = vmul.f32 %v8063_v17, %v8063_v17  ;;  %v6980_v22 = vpop.f32.mrb[47].mxu0  ;;  %7285 = vmatprep.mubr.msk.bf16.mxu1 %vm7567_vm0, %v15325_v0 }
 0x152   :  { %v2556_v24 = vadd.f32 %v2555_v18, %v2316_v21  ;;  %7086 = vmatmul.mubr.bf16.gmra.mrb[152].mxu0 %v7489_v15  ;;  %v8130_v21 = vpop.f32.mrb[0].mxu1 }
 0x153   :  { %7089 = vmatprep.mubr.msk.bf16.mxu0 %vm7567_vm0, %v15325_v0  ;;  %v7179_v22 = vpop.f32.mrb[1].mxu1 }
 0x155   :  { %v8072_v26 = vpop.f32.mrb[48].mxu0 }
 0x156   :  { %16015 = vst [vmem:[#allocation26_spill] sm:$0xff] %v8072_v26  ;;  %v2070_v28 = vadd.f32 %v2069_v20, %v8072_v26  ;;  %v2317_v29 = vmul.f32 %v8072_v26, %v8072_v26  ;;  %v6983_v32 = vpop.f32.mrb[49].mxu0 }
 0x157   :  { %v8083_v34 = vpop.f32.mrb[50].mxu0 }
 0x158   :  { %16016 = vst [vmem:[#allocation27_spill] sm:$0xff] %v8083_v34  ;;  %v2557_v35 = vadd.f32 %v2556_v24, %v2317_v29  ;;  %v2071_v36 = vadd.f32 %v2070_v28, %v8083_v34  ;;  %v2318_v39 = vmul.f32 %v8083_v34, %v8083_v34  ;;  %v6984_v40 = vpop.f32.mrb[51].mxu0  ;;  %v8134_v24 = vpop.f32.mrb[2].mxu1  ;;  %v7528_v29 = vld [vmem:[%s15321_s0 + $0x2c0] sm:$0xff]  }
 0x159   :  { %16021 = vst [vmem:[#allocation32_spill] sm:$0xff] %v8134_v24  ;;  %v7180_v28 = vpop.f32.mrb[3].mxu1  ;;  %7286 = vmatmul.mubr.bf16.gmra.mrb[108].mxu1 %v7528_v29 }
 0x15a   :  { %v2558_v41 = vadd.f32 %v2557_v35, %v2318_v39  ;;  %7090 = vmatmul.mubr.bf16.gmra.mrb[156].mxu0 %v7491_v33  ;;  %7289 = vmatprep.mubr.msk.bf16.mxu1 %vm7567_vm0, %v15325_v0 }
 0x15b   :  { %7093 = vmatprep.mubr.msk.bf16.mxu0 %vm7567_vm0, %v15325_v0 }
 0x15d   :  { %v8092_v42 = vpop.f32.mrb[52].mxu0 }
 0x15e   :  { %16017 = vst [vmem:[#allocation28_spill] sm:$0xff] %v8092_v42  ;;  %v2072_v46 = vadd.f32 %v2071_v36, %v8092_v42  ;;  %v2319_v47 = vmul.f32 %v8092_v42, %v8092_v42  ;;  %v6987_v49 = vpop.f32.mrb[53].mxu0  ;;  %v7497_v36 = vld [vmem:[%s15321_s0 + $0x150] sm:$0xff]  }
 0x15f   :  { %v8103_v53 = vpop.f32.mrb[54].mxu0  ;;  %v8154_v49 = vpop.f32.mrb[4].mxu1 }
 0x160   :  { %16018 = vst [vmem:[#allocation29_spill] sm:$0xff] %v8103_v53  ;;  %v2559_v55 = vadd.f32 %v2558_v41, %v2319_v47  ;;  %v2073_v56 = vadd.f32 %v2072_v46, %v8103_v53  ;;  %v2320_v59 = vmul.f32 %v8103_v53, %v8103_v53  ;;  %v6988_v60 = vpop.f32.mrb[55].mxu0  ;;  %16024 = vst [vmem:[#allocation35_spill] sm:$0xff] %v8154_v49 }
 0x161   :  { %v7530_v60 = vld [vmem:[%s15321_s0 + $0x2c8] sm:$0xff]  }
 0x162   :  { %v2560_v61 = vadd.f32 %v2559_v55, %v2320_v59  ;;  %7094 = vmatmul.mubr.bf16.gmra.mrb[160].mxu0 %v7493_v51  ;;  %v7183_v51 = vpop.f32.mrb[5].mxu1  ;;  %7290 = vmatmul.mubr.bf16.gmra.mrb[112].mxu1 %v7530_v60 }
 0x163   :  { %7097 = vmatprep.mubr.msk.bf16.mxu0 %vm7567_vm0, %v15325_v0  ;;  %v8158_v55 = vpop.f32.mrb[6].mxu1  ;;  %7293 = vmatprep.mubr.msk.bf16.mxu1 %vm7567_vm0, %v15325_v0 }
 0x164   :  { %16025 = vst [vmem:[#allocation36_spill] sm:$0xff] %v8158_v55  ;;  %v7184_v59 = vpop.f32.mrb[7].mxu1 }
 0x165   :  { %v8112_v63 = vpop.f32.mrb[56].mxu0 }
 0x166   :  { %16019 = vst [vmem:[#allocation30_spill] sm:$0xff] %v8112_v63  ;;  %v2074_v4 = vadd.f32 %v2073_v56, %v8112_v63  ;;  %v2321_v5 = vmul.f32 %v8112_v63, %v8112_v63  ;;  %v6991_v6 = vpop.f32.mrb[57].mxu0 }
 0x167   :  { %v8123_v11 = vpop.f32.mrb[58].mxu0 }
 0x168   :  { %16020 = vst [vmem:[#allocation31_spill] sm:$0xff] %v8123_v11  ;;  %v2561_v12 = vadd.f32 %v2560_v61, %v2321_v5  ;;  %v2075_v14 = vadd.f32 %v2074_v4, %v8123_v11  ;;  %v2322_v15 = vmul.f32 %v8123_v11, %v8123_v11  ;;  %v6992_v18 = vpop.f32.mrb[59].mxu0  ;;  %v7499_v5 = vld [vmem:[%s15321_s0 + $0x158] sm:$0xff]  }
 0x16a   :  { %v2562_v20 = vadd.f32 %v2561_v12, %v2322_v15  ;;  %7098 = vmatmul.mubr.bf16.gmra.mrb[164].mxu0 %v7495_v10 }
 0x16b   :  { %7101 = vmatprep.mubr.msk.bf16.mxu0 %vm7567_vm0, %v15325_v0 }
 0x16d   :  { %v8136_v27 = vpop.f32.mrb[60].mxu0 }
 0x16e   :  { %16022 = vst [vmem:[#allocation33_spill] sm:$0xff] %v8136_v27  ;;  %v2076_v32 = vadd.f32 %v2075_v14, %v8136_v27  ;;  %v2323_v33 = vmul.f32 %v8136_v27, %v8136_v27  ;;  %v6995_v35 = vpop.f32.mrb[61].mxu0 }
 0x16f   :  { %v8147_v39 = vpop.f32.mrb[62].mxu0 }
 0x170   :  { %16023 = vst [vmem:[#allocation34_spill] sm:$0xff] %v8147_v39  ;;  %v2563_v40 = vadd.f32 %v2562_v20, %v2323_v33  ;;  %v2077_v41 = vadd.f32 %v2076_v32, %v8147_v39  ;;  %v2324_v44 = vmul.f32 %v8147_v39, %v8147_v39  ;;  %v6996_v46 = vpop.f32.mrb[63].mxu0  ;;  %v8178_v20 = vpop.f32.mrb[8].mxu1  ;;  %v7532_v33 = vld [vmem:[%s15321_s0 + $0x2d0] sm:$0xff]  }
 0x171   :  { %v7187_v22 = vpop.f32.mrb[9].mxu1  ;;  %7294 = vmatmul.mubr.bf16.gmra.mrb[116].mxu1 %v7532_v33 }
 0x172   :  { %v2564_v47 = vadd.f32 %v2563_v40, %v2324_v44  ;;  %7102 = vmatmul.mubr.bf16.gmra.mrb[168].mxu0 %v7497_v36  ;;  %v8182_v28 = vpop.f32.mrb[10].mxu1  ;;  %7297 = vmatprep.mubr.msk.bf16.mxu1 %vm7567_vm0, %v15325_v0  ;;  %v7503_v22 = vld [vmem:[%s15321_s0 + $0x168] sm:$0xff]  }
 0x173   :  { %7105 = vmatprep.mubr.msk.bf16.mxu0 %vm7567_vm0, %v15325_v0  ;;  %16028 = vst [vmem:[#allocation39_spill] sm:$0xff] %v8182_v28  ;;  %v7188_v32 = vpop.f32.mrb[11].mxu1 }
 0x175   :  { %v8160_v56 = vpop.f32.mrb[64].mxu0 }
 0x176   :  { %16026 = vst [vmem:[#allocation37_spill] sm:$0xff] %v8160_v56  ;;  %v2078_v61 = vadd.f32 %v2077_v41, %v8160_v56  ;;  %v2325_v3 = vmul.f32 %v8160_v56, %v8160_v56  ;;  %v6999_v4 = vpop.f32.mrb[65].mxu0  ;;  %v7501_v41 = vld [vmem:[%s15321_s0 + $0x160] sm:$0xff]  }
 0x177   :  { %v8171_v6 = vpop.f32.mrb[66].mxu0 }
 0x178   :  { %16027 = vst [vmem:[#allocation38_spill] sm:$0xff] %v8171_v6  ;;  %v2565_v10 = vadd.f32 %v2564_v47, %v2325_v3  ;;  %v2079_v12 = vadd.f32 %v2078_v61, %v8171_v6  ;;  %v2326_v14 = vmul.f32 %v8171_v6, %v8171_v6  ;;  %v7000_v15 = vpop.f32.mrb[67].mxu0  ;;  %v8202_v61 = vpop.f32.mrb[12].mxu1 }
 0x179   :  { %16031 = vst [vmem:[#allocation42_spill] sm:$0xff] %v8202_v61  ;;  %v7191_v3 = vpop.f32.mrb[13].mxu1 }
 0x17a   :  { %v2566_v18 = vadd.f32 %v2565_v10, %v2326_v14  ;;  %7106 = vmatmul.mubr.bf16.gmra.mrb[172].mxu0 %v7499_v5  ;;  %v8206_v4 = vpop.f32.mrb[14].mxu1  ;;  %v7535_v3 = vld [vmem:[%s15321_s0 + $0x2e0] sm:$0xff]  }
 0x17b   :  { %7109 = vmatprep.mubr.msk.bf16.mxu0 %vm7567_vm0, %v15325_v0  ;;  %16032 = vst [vmem:[#allocation43_spill] sm:$0xff] %v8206_v4  ;;  %v7192_v10 = vpop.f32.mrb[15].mxu1 }
 0x17d   :  { %v8184_v29 = vpop.f32.mrb[68].mxu0 }
 0x17e   :  { %16029 = vst [vmem:[#allocation40_spill] sm:$0xff] %v8184_v29  ;;  %v2080_v35 = vadd.f32 %v2079_v12, %v8184_v29  ;;  %v2327_v36 = vmul.f32 %v8184_v29, %v8184_v29  ;;  %v7003_v40 = vpop.f32.mrb[69].mxu0  ;;  %v7534_v12 = vld [vmem:[%s15321_s0 + $0x2d8] sm:$0xff]  }
 0x17f   :  { %v8195_v44 = vpop.f32.mrb[70].mxu0  ;;  %7298 = vmatmul.mubr.bf16.gmra.mrb[120].mxu1 %v7534_v12 }
 0x180   :  { %16030 = vst [vmem:[#allocation41_spill] sm:$0xff] %v8195_v44  ;;  %v2567_v46 = vadd.f32 %v2566_v18, %v2327_v36  ;;  %v2081_v47 = vadd.f32 %v2080_v35, %v8195_v44  ;;  %v2328_v51 = vmul.f32 %v8195_v44, %v8195_v44  ;;  %v7004_v59 = vpop.f32.mrb[71].mxu0  ;;  %7301 = vmatprep.mubr.msk.bf16.mxu1 %vm7567_vm0, %v15325_v0 }
 0x182   :  { %v2568_v60 = vadd.f32 %v2567_v46, %v2328_v51  ;;  %7110 = vmatmul.mubr.bf16.gmra.mrb[176].mxu0 %v7501_v41  ;;  %v8226_v46 = vpop.f32.mrb[16].mxu1 }
 0x183   :  { %7113 = vmatprep.mubr.msk.bf16.mxu0 %vm7567_vm0, %v15325_v0 }
 0x185   :  { %v8208_v5 = vpop.f32.mrb[72].mxu0 }
 0x186   :  { %16033 = vst [vmem:[#allocation44_spill] sm:$0xff] %v8208_v5  ;;  %v2082_v14 = vadd.f32 %v2081_v47, %v8208_v5  ;;  %v2329_v15 = vmul.f32 %v8208_v5, %v8208_v5  ;;  %v7007_v18 = vpop.f32.mrb[73].mxu0  ;;  %v7195_v47 = vpop.f32.mrb[17].mxu1 }
 0x187   :  { %v8219_v32 = vpop.f32.mrb[74].mxu0  ;;  %v8230_v51 = vpop.f32.mrb[18].mxu1  ;;  %7302 = vmatmul.mubr.bf16.gmra.mrb[124].mxu1 %v7535_v3 }
 0x188   :  { %16034 = vst [vmem:[#allocation45_spill] sm:$0xff] %v8219_v32  ;;  %v2569_v33 = vadd.f32 %v2568_v60, %v2329_v15  ;;  %v2083_v35 = vadd.f32 %v2082_v14, %v8219_v32  ;;  %v2330_v36 = vmul.f32 %v8219_v32, %v8219_v32  ;;  %v7008_v40 = vpop.f32.mrb[75].mxu0  ;;  %16035 = vst [vmem:[#allocation46_spill] sm:$0xff] %v8230_v51  ;;  %v7196_v60 = vpop.f32.mrb[19].mxu1  ;;  %v7505_v15 = vld [vmem:[%s15321_s0 + $0x170] sm:$0xff]   ;;  %7305 = vmatprep.mubr.msk.bf16.mxu1 %vm7567_vm0, %v15325_v0 }
 0x189   :  { %v8250_v47 = vpop.f32.mrb[20].mxu1 }
 0x18a   :  { %v2570_v41 = vadd.f32 %v2569_v33, %v2330_v36  ;;  %7114 = vmatmul.mubr.bf16.gmra.mrb[180].mxu0 %v7503_v22  ;;  %16038 = vst [vmem:[#allocation49_spill] sm:$0xff] %v8250_v47  ;;  %v7199_v60 = vpop.f32.mrb[21].mxu1 }
 0x18b   :  { %7117 = vmatprep.mubr.msk.bf16.mxu0 %vm7567_vm0, %v15325_v0 }
 0x18d   :  { %v8232_v59 = vpop.f32.mrb[76].mxu0 }
 0x18e   :  { %16036 = vst [vmem:[#allocation47_spill] sm:$0xff] %v8232_v59  ;;  %v2084_v10 = vadd.f32 %v2083_v35, %v8232_v59  ;;  %v2331_v12 = vmul.f32 %v8232_v59, %v8232_v59  ;;  %v7011_v14 = vpop.f32.mrb[77].mxu0  ;;  %v16042_v59 = vmov 0.0  }
 0x18f   :  { %v8243_v18 = vpop.f32.mrb[78].mxu0  ;;  %v8254_v14 = vpop.f32.mrb[22].mxu1 }
 0x190   :  { %16037 = vst [vmem:[#allocation48_spill] sm:$0xff] %v8243_v18  ;;  %v2571_v22 = vadd.f32 %v2570_v41, %v2331_v12  ;;  %v2085_v33 = vadd.f32 %v2084_v10, %v8243_v18  ;;  %v2332_v36 = vmul.f32 %v8243_v18, %v8243_v18  ;;  %v7012_v40 = vpop.f32.mrb[79].mxu0  ;;  %16039 = vst [vmem:[#allocation50_spill] sm:$0xff] %v8254_v14  ;;  %v7200_v3 = vpop.f32.mrb[23].mxu1  ;;  %v7536_v10 = vld [vmem:[%s15321_s0 + $0x2e8] sm:$0xff]  }
 0x191   :  { %7306 = vmatmul.mubr.bf16.gmra.mrb[128].mxu1 %v7536_v10 }
 0x192   :  { %v2572_v35 = vadd.f32 %v2571_v22, %v2332_v36  ;;  %7118 = vmatmul.mubr.bf16.gmra.mrb[184].mxu0 %v7505_v15  ;;  %v7507_v36 = vld [vmem:[%s15321_s0 + $0x178] sm:$0xff]   ;;  %7309 = vmatprep.mubr.msk.bf16.mxu1 %vm7567_vm0, %v16042_v59 }
 0x193   :  { %7121 = vmatprep.mubr.msk.bf16.mxu0 %vm7567_vm0, %v15325_v0 }
 0x195   :  { %v8256_v41 = vpop.f32.mrb[80].mxu0 }
 0x196   :  { %16040 = vst [vmem:[#allocation51_spill] sm:$0xff] %v8256_v41  ;;  %v2086_v12 = vadd.f32 %v2085_v33, %v8256_v41  ;;  %v2333_v15 = vmul.f32 %v8256_v41, %v8256_v41  ;;  %v7015_v22 = vpop.f32.mrb[81].mxu0 }
 0x197   :  { %v8267_v40 = vpop.f32.mrb[82].mxu0  ;;  %v8274_v22 = vpop.f32.mrb[24].mxu1 }
 0x198   :  { %16041 = vst [vmem:[#allocation52_spill] sm:$0xff] %v8267_v40  ;;  %v2573_v60 = vadd.f32 %v2572_v35, %v2333_v15  ;;  %v2087_v3 = vadd.f32 %v2086_v12, %v8267_v40  ;;  %v2334_v0 = vmul.f32 %v8267_v40, %v8267_v40  ;;  %v7016_v18 = vpop.f32.mrb[83].mxu0  ;;  %v7203_v41 = vpop.f32.mrb[25].mxu1 }
 0x199   :  { %v8278_v32 = vpop.f32.mrb[26].mxu1  ;;  %v7537_v18 = vld [vmem:[%s15321_s0 + $0x2f0] sm:$0xff]  }
 0x19a   :  { %v2574_v33 = vadd.f32 %v2573_v60, %v2334_v0  ;;  %7122 = vmatmul.mubr.bf16.gmra.mrb[188].mxu0 %v7507_v36  ;;  %16043 = vst [vmem:[#allocation53_spill] sm:$0xff] %v8278_v32  ;;  %v7204_v10 = vpop.f32.mrb[27].mxu1  ;;  %v7509_v36 = vld [vmem:[%s15321_s0 + $0x180] sm:$0xff]   ;;  %7310 = vmatmul.mubr.bf16.gmra.mrb[132].mxu1 %v7537_v18 }
 0x19b   :  { %7125 = vmatprep.mubr.msk.bf16.mxu0 %vm7567_vm0, %v16042_v59  ;;  %7313 = vmatprep.mubr.msk.bf16.mxu1 %vm7567_vm0, %v16042_v59 }
 0x19d   :  { %v8280_v35 = vpop.f32.mrb[84].mxu0 }
 0x19e   :  { %16044 = vst [vmem:[#allocation54_spill] sm:$0xff] %v8280_v35  ;;  %v2088_v12 = vadd.f32 %v2087_v3, %v8280_v35  ;;  %v2335_v0 = vmul.f32 %v8280_v35, %v8280_v35  ;;  %v7019_v15 = vpop.f32.mrb[85].mxu0 }
 0x19f   :  { %v8291_v41 = vpop.f32.mrb[86].mxu0  ;;  %v8298_v15 = vpop.f32.mrb[28].mxu1 }
 0x1a0   :  { %16045 = vst [vmem:[#allocation55_spill] sm:$0xff] %v8291_v41  ;;  %v2575_v60 = vadd.f32 %v2574_v33, %v2335_v0  ;;  %v2089_v10 = vadd.f32 %v2088_v12, %v8291_v41  ;;  %v2336_v40 = vmul.f32 %v8291_v41, %v8291_v41  ;;  %v7020_v5 = vpop.f32.mrb[87].mxu0  ;;  %16046 = vst [vmem:[#allocation56_spill] sm:$0xff] %v8298_v15  ;;  %v7207_v35 = vpop.f32.mrb[29].mxu1 }
 0x1a1   :  { %v8302_v44 = vpop.f32.mrb[30].mxu1  ;;  %v7538_v5 = vld [vmem:[%s15321_s0 + $0x2f8] sm:$0xff]  }
 0x1a2   :  { %v2576_v3 = vadd.f32 %v2575_v60, %v2336_v40  ;;  %7126 = vmatmul.mubr.bf16.gmra.mrb[192].mxu0 %v7509_v36  ;;  %16047 = vst [vmem:[#allocation57_spill] sm:$0xff] %v8302_v44  ;;  %v7208_v18 = vpop.f32.mrb[31].mxu1  ;;  %v7511_v36 = vld [vmem:[%s15321_s0 + $0x188] sm:$0xff]   ;;  %7314 = vmatmul.mubr.bf16.gmra.mrb[136].mxu1 %v7538_v5 }
 0x1a3   :  { %7129 = vmatprep.mubr.msk.bf16.mxu0 %vm7567_vm0, %v16042_v59  ;;  %7317 = vmatprep.mubr.msk.bf16.mxu1 %vm7567_vm0, %v16042_v59 }
 0x1a5   :  { %v8304_v33 = vpop.f32.mrb[88].mxu0 }
 0x1a6   :  { %16048 = vst [vmem:[#allocation58_spill] sm:$0xff] %v8304_v33  ;;  %v2090_v12 = vadd.f32 %v2089_v10, %v8304_v33  ;;  %v2337_v40 = vmul.f32 %v8304_v33, %v8304_v33  ;;  %v7023_v0 = vpop.f32.mrb[89].mxu0 }
 0x1a7   :  { %v8315_v35 = vpop.f32.mrb[90].mxu0  ;;  %v8322_v0 = vpop.f32.mrb[32].mxu1 }
 0x1a8   :  { %16049 = vst [vmem:[#allocation59_spill] sm:$0xff] %v8315_v35  ;;  %v2577_v60 = vadd.f32 %v2576_v3, %v2337_v40  ;;  %v2091_v18 = vadd.f32 %v2090_v12, %v8315_v35  ;;  %v2338_v41 = vmul.f32 %v8315_v35, %v8315_v35  ;;  %v7024_v29 = vpop.f32.mrb[91].mxu0  ;;  %v7211_v33 = vpop.f32.mrb[33].mxu1 }
 0x1a9   :  { %v8326_v6 = vpop.f32.mrb[34].mxu1  ;;  %v7539_v29 = vld [vmem:[%s15321_s0 + $0x300] sm:$0xff]  }
 0x1aa   :  { %v2578_v10 = vadd.f32 %v2577_v60, %v2338_v41  ;;  %7130 = vmatmul.mubr.bf16.gmra.mrb[196].mxu0 %v7511_v36  ;;  %16050 = vst [vmem:[#allocation60_spill] sm:$0xff] %v8326_v6  ;;  %v7212_v5 = vpop.f32.mrb[35].mxu1  ;;  %v7513_v36 = vld [vmem:[%s15321_s0 + $0x190] sm:$0xff]   ;;  %7318 = vmatmul.mubr.bf16.gmra.mrb[140].mxu1 %v7539_v29 }
 0x1ab   :  { %7133 = vmatprep.mubr.msk.bf16.mxu0 %vm7567_vm0, %v16042_v59  ;;  %7321 = vmatprep.mubr.msk.bf16.mxu1 %vm7567_vm0, %v16042_v59 }
 0x1ad   :  { %v8328_v3 = vpop.f32.mrb[92].mxu0 }
 0x1ae   :  { %16051 = vst [vmem:[#allocation61_spill] sm:$0xff] %v8328_v3  ;;  %v2092_v12 = vadd.f32 %v2091_v18, %v8328_v3  ;;  %v2339_v41 = vmul.f32 %v8328_v3, %v8328_v3  ;;  %v7027_v40 = vpop.f32.mrb[93].mxu0 }
 0x1af   :  { %v8339_v33 = vpop.f32.mrb[94].mxu0  ;;  %v8346_v40 = vpop.f32.mrb[36].mxu1 }
 0x1b0   :  { %16052 = vst [vmem:[#allocation62_spill] sm:$0xff] %v8339_v33  ;;  %v2579_v60 = vadd.f32 %v2578_v10, %v2339_v41  ;;  %v2093_v5 = vadd.f32 %v2092_v12, %v8339_v33  ;;  %v2340_v35 = vmul.f32 %v8339_v33, %v8339_v33  ;;  %v7028_v56 = vpop.f32.mrb[95].mxu0  ;;  %16053 = vst [vmem:[#allocation63_spill] sm:$0xff] %v8346_v40  ;;  %v7215_v3 = vpop.f32.mrb[37].mxu1 }
 0x1b1   :  { %v8350_v39 = vpop.f32.mrb[38].mxu1  ;;  %v7540_v56 = vld [vmem:[%s15321_s0 + $0x308] sm:$0xff]  }
 0x1b2   :  { %v2580_v18 = vadd.f32 %v2579_v60, %v2340_v35  ;;  %7134 = vmatmul.mubr.bf16.gmra.mrb[200].mxu0 %v7513_v36  ;;  %16054 = vst [vmem:[#allocation64_spill] sm:$0xff] %v8350_v39  ;;  %v7216_v29 = vpop.f32.mrb[39].mxu1  ;;  %v7515_v36 = vld [vmem:[%s15321_s0 + $0x198] sm:$0xff]   ;;  %7322 = vmatmul.mubr.bf16.gmra.mrb[144].mxu1 %v7540_v56 }
 0x1b3   :  { %7137 = vmatprep.mubr.msk.bf16.mxu0 %vm7567_vm0, %v16042_v59  ;;  %7325 = vmatprep.mubr.msk.bf16.mxu1 %vm7567_vm0, %v16042_v59 }
 0x1b5   :  { %v8352_v10 = vpop.f32.mrb[96].mxu0 }
 0x1b6   :  { %16055 = vst [vmem:[#allocation65_spill] sm:$0xff] %v8352_v10  ;;  %v2094_v12 = vadd.f32 %v2093_v5, %v8352_v10  ;;  %v2341_v35 = vmul.f32 %v8352_v10, %v8352_v10  ;;  %v7031_v41 = vpop.f32.mrb[97].mxu0 }
 0x1b7   :  { %v8363_v3 = vpop.f32.mrb[98].mxu0  ;;  %v8370_v41 = vpop.f32.mrb[40].mxu1 }
 0x1b8   :  { %16056 = vst [vmem:[#allocation66_spill] sm:$0xff] %v8363_v3  ;;  %v2581_v60 = vadd.f32 %v2580_v18, %v2341_v35  ;;  %v2095_v29 = vadd.f32 %v2094_v12, %v8363_v3  ;;  %v2342_v33 = vmul.f32 %v8363_v3, %v8363_v3  ;;  %v7032_v27 = vpop.f32.mrb[99].mxu0  ;;  %v7219_v10 = vpop.f32.mrb[41].mxu1 }
 0x1b9   :  { %v8374_v11 = vpop.f32.mrb[42].mxu1  ;;  %v7541_v27 = vld [vmem:[%s15321_s0 + $0x310] sm:$0xff]  }
 0x1ba   :  { %v2582_v5 = vadd.f32 %v2581_v60, %v2342_v33  ;;  %7138 = vmatmul.mubr.bf16.gmra.mrb[204].mxu0 %v7515_v36  ;;  %16057 = vst [vmem:[#allocation67_spill] sm:$0xff] %v8374_v11  ;;  %v7220_v56 = vpop.f32.mrb[43].mxu1  ;;  %v7517_v36 = vld [vmem:[%s15321_s0 + $0x1a0] sm:$0xff]   ;;  %7326 = vmatmul.mubr.bf16.gmra.mrb[148].mxu1 %v7541_v27 }
 0x1bb   :  { %7141 = vmatprep.mubr.msk.bf16.mxu0 %vm7567_vm0, %v16042_v59  ;;  %7329 = vmatprep.mubr.msk.bf16.mxu1 %vm7567_vm0, %v16042_v59 }
 0x1bd   :  { %v8376_v18 = vpop.f32.mrb[100].mxu0 }
 0x1be   :  { %16058 = vst [vmem:[#allocation68_spill] sm:$0xff] %v8376_v18  ;;  %v2096_v12 = vadd.f32 %v2095_v29, %v8376_v18  ;;  %v2343_v33 = vmul.f32 %v8376_v18, %v8376_v18  ;;  %v7035_v35 = vpop.f32.mrb[101].mxu0 }
 0x1bf   :  { %v8387_v10 = vpop.f32.mrb[102].mxu0  ;;  %v8394_v35 = vpop.f32.mrb[44].mxu1 }
 0x1c0   :  { %16059 = vst [vmem:[#allocation69_spill] sm:$0xff] %v8387_v10  ;;  %v2583_v60 = vadd.f32 %v2582_v5, %v2343_v33  ;;  %v2097_v56 = vadd.f32 %v2096_v12, %v8387_v10  ;;  %v2344_v3 = vmul.f32 %v8387_v10, %v8387_v10  ;;  %v7036_v63 = vpop.f32.mrb[103].mxu0  ;;  %16060 = vst [vmem:[#allocation70_spill] sm:$0xff] %v8394_v35  ;;  %v7223_v18 = vpop.f32.mrb[45].mxu1 }
 0x1c1   :  { %v8398_v53 = vpop.f32.mrb[46].mxu1  ;;  %v7542_v63 = vld [vmem:[%s15321_s0 + $0x318] sm:$0xff]  }
 0x1c2   :  { %v2584_v29 = vadd.f32 %v2583_v60, %v2344_v3  ;;  %7142 = vmatmul.mubr.bf16.gmra.mrb[208].mxu0 %v7517_v36  ;;  %16061 = vst [vmem:[#allocation71_spill] sm:$0xff] %v8398_v53  ;;  %v7224_v27 = vpop.f32.mrb[47].mxu1  ;;  %v7519_v36 = vld [vmem:[%s15321_s0 + $0x1a8] sm:$0xff]   ;;  %7330 = vmatmul.mubr.bf16.gmra.mrb[152].mxu1 %v7542_v63 }
 0x1c3   :  { %7145 = vmatprep.mubr.msk.bf16.mxu0 %vm7567_vm0, %v16042_v59  ;;  %7333 = vmatprep.mubr.msk.bf16.mxu1 %vm7567_vm0, %v16042_v59 }
 0x1c5   :  { %v8400_v5 = vpop.f32.mrb[104].mxu0 }
 0x1c6   :  { %16062 = vst [vmem:[#allocation72_spill] sm:$0xff] %v8400_v5  ;;  %v2098_v12 = vadd.f32 %v2097_v56, %v8400_v5  ;;  %v2345_v3 = vmul.f32 %v8400_v5, %v8400_v5  ;;  %v7039_v33 = vpop.f32.mrb[105].mxu0 }
 0x1c7   :  { %v8411_v18 = vpop.f32.mrb[106].mxu0  ;;  %v8418_v33 = vpop.f32.mrb[48].mxu1 }
 0x1c8   :  { %16063 = vst [vmem:[#allocation73_spill] sm:$0xff] %v8411_v18  ;;  %v2585_v60 = vadd.f32 %v2584_v29, %v2345_v3  ;;  %v2099_v27 = vadd.f32 %v2098_v12, %v8411_v18  ;;  %v2346_v10 = vmul.f32 %v8411_v18, %v8411_v18  ;;  %v7040_v42 = vpop.f32.mrb[107].mxu0  ;;  %v7227_v5 = vpop.f32.mrb[49].mxu1 }
 0x1c9   :  { %v8422_v34 = vpop.f32.mrb[50].mxu1  ;;  %v7543_v42 = vld [vmem:[%s15321_s0 + $0x320] sm:$0xff]  }
 0x1ca   :  { %v2586_v56 = vadd.f32 %v2585_v60, %v2346_v10  ;;  %7146 = vmatmul.mubr.bf16.gmra.mrb[212].mxu0 %v7519_v36  ;;  %16064 = vst [vmem:[#allocation74_spill] sm:$0xff] %v8422_v34  ;;  %v7228_v63 = vpop.f32.mrb[51].mxu1  ;;  %v7521_v36 = vld [vmem:[%s15321_s0 + $0x1b0] sm:$0xff]   ;;  %7334 = vmatmul.mubr.bf16.gmra.mrb[156].mxu1 %v7543_v42 }
 0x1cb   :  { %7149 = vmatprep.mubr.msk.bf16.mxu0 %vm7567_vm0, %v16042_v59  ;;  %7337 = vmatprep.mubr.msk.bf16.mxu1 %vm7567_vm0, %v16042_v59 }
 0x1cd   :  { %v8424_v29 = vpop.f32.mrb[108].mxu0 }
 0x1ce   :  { %16065 = vst [vmem:[#allocation75_spill] sm:$0xff] %v8424_v29  ;;  %v2100_v12 = vadd.f32 %v2099_v27, %v8424_v29  ;;  %v2347_v10 = vmul.f32 %v8424_v29, %v8424_v29  ;;  %v7043_v3 = vpop.f32.mrb[109].mxu0 }
 0x1cf   :  { %v8435_v5 = vpop.f32.mrb[110].mxu0  ;;  %v8442_v3 = vpop.f32.mrb[52].mxu1 }
 0x1d0   :  { %16066 = vst [vmem:[#allocation76_spill] sm:$0xff] %v8435_v5  ;;  %v2587_v60 = vadd.f32 %v2586_v56, %v2347_v10  ;;  %v2101_v63 = vadd.f32 %v2100_v12, %v8435_v5  ;;  %v2348_v18 = vmul.f32 %v8435_v5, %v8435_v5  ;;  %v7044_v26 = vpop.f32.mrb[111].mxu0  ;;  %16067 = vst [vmem:[#allocation77_spill] sm:$0xff] %v8442_v3  ;;  %v7231_v29 = vpop.f32.mrb[53].mxu1 }
 0x1d1   :  { %v8446_v17 = vpop.f32.mrb[54].mxu1  ;;  %v7544_v26 = vld [vmem:[%s15321_s0 + $0x328] sm:$0xff]  }
 0x1d2   :  { %v2588_v27 = vadd.f32 %v2587_v60, %v2348_v18  ;;  %7150 = vmatmul.mubr.bf16.gmra.mrb[216].mxu0 %v7521_v36  ;;  %16068 = vst [vmem:[#allocation78_spill] sm:$0xff] %v8446_v17  ;;  %v7232_v42 = vpop.f32.mrb[55].mxu1  ;;  %v7523_v36 = vld [vmem:[%s15321_s0 + $0x1b8] sm:$0xff]   ;;  %7338 = vmatmul.mubr.bf16.gmra.mrb[160].mxu1 %v7544_v26 }
 0x1d3   :  { %7153 = vmatprep.mubr.msk.bf16.mxu0 %vm7567_vm0, %v16042_v59  ;;  %7341 = vmatprep.mubr.msk.bf16.mxu1 %vm7567_vm0, %v16042_v59 }
 0x1d5   :  { %v8448_v56 = vpop.f32.mrb[112].mxu0 }
 0x1d6   :  { %16069 = vst [vmem:[#allocation79_spill] sm:$0xff] %v8448_v56  ;;  %v2102_v12 = vadd.f32 %v2101_v63, %v8448_v56  ;;  %v2349_v18 = vmul.f32 %v8448_v56, %v8448_v56  ;;  %v7047_v10 = vpop.f32.mrb[113].mxu0 }
 0x1d7   :  { %v8459_v29 = vpop.f32.mrb[114].mxu0  ;;  %v8466_v10 = vpop.f32.mrb[56].mxu1 }
 0x1d8   :  { %16070 = vst [vmem:[#allocation80_spill] sm:$0xff] %v8459_v29  ;;  %v2589_v60 = vadd.f32 %v2588_v27, %v2349_v18  ;;  %v2103_v42 = vadd.f32 %v2102_v12, %v8459_v29  ;;  %v2350_v5 = vmul.f32 %v8459_v29, %v8459_v29  ;;  %v7048_v8 = vpop.f32.mrb[115].mxu0  ;;  %v7235_v56 = vpop.f32.mrb[57].mxu1 }
 0x1d9   :  { %v8470_v62 = vpop.f32.mrb[58].mxu1  ;;  %v7545_v8 = vld [vmem:[%s15321_s0 + $0x330] sm:$0xff]  }
 0x1da   :  { %v2590_v63 = vadd.f32 %v2589_v60, %v2350_v5  ;;  %7154 = vmatmul.mubr.bf16.gmra.mrb[220].mxu0 %v7523_v36  ;;  %16071 = vst [vmem:[#allocation81_spill] sm:$0xff] %v8470_v62  ;;  %v7236_v26 = vpop.f32.mrb[59].mxu1  ;;  %v7525_v36 = vld [vmem:[%s15321_s0 + $0x1c0] sm:$0xff]   ;;  %7342 = vmatmul.mubr.bf16.gmra.mrb[164].mxu1 %v7545_v8 }
 0x1db   :  { %7157 = vmatprep.mubr.msk.bf16.mxu0 %vm7567_vm0, %v16042_v59  ;;  %7345 = vmatprep.mubr.msk.bf16.mxu1 %vm7567_vm0, %v16042_v59 }
 0x1dd   :  { %v8472_v27 = vpop.f32.mrb[116].mxu0 }
 0x1de   :  { %16072 = vst [vmem:[#allocation82_spill] sm:$0xff] %v8472_v27  ;;  %v2104_v12 = vadd.f32 %v2103_v42, %v8472_v27  ;;  %v2351_v5 = vmul.f32 %v8472_v27, %v8472_v27  ;;  %v7051_v18 = vpop.f32.mrb[117].mxu0 }
 0x1df   :  { %v8483_v56 = vpop.f32.mrb[118].mxu0  ;;  %v8490_v18 = vpop.f32.mrb[60].mxu1 }
 0x1e0   :  { %16073 = vst [vmem:[#allocation83_spill] sm:$0xff] %v8483_v56  ;;  %v2591_v60 = vadd.f32 %v2590_v63, %v2351_v5  ;;  %v2105_v26 = vadd.f32 %v2104_v12, %v8483_v56  ;;  %v2352_v29 = vmul.f32 %v8483_v56, %v8483_v56  ;;  %v7052_v54 = vpop.f32.mrb[119].mxu0  ;;  %16074 = vst [vmem:[#allocation84_spill] sm:$0xff] %v8490_v18  ;;  %v7239_v27 = vpop.f32.mrb[61].mxu1 }
 0x1e1   :  { %v8494_v45 = vpop.f32.mrb[62].mxu1  ;;  %v7546_v54 = vld [vmem:[%s15321_s0 + $0x338] sm:$0xff]  }
 0x1e2   :  { %v2592_v42 = vadd.f32 %v2591_v60, %v2352_v29  ;;  %7158 = vmatmul.mubr.bf16.gmra.mrb[224].mxu0 %v7525_v36  ;;  %16075 = vst [vmem:[#allocation85_spill] sm:$0xff] %v8494_v45  ;;  %v7240_v8 = vpop.f32.mrb[63].mxu1  ;;  %v7527_v36 = vld [vmem:[%s15321_s0 + $0x1c8] sm:$0xff]   ;;  %7346 = vmatmul.mubr.bf16.gmra.mrb[168].mxu1 %v7546_v54 }
 0x1e3   :  { %7161 = vmatprep.mubr.msk.bf16.mxu0 %vm7567_vm0, %v16042_v59  ;;  %7349 = vmatprep.mubr.msk.bf16.mxu1 %vm7567_vm0, %v16042_v59 }
 0x1e5   :  { %v8496_v63 = vpop.f32.mrb[120].mxu0 }
 0x1e6   :  { %16076 = vst [vmem:[#allocation86_spill] sm:$0xff] %v8496_v63  ;;  %v2106_v12 = vadd.f32 %v2105_v26, %v8496_v63  ;;  %v2353_v29 = vmul.f32 %v8496_v63, %v8496_v63  ;;  %v7055_v5 = vpop.f32.mrb[121].mxu0 }
 0x1e7   :  { %v8507_v27 = vpop.f32.mrb[122].mxu0  ;;  %v8514_v5 = vpop.f32.mrb[64].mxu1 }
 0x1e8   :  { %16077 = vst [vmem:[#allocation87_spill] sm:$0xff] %v8507_v27  ;;  %v2593_v60 = vadd.f32 %v2592_v42, %v2353_v29  ;;  %v2107_v8 = vadd.f32 %v2106_v12, %v8507_v27  ;;  %v2354_v56 = vmul.f32 %v8507_v27, %v8507_v27  ;;  %v7056_v38 = vpop.f32.mrb[123].mxu0  ;;  %16078 = vst [vmem:[#allocation88_spill] sm:$0xff] %v8514_v5  ;;  %v7243_v63 = vpop.f32.mrb[65].mxu1 }
 0x1e9   :  { %v8518_v30 = vpop.f32.mrb[66].mxu1  ;;  %v7547_v38 = vld [vmem:[%s15321_s0 + $0x340] sm:$0xff]  }
 0x1ea   :  { %v2594_v26 = vadd.f32 %v2593_v60, %v2354_v56  ;;  %7162 = vmatmul.mubr.bf16.gmra.mrb[228].mxu0 %v7527_v36  ;;  %16079 = vst [vmem:[#allocation89_spill] sm:$0xff] %v8518_v30  ;;  %v7244_v54 = vpop.f32.mrb[67].mxu1  ;;  %v7529_v36 = vld [vmem:[%s15321_s0 + $0x1d0] sm:$0xff]   ;;  %7350 = vmatmul.mubr.bf16.gmra.mrb[172].mxu1 %v7547_v38 }
 0x1eb   :  { %7165 = vmatprep.mubr.msk.bf16.mxu0 %vm7567_vm0, %v16042_v59  ;;  %7353 = vmatprep.mubr.msk.bf16.mxu1 %vm7567_vm0, %v16042_v59 }
 0x1ed   :  { %v8520_v42 = vpop.f32.mrb[124].mxu0 }
 0x1ee   :  { %16080 = vst [vmem:[#allocation90_spill] sm:$0xff] %v8520_v42  ;;  %v2108_v12 = vadd.f32 %v2107_v8, %v8520_v42  ;;  %v2355_v56 = vmul.f32 %v8520_v42, %v8520_v42  ;;  %v7059_v29 = vpop.f32.mrb[125].mxu0 }
 0x1ef   :  { %v8531_v63 = vpop.f32.mrb[126].mxu0  ;;  %v8538_v29 = vpop.f32.mrb[68].mxu1 }
 0x1f0   :  { %16081 = vst [vmem:[#allocation91_spill] sm:$0xff] %v8531_v63  ;;  %v2595_v60 = vadd.f32 %v2594_v26, %v2355_v56  ;;  %v2109_v54 = vadd.f32 %v2108_v12, %v8531_v63  ;;  %v2356_v27 = vmul.f32 %v8531_v63, %v8531_v63  ;;  %v7060_v23 = vpop.f32.mrb[127].mxu0  ;;  %16082 = vst [vmem:[#allocation92_spill] sm:$0xff] %v8538_v29  ;;  %v7247_v42 = vpop.f32.mrb[69].mxu1 }
 0x1f1   :  { %v8542_v16 = vpop.f32.mrb[70].mxu1  ;;  %v7548_v23 = vld [vmem:[%s15321_s0 + $0x348] sm:$0xff]  }
 0x1f2   :  { %v2596_v8 = vadd.f32 %v2595_v60, %v2356_v27  ;;  %7166 = vmatmul.mubr.bf16.gmra.mrb[232].mxu0 %v7529_v36  ;;  %16083 = vst [vmem:[#allocation93_spill] sm:$0xff] %v8542_v16  ;;  %v7248_v38 = vpop.f32.mrb[71].mxu1  ;;  %v7531_v36 = vld [vmem:[%s15321_s0 + $0x1d8] sm:$0xff]   ;;  %7354 = vmatmul.mubr.bf16.gmra.mrb[176].mxu1 %v7548_v23 }
 0x1f3   :  { %7169 = vmatprep.mubr.msk.bf16.mxu0 %vm7567_vm0, %v16042_v59  ;;  %7357 = vmatprep.mubr.msk.bf16.mxu1 %vm7567_vm0, %v16042_v59 }
 0x1f5   :  { %v8544_v26 = vpop.f32.mrb[128].mxu0 }
 0x1f6   :  { %16084 = vst [vmem:[#allocation94_spill] sm:$0xff] %v8544_v26  ;;  %v2110_v12 = vadd.f32 %v2109_v54, %v8544_v26  ;;  %v2357_v27 = vmul.f32 %v8544_v26, %v8544_v26  ;;  %v7063_v56 = vpop.f32.mrb[129].mxu0 }
 0x1f7   :  { %v8555_v42 = vpop.f32.mrb[130].mxu0  ;;  %v8562_v56 = vpop.f32.mrb[72].mxu1 }
 0x1f8   :  { %16085 = vst [vmem:[#allocation95_spill] sm:$0xff] %v8555_v42  ;;  %v2597_v60 = vadd.f32 %v2596_v8, %v2357_v27  ;;  %v2111_v38 = vadd.f32 %v2110_v12, %v8555_v42  ;;  %v2358_v63 = vmul.f32 %v8555_v42, %v8555_v42  ;;  %v7064_v9 = vpop.f32.mrb[131].mxu0  ;;  %16086 = vst [vmem:[#allocation96_spill] sm:$0xff] %v8562_v56  ;;  %v7251_v26 = vpop.f32.mrb[73].mxu1 }
 0x1f9   :  { %v8566_v2 = vpop.f32.mrb[74].mxu1  ;;  %v7549_v9 = vld [vmem:[%s15321_s0 + $0x350] sm:$0xff]  }
 0x1fa   :  { %v2598_v54 = vadd.f32 %v2597_v60, %v2358_v63  ;;  %7170 = vmatmul.mubr.bf16.gmra.mrb[236].mxu0 %v7531_v36  ;;  %16087 = vst [vmem:[#allocation97_spill] sm:$0xff] %v8566_v2  ;;  %v7252_v23 = vpop.f32.mrb[75].mxu1  ;;  %v7533_v36 = vld [vmem:[%s15321_s0 + $0x1e0] sm:$0xff]   ;;  %7358 = vmatmul.mubr.bf16.gmra.mrb[180].mxu1 %v7549_v9 }
 0x1fb   :  { %7173 = vmatprep.mubr.msk.bf16.mxu0 %vm7567_vm0, %v16042_v59  ;;  %7361 = vmatprep.mubr.msk.bf16.mxu1 %vm7567_vm0, %v16042_v59 }
 0x1fd   :  { %v8568_v8 = vpop.f32.mrb[132].mxu0 }
 0x1fe   :  { %16088 = vst [vmem:[#allocation98_spill] sm:$0xff] %v8568_v8  ;;  %v2112_v12 = vadd.f32 %v2111_v38, %v8568_v8  ;;  %v2359_v63 = vmul.f32 %v8568_v8, %v8568_v8  ;;  %v7067_v27 = vpop.f32.mrb[133].mxu0 }
 0x1ff   :  { %v8579_v26 = vpop.f32.mrb[134].mxu0  ;;  %v8586_v27 = vpop.f32.mrb[76].mxu1 }
 0x200   :  { %16089 = vst [vmem:[#allocation99_spill] sm:$0xff] %v8579_v26  ;;  %v2599_v60 = vadd.f32 %v2598_v54, %v2359_v63  ;;  %v2113_v23 = vadd.f32 %v2112_v12, %v8579_v26  ;;  %v2360_v42 = vmul.f32 %v8579_v26, %v8579_v26  ;;  %v7068_v57 = vpop.f32.mrb[135].mxu0  ;;  %16090 = vst [vmem:[#allocation100_spill] sm:$0xff] %v8586_v27  ;;  %v7255_v8 = vpop.f32.mrb[77].mxu1  ;;  %v7550_v54 = vld [vmem:[%s15321_s0 + $0x358] sm:$0xff]  }
 0x201   :  { %v8588_v50 = vpop.f32.mrb[78].mxu1 }
 0x202   :  { %v2600_v38 = vadd.f32 %v2599_v60, %v2360_v42  ;;  %7174 = vmatmul.mubr.bf16.gmra.mrb[240].mxu0 %v7533_v36  ;;  %16091 = vst [vmem:[#allocation101_spill] sm:$0xff] %v8588_v50  ;;  %v7256_v9 = vpop.f32.mrb[79].mxu1  ;;  %7362 = vmatmul.mubr.bf16.gmra.mrb[184].mxu1 %v7550_v54 }
 0x203   :  { %7365 = vmatprep.mubr.msk.bf16.mxu1 %vm7567_vm0, %v16042_v59  ;;  %v8605_v37 = vpop.f32.mrb[80].mxu1 }
 0x204   :  { %16094 = vst [vmem:[#allocation104_spill] sm:$0xff] %v8605_v37 }
 0x205   :  { %v8590_v43 = vpop.f32.mrb[136].mxu0 }
 0x206   :  { %16092 = vst [vmem:[#allocation102_spill] sm:$0xff] %v8590_v43  ;;  %v2114_v12 = vadd.f32 %v2113_v23, %v8590_v43  ;;  %v2361_v57 = vmul.f32 %v8590_v43, %v8590_v43  ;;  %v7071_v63 = vpop.f32.mrb[137].mxu0  ;;  %v7259_v23 = vpop.f32.mrb[81].mxu1 }
 0x207   :  { %v8598_v42 = vpop.f32.mrb[138].mxu0  ;;  %v8607_v31 = vpop.f32.mrb[82].mxu1 }
 0x208   :  { %16093 = vst [vmem:[#allocation103_spill] sm:$0xff] %v8598_v42  ;;  %v2601_v36 = vadd.f32 %v2600_v38, %v2361_v57  ;;  %v2115_v8 = vadd.f32 %v2114_v12, %v8598_v42  ;;  %v2362_v60 = vmul.f32 %v8598_v42, %v8598_v42  ;;  %v7072_v9 = vpop.f32.mrb[139].mxu0  ;;  %16095 = vst [vmem:[#allocation105_spill] sm:$0xff] %v8607_v31  ;;  %v7260_v43 = vpop.f32.mrb[83].mxu1  ;;  %v7551_v38 = vld [vmem:[%s15321_s0 + $0x360] sm:$0xff]  }
 0x209   :  { %v8624_v25 = vpop.f32.mrb[84].mxu1 }
 0x20a   :  { %v2602_v26 = vadd.f32 %v2601_v36, %v2362_v60  ;;  %7366 = vmatmul.mubr.bf16.gmra.mrb[188].mxu1 %v7551_v38  ;;  %16098 = vst [vmem:[#allocation108_spill] sm:$0xff] %v8624_v25 }
 0x20b   :  { %7369 = vmatprep.mubr.msk.bf16.mxu1 %vm7567_vm0, %v16042_v59 }
 0x20d   :  { %v8609_v63 = vpop.f32.mrb[140].mxu0 }
 0x20e   :  { %16096 = vst [vmem:[#allocation106_spill] sm:$0xff] %v8609_v63  ;;  %v2116_v54 = vadd.f32 %v2115_v8, %v8609_v63  ;;  %v2363_v12 = vmul.f32 %v8609_v63, %v8609_v63  ;;  %v7075_v57 = vpop.f32.mrb[141].mxu0  ;;  %v7263_v8 = vpop.f32.mrb[85].mxu1 }
 0x20f   :  { %v8617_v9 = vpop.f32.mrb[142].mxu0  ;;  %v8626_v19 = vpop.f32.mrb[86].mxu1 }
 0x210   :  { %16097 = vst [vmem:[#allocation107_spill] sm:$0xff] %v8617_v9  ;;  %v2603_v36 = vadd.f32 %v2602_v26, %v2363_v12  ;;  %v2117_v60 = vadd.f32 %v2116_v54, %v8617_v9  ;;  %v2364_v23 = vmul.f32 %v8617_v9, %v8617_v9  ;;  %v7076_v43 = vpop.f32.mrb[143].mxu0  ;;  %16099 = vst [vmem:[#allocation109_spill] sm:$0xff] %v8626_v19  ;;  %v7264_v63 = vpop.f32.mrb[87].mxu1  ;;  %v7552_v26 = vld [vmem:[%s15321_s0 + $0x368] sm:$0xff]  }
 0x211   :  { %v8643_v13 = vpop.f32.mrb[88].mxu1 }
 0x212   :  { %v2604_v42 = vadd.f32 %v2603_v36, %v2364_v23  ;;  %7370 = vmatmul.mubr.bf16.gmra.mrb[192].mxu1 %v7552_v26  ;;  %16102 = vst [vmem:[#allocation112_spill] sm:$0xff] %v8643_v13 }
 0x213   :  { %7373 = vmatprep.mubr.msk.bf16.mxu1 %vm7567_vm0, %v16042_v59 }
 0x215   :  { %v8628_v57 = vpop.f32.mrb[144].mxu0 }
 0x216   :  { %16100 = vst [vmem:[#allocation110_spill] sm:$0xff] %v8628_v57  ;;  %v2118_v38 = vadd.f32 %v2117_v60, %v8628_v57  ;;  %v2365_v54 = vmul.f32 %v8628_v57, %v8628_v57  ;;  %v7079_v12 = vpop.f32.mrb[145].mxu0  ;;  %v7267_v60 = vpop.f32.mrb[89].mxu1 }
 0x217   :  { %v8636_v43 = vpop.f32.mrb[146].mxu0  ;;  %v8645_v7 = vpop.f32.mrb[90].mxu1 }
 0x218   :  { %16101 = vst [vmem:[#allocation111_spill] sm:$0xff] %v8636_v43  ;;  %v2605_v36 = vadd.f32 %v2604_v42, %v2365_v54  ;;  %v2119_v23 = vadd.f32 %v2118_v38, %v8636_v43  ;;  %v2366_v8 = vmul.f32 %v8636_v43, %v8636_v43  ;;  %v7080_v63 = vpop.f32.mrb[147].mxu0  ;;  %16103 = vst [vmem:[#allocation113_spill] sm:$0xff] %v8645_v7  ;;  %v7268_v57 = vpop.f32.mrb[91].mxu1  ;;  %v7553_v42 = vld [vmem:[%s15321_s0 + $0x370] sm:$0xff]  }
 0x219   :  { %v8662_v1 = vpop.f32.mrb[92].mxu1 }
 0x21a   :  { %v2606_v9 = vadd.f32 %v2605_v36, %v2366_v8  ;;  %7374 = vmatmul.mubr.bf16.gmra.mrb[196].mxu1 %v7553_v42  ;;  %16106 = vst [vmem:[#allocation116_spill] sm:$0xff] %v8662_v1 }
 0x21b   :  { %7377 = vmatprep.mubr.msk.bf16.mxu1 %vm7567_vm0, %v16042_v59 }
 0x21d   :  { %v8647_v12 = vpop.f32.mrb[148].mxu0 }
 0x21e   :  { %16104 = vst [vmem:[#allocation114_spill] sm:$0xff] %v8647_v12  ;;  %v2120_v26 = vadd.f32 %v2119_v23, %v8647_v12  ;;  %v2367_v38 = vmul.f32 %v8647_v12, %v8647_v12  ;;  %v7083_v54 = vpop.f32.mrb[149].mxu0  ;;  %v7271_v23 = vpop.f32.mrb[93].mxu1 }
 0x21f   :  { %v8655_v63 = vpop.f32.mrb[150].mxu0  ;;  %v8664_v58 = vpop.f32.mrb[94].mxu1 }
 0x220   :  { %16105 = vst [vmem:[#allocation115_spill] sm:$0xff] %v8655_v63  ;;  %v2607_v36 = vadd.f32 %v2606_v9, %v2367_v38  ;;  %v2121_v8 = vadd.f32 %v2120_v26, %v8655_v63  ;;  %v2368_v60 = vmul.f32 %v8655_v63, %v8655_v63  ;;  %v7084_v57 = vpop.f32.mrb[151].mxu0  ;;  %16107 = vst [vmem:[#allocation117_spill] sm:$0xff] %v8664_v58  ;;  %v7272_v12 = vpop.f32.mrb[95].mxu1  ;;  %v7554_v9 = vld [vmem:[%s15321_s0 + $0x378] sm:$0xff]  }
 0x221   :  { %v8681_v52 = vpop.f32.mrb[96].mxu1 }
 0x222   :  { %v2608_v43 = vadd.f32 %v2607_v36, %v2368_v60  ;;  %7378 = vmatmul.mubr.bf16.gmra.mrb[200].mxu1 %v7554_v9  ;;  %16110 = vst [vmem:[#allocation120_spill] sm:$0xff] %v8681_v52 }
 0x223   :  { %7381 = vmatprep.mubr.msk.bf16.mxu1 %vm7567_vm0, %v16042_v59 }
 0x225   :  { %v8666_v54 = vpop.f32.mrb[152].mxu0 }
 0x226   :  { %16108 = vst [vmem:[#allocation118_spill] sm:$0xff] %v8666_v54  ;;  %v2122_v42 = vadd.f32 %v2121_v8, %v8666_v54  ;;  %v2369_v26 = vmul.f32 %v8666_v54, %v8666_v54  ;;  %v7087_v38 = vpop.f32.mrb[153].mxu0  ;;  %v7275_v8 = vpop.f32.mrb[97].mxu1 }
 0x227   :  { %v8674_v57 = vpop.f32.mrb[154].mxu0  ;;  %v8683_v48 = vpop.f32.mrb[98].mxu1 }
 0x228   :  { %16109 = vst [vmem:[#allocation119_spill] sm:$0xff] %v8674_v57  ;;  %v2609_v36 = vadd.f32 %v2608_v43, %v2369_v26  ;;  %v2123_v60 = vadd.f32 %v2122_v42, %v8674_v57  ;;  %v2370_v23 = vmul.f32 %v8674_v57, %v8674_v57  ;;  %v7088_v12 = vpop.f32.mrb[155].mxu0  ;;  %16111 = vst [vmem:[#allocation121_spill] sm:$0xff] %v8683_v48  ;;  %v7276_v54 = vpop.f32.mrb[99].mxu1  ;;  %v7555_v43 = vld [vmem:[%s15321_s0 + $0x380] sm:$0xff]  }
 0x229   :  { %v8700_v48 = vpop.f32.mrb[100].mxu1 }
 0x22a   :  { %v2610_v63 = vadd.f32 %v2609_v36, %v2370_v23  ;;  %7382 = vmatmul.mubr.bf16.gmra.mrb[204].mxu1 %v7555_v43  ;;  %16114 = vst [vmem:[#allocation124_spill] sm:$0xff] %v8700_v48 }
 0x22b   :  { %7385 = vmatprep.mubr.msk.bf16.mxu1 %vm7567_vm0, %v16042_v59 }
 0x22d   :  { %v8685_v38 = vpop.f32.mrb[156].mxu0 }
 0x22e   :  { %16112 = vst [vmem:[#allocation122_spill] sm:$0xff] %v8685_v38  ;;  %v2124_v9 = vadd.f32 %v2123_v60, %v8685_v38  ;;  %v2371_v42 = vmul.f32 %v8685_v38, %v8685_v38  ;;  %v7091_v26 = vpop.f32.mrb[157].mxu0  ;;  %v7279_v60 = vpop.f32.mrb[101].mxu1 }
 0x22f   :  { %v8693_v12 = vpop.f32.mrb[158].mxu0  ;;  %v8702_v52 = vpop.f32.mrb[102].mxu1 }
 0x230   :  { %16113 = vst [vmem:[#allocation123_spill] sm:$0xff] %v8693_v12  ;;  %v2611_v36 = vadd.f32 %v2610_v63, %v2371_v42  ;;  %v2125_v23 = vadd.f32 %v2124_v9, %v8693_v12  ;;  %v2372_v8 = vmul.f32 %v8693_v12, %v8693_v12  ;;  %v7092_v54 = vpop.f32.mrb[159].mxu0  ;;  %16115 = vst [vmem:[#allocation125_spill] sm:$0xff] %v8702_v52  ;;  %v7280_v38 = vpop.f32.mrb[103].mxu1  ;;  %v7556_v63 = vld [vmem:[%s15321_s0 + $0x388] sm:$0xff]  }
 0x231   :  { %v8719_v52 = vpop.f32.mrb[104].mxu1 }
 0x232   :  { %v2612_v57 = vadd.f32 %v2611_v36, %v2372_v8  ;;  %7386 = vmatmul.mubr.bf16.gmra.mrb[208].mxu1 %v7556_v63  ;;  %16118 = vst [vmem:[#allocation128_spill] sm:$0xff] %v8719_v52 }
 0x233   :  { %7389 = vmatprep.mubr.msk.bf16.mxu1 %vm7567_vm0, %v16042_v59 }
 0x235   :  { %v8704_v26 = vpop.f32.mrb[160].mxu0 }
 0x236   :  { %16116 = vst [vmem:[#allocation126_spill] sm:$0xff] %v8704_v26  ;;  %v2126_v43 = vadd.f32 %v2125_v23, %v8704_v26  ;;  %v2373_v9 = vmul.f32 %v8704_v26, %v8704_v26  ;;  %v7095_v42 = vpop.f32.mrb[161].mxu0  ;;  %v7283_v23 = vpop.f32.mrb[105].mxu1 }
 0x237   :  { %v8712_v54 = vpop.f32.mrb[162].mxu0  ;;  %v8721_v48 = vpop.f32.mrb[106].mxu1 }
 0x238   :  { %16117 = vst [vmem:[#allocation127_spill] sm:$0xff] %v8712_v54  ;;  %v2613_v36 = vadd.f32 %v2612_v57, %v2373_v9  ;;  %v2127_v8 = vadd.f32 %v2126_v43, %v8712_v54  ;;  %v2374_v60 = vmul.f32 %v8712_v54, %v8712_v54  ;;  %v7096_v38 = vpop.f32.mrb[163].mxu0  ;;  %16119 = vst [vmem:[#allocation129_spill] sm:$0xff] %v8721_v48  ;;  %v7284_v26 = vpop.f32.mrb[107].mxu1  ;;  %v7557_v57 = vld [vmem:[%s15321_s0 + $0x390] sm:$0xff]  }
 0x239   :  { %v8738_v48 = vpop.f32.mrb[108].mxu1 }
 0x23a   :  { %v2614_v12 = vadd.f32 %v2613_v36, %v2374_v60  ;;  %7390 = vmatmul.mubr.bf16.gmra.mrb[212].mxu1 %v7557_v57  ;;  %16122 = vst [vmem:[#allocation132_spill] sm:$0xff] %v8738_v48 }
 0x23b   :  { %7393 = vmatprep.mubr.msk.bf16.mxu1 %vm7567_vm0, %v16042_v59 }
 0x23d   :  { %v8723_v42 = vpop.f32.mrb[164].mxu0 }
 0x23e   :  { %16120 = vst [vmem:[#allocation130_spill] sm:$0xff] %v8723_v42  ;;  %v2128_v63 = vadd.f32 %v2127_v8, %v8723_v42  ;;  %v2375_v43 = vmul.f32 %v8723_v42, %v8723_v42  ;;  %v7099_v9 = vpop.f32.mrb[165].mxu0  ;;  %v7287_v8 = vpop.f32.mrb[109].mxu1 }
 0x23f   :  { %v8731_v38 = vpop.f32.mrb[166].mxu0  ;;  %v8740_v52 = vpop.f32.mrb[110].mxu1 }
 0x240   :  { %16121 = vst [vmem:[#allocation131_spill] sm:$0xff] %v8731_v38  ;;  %v2615_v36 = vadd.f32 %v2614_v12, %v2375_v43  ;;  %v2129_v60 = vadd.f32 %v2128_v63, %v8731_v38  ;;  %v2376_v23 = vmul.f32 %v8731_v38, %v8731_v38  ;;  %v7100_v26 = vpop.f32.mrb[167].mxu0  ;;  %16123 = vst [vmem:[#allocation133_spill] sm:$0xff] %v8740_v52  ;;  %v7288_v42 = vpop.f32.mrb[111].mxu1  ;;  %v7558_v12 = vld [vmem:[%s15321_s0 + $0x398] sm:$0xff]  }
 0x241   :  { %v8757_v52 = vpop.f32.mrb[112].mxu1 }
 0x242   :  { %v2616_v54 = vadd.f32 %v2615_v36, %v2376_v23  ;;  %7394 = vmatmul.mubr.bf16.gmra.mrb[216].mxu1 %v7558_v12  ;;  %16126 = vst [vmem:[#allocation136_spill] sm:$0xff] %v8757_v52 }
 0x243   :  { %7397 = vmatprep.mubr.msk.bf16.mxu1 %vm7567_vm0, %v16042_v59 }
 0x245   :  { %v8742_v9 = vpop.f32.mrb[168].mxu0 }
 0x246   :  { %16124 = vst [vmem:[#allocation134_spill] sm:$0xff] %v8742_v9  ;;  %v2130_v57 = vadd.f32 %v2129_v60, %v8742_v9  ;;  %v2377_v63 = vmul.f32 %v8742_v9, %v8742_v9  ;;  %v7103_v43 = vpop.f32.mrb[169].mxu0  ;;  %v7291_v60 = vpop.f32.mrb[113].mxu1 }
 0x247   :  { %v8750_v26 = vpop.f32.mrb[170].mxu0  ;;  %v8759_v48 = vpop.f32.mrb[114].mxu1 }
 0x248   :  { %16125 = vst [vmem:[#allocation135_spill] sm:$0xff] %v8750_v26  ;;  %v2617_v36 = vadd.f32 %v2616_v54, %v2377_v63  ;;  %v2131_v23 = vadd.f32 %v2130_v57, %v8750_v26  ;;  %v2378_v8 = vmul.f32 %v8750_v26, %v8750_v26  ;;  %v7104_v42 = vpop.f32.mrb[171].mxu0  ;;  %16127 = vst [vmem:[#allocation137_spill] sm:$0xff] %v8759_v48  ;;  %v7292_v9 = vpop.f32.mrb[115].mxu1  ;;  %v7559_v54 = vld [vmem:[%s15321_s0 + $0x3a0] sm:$0xff]  }
 0x249   :  { %v8776_v48 = vpop.f32.mrb[116].mxu1 }
 0x24a   :  { %v2618_v38 = vadd.f32 %v2617_v36, %v2378_v8  ;;  %7398 = vmatmul.mubr.bf16.gmra.mrb[220].mxu1 %v7559_v54  ;;  %16130 = vst [vmem:[#allocation140_spill] sm:$0xff] %v8776_v48 }
 0x24b   :  { %7401 = vmatprep.mubr.msk.bf16.mxu1 %vm7567_vm0, %v16042_v59 }
 0x24d   :  { %v8761_v43 = vpop.f32.mrb[172].mxu0 }
 0x24e   :  { %16128 = vst [vmem:[#allocation138_spill] sm:$0xff] %v8761_v43  ;;  %v2132_v12 = vadd.f32 %v2131_v23, %v8761_v43  ;;  %v2379_v57 = vmul.f32 %v8761_v43, %v8761_v43  ;;  %v7107_v63 = vpop.f32.mrb[173].mxu0  ;;  %v7295_v23 = vpop.f32.mrb[117].mxu1 }
 0x24f   :  { %v8769_v42 = vpop.f32.mrb[174].mxu0  ;;  %v8778_v52 = vpop.f32.mrb[118].mxu1 }
 0x250   :  { %16129 = vst [vmem:[#allocation139_spill] sm:$0xff] %v8769_v42  ;;  %v2619_v36 = vadd.f32 %v2618_v38, %v2379_v57  ;;  %v2133_v8 = vadd.f32 %v2132_v12, %v8769_v42  ;;  %v2380_v60 = vmul.f32 %v8769_v42, %v8769_v42  ;;  %v7108_v9 = vpop.f32.mrb[175].mxu0  ;;  %16131 = vst [vmem:[#allocation141_spill] sm:$0xff] %v8778_v52  ;;  %v7296_v43 = vpop.f32.mrb[119].mxu1  ;;  %v7560_v38 = vld [vmem:[%s15321_s0 + $0x3a8] sm:$0xff]  }
 0x252   :  { %v2620_v26 = vadd.f32 %v2619_v36, %v2380_v60  ;;  %7402 = vmatmul.mubr.bf16.gmra.mrb[224].mxu1 %v7560_v38  ;;  %v8795_v52 = vpop.f32.mrb[120].mxu1 }
 0x253   :  { %7405 = vmatprep.mubr.msk.bf16.mxu1 %vm7567_vm0, %v16042_v59  ;;  %16134 = vst [vmem:[#allocation144_spill] sm:$0xff] %v8795_v52 }
 0x255   :  { %v8780_v63 = vpop.f32.mrb[176].mxu0 }
 0x256   :  { %16132 = vst [vmem:[#allocation142_spill] sm:$0xff] %v8780_v63  ;;  %v2134_v54 = vadd.f32 %v2133_v8, %v8780_v63  ;;  %v2381_v12 = vmul.f32 %v8780_v63, %v8780_v63  ;;  %v7111_v57 = vpop.f32.mrb[177].mxu0  ;;  %v7299_v8 = vpop.f32.mrb[121].mxu1 }
 0x257   :  { %v8788_v9 = vpop.f32.mrb[178].mxu0  ;;  %v8797_v48 = vpop.f32.mrb[122].mxu1 }
 0x258   :  { %16133 = vst [vmem:[#allocation143_spill] sm:$0xff] %v8788_v9  ;;  %v2621_v36 = vadd.f32 %v2620_v26, %v2381_v12  ;;  %v2135_v60 = vadd.f32 %v2134_v54, %v8788_v9  ;;  %v2382_v23 = vmul.f32 %v8788_v9, %v8788_v9  ;;  %v7112_v43 = vpop.f32.mrb[179].mxu0  ;;  %16135 = vst [vmem:[#allocation145_spill] sm:$0xff] %v8797_v48  ;;  %v7300_v63 = vpop.f32.mrb[123].mxu1  ;;  %v7561_v26 = vld [vmem:[%s15321_s0 + $0x3b0] sm:$0xff]  }
 0x25a   :  { %v2622_v42 = vadd.f32 %v2621_v36, %v2382_v23  ;;  %7406 = vmatmul.mubr.bf16.gmra.mrb[228].mxu1 %v7561_v26  ;;  %v8814_v48 = vpop.f32.mrb[124].mxu1 }
 0x25b   :  { %7409 = vmatprep.mubr.msk.bf16.mxu1 %vm7567_vm0, %v16042_v59  ;;  %16138 = vst [vmem:[#allocation148_spill] sm:$0xff] %v8814_v48 }
 0x25d   :  { %v8799_v57 = vpop.f32.mrb[180].mxu0 }
 0x25e   :  { %16136 = vst [vmem:[#allocation146_spill] sm:$0xff] %v8799_v57  ;;  %v2136_v38 = vadd.f32 %v2135_v60, %v8799_v57  ;;  %v2383_v54 = vmul.f32 %v8799_v57, %v8799_v57  ;;  %v7115_v12 = vpop.f32.mrb[181].mxu0  ;;  %v7303_v60 = vpop.f32.mrb[125].mxu1 }
 0x25f   :  { %v8807_v43 = vpop.f32.mrb[182].mxu0  ;;  %v8816_v52 = vpop.f32.mrb[126].mxu1 }
 0x260   :  { %16137 = vst [vmem:[#allocation147_spill] sm:$0xff] %v8807_v43  ;;  %v2623_v36 = vadd.f32 %v2622_v42, %v2383_v54  ;;  %v2137_v23 = vadd.f32 %v2136_v38, %v8807_v43  ;;  %v2384_v8 = vmul.f32 %v8807_v43, %v8807_v43  ;;  %v7116_v63 = vpop.f32.mrb[183].mxu0  ;;  %16139 = vst [vmem:[#allocation149_spill] sm:$0xff] %v8816_v52  ;;  %v7304_v57 = vpop.f32.mrb[127].mxu1  ;;  %v7562_v42 = vld [vmem:[%s15321_s0 + $0x3b8] sm:$0xff]  }
 0x262   :  { %v2624_v9 = vadd.f32 %v2623_v36, %v2384_v8  ;;  %7410 = vmatmul.mubr.bf16.gmra.mrb[232].mxu1 %v7562_v42 }
 0x263   :  { %7413 = vmatprep.mubr.msk.bf16.mxu1 %vm7567_vm0, %v16042_v59 }
 0x264   :  { %v8833_v52 = vpop.f32.mrb[128].mxu1 }
 0x265   :  { %v8818_v12 = vpop.f32.mrb[184].mxu0  ;;  %16142 = vst [vmem:[#allocation152_spill] sm:$0xff] %v8833_v52 }
 0x266   :  { %16140 = vst [vmem:[#allocation150_spill] sm:$0xff] %v8818_v12  ;;  %v2138_v26 = vadd.f32 %v2137_v23, %v8818_v12  ;;  %v2385_v38 = vmul.f32 %v8818_v12, %v8818_v12  ;;  %v7119_v54 = vpop.f32.mrb[185].mxu0  ;;  %v7307_v23 = vpop.f32.mrb[129].mxu1 }
 0x267   :  { %v8826_v63 = vpop.f32.mrb[186].mxu0  ;;  %v8835_v48 = vpop.f32.mrb[130].mxu1 }
 0x268   :  { %16141 = vst [vmem:[#allocation151_spill] sm:$0xff] %v8826_v63  ;;  %v2625_v36 = vadd.f32 %v2624_v9, %v2385_v38  ;;  %v2139_v8 = vadd.f32 %v2138_v26, %v8826_v63  ;;  %v2386_v60 = vmul.f32 %v8826_v63, %v8826_v63  ;;  %v7120_v57 = vpop.f32.mrb[187].mxu0  ;;  %16143 = vst [vmem:[#allocation153_spill] sm:$0xff] %v8835_v48  ;;  %v7308_v12 = vpop.f32.mrb[131].mxu1  ;;  %v7563_v9 = vld [vmem:[%s15321_s0 + $0x3c0] ss:$0 sps:$4 sm:$0xff]  }
 0x26a   :  { %v2626_v43 = vadd.f32 %v2625_v36, %v2386_v60  ;;  %7414 = vmatmul.mubr.bf16.gmra.mrb[236].mxu1 %v7563_v9 }
 0x26d   :  { %v8837_v54 = vpop.f32.mrb[188].mxu0  ;;  %v8850_v63 = vpop.f32.mrb[132].mxu1 }
 0x26e   :  { %16144 = vst [vmem:[#allocation154_spill] sm:$0xff] %v8837_v54  ;;  %v2140_v42 = vadd.f32 %v2139_v8, %v8837_v54  ;;  %v2387_v26 = vmul.f32 %v8837_v54, %v8837_v54  ;;  %v7123_v38 = vpop.f32.mrb[189].mxu0  ;;  %16146 = vst [vmem:[#allocation156_spill] sm:$0xff] %v8850_v63  ;;  %v7311_v48 = vpop.f32.mrb[133].mxu1 }
 0x26f   :  { %v8845_v59 = vpop.f32.mrb[190].mxu0  ;;  %v8852_v52 = vpop.f32.mrb[134].mxu1 }
 0x270   :  { %16145 = vst [vmem:[#allocation155_spill] sm:$0xff] %v8845_v59  ;;  %v2627_v36 = vadd.f32 %v2626_v43, %v2387_v26  ;;  %v2141_v60 = vadd.f32 %v2140_v42, %v8845_v59  ;;  %v2388_v57 = vmul.f32 %v8845_v59, %v8845_v59  ;;  %v7124_v12 = vpop.f32.mrb[191].mxu0  ;;  %16147 = vst [vmem:[#allocation157_spill] sm:$0xff] %v8852_v52  ;;  %v7312_v54 = vpop.f32.mrb[135].mxu1 }
 0x272   :  { %v2628_v23 = vadd.f32 %v2627_v36, %v2388_v57 }
 0x275   :  { %v8854_v8 = vpop.f32.mrb[192].mxu0  ;;  %v8864_v59 = vpop.f32.mrb[136].mxu1 }
 0x276   :  { %16148 = vst [vmem:[#allocation158_spill] sm:$0xff] %v8854_v8  ;;  %v2142_v38 = vadd.f32 %v2141_v60, %v8854_v8  ;;  %v2389_v43 = vmul.f32 %v8854_v8, %v8854_v8  ;;  %v7127_v9 = vpop.f32.mrb[193].mxu0  ;;  %16150 = vst [vmem:[#allocation160_spill] sm:$0xff] %v8864_v59  ;;  %v7315_v52 = vpop.f32.mrb[137].mxu1 }
 0x277   :  { %v8859_v42 = vpop.f32.mrb[194].mxu0  ;;  %v8866_v54 = vpop.f32.mrb[138].mxu1 }
 0x278   :  { %16149 = vst [vmem:[#allocation159_spill] sm:$0xff] %v8859_v42  ;;  %v2629_v26 = vadd.f32 %v2628_v23, %v2389_v43  ;;  %v2143_v12 = vadd.f32 %v2142_v38, %v8859_v42  ;;  %v2390_v36 = vmul.f32 %v8859_v42, %v8859_v42  ;;  %v7128_v48 = vpop.f32.mrb[195].mxu0  ;;  %16151 = vst [vmem:[#allocation161_spill] sm:$0xff] %v8866_v54  ;;  %v7316_v63 = vpop.f32.mrb[139].mxu1 }
 0x27a   :  { %v2630_v57 = vadd.f32 %v2629_v26, %v2390_v36 }
 0x27d   :  { %v8868_v60 = vpop.f32.mrb[196].mxu0  ;;  %v8878_v42 = vpop.f32.mrb[140].mxu1 }
 0x27e   :  { %16152 = vst [vmem:[#allocation162_spill] sm:$0xff] %v8868_v60  ;;  %v2144_v9 = vadd.f32 %v2143_v12, %v8868_v60  ;;  %v2391_v23 = vmul.f32 %v8868_v60, %v8868_v60  ;;  %v7131_v43 = vpop.f32.mrb[197].mxu0  ;;  %16154 = vst [vmem:[#allocation164_spill] sm:$0xff] %v8878_v42  ;;  %v7319_v54 = vpop.f32.mrb[141].mxu1 }
 0x27f   :  { %v8873_v38 = vpop.f32.mrb[198].mxu0  ;;  %v8880_v63 = vpop.f32.mrb[142].mxu1 }
 0x280   :  { %16153 = vst [vmem:[#allocation163_spill] sm:$0xff] %v8873_v38  ;;  %v2631_v8 = vadd.f32 %v2630_v57, %v2391_v23  ;;  %v2145_v48 = vadd.f32 %v2144_v9, %v8873_v38  ;;  %v2392_v26 = vmul.f32 %v8873_v38, %v8873_v38  ;;  %v7132_v52 = vpop.f32.mrb[199].mxu0  ;;  %16155 = vst [vmem:[#allocation165_spill] sm:$0xff] %v8880_v63  ;;  %v7320_v59 = vpop.f32.mrb[143].mxu1 }
 0x282   :  { %v2632_v36 = vadd.f32 %v2631_v8, %v2392_v26 }
 0x285   :  { %v8882_v12 = vpop.f32.mrb[200].mxu0  ;;  %v8892_v38 = vpop.f32.mrb[144].mxu1 }
 0x286   :  { %16156 = vst [vmem:[#allocation166_spill] sm:$0xff] %v8882_v12  ;;  %v2146_v43 = vadd.f32 %v2145_v48, %v8882_v12  ;;  %v2393_v57 = vmul.f32 %v8882_v12, %v8882_v12  ;;  %v7135_v23 = vpop.f32.mrb[201].mxu0  ;;  %16158 = vst [vmem:[#allocation168_spill] sm:$0xff] %v8892_v38  ;;  %v7323_v63 = vpop.f32.mrb[145].mxu1 }
 0x287   :  { %v8887_v9 = vpop.f32.mrb[202].mxu0  ;;  %v8894_v59 = vpop.f32.mrb[146].mxu1 }
 0x288   :  { %16157 = vst [vmem:[#allocation167_spill] sm:$0xff] %v8887_v9  ;;  %v2633_v60 = vadd.f32 %v2632_v36, %v2393_v57  ;;  %v2147_v52 = vadd.f32 %v2146_v43, %v8887_v9  ;;  %v2394_v8 = vmul.f32 %v8887_v9, %v8887_v9  ;;  %v7136_v54 = vpop.f32.mrb[203].mxu0  ;;  %16159 = vst [vmem:[#allocation169_spill] sm:$0xff] %v8894_v59  ;;  %v7324_v42 = vpop.f32.mrb[147].mxu1 }
 0x28a   :  { %v2634_v26 = vadd.f32 %v2633_v60, %v2394_v8 }
 0x28d   :  { %v8896_v48 = vpop.f32.mrb[204].mxu0  ;;  %v8906_v9 = vpop.f32.mrb[148].mxu1 }
 0x28e   :  { %16160 = vst [vmem:[#allocation170_spill] sm:$0xff] %v8896_v48  ;;  %v2148_v23 = vadd.f32 %v2147_v52, %v8896_v48  ;;  %v2395_v36 = vmul.f32 %v8896_v48, %v8896_v48  ;;  %v7139_v57 = vpop.f32.mrb[205].mxu0  ;;  %16162 = vst [vmem:[#allocation172_spill] sm:$0xff] %v8906_v9  ;;  %v7327_v59 = vpop.f32.mrb[149].mxu1 }
 0x28f   :  { %v8901_v43 = vpop.f32.mrb[206].mxu0  ;;  %v8908_v42 = vpop.f32.mrb[150].mxu1 }
 0x290   :  { %16161 = vst [vmem:[#allocation171_spill] sm:$0xff] %v8901_v43  ;;  %v2635_v12 = vadd.f32 %v2634_v26, %v2395_v36  ;;  %v2149_v54 = vadd.f32 %v2148_v23, %v8901_v43  ;;  %v2396_v60 = vmul.f32 %v8901_v43, %v8901_v43  ;;  %v7140_v63 = vpop.f32.mrb[207].mxu0  ;;  %16163 = vst [vmem:[#allocation173_spill] sm:$0xff] %v8908_v42  ;;  %v7328_v38 = vpop.f32.mrb[151].mxu1 }
 0x292   :  { %v2636_v8 = vadd.f32 %v2635_v12, %v2396_v60 }
 0x295   :  { %v8910_v52 = vpop.f32.mrb[208].mxu0  ;;  %v8920_v43 = vpop.f32.mrb[152].mxu1 }
 0x296   :  { %16164 = vst [vmem:[#allocation174_spill] sm:$0xff] %v8910_v52  ;;  %v2150_v57 = vadd.f32 %v2149_v54, %v8910_v52  ;;  %v2397_v26 = vmul.f32 %v8910_v52, %v8910_v52  ;;  %v7143_v36 = vpop.f32.mrb[209].mxu0  ;;  %16166 = vst [vmem:[#allocation176_spill] sm:$0xff] %v8920_v43  ;;  %v7331_v42 = vpop.f32.mrb[153].mxu1 }
 0x297   :  { %v8915_v23 = vpop.f32.mrb[210].mxu0  ;;  %v8922_v38 = vpop.f32.mrb[154].mxu1 }
 0x298   :  { %16165 = vst [vmem:[#allocation175_spill] sm:$0xff] %v8915_v23  ;;  %v2637_v48 = vadd.f32 %v2636_v8, %v2397_v26  ;;  %v2151_v63 = vadd.f32 %v2150_v57, %v8915_v23  ;;  %v2398_v12 = vmul.f32 %v8915_v23, %v8915_v23  ;;  %v7144_v59 = vpop.f32.mrb[211].mxu0  ;;  %16167 = vst [vmem:[#allocation177_spill] sm:$0xff] %v8922_v38  ;;  %v7332_v9 = vpop.f32.mrb[155].mxu1 }
 0x29a   :  { %v2638_v60 = vadd.f32 %v2637_v48, %v2398_v12 }
 0x29d   :  { %v8924_v54 = vpop.f32.mrb[212].mxu0  ;;  %v8934_v23 = vpop.f32.mrb[156].mxu1 }
 0x29e   :  { %16168 = vst [vmem:[#allocation178_spill] sm:$0xff] %v8924_v54  ;;  %v2152_v36 = vadd.f32 %v2151_v63, %v8924_v54  ;;  %v2399_v8 = vmul.f32 %v8924_v54, %v8924_v54  ;;  %v7147_v26 = vpop.f32.mrb[213].mxu0  ;;  %16170 = vst [vmem:[#allocation180_spill] sm:$0xff] %v8934_v23  ;;  %v7335_v38 = vpop.f32.mrb[157].mxu1 }
 0x29f   :  { %v8929_v57 = vpop.f32.mrb[214].mxu0  ;;  %v8936_v9 = vpop.f32.mrb[158].mxu1 }
 0x2a0   :  { %16169 = vst [vmem:[#allocation179_spill] sm:$0xff] %v8929_v57  ;;  %v2639_v52 = vadd.f32 %v2638_v60, %v2399_v8  ;;  %v2153_v59 = vadd.f32 %v2152_v36, %v8929_v57  ;;  %v2400_v48 = vmul.f32 %v8929_v57, %v8929_v57  ;;  %v7148_v42 = vpop.f32.mrb[215].mxu0  ;;  %16171 = vst [vmem:[#allocation181_spill] sm:$0xff] %v8936_v9  ;;  %v7336_v43 = vpop.f32.mrb[159].mxu1 }
 0x2a2   :  { %v2640_v12 = vadd.f32 %v2639_v52, %v2400_v48 }
 0x2a5   :  { %v8938_v63 = vpop.f32.mrb[216].mxu0  ;;  %v8948_v57 = vpop.f32.mrb[160].mxu1 }
 0x2a6   :  { %16172 = vst [vmem:[#allocation182_spill] sm:$0xff] %v8938_v63  ;;  %v2154_v26 = vadd.f32 %v2153_v59, %v8938_v63  ;;  %v2401_v60 = vmul.f32 %v8938_v63, %v8938_v63  ;;  %v7151_v8 = vpop.f32.mrb[217].mxu0  ;;  %16174 = vst [vmem:[#allocation184_spill] sm:$0xff] %v8948_v57  ;;  %v7339_v9 = vpop.f32.mrb[161].mxu1 }
 0x2a7   :  { %v8943_v36 = vpop.f32.mrb[218].mxu0  ;;  %v8950_v43 = vpop.f32.mrb[162].mxu1 }
 0x2a8   :  { %16173 = vst [vmem:[#allocation183_spill] sm:$0xff] %v8943_v36  ;;  %v2641_v54 = vadd.f32 %v2640_v12, %v2401_v60  ;;  %v2155_v42 = vadd.f32 %v2154_v26, %v8943_v36  ;;  %v2402_v52 = vmul.f32 %v8943_v36, %v8943_v36  ;;  %v7152_v38 = vpop.f32.mrb[219].mxu0  ;;  %16175 = vst [vmem:[#allocation185_spill] sm:$0xff] %v8950_v43  ;;  %v7340_v23 = vpop.f32.mrb[163].mxu1 }
 0x2aa   :  { %v2642_v48 = vadd.f32 %v2641_v54, %v2402_v52 }
 0x2ad   :  { %v8952_v59 = vpop.f32.mrb[220].mxu0  ;;  %v8962_v36 = vpop.f32.mrb[164].mxu1 }
 0x2ae   :  { %16176 = vst [vmem:[#allocation186_spill] sm:$0xff] %v8952_v59  ;;  %v2156_v8 = vadd.f32 %v2155_v42, %v8952_v59  ;;  %v2403_v12 = vmul.f32 %v8952_v59, %v8952_v59  ;;  %v7155_v60 = vpop.f32.mrb[221].mxu0  ;;  %16178 = vst [vmem:[#allocation188_spill] sm:$0xff] %v8962_v36  ;;  %v7343_v43 = vpop.f32.mrb[165].mxu1 }
 0x2af   :  { %v8957_v26 = vpop.f32.mrb[222].mxu0  ;;  %v8964_v23 = vpop.f32.mrb[166].mxu1 }
 0x2b0   :  { %16177 = vst [vmem:[#allocation187_spill] sm:$0xff] %v8957_v26  ;;  %v2643_v63 = vadd.f32 %v2642_v48, %v2403_v12  ;;  %v2157_v38 = vadd.f32 %v2156_v8, %v8957_v26  ;;  %v2404_v54 = vmul.f32 %v8957_v26, %v8957_v26  ;;  %v7156_v9 = vpop.f32.mrb[223].mxu0  ;;  %16179 = vst [vmem:[#allocation189_spill] sm:$0xff] %v8964_v23  ;;  %v7344_v57 = vpop.f32.mrb[167].mxu1 }
 0x2b2   :  { %v2644_v52 = vadd.f32 %v2643_v63, %v2404_v54 }
 0x2b5   :  { %v8966_v42 = vpop.f32.mrb[224].mxu0  ;;  %v8976_v26 = vpop.f32.mrb[168].mxu1 }
 0x2b6   :  { %16180 = vst [vmem:[#allocation190_spill] sm:$0xff] %v8966_v42  ;;  %v2158_v60 = vadd.f32 %v2157_v38, %v8966_v42  ;;  %v2405_v48 = vmul.f32 %v8966_v42, %v8966_v42  ;;  %v7159_v12 = vpop.f32.mrb[225].mxu0  ;;  %16182 = vst [vmem:[#allocation192_spill] sm:$0xff] %v8976_v26  ;;  %v7347_v23 = vpop.f32.mrb[169].mxu1 }
 0x2b7   :  { %v8971_v8 = vpop.f32.mrb[226].mxu0  ;;  %v8978_v57 = vpop.f32.mrb[170].mxu1 }
 0x2b8   :  { %16181 = vst [vmem:[#allocation191_spill] sm:$0xff] %v8971_v8  ;;  %v2645_v59 = vadd.f32 %v2644_v52, %v2405_v48  ;;  %v2159_v9 = vadd.f32 %v2158_v60, %v8971_v8  ;;  %v2406_v63 = vmul.f32 %v8971_v8, %v8971_v8  ;;  %v7160_v43 = vpop.f32.mrb[227].mxu0  ;;  %16183 = vst [vmem:[#allocation193_spill] sm:$0xff] %v8978_v57  ;;  %v7348_v36 = vpop.f32.mrb[171].mxu1 }
 0x2ba   :  { %v2646_v54 = vadd.f32 %v2645_v59, %v2406_v63 }
 0x2bd   :  { %v8980_v38 = vpop.f32.mrb[228].mxu0  ;;  %v8990_v8 = vpop.f32.mrb[172].mxu1 }
 0x2be   :  { %16184 = vst [vmem:[#allocation194_spill] sm:$0xff] %v8980_v38  ;;  %v2160_v12 = vadd.f32 %v2159_v9, %v8980_v38  ;;  %v2407_v52 = vmul.f32 %v8980_v38, %v8980_v38  ;;  %v7163_v48 = vpop.f32.mrb[229].mxu0  ;;  %16186 = vst [vmem:[#allocation196_spill] sm:$0xff] %v8990_v8  ;;  %v7351_v57 = vpop.f32.mrb[173].mxu1 }
 0x2bf   :  { %v8985_v60 = vpop.f32.mrb[230].mxu0  ;;  %v8992_v36 = vpop.f32.mrb[174].mxu1 }
 0x2c0   :  { %16185 = vst [vmem:[#allocation195_spill] sm:$0xff] %v8985_v60  ;;  %v2647_v42 = vadd.f32 %v2646_v54, %v2407_v52  ;;  %v2161_v43 = vadd.f32 %v2160_v12, %v8985_v60  ;;  %v2408_v59 = vmul.f32 %v8985_v60, %v8985_v60  ;;  %v7164_v23 = vpop.f32.mrb[231].mxu0  ;;  %16187 = vst [vmem:[#allocation197_spill] sm:$0xff] %v8992_v36  ;;  %v7352_v26 = vpop.f32.mrb[175].mxu1 }
 0x2c2   :  { %v2648_v63 = vadd.f32 %v2647_v42, %v2408_v59 }
 0x2c5   :  { %v8994_v9 = vpop.f32.mrb[232].mxu0  ;;  %v9004_v60 = vpop.f32.mrb[176].mxu1 }
 0x2c6   :  { %16188 = vst [vmem:[#allocation198_spill] sm:$0xff] %v8994_v9  ;;  %v2162_v48 = vadd.f32 %v2161_v43, %v8994_v9  ;;  %v2409_v54 = vmul.f32 %v8994_v9, %v8994_v9  ;;  %v7167_v52 = vpop.f32.mrb[233].mxu0  ;;  %16190 = vst [vmem:[#allocation200_spill] sm:$0xff] %v9004_v60  ;;  %v7355_v36 = vpop.f32.mrb[177].mxu1 }
 0x2c7   :  { %v8999_v12 = vpop.f32.mrb[234].mxu0  ;;  %v9006_v26 = vpop.f32.mrb[178].mxu1 }
 0x2c8   :  { %16189 = vst [vmem:[#allocation199_spill] sm:$0xff] %v8999_v12  ;;  %v2649_v38 = vadd.f32 %v2648_v63, %v2409_v54  ;;  %v2163_v23 = vadd.f32 %v2162_v48, %v8999_v12  ;;  %v2410_v42 = vmul.f32 %v8999_v12, %v8999_v12  ;;  %v7168_v57 = vpop.f32.mrb[235].mxu0  ;;  %16191 = vst [vmem:[#allocation201_spill] sm:$0xff] %v9006_v26  ;;  %v7356_v8 = vpop.f32.mrb[179].mxu1 }
 0x2ca   :  { %v2650_v59 = vadd.f32 %v2649_v38, %v2410_v42 }
 0x2cd   :  { %v9008_v43 = vpop.f32.mrb[236].mxu0  ;;  %v9018_v12 = vpop.f32.mrb[180].mxu1 }
 0x2ce   :  { %16192 = vst [vmem:[#allocation202_spill] sm:$0xff] %v9008_v43  ;;  %v2164_v52 = vadd.f32 %v2163_v23, %v9008_v43  ;;  %v2411_v63 = vmul.f32 %v9008_v43, %v9008_v43  ;;  %v7171_v54 = vpop.f32.mrb[237].mxu0  ;;  %16194 = vst [vmem:[#allocation204_spill] sm:$0xff] %v9018_v12  ;;  %v7359_v26 = vpop.f32.mrb[181].mxu1 }
 0x2cf   :  { %v9013_v48 = vpop.f32.mrb[238].mxu0  ;;  %v9020_v8 = vpop.f32.mrb[182].mxu1 }
 0x2d0   :  { %16193 = vst [vmem:[#allocation203_spill] sm:$0xff] %v9013_v48  ;;  %v2651_v9 = vadd.f32 %v2650_v59, %v2411_v63  ;;  %v2165_v57 = vadd.f32 %v2164_v52, %v9013_v48  ;;  %v2412_v38 = vmul.f32 %v9013_v48, %v9013_v48  ;;  %v7172_v36 = vpop.f32.mrb[239].mxu0  ;;  %16195 = vst [vmem:[#allocation205_spill] sm:$0xff] %v9020_v8  ;;  %v7360_v60 = vpop.f32.mrb[183].mxu1 }
 0x2d2   :  { %v2652_v42 = vadd.f32 %v2651_v9, %v2412_v38  ;;  %v2415_v38 = vmul.f32 %v8130_v21, %v8130_v21 }
 0x2d5   :  { %v9022_v23 = vpop.f32.mrb[240].mxu0 }
 0x2d6   :  { %16196 = vst [vmem:[#allocation206_spill] sm:$0xff] %v9022_v23  ;;  %v2166_v54 = vadd.f32 %v2165_v57, %v9022_v23  ;;  %v2413_v59 = vmul.f32 %v9022_v23, %v9022_v23  ;;  %v7175_v63 = vpop.f32.mrb[241].mxu0  ;;  %v9035_v57 = vpop.f32.mrb[184].mxu1 }
 0x2d7   :  { %v9027_v52 = vpop.f32.mrb[242].mxu0  ;;  %v7363_v8 = vpop.f32.mrb[185].mxu1  ;;  %v2416_v63 = vmul.f32 %v8134_v24, %v8134_v24 }
 0x2d8   :  { %16197 = vst [vmem:[#allocation207_spill] sm:$0xff] %v9027_v52  ;;  %v2653_v43 = vadd.f32 %v2652_v42, %v2413_v59  ;;  %v2167_v36 = vadd.f32 %v2166_v54, %v9027_v52  ;;  %v2414_v9 = vmul.f32 %v9027_v52, %v9027_v52  ;;  %v7176_v26 = vpop.f32.mrb[243].mxu0  ;;  %v9040_v54 = vpop.f32.mrb[186].mxu1 }
 0x2d9   :  { %v7364_v23 = vpop.f32.mrb[187].mxu1  ;;  %v2417_v26 = vmul.f32 %v8154_v49, %v8154_v49 }
 0x2da   :  { %v2168_v60 = vadd.f32 %v2167_v36, %v8130_v21  ;;  %v2654_v48 = vadd.f32 %v2653_v43, %v2414_v9  ;;  %v2418_v43 = vmul.f32 %v8158_v55, %v8158_v55  ;;  %v2419_v9 = vmul.f32 %v8178_v20, %v8178_v20 }
 0x2dc   :  { %v2169_v42 = vadd.f32 %v2168_v60, %v8134_v24  ;;  %v2655_v59 = vadd.f32 %v2654_v48, %v2415_v38  ;;  %v2420_v24 = vmul.f32 %v8182_v28, %v8182_v28 }
 0x2dd   :  { %v9051_v60 = vpop.f32.mrb[188].mxu1 }
 0x2de   :  { %v2170_v52 = vadd.f32 %v2169_v42, %v8154_v49  ;;  %v2656_v12 = vadd.f32 %v2655_v59, %v2416_v63  ;;  %v7367_v23 = vpop.f32.mrb[189].mxu1 }
 0x2df   :  { %v9056_v59 = vpop.f32.mrb[190].mxu1  ;;  %v2423_v23 = vmul.f32 %v8226_v46, %v8226_v46 }
 0x2e0   :  { %v2171_v8 = vadd.f32 %v2170_v52, %v8158_v55  ;;  %v2657_v36 = vadd.f32 %v2656_v12, %v2417_v26  ;;  %v7368_v49 = vpop.f32.mrb[191].mxu1  ;;  %v2421_v12 = vmul.f32 %v8202_v61, %v8202_v61  ;;  %v16388_v55 = vld [vmem:[#allocation60_spill] sm:$0xff] }
 0x2e2   :  { %v2172_v48 = vadd.f32 %v2171_v8, %v8178_v20  ;;  %v2658_v38 = vadd.f32 %v2657_v36, %v2418_v43  ;;  %v2422_v43 = vmul.f32 %v8206_v4, %v8206_v4 }
 0x2e4   :  { %v2173_v63 = vadd.f32 %v2172_v48, %v8182_v28  ;;  %v2659_v42 = vadd.f32 %v2658_v38, %v2419_v9  ;;  %v2424_v28 = vmul.f32 %v8230_v51, %v8230_v51 }
 0x2e5   :  { %v9067_v38 = vpop.f32.mrb[192].mxu1 }
 0x2e6   :  { %v2174_v52 = vadd.f32 %v2173_v63, %v8202_v61  ;;  %v2660_v26 = vadd.f32 %v2659_v42, %v2420_v24  ;;  %v7371_v49 = vpop.f32.mrb[193].mxu1 }
 0x2e7   :  { %v9072_v42 = vpop.f32.mrb[194].mxu1  ;;  %v2427_v49 = vmul.f32 %v8274_v22, %v8274_v22 }
 0x2e8   :  { %v2175_v8 = vadd.f32 %v2174_v52, %v8206_v4  ;;  %v2661_v36 = vadd.f32 %v2660_v26, %v2421_v12  ;;  %v7372_v61 = vpop.f32.mrb[195].mxu1  ;;  %v2425_v12 = vmul.f32 %v8250_v47, %v8250_v47  ;;  %v16390_v4 = vld [vmem:[#allocation67_spill] sm:$0xff] }
 0x2ea   :  { %v2176_v9 = vadd.f32 %v2175_v8, %v8226_v46  ;;  %v2662_v48 = vadd.f32 %v2661_v36, %v2422_v43  ;;  %v2426_v43 = vmul.f32 %v8254_v14, %v8254_v14 }
 0x2ec   :  { %v2177_v24 = vadd.f32 %v2176_v9, %v8230_v51  ;;  %v2663_v63 = vadd.f32 %v2662_v48, %v2423_v23  ;;  %v2428_v51 = vmul.f32 %v8278_v32, %v8278_v32 }
 0x2ed   :  { %v9083_v48 = vpop.f32.mrb[196].mxu1 }
 0x2ee   :  { %v2178_v52 = vadd.f32 %v2177_v24, %v8250_v47  ;;  %v2664_v26 = vadd.f32 %v2663_v63, %v2424_v28  ;;  %v7375_v61 = vpop.f32.mrb[197].mxu1 }
 0x2ef   :  { %v9088_v63 = vpop.f32.mrb[198].mxu1  ;;  %v2431_v61 = vmul.f32 %v8322_v0, %v8322_v0 }
 0x2f0   :  { %v2179_v8 = vadd.f32 %v2178_v52, %v8254_v14  ;;  %v2665_v36 = vadd.f32 %v2664_v26, %v2425_v12  ;;  %v7376_v47 = vpop.f32.mrb[199].mxu1  ;;  %v2429_v12 = vmul.f32 %v8298_v15, %v8298_v15  ;;  %v16392_v14 = vld [vmem:[#allocation74_spill] sm:$0xff] }
 0x2f2   :  { %v2180_v23 = vadd.f32 %v2179_v8, %v8274_v22  ;;  %v2666_v9 = vadd.f32 %v2665_v36, %v2426_v43  ;;  %v2430_v43 = vmul.f32 %v8302_v44, %v8302_v44 }
 0x2f4   :  { %v2181_v28 = vadd.f32 %v2180_v23, %v8278_v32  ;;  %v2667_v24 = vadd.f32 %v2666_v9, %v2427_v49  ;;  %v2432_v32 = vmul.f32 %v8326_v6, %v8326_v6 }
 0x2f5   :  { %v9099_v9 = vpop.f32.mrb[200].mxu1 }
 0x2f6   :  { %v2182_v52 = vadd.f32 %v2181_v28, %v8298_v15  ;;  %v2668_v26 = vadd.f32 %v2667_v24, %v2428_v51  ;;  %v7379_v47 = vpop.f32.mrb[201].mxu1 }
 0x2f7   :  { %v9104_v24 = vpop.f32.mrb[202].mxu1  ;;  %v2435_v47 = vmul.f32 %v8370_v41, %v8370_v41 }
 0x2f8   :  { %v2183_v8 = vadd.f32 %v2182_v52, %v8302_v44  ;;  %v2669_v36 = vadd.f32 %v2668_v26, %v2429_v12  ;;  %v7380_v15 = vpop.f32.mrb[203].mxu1  ;;  %v2433_v12 = vmul.f32 %v8346_v40, %v8346_v40  ;;  %v16445_v44 = vld [vmem:[#allocation193_spill] sm:$0xff] }
 0x2fa   :  { %v2184_v49 = vadd.f32 %v2183_v8, %v8322_v0  ;;  %v2670_v23 = vadd.f32 %v2669_v36, %v2430_v43  ;;  %v2434_v43 = vmul.f32 %v8350_v39, %v8350_v39 }
 0x2fc   :  { %v2185_v51 = vadd.f32 %v2184_v49, %v8326_v6  ;;  %v2671_v28 = vadd.f32 %v2670_v23, %v2431_v61  ;;  %v2436_v6 = vmul.f32 %v8374_v11, %v8374_v11 }
 0x2fd   :  { %v9115_v23 = vpop.f32.mrb[204].mxu1 }
 0x2fe   :  { %v2186_v52 = vadd.f32 %v2185_v51, %v8346_v40  ;;  %v2672_v26 = vadd.f32 %v2671_v28, %v2432_v32  ;;  %16198 = vst [vmem:[#allocation208_spill] sm:$0xff] %v9115_v23  ;;  %v7383_v15 = vpop.f32.mrb[205].mxu1 }
 0x2ff   :  { %v9120_v28 = vpop.f32.mrb[206].mxu1  ;;  %v2439_v15 = vmul.f32 %v8418_v33, %v8418_v33 }
 0x300   :  { %v2187_v8 = vadd.f32 %v2186_v52, %v8350_v39  ;;  %v2673_v36 = vadd.f32 %v2672_v26, %v2433_v12  ;;  %16199 = vst [vmem:[#allocation209_spill] sm:$0xff] %v9120_v28  ;;  %v7384_v40 = vpop.f32.mrb[207].mxu1  ;;  %v2437_v12 = vmul.f32 %v8394_v35, %v8394_v35  ;;  %v16442_v39 = vld [vmem:[#allocation188_spill] sm:$0xff] }
 0x302   :  { %v2188_v61 = vadd.f32 %v2187_v8, %v8370_v41  ;;  %v2674_v49 = vadd.f32 %v2673_v36, %v2434_v43  ;;  %v2438_v43 = vmul.f32 %v8398_v53, %v8398_v53 }
 0x304   :  { %v2189_v32 = vadd.f32 %v2188_v61, %v8374_v11  ;;  %v2675_v51 = vadd.f32 %v2674_v49, %v2435_v47  ;;  %v2440_v11 = vmul.f32 %v8422_v34, %v8422_v34 }
 0x305   :  { %v9131_v49 = vpop.f32.mrb[208].mxu1 }
 0x306   :  { %v2190_v52 = vadd.f32 %v2189_v32, %v8394_v35  ;;  %v2676_v26 = vadd.f32 %v2675_v51, %v2436_v6  ;;  %16200 = vst [vmem:[#allocation210_spill] sm:$0xff] %v9131_v49  ;;  %v7387_v40 = vpop.f32.mrb[209].mxu1 }
 0x307   :  { %v9136_v51 = vpop.f32.mrb[210].mxu1  ;;  %v2443_v40 = vmul.f32 %v8466_v10, %v8466_v10 }
 0x308   :  { %v2191_v8 = vadd.f32 %v2190_v52, %v8398_v53  ;;  %v2677_v36 = vadd.f32 %v2676_v26, %v2437_v12  ;;  %16201 = vst [vmem:[#allocation211_spill] sm:$0xff] %v9136_v51  ;;  %v7388_v35 = vpop.f32.mrb[211].mxu1  ;;  %v2441_v12 = vmul.f32 %v8442_v3, %v8442_v3 }
 0x30a   :  { %v2192_v47 = vadd.f32 %v2191_v8, %v8418_v33  ;;  %v2678_v61 = vadd.f32 %v2677_v36, %v2438_v43  ;;  %v2442_v43 = vmul.f32 %v8446_v17, %v8446_v17 }
 0x30c   :  { %v2193_v6 = vadd.f32 %v2192_v47, %v8422_v34  ;;  %v2679_v32 = vadd.f32 %v2678_v61, %v2439_v15  ;;  %v2444_v34 = vmul.f32 %v8470_v62, %v8470_v62 }
 0x30d   :  { %v9147_v61 = vpop.f32.mrb[212].mxu1 }
 0x30e   :  { %v2194_v52 = vadd.f32 %v2193_v6, %v8442_v3  ;;  %v2680_v26 = vadd.f32 %v2679_v32, %v2440_v11  ;;  %16202 = vst [vmem:[#allocation212_spill] sm:$0xff] %v9147_v61  ;;  %v7391_v35 = vpop.f32.mrb[213].mxu1 }
 0x30f   :  { %v9152_v32 = vpop.f32.mrb[214].mxu1  ;;  %v2447_v35 = vmul.f32 %v8514_v5, %v8514_v5 }
 0x310   :  { %v2195_v8 = vadd.f32 %v2194_v52, %v8446_v17  ;;  %v2681_v36 = vadd.f32 %v2680_v26, %v2441_v12  ;;  %16203 = vst [vmem:[#allocation213_spill] sm:$0xff] %v9152_v32  ;;  %v7392_v3 = vpop.f32.mrb[215].mxu1  ;;  %v2445_v12 = vmul.f32 %v8490_v18, %v8490_v18  ;;  %v16443_v17 = vld [vmem:[#allocation189_spill] sm:$0xff] }
 0x312   :  { %v2196_v15 = vadd.f32 %v2195_v8, %v8466_v10  ;;  %v2682_v47 = vadd.f32 %v2681_v36, %v2442_v43  ;;  %v2446_v43 = vmul.f32 %v8494_v45, %v8494_v45 }
 0x314   :  { %v2197_v11 = vadd.f32 %v2196_v15, %v8470_v62  ;;  %v2683_v6 = vadd.f32 %v2682_v47, %v2443_v40  ;;  %v2448_v62 = vmul.f32 %v8518_v30, %v8518_v30 }
 0x315   :  { %v9163_v47 = vpop.f32.mrb[216].mxu1 }
 0x316   :  { %v2198_v52 = vadd.f32 %v2197_v11, %v8490_v18  ;;  %v2684_v26 = vadd.f32 %v2683_v6, %v2444_v34  ;;  %16204 = vst [vmem:[#allocation214_spill] sm:$0xff] %v9163_v47  ;;  %v7395_v3 = vpop.f32.mrb[217].mxu1 }
 0x317   :  { %v9168_v6 = vpop.f32.mrb[218].mxu1  ;;  %v2451_v3 = vmul.f32 %v8562_v56, %v8562_v56 }
 0x318   :  { %v2199_v8 = vadd.f32 %v2198_v52, %v8494_v45  ;;  %v2685_v36 = vadd.f32 %v2684_v26, %v2445_v12  ;;  %16205 = vst [vmem:[#allocation215_spill] sm:$0xff] %v9168_v6  ;;  %v7396_v18 = vpop.f32.mrb[219].mxu1  ;;  %v2449_v12 = vmul.f32 %v8538_v29, %v8538_v29 }
 0x31a   :  { %v2200_v40 = vadd.f32 %v2199_v8, %v8514_v5  ;;  %v2686_v15 = vadd.f32 %v2685_v36, %v2446_v43  ;;  %v2450_v43 = vmul.f32 %v8542_v16, %v8542_v16 }
 0x31c   :  { %v2201_v34 = vadd.f32 %v2200_v40, %v8518_v30  ;;  %v2687_v11 = vadd.f32 %v2686_v15, %v2447_v35  ;;  %v2452_v30 = vmul.f32 %v8566_v2, %v8566_v2 }
 0x31d   :  { %v9179_v15 = vpop.f32.mrb[220].mxu1 }
 0x31e   :  { %v2202_v52 = vadd.f32 %v2201_v34, %v8538_v29  ;;  %v2688_v26 = vadd.f32 %v2687_v11, %v2448_v62  ;;  %16206 = vst [vmem:[#allocation216_spill] sm:$0xff] %v9179_v15  ;;  %v7399_v18 = vpop.f32.mrb[221].mxu1 }
 0x31f   :  { %v9184_v11 = vpop.f32.mrb[222].mxu1  ;;  %v2455_v18 = vmul.f32 %v8605_v37, %v8605_v37 }
 0x320   :  { %v2203_v8 = vadd.f32 %v2202_v52, %v8542_v16  ;;  %v2689_v36 = vadd.f32 %v2688_v26, %v2449_v12  ;;  %16207 = vst [vmem:[#allocation217_spill] sm:$0xff] %v9184_v11  ;;  %v7400_v29 = vpop.f32.mrb[223].mxu1  ;;  %v2453_v12 = vmul.f32 %v8586_v27, %v8586_v27 }
 0x322   :  { %v2204_v35 = vadd.f32 %v2203_v8, %v8562_v56  ;;  %v2690_v40 = vadd.f32 %v2689_v36, %v2450_v43  ;;  %v2454_v43 = vmul.f32 %v8588_v50, %v8588_v50  ;;  %v16220_v56 = vld [vmem:[#allocation132_spill] sm:$0xff] }
 0x324   :  { %v2205_v62 = vadd.f32 %v2204_v35, %v8566_v2  ;;  %v2691_v34 = vadd.f32 %v2690_v40, %v2451_v3  ;;  %v2456_v2 = vmul.f32 %v8607_v31, %v8607_v31 }
 0x325   :  { %v9195_v40 = vpop.f32.mrb[224].mxu1 }
 0x326   :  { %v2206_v52 = vadd.f32 %v2205_v62, %v8586_v27  ;;  %v2692_v26 = vadd.f32 %v2691_v34, %v2452_v30  ;;  %16208 = vst [vmem:[#allocation218_spill] sm:$0xff] %v9195_v40  ;;  %v7403_v29 = vpop.f32.mrb[225].mxu1 }
 0x327   :  { %v9200_v34 = vpop.f32.mrb[226].mxu1  ;;  %v2459_v29 = vmul.f32 %v8643_v13, %v8643_v13 }
 0x328   :  { %v2207_v8 = vadd.f32 %v2206_v52, %v8588_v50  ;;  %v2693_v36 = vadd.f32 %v2692_v26, %v2453_v12  ;;  %16209 = vst [vmem:[#allocation219_spill] sm:$0xff] %v9200_v34  ;;  %v7404_v27 = vpop.f32.mrb[227].mxu1  ;;  %v2457_v12 = vmul.f32 %v8624_v25, %v8624_v25 }
 0x32a   :  { %v2208_v3 = vadd.f32 %v2207_v8, %v8605_v37  ;;  %v2694_v35 = vadd.f32 %v2693_v36, %v2454_v43  ;;  %v2458_v43 = vmul.f32 %v8626_v19, %v8626_v19 }
 0x32c   :  { %v2209_v30 = vadd.f32 %v2208_v3, %v8607_v31  ;;  %v2695_v62 = vadd.f32 %v2694_v35, %v2455_v18  ;;  %v2460_v31 = vmul.f32 %v8645_v7, %v8645_v7 }
 0x32d   :  { %v9211_v35 = vpop.f32.mrb[228].mxu1 }
 0x32e   :  { %v2210_v52 = vadd.f32 %v2209_v30, %v8624_v25  ;;  %v2696_v26 = vadd.f32 %v2695_v62, %v2456_v2  ;;  %16210 = vst [vmem:[#allocation220_spill] sm:$0xff] %v9211_v35  ;;  %v7407_v27 = vpop.f32.mrb[229].mxu1 }
 0x32f   :  { %v9216_v62 = vpop.f32.mrb[230].mxu1  ;;  %v16212_v27 = vld [vmem:[#allocation120_spill] sm:$0xff] }
 0x330   :  { %v2211_v8 = vadd.f32 %v2210_v52, %v8626_v19  ;;  %v2697_v36 = vadd.f32 %v2696_v26, %v2457_v12  ;;  %16211 = vst [vmem:[#allocation221_spill] sm:$0xff] %v9216_v62  ;;  %v7408_v25 = vpop.f32.mrb[231].mxu1  ;;  %v2461_v12 = vmul.f32 %v8662_v1, %v8662_v1 }
 0x332   :  { %v2212_v18 = vadd.f32 %v2211_v8, %v8643_v13  ;;  %v2698_v3 = vadd.f32 %v2697_v36, %v2458_v43  ;;  %v2462_v43 = vmul.f32 %v8664_v58, %v8664_v58  ;;  %v16214_v13 = vld [vmem:[#allocation121_spill] sm:$0xff] }
 0x333   :  { %v2464_v19 = vmul.f32 %v16214_v13, %v16214_v13 }
 0x334   :  { %v2699_v30 = vadd.f32 %v2698_v3, %v2459_v29  ;;  %v2213_v2 = vadd.f32 %v2212_v18, %v8645_v7  ;;  %v2463_v29 = vmul.f32 %v16212_v27, %v16212_v27 }
 0x335   :  { %v9227_v7 = vpop.f32.mrb[232].mxu1  ;;  %v16453_v53 = vld [vmem:[#allocation220_spill] sm:$0xff] }
 0x336   :  { %v2214_v52 = vadd.f32 %v2213_v2, %v8662_v1  ;;  %v2700_v26 = vadd.f32 %v2699_v30, %v2460_v31  ;;  %16213 = vst [vmem:[#allocation222_spill] sm:$0xff] %v9227_v7  ;;  %v7411_v25 = vpop.f32.mrb[233].mxu1 }
 0x337   :  { %v9232_v2 = vpop.f32.mrb[234].mxu1  ;;  %v16454_v45 = vld [vmem:[#allocation221_spill] sm:$0xff] }
 0x338   :  { %v2215_v8 = vadd.f32 %v2214_v52, %v8664_v58  ;;  %v2701_v36 = vadd.f32 %v2700_v26, %v2461_v12  ;;  %16215 = vst [vmem:[#allocation223_spill] sm:$0xff] %v9232_v2  ;;  %v7412_v1 = vpop.f32.mrb[235].mxu1  ;;  %v16216_v52 = vld [vmem:[#allocation124_spill] sm:$0xff] }
 0x339   :  { %v2465_v12 = vmul.f32 %v16216_v52, %v16216_v52 }
 0x33a   :  { %v2216_v18 = vadd.f32 %v2215_v8, %v16212_v27  ;;  %v2702_v3 = vadd.f32 %v2701_v36, %v2462_v43  ;;  %v16217_v8 = vld [vmem:[#allocation125_spill] sm:$0xff]  ;;  %v16218_v27 = vld [vmem:[#allocation128_spill] sm:$0xff] }
 0x33b   :  { %v2466_v43 = vmul.f32 %v16217_v8, %v16217_v8  ;;  %v2467_v37 = vmul.f32 %v16218_v27, %v16218_v27 }
 0x33c   :  { %v2217_v31 = vadd.f32 %v2216_v18, %v16214_v13  ;;  %v2703_v30 = vadd.f32 %v2702_v3, %v2463_v29  ;;  %v16219_v13 = vld [vmem:[#allocation129_spill] sm:$0xff] }
 0x33d   :  { %v9243_v3 = vpop.f32.mrb[236].mxu1  ;;  %v2468_v50 = vmul.f32 %v16219_v13, %v16219_v13 }
 0x33e   :  { %v2218_v26 = vadd.f32 %v2217_v31, %v16216_v52  ;;  %v2704_v58 = vadd.f32 %v2703_v30, %v2464_v19  ;;  %v7415_v1 = vpop.f32.mrb[237].mxu1 }
 0x33f   :  { %v2044_v30 = vpop.f32.mrb[238].mxu1  ;;  %v16222_v1 = vld [vmem:[#allocation136_spill] sm:$0xff] }
 0x340   :  { %v2219_v36 = vadd.f32 %v2218_v26, %v16217_v8  ;;  %v2705_v25 = vadd.f32 %v2704_v58, %v2465_v12  ;;  %v7416_v52 = vpop.f32.mrb[239].mxu1  ;;  %v2469_v58 = vmul.f32 %v16220_v56, %v16220_v56  ;;  %v16221_v8 = vld [vmem:[#allocation133_spill] sm:$0xff] }
 0x342   :  { %v2220_v29 = vadd.f32 %v2219_v36, %v16218_v27  ;;  %v2706_v18 = vadd.f32 %v2705_v25, %v2466_v43  ;;  %v2470_v43 = vmul.f32 %v16221_v8, %v16221_v8  ;;  %v2471_v27 = vmul.f32 %v16222_v1, %v16222_v1 }
 0x344   :  { %v2221_v19 = vadd.f32 %v2220_v29, %v16219_v13  ;;  %v2707_v31 = vadd.f32 %v2706_v18, %v2467_v37  ;;  %v16223_v18 = vld [vmem:[#allocation137_spill] sm:$0xff] }
 0x345   :  { %v2472_v52 = vmul.f32 %v16223_v18, %v16223_v18 }
 0x346   :  { %v2222_v12 = vadd.f32 %v2221_v19, %v16220_v56  ;;  %v2708_v26 = vadd.f32 %v2707_v31, %v2468_v50  ;;  %v16224_v19 = vld [vmem:[#allocation140_spill] sm:$0xff] }
 0x347   :  { %v2473_v50 = vmul.f32 %v16224_v19, %v16224_v19 }
 0x348   :  { %v2223_v36 = vadd.f32 %v2222_v12, %v16221_v8  ;;  %v2709_v25 = vadd.f32 %v2708_v26, %v2469_v58  ;;  %v16225_v12 = vld [vmem:[#allocation141_spill] sm:$0xff] }
 0x349   :  { %v2474_v58 = vmul.f32 %v16225_v12, %v16225_v12 }
 0x34a   :  { %v2224_v29 = vadd.f32 %v2223_v36, %v16222_v1  ;;  %v2710_v37 = vadd.f32 %v2709_v25, %v2470_v43  ;;  %v16226_v36 = vld [vmem:[#allocation144_spill] sm:$0xff] }
 0x34b   :  { %v2475_v25 = vmul.f32 %v16226_v36, %v16226_v36 }
 0x34c   :  { %v2225_v30 = vadd.f32 %v2224_v29, %v16223_v18  ;;  %v2711_v13 = vadd.f32 %v2710_v37, %v2471_v27  ;;  %v16227_v27 = vld [vmem:[#allocation145_spill] sm:$0xff] }
 0x34d   :  { %v2476_v18 = vmul.f32 %v16227_v27, %v16227_v27 }
 0x34e   :  { %v2226_v31 = vadd.f32 %v2225_v30, %v16224_v19  ;;  %v2712_v56 = vadd.f32 %v2711_v13, %v2472_v52  ;;  %v16228_v13 = vld [vmem:[#allocation148_spill] sm:$0xff] }
 0x34f   :  { %v2477_v19 = vmul.f32 %v16228_v13, %v16228_v13 }
 0x350   :  { %v2227_v26 = vadd.f32 %v2226_v31, %v16225_v12  ;;  %v2713_v8 = vadd.f32 %v2712_v56, %v2473_v50  ;;  %v16229_v56 = vld [vmem:[#allocation149_spill] sm:$0xff] }
 0x351   :  { %v16447_v12 = vld [vmem:[#allocation197_spill] sm:$0xff] }
 0x352   :  { %v2228_v43 = vadd.f32 %v2227_v26, %v16226_v36  ;;  %v2714_v1 = vadd.f32 %v2713_v8, %v2474_v58  ;;  %v2478_v26 = vmul.f32 %v16229_v56, %v16229_v56  ;;  %v16230_v8 = vld [vmem:[#allocation152_spill] sm:$0xff] }
 0x353   :  { %v2479_v58 = vmul.f32 %v16230_v8, %v16230_v8 }
 0x354   :  { %v2715_v29 = vadd.f32 %v2714_v1, %v2475_v25  ;;  %v2229_v37 = vadd.f32 %v2228_v43, %v16227_v27  ;;  %v16231_v25 = vld [vmem:[#allocation153_spill] sm:$0xff] }
 0x356   :  { %v2716_v30 = vadd.f32 %v2715_v29, %v2476_v18  ;;  %v2230_v52 = vadd.f32 %v2229_v37, %v16228_v13  ;;  %v2480_v29 = vmul.f32 %v16231_v25, %v16231_v25  ;;  %v16232_v13 = vld [vmem:[#allocation156_spill] sm:$0xff] }
 0x358   :  { %v2717_v31 = vadd.f32 %v2716_v30, %v2477_v19  ;;  %v2231_v50 = vadd.f32 %v2230_v52, %v16229_v56  ;;  %v2481_v30 = vmul.f32 %v16232_v13, %v16232_v13  ;;  %v16233_v56 = vld [vmem:[#allocation157_spill] sm:$0xff] }
 0x35a   :  { %v2718_v36 = vadd.f32 %v2717_v31, %v2478_v26  ;;  %v2232_v1 = vadd.f32 %v2231_v50, %v16230_v8  ;;  %v2482_v50 = vmul.f32 %v16233_v56, %v16233_v56  ;;  %v16234_v8 = vld [vmem:[#allocation160_spill] sm:$0xff] }
 0x35c   :  { %v2719_v43 = vadd.f32 %v2718_v36, %v2479_v58  ;;  %v2233_v18 = vadd.f32 %v2232_v1, %v16231_v25  ;;  %v2483_v1 = vmul.f32 %v16234_v8, %v16234_v8  ;;  %v16235_v25 = vld [vmem:[#allocation161_spill] sm:$0xff] }
 0x35e   :  { %v2720_v37 = vadd.f32 %v2719_v43, %v2480_v29  ;;  %v2234_v19 = vadd.f32 %v2233_v18, %v16232_v13  ;;  %v2484_v18 = vmul.f32 %v16235_v25, %v16235_v25  ;;  %v16236_v13 = vld [vmem:[#allocation164_spill] sm:$0xff] }
 0x360   :  { %v2721_v52 = vadd.f32 %v2720_v37, %v2481_v30  ;;  %v2235_v31 = vadd.f32 %v2234_v19, %v16233_v56  ;;  %v2485_v19 = vmul.f32 %v16236_v13, %v16236_v13  ;;  %v16237_v56 = vld [vmem:[#allocation165_spill] sm:$0xff] }
 0x362   :  { %v2722_v26 = vadd.f32 %v2721_v52, %v2482_v50  ;;  %v2236_v36 = vadd.f32 %v2235_v31, %v16234_v8  ;;  %v2486_v31 = vmul.f32 %v16237_v56, %v16237_v56  ;;  %v16238_v8 = vld [vmem:[#allocation168_spill] sm:$0xff] }
 0x364   :  { %v2723_v58 = vadd.f32 %v2722_v26, %v2483_v1  ;;  %v2237_v43 = vadd.f32 %v2236_v36, %v16235_v25  ;;  %v2487_v36 = vmul.f32 %v16238_v8, %v16238_v8  ;;  %v16239_v25 = vld [vmem:[#allocation169_spill] sm:$0xff] }
 0x366   :  { %v2724_v29 = vadd.f32 %v2723_v58, %v2484_v18  ;;  %v2238_v37 = vadd.f32 %v2237_v43, %v16236_v13  ;;  %v2488_v43 = vmul.f32 %v16239_v25, %v16239_v25  ;;  %v16240_v13 = vld [vmem:[#allocation172_spill] sm:$0xff] }
 0x368   :  { %v2725_v30 = vadd.f32 %v2724_v29, %v2485_v19  ;;  %v2239_v52 = vadd.f32 %v2238_v37, %v16237_v56  ;;  %v2489_v37 = vmul.f32 %v16240_v13, %v16240_v13  ;;  %v16241_v56 = vld [vmem:[#allocation173_spill] sm:$0xff] }
 0x36a   :  { %v2726_v50 = vadd.f32 %v2725_v30, %v2486_v31  ;;  %v2240_v26 = vadd.f32 %v2239_v52, %v16238_v8  ;;  %v2490_v52 = vmul.f32 %v16241_v56, %v16241_v56  ;;  %v16242_v8 = vld [vmem:[#allocation176_spill] sm:$0xff] }
 0x36c   :  { %v2727_v1 = vadd.f32 %v2726_v50, %v2487_v36  ;;  %v2241_v58 = vadd.f32 %v2240_v26, %v16239_v25  ;;  %v2491_v26 = vmul.f32 %v16242_v8, %v16242_v8  ;;  %v16243_v25 = vld [vmem:[#allocation177_spill] sm:$0xff] }
 0x36e   :  { %v2728_v18 = vadd.f32 %v2727_v1, %v2488_v43  ;;  %v2242_v29 = vadd.f32 %v2241_v58, %v16240_v13  ;;  %v2492_v58 = vmul.f32 %v16243_v25, %v16243_v25  ;;  %v16244_v13 = vld [vmem:[#allocation180_spill] sm:$0xff] }
 0x370   :  { %v2729_v19 = vadd.f32 %v2728_v18, %v2489_v37  ;;  %v2243_v30 = vadd.f32 %v2242_v29, %v16241_v56  ;;  %v2493_v29 = vmul.f32 %v16244_v13, %v16244_v13  ;;  %v16245_v56 = vld [vmem:[#allocation181_spill] sm:$0xff] }
 0x372   :  { %v2730_v31 = vadd.f32 %v2729_v19, %v2490_v52  ;;  %v2244_v50 = vadd.f32 %v2243_v30, %v16242_v8  ;;  %v2494_v30 = vmul.f32 %v16245_v56, %v16245_v56  ;;  %v16246_v8 = vld [vmem:[#allocation184_spill] sm:$0xff] }
 0x374   :  { %v2731_v36 = vadd.f32 %v2730_v31, %v2491_v26  ;;  %v2245_v1 = vadd.f32 %v2244_v50, %v16243_v25  ;;  %v2495_v50 = vmul.f32 %v16246_v8, %v16246_v8  ;;  %v16247_v25 = vld [vmem:[#allocation185_spill] sm:$0xff] }
 0x376   :  { %v2732_v43 = vadd.f32 %v2731_v36, %v2492_v58  ;;  %v2246_v18 = vadd.f32 %v2245_v1, %v16244_v13  ;;  %v2496_v1 = vmul.f32 %v16247_v25, %v16247_v25  ;;  %v16248_v13 = vld [vmem:[#allocation188_spill] sm:$0xff] }
 0x378   :  { %v2733_v37 = vadd.f32 %v2732_v43, %v2493_v29  ;;  %v2247_v19 = vadd.f32 %v2246_v18, %v16245_v56  ;;  %v2497_v18 = vmul.f32 %v16248_v13, %v16248_v13  ;;  %v16249_v56 = vld [vmem:[#allocation189_spill] sm:$0xff] }
 0x37a   :  { %v2734_v52 = vadd.f32 %v2733_v37, %v2494_v30  ;;  %v2248_v31 = vadd.f32 %v2247_v19, %v16246_v8  ;;  %v2498_v19 = vmul.f32 %v16249_v56, %v16249_v56  ;;  %v16250_v8 = vld [vmem:[#allocation192_spill] sm:$0xff] }
 0x37c   :  { %v2735_v26 = vadd.f32 %v2734_v52, %v2495_v50  ;;  %v2249_v36 = vadd.f32 %v2248_v31, %v16247_v25  ;;  %v2499_v31 = vmul.f32 %v16250_v8, %v16250_v8  ;;  %v16251_v25 = vld [vmem:[#allocation193_spill] sm:$0xff] }
 0x37e   :  { %v2736_v58 = vadd.f32 %v2735_v26, %v2496_v1  ;;  %v2250_v43 = vadd.f32 %v2249_v36, %v16248_v13  ;;  %v2500_v36 = vmul.f32 %v16251_v25, %v16251_v25  ;;  %v16252_v13 = vld [vmem:[#allocation196_spill] sm:$0xff] }
 0x380   :  { %v2737_v29 = vadd.f32 %v2736_v58, %v2497_v18  ;;  %v2251_v37 = vadd.f32 %v2250_v43, %v16249_v56  ;;  %v2501_v43 = vmul.f32 %v16252_v13, %v16252_v13  ;;  %v16253_v56 = vld [vmem:[#allocation197_spill] sm:$0xff] }
 0x382   :  { %v2738_v30 = vadd.f32 %v2737_v29, %v2498_v19  ;;  %v2252_v52 = vadd.f32 %v2251_v37, %v16250_v8  ;;  %v2502_v37 = vmul.f32 %v16253_v56, %v16253_v56  ;;  %v16254_v8 = vld [vmem:[#allocation200_spill] sm:$0xff] }
 0x384   :  { %v2739_v50 = vadd.f32 %v2738_v30, %v2499_v31  ;;  %v2253_v26 = vadd.f32 %v2252_v52, %v16251_v25  ;;  %v2503_v52 = vmul.f32 %v16254_v8, %v16254_v8  ;;  %v16255_v25 = vld [vmem:[#allocation201_spill] sm:$0xff] }
 0x386   :  { %v2740_v1 = vadd.f32 %v2739_v50, %v2500_v36  ;;  %v2254_v58 = vadd.f32 %v2253_v26, %v16252_v13  ;;  %v2504_v26 = vmul.f32 %v16255_v25, %v16255_v25  ;;  %v16256_v13 = vld [vmem:[#allocation204_spill] sm:$0xff] }
 0x388   :  { %v2741_v18 = vadd.f32 %v2740_v1, %v2501_v43  ;;  %v2255_v29 = vadd.f32 %v2254_v58, %v16253_v56  ;;  %v2505_v58 = vmul.f32 %v16256_v13, %v16256_v13  ;;  %v16257_v56 = vld [vmem:[#allocation205_spill] sm:$0xff] }
 0x38a   :  { %v2742_v19 = vadd.f32 %v2741_v18, %v2502_v37  ;;  %v2256_v30 = vadd.f32 %v2255_v29, %v16254_v8  ;;  %v2506_v29 = vmul.f32 %v16257_v56, %v16257_v56 }
 0x38c   :  { %v2743_v31 = vadd.f32 %v2742_v19, %v2503_v52  ;;  %v2257_v50 = vadd.f32 %v2256_v30, %v16255_v25  ;;  %v2507_v30 = vmul.f32 %v9035_v57, %v9035_v57 }
 0x38e   :  { %v2744_v36 = vadd.f32 %v2743_v31, %v2504_v26  ;;  %v2258_v1 = vadd.f32 %v2257_v50, %v16256_v13  ;;  %v2508_v50 = vmul.f32 %v9040_v54, %v9040_v54 }
 0x390   :  { %v2745_v43 = vadd.f32 %v2744_v36, %v2505_v58  ;;  %v2259_v18 = vadd.f32 %v2258_v1, %v16257_v56  ;;  %v2509_v1 = vmul.f32 %v9051_v60, %v9051_v60 }
 0x392   :  { %v2746_v37 = vadd.f32 %v2745_v43, %v2506_v29  ;;  %v2260_v19 = vadd.f32 %v2259_v18, %v9035_v57  ;;  %v2510_v18 = vmul.f32 %v9056_v59, %v9056_v59 }
 0x394   :  { %v2747_v52 = vadd.f32 %v2746_v37, %v2507_v30  ;;  %v2261_v31 = vadd.f32 %v2260_v19, %v9040_v54  ;;  %v2511_v19 = vmul.f32 %v9067_v38, %v9067_v38 }
 0x396   :  { %v2748_v26 = vadd.f32 %v2747_v52, %v2508_v50  ;;  %v2262_v36 = vadd.f32 %v2261_v31, %v9051_v60  ;;  %v2512_v31 = vmul.f32 %v9072_v42, %v9072_v42 }
 0x398   :  { %v2749_v58 = vadd.f32 %v2748_v26, %v2509_v1  ;;  %v2263_v43 = vadd.f32 %v2262_v36, %v9056_v59  ;;  %v2513_v36 = vmul.f32 %v9083_v48, %v9083_v48 }
 0x39a   :  { %v2750_v29 = vadd.f32 %v2749_v58, %v2510_v18  ;;  %v2264_v37 = vadd.f32 %v2263_v43, %v9067_v38  ;;  %v2514_v43 = vmul.f32 %v9088_v63, %v9088_v63 }
 0x39c   :  { %v2751_v30 = vadd.f32 %v2750_v29, %v2511_v19  ;;  %v2265_v52 = vadd.f32 %v2264_v37, %v9072_v42  ;;  %v2515_v37 = vmul.f32 %v9099_v9, %v9099_v9 }
 0x39e   :  { %v2752_v50 = vadd.f32 %v2751_v30, %v2512_v31  ;;  %v2266_v26 = vadd.f32 %v2265_v52, %v9083_v48  ;;  %v2516_v52 = vmul.f32 %v9104_v24, %v9104_v24 }
 0x3a0   :  { %v2753_v1 = vadd.f32 %v2752_v50, %v2513_v36  ;;  %v2267_v58 = vadd.f32 %v2266_v26, %v9088_v63  ;;  %v2517_v26 = vmul.f32 %v9115_v23, %v9115_v23 }
 0x3a2   :  { %v2754_v18 = vadd.f32 %v2753_v1, %v2514_v43  ;;  %v2268_v29 = vadd.f32 %v2267_v58, %v9099_v9  ;;  %v2518_v58 = vmul.f32 %v9120_v28, %v9120_v28 }
 0x3a4   :  { %v2755_v19 = vadd.f32 %v2754_v18, %v2515_v37  ;;  %v2269_v30 = vadd.f32 %v2268_v29, %v9104_v24  ;;  %v2519_v29 = vmul.f32 %v9131_v49, %v9131_v49 }
 0x3a6   :  { %v2756_v31 = vadd.f32 %v2755_v19, %v2516_v52  ;;  %v2270_v50 = vadd.f32 %v2269_v30, %v9115_v23  ;;  %v2520_v30 = vmul.f32 %v9136_v51, %v9136_v51  ;;  %v16455_v23 = vld [vmem:[#allocation222_spill] sm:$0xff] }
 0x3a8   :  { %v2757_v36 = vadd.f32 %v2756_v31, %v2517_v26  ;;  %v2271_v1 = vadd.f32 %v2270_v50, %v9120_v28  ;;  %v2521_v50 = vmul.f32 %v9147_v61, %v9147_v61  ;;  %v16456_v28 = vld [vmem:[#allocation223_spill] sm:$0xff] }
 0x3aa   :  { %v2758_v43 = vadd.f32 %v2757_v36, %v2518_v58  ;;  %v2272_v18 = vadd.f32 %v2271_v1, %v9131_v49  ;;  %v2522_v1 = vmul.f32 %v9152_v32, %v9152_v32 }
 0x3ac   :  { %v2759_v37 = vadd.f32 %v2758_v43, %v2519_v29  ;;  %v2273_v19 = vadd.f32 %v2272_v18, %v9136_v51  ;;  %v2523_v18 = vmul.f32 %v9163_v47, %v9163_v47 }
 0x3ae   :  { %v2760_v52 = vadd.f32 %v2759_v37, %v2520_v30  ;;  %v2274_v31 = vadd.f32 %v2273_v19, %v9147_v61  ;;  %v2524_v19 = vmul.f32 %v9168_v6, %v9168_v6 }
 0x3b0   :  { %v2761_v26 = vadd.f32 %v2760_v52, %v2521_v50  ;;  %v2275_v36 = vadd.f32 %v2274_v31, %v9152_v32  ;;  %v2525_v31 = vmul.f32 %v9179_v15, %v9179_v15 }
 0x3b2   :  { %v2762_v58 = vadd.f32 %v2761_v26, %v2522_v1  ;;  %v2276_v43 = vadd.f32 %v2275_v36, %v9163_v47  ;;  %v2526_v36 = vmul.f32 %v9184_v11, %v9184_v11 }
 0x3b4   :  { %v2763_v29 = vadd.f32 %v2762_v58, %v2523_v18  ;;  %v2277_v37 = vadd.f32 %v2276_v43, %v9168_v6  ;;  %v2527_v43 = vmul.f32 %v9195_v40, %v9195_v40 }
 0x3b6   :  { %v2764_v30 = vadd.f32 %v2763_v29, %v2524_v19  ;;  %v2278_v52 = vadd.f32 %v2277_v37, %v9179_v15  ;;  %v2528_v37 = vmul.f32 %v9200_v34, %v9200_v34 }
 0x3b8   :  { %v2765_v50 = vadd.f32 %v2764_v30, %v2525_v31  ;;  %v2279_v26 = vadd.f32 %v2278_v52, %v9184_v11  ;;  %v2529_v52 = vmul.f32 %v9211_v35, %v9211_v35 }
 0x3ba   :  { %v2766_v1 = vadd.f32 %v2765_v50, %v2526_v36  ;;  %v2280_v58 = vadd.f32 %v2279_v26, %v9195_v40  ;;  %v2530_v26 = vmul.f32 %v9216_v62, %v9216_v62 }
 0x3bc   :  { %v2767_v18 = vadd.f32 %v2766_v1, %v2527_v43  ;;  %v2281_v29 = vadd.f32 %v2280_v58, %v9200_v34  ;;  %v2531_v58 = vmul.f32 %v9227_v7, %v9227_v7  ;;  %v3030_v34 = vlaneseq }
 0x3be   :  { %v2768_v19 = vadd.f32 %v2767_v18, %v2528_v37  ;;  %v2282_v30 = vadd.f32 %v2281_v29, %v9211_v35  ;;  %v2532_v29 = vmul.f32 %v9232_v2, %v9232_v2  ;;  %v2533_v37 = vmul.f32 %v9243_v3, %v9243_v3 }
 0x3bf   :  { %v9443_v40 = vshrl.u32 %v3030_v34, 7  ;;  %v16260_v34 = vld [vmem:[#allocation4_spill] sm:$0xff] }
 0x3c0   :  { %v2769_v31 = vadd.f32 %v2768_v19, %v2529_v52  ;;  %v2283_v50 = vadd.f32 %v2282_v30, %v9216_v62 }
 0x3c1   :  { %v16457_v51 = vsub.s32 0, %v9443_v40 }
 0x3c2   :  { %v2770_v36 = vadd.f32 %v2769_v31, %v2530_v26  ;;  %v2284_v1 = vadd.f32 %v2283_v50, %v9227_v7 }
 0x3c4   :  { %v2771_v43 = vadd.f32 %v2770_v36, %v2531_v58  ;;  %v2285_v18 = vadd.f32 %v2284_v1, %v9232_v2 }
 0x3c6   :  { %v2772_v19 = vadd.f32 %v2771_v43, %v2532_v29  ;;  %v2286_v30 = vadd.f32 %v2285_v18, %v9243_v3  ;;  %v16441_v43 = vld [vmem:[#allocation185_spill] sm:$0xff] }
 0x3c8   :  { %v2287_v52 = vrot.slane %v2286_v30, 4  ;;  %v2773_v62 = vadd.f32 %v2772_v19, %v2533_v37  ;;  %v16259_v19 = vld [vmem:[#allocation3_spill] sm:$0xff]  ;;  %v16386_v37 = vld [vmem:[#allocation53_spill] sm:$0xff] }
 0x3ca   :  { %v2288_v31 = vadd.f32 %v2287_v52, %v2286_v30  ;;  %v2774_v26 = vrot.slane %v2773_v62, 4  ;;  %v16450_v52 = vld [vmem:[#allocation217_spill] sm:$0xff] }
 0x3cc   :  { %v2289_v50 = vrot.slane %v2288_v31, 2  ;;  %v2775_v35 = vadd.f32 %v2774_v26, %v2773_v62  ;;  %v16258_v62 = vld [vmem:[#allocation2_spill] sm:$0xff] }
 0x3ce   :  { %v2290_v7 = vadd.f32 %v2289_v50, %v2288_v31  ;;  %v2776_v36 = vrot.slane %v2775_v35, 2  ;;  %v16446_v50 = vld [vmem:[#allocation196_spill] sm:$0xff] }
 0x3d0   :  { %v2291_v58 = vrot.slane %v2290_v7, 1  ;;  %v2777_v1 = vadd.f32 %v2776_v36, %v2775_v35  ;;  %v2784_v35 = vld [vmem:[%s15322_s2] sm:$0x1]  ;;  %v16452_v36 = vld [vmem:[#allocation219_spill] sm:$0xff] }
 0x3d2   :  { %v2292_v2 = vadd.f32 %v2291_v58, %v2290_v7  ;;  %v2778_v11 = vrot.slane %v2777_v1, 1  ;;  %v16320_v58 = vld [vmem:[#allocation90_spill] sm:$0xff]  ;;  %v16382_v7 = vld [vmem:[#allocation39_spill] sm:$0xff] }
 0x3d4   :  { %v2779_v15 = vadd.f32 %v2778_v11, %v2777_v1  ;;  %v9445_v6 = vmul.f32 0.0005202914, %v2292_v2  ;;  %v16384_v1 = vld [vmem:[#allocation46_spill] sm:$0xff]  ;;  %v16416_v11 = vld [vmem:[#allocation132_spill] sm:$0xff] }
 0x3d5   :  { %v16444_v2 = vld [vmem:[#allocation192_spill] sm:$0xff] }
 0x3d6   :  { %v2781_v18 = vmul.f32 0.0005202914, %v2779_v15  ;;  %v2782_v29 = vmul.f32 %v9445_v6, %v9445_v6  ;;  %v16263_v15 = vld [vmem:[#allocation7_spill] sm:$0xff]  ;;  %v16458_v32 = vsub.f32 %v16258_v62, %v9445_v6  ;;  %v16459_v5 = vsub.f32 %v16259_v19, %v9445_v6 }
 0x3d7   :  { %v16460_v49 = vsub.f32 %v16260_v34, %v9445_v6 }
 0x3d8   :  { %v2783_v26 = vsub.f32 %v2781_v18, %v2782_v29  ;;  %v16380_v29 = vld [vmem:[#allocation32_spill] sm:$0xff] }
 0x3da   :  { %v2785_v31 = vadd.f32 1e-05, %v2783_v26  ;;  %v16377_v26 = vld [vmem:[#allocation203_spill] sm:$0xff] }
 0x3dc   :  { %7564 = vrsqrt.f32 %v2785_v31  ;;  %v16373_v31 = vld [vmem:[#allocation195_spill] sm:$0xff] }
 0x3e6   :  { %v7565_v18 = vpop.eup %7564 }
 0x3e7   :  { %v9579_v30 = vmul.f32 %v7565_v18, %v2784_v35  ;;  %v16376_v18 = vld [vmem:[#allocation202_spill] sm:$0xff]  ;;  %v16414_v35 = vld [vmem:[#allocation128_spill] sm:$0xff] }
 0x3e9   :  { %v9940_v16 = vrot.slane %v9579_v30, %v16457_v51  ;;  %v16462_v51 = vld [vmem:[#allocation5_spill] sm:$0xff] }
 0x3ea   :  { %v16463_v30 = vsub.f32 %v16462_v51, %v9445_v6 }
 0x3eb   :  { %v9946_v61 = vmul.f32 %v9940_v16, %v16458_v32  ;;  %v9952_v47 = vmul.f32 %v9940_v16, %v16459_v5  ;;  %v9958_v40 = vmul.f32 %v9940_v16, %v16460_v49  ;;  %v16465_v32 = vld [vmem:[#allocation6_spill] sm:$0xff]  ;;  %v16468_v5 = vsub.f32 %v16263_v15, %v9445_v6  ;;  %v16470_v49 = vld [vmem:[#allocation8_spill] sm:$0xff] }
 0x3ec   :  { %v9964_v62 = vmul.f32 %v9940_v16, %v16463_v30  ;;  %v16466_v27 = vsub.f32 %v16465_v32, %v9445_v6  ;;  %v16473_v30 = vld [vmem:[#allocation9_spill] sm:$0xff] }
 0x3ed   :  { %16461 = vst [vmem:[#allocation200_spill] sm:$0xff] %v9958_v40  ;;  %v9976_v34 = vmul.f32 %v9940_v16, %v16468_v5  ;;  %v16471_v40 = vsub.f32 %v16470_v49, %v9445_v6  ;;  %v16479_v5 = vld [vmem:[#allocation11_spill] sm:$0xff] }
 0x3ee   :  { %16464 = vst [vmem:[#allocation201_spill] sm:$0xff] %v9964_v62  ;;  %v9970_v19 = vmul.f32 %v9940_v16, %v16466_v27  ;;  %v16474_v62 = vsub.f32 %v16473_v30, %v9445_v6  ;;  %v16476_v27 = vld [vmem:[#allocation10_spill] sm:$0xff] }
 0x3ef   :  { %16469 = vst [vmem:[#allocation205_spill] sm:$0xff] %v9976_v34  ;;  %v9982_v51 = vmul.f32 %v9940_v16, %v16471_v40  ;;  %v16480_v34 = vsub.f32 %v16479_v5, %v9445_v6  ;;  %v16482_v40 = vld [vmem:[#allocation12_spill] sm:$0xff] }
 0x3f0   :  { %16467 = vst [vmem:[#allocation204_spill] sm:$0xff] %v9970_v19  ;;  %v9988_v32 = vmul.f32 %v9940_v16, %v16474_v62  ;;  %v16477_v19 = vsub.f32 %v16476_v27, %v9445_v6  ;;  %v16485_v62 = vld [vmem:[#allocation13_spill] sm:$0xff] }
 0x3f1   :  { %16472 = vst [vmem:[#allocation2_spill] sm:$0xff] %v9982_v51  ;;  %v10000_v49 = vmul.f32 %v9940_v16, %v16480_v34  ;;  %v16483_v51 = vsub.f32 %v16482_v40, %v9445_v6  ;;  %v16491_v34 = vld [vmem:[#allocation15_spill] sm:$0xff] }
 0x3f2   :  { %16475 = vst [vmem:[#allocation3_spill] sm:$0xff] %v9988_v32  ;;  %v9994_v15 = vmul.f32 %v9940_v16, %v16477_v19  ;;  %v16486_v32 = vsub.f32 %v16485_v62, %v9445_v6  ;;  %v16488_v19 = vld [vmem:[#allocation14_spill] sm:$0xff] }
 0x3f3   :  { %16481 = vst [vmem:[#allocation7_spill] sm:$0xff] %v10000_v49  ;;  %v10006_v30 = vmul.f32 %v9940_v16, %v16483_v51  ;;  %v16492_v49 = vsub.f32 %v16491_v34, %v9445_v6  ;;  %v16494_v51 = vld [vmem:[#allocation16_spill] sm:$0xff] }
 0x3f4   :  { %16478 = vst [vmem:[#allocation4_spill] sm:$0xff] %v9994_v15  ;;  %v10012_v27 = vmul.f32 %v9940_v16, %v16486_v32  ;;  %v16489_v15 = vsub.f32 %v16488_v19, %v9445_v6  ;;  %v16497_v32 = vld [vmem:[#allocation17_spill] sm:$0xff] }
 0x3f5   :  { %16484 = vst [vmem:[#allocation90_spill] sm:$0xff] %v10006_v30  ;;  %v10024_v40 = vmul.f32 %v9940_v16, %v16492_v49  ;;  %v16495_v30 = vsub.f32 %v16494_v51, %v9445_v6  ;;  %v16503_v49 = vld [vmem:[#allocation19_spill] sm:$0xff] }
 0x3f6   :  { %16487 = vst [vmem:[#allocation195_spill] sm:$0xff] %v10012_v27  ;;  %v10018_v5 = vmul.f32 %v9940_v16, %v16489_v15  ;;  %v16498_v27 = vsub.f32 %v16497_v32, %v9445_v6  ;;  %v16500_v15 = vld [vmem:[#allocation18_spill] sm:$0xff] }
 0x3f7   :  { %16493 = vst [vmem:[#allocation203_spill] sm:$0xff] %v10024_v40  ;;  %v10030_v62 = vmul.f32 %v9940_v16, %v16495_v30  ;;  %v16504_v40 = vsub.f32 %v16503_v49, %v9445_v6  ;;  %v16506_v30 = vld [vmem:[#allocation20_spill] sm:$0xff] }
 0x3f8   :  { %16490 = vst [vmem:[#allocation202_spill] sm:$0xff] %v10018_v5  ;;  %v10036_v19 = vmul.f32 %v9940_v16, %v16498_v27  ;;  %v16501_v5 = vsub.f32 %v16500_v15, %v9445_v6  ;;  %v16509_v27 = vld [vmem:[#allocation21_spill] sm:$0xff] }
 0x3f9   :  { %16496 = vst [vmem:[#allocation32_spill] sm:$0xff] %v10030_v62  ;;  %v10048_v51 = vmul.f32 %v9940_v16, %v16504_v40  ;;  %v16507_v62 = vsub.f32 %v16506_v30, %v9445_v6  ;;  %v16515_v40 = vld [vmem:[#allocation23_spill] sm:$0xff] }
 0x3fa   :  { %16499 = vst [vmem:[#allocation39_spill] sm:$0xff] %v10036_v19  ;;  %v10042_v34 = vmul.f32 %v9940_v16, %v16501_v5  ;;  %v16510_v19 = vsub.f32 %v16509_v27, %v9445_v6  ;;  %v16512_v5 = vld [vmem:[#allocation22_spill] sm:$0xff] }
 0x3fb   :  { %16505 = vst [vmem:[#allocation53_spill] sm:$0xff] %v10048_v51  ;;  %v10054_v32 = vmul.f32 %v9940_v16, %v16507_v62  ;;  %v16516_v51 = vsub.f32 %v16515_v40, %v9445_v6  ;;  %v16518_v62 = vld [vmem:[#allocation24_spill] sm:$0xff] }
 0x3fc   :  { %16502 = vst [vmem:[#allocation46_spill] sm:$0xff] %v10042_v34  ;;  %v10060_v15 = vmul.f32 %v9940_v16, %v16510_v19  ;;  %v16513_v34 = vsub.f32 %v16512_v5, %v9445_v6  ;;  %v16521_v19 = vld [vmem:[#allocation25_spill] sm:$0xff] }
 0x3fd   :  { %16508 = vst [vmem:[#allocation60_spill] sm:$0xff] %v10054_v32  ;;  %v10072_v30 = vmul.f32 %v9940_v16, %v16516_v51  ;;  %v16519_v32 = vsub.f32 %v16518_v62, %v9445_v6  ;;  %v16527_v51 = vld [vmem:[#allocation27_spill] sm:$0xff] }
 0x3fe   :  { %16511 = vst [vmem:[#allocation67_spill] sm:$0xff] %v10060_v15  ;;  %v10066_v49 = vmul.f32 %v9940_v16, %v16513_v34  ;;  %v16522_v15 = vsub.f32 %v16521_v19, %v9445_v6  ;;  %v16524_v34 = vld [vmem:[#allocation26_spill] sm:$0xff] }
 0x3ff   :  { %16517 = vst [vmem:[#allocation128_spill] sm:$0xff] %v10072_v30  ;;  %v10078_v27 = vmul.f32 %v9940_v16, %v16519_v32  ;;  %v16528_v30 = vsub.f32 %v16527_v51, %v9445_v6  ;;  %v16530_v32 = vld [vmem:[#allocation28_spill] sm:$0xff] }
 0x400   :  { %16514 = vst [vmem:[#allocation74_spill] sm:$0xff] %v10066_v49  ;;  %v10084_v5 = vmul.f32 %v9940_v16, %v16522_v15  ;;  %v16525_v49 = vsub.f32 %v16524_v34, %v9445_v6  ;;  %v16533_v15 = vld [vmem:[#allocation29_spill] sm:$0xff] }
 0x401   :  { %16520 = vst [vmem:[#allocation132_spill] sm:$0xff] %v10078_v27  ;;  %v10096_v62 = vmul.f32 %v9940_v16, %v16528_v30  ;;  %v16531_v27 = vsub.f32 %v16530_v32, %v9445_v6  ;;  %v16539_v30 = vld [vmem:[#allocation31_spill] sm:$0xff] }
 0x402   :  { %16523 = vst [vmem:[#allocation185_spill] sm:$0xff] %v10084_v5  ;;  %v10090_v40 = vmul.f32 %v9940_v16, %v16525_v49  ;;  %v16534_v5 = vsub.f32 %v16533_v15, %v9445_v6  ;;  %v16536_v49 = vld [vmem:[#allocation30_spill] sm:$0xff] }
 0x403   :  { %16529 = vst [vmem:[#allocation189_spill] sm:$0xff] %v10096_v62  ;;  %v10102_v19 = vmul.f32 %v9940_v16, %v16531_v27  ;;  %v16540_v62 = vsub.f32 %v16539_v30, %v9445_v6  ;;  %v16542_v27 = vld [vmem:[#allocation33_spill] sm:$0xff] }
 0x404   :  { %16526 = vst [vmem:[#allocation188_spill] sm:$0xff] %v10090_v40  ;;  %v10108_v34 = vmul.f32 %v9940_v16, %v16534_v5  ;;  %v16537_v40 = vsub.f32 %v16536_v49, %v9445_v6  ;;  %v16545_v5 = vld [vmem:[#allocation34_spill] sm:$0xff] }
 0x405   :  { %16532 = vst [vmem:[#allocation192_spill] sm:$0xff] %v10102_v19  ;;  %v10120_v32 = vmul.f32 %v9940_v16, %v16540_v62  ;;  %v16543_v19 = vsub.f32 %v16542_v27, %v9445_v6  ;;  %v16551_v62 = vld [vmem:[#allocation38_spill] sm:$0xff] }
 0x406   :  { %16535 = vst [vmem:[#allocation193_spill] sm:$0xff] %v10108_v34  ;;  %v10114_v51 = vmul.f32 %v9940_v16, %v16537_v40  ;;  %v16546_v34 = vsub.f32 %v16545_v5, %v9445_v6  ;;  %v16548_v40 = vld [vmem:[#allocation37_spill] sm:$0xff] }
 0x407   :  { %16541 = vst [vmem:[#allocation197_spill] sm:$0xff] %v10120_v32  ;;  %v10126_v15 = vmul.f32 %v9940_v16, %v16543_v19  ;;  %v16552_v32 = vsub.f32 %v16551_v62, %v9445_v6  ;;  %v16554_v19 = vld [vmem:[#allocation40_spill] sm:$0xff] }
 0x408   :  { %16538 = vst [vmem:[#allocation196_spill] sm:$0xff] %v10114_v51  ;;  %v10132_v49 = vmul.f32 %v9940_v16, %v16546_v34  ;;  %v16549_v51 = vsub.f32 %v16548_v40, %v9445_v6  ;;  %v16557_v34 = vld [vmem:[#allocation41_spill] sm:$0xff] }
 0x409   :  { %16544 = vst [vmem:[#allocation217_spill] sm:$0xff] %v10126_v15  ;;  %v10144_v27 = vmul.f32 %v9940_v16, %v16552_v32  ;;  %v16555_v15 = vsub.f32 %v16554_v19, %v9445_v6  ;;  %v16563_v32 = vld [vmem:[#allocation45_spill] sm:$0xff] }
 0x40a   :  { %16547 = vst [vmem:[#allocation219_spill] sm:$0xff] %v10132_v49  ;;  %v10138_v30 = vmul.f32 %v9940_v16, %v16549_v51  ;;  %v16558_v49 = vsub.f32 %v16557_v34, %v9445_v6  ;;  %v16560_v51 = vld [vmem:[#allocation44_spill] sm:$0xff] }
 0x40b   :  { %16553 = vst [vmem:[#allocation221_spill] sm:$0xff] %v10144_v27  ;;  %v10150_v5 = vmul.f32 %v9940_v16, %v16555_v15  ;;  %v16564_v27 = vsub.f32 %v16563_v32, %v9445_v6  ;;  %v16566_v15 = vld [vmem:[#allocation47_spill] sm:$0xff] }
 0x40c   :  { %16550 = vst [vmem:[#allocation220_spill] sm:$0xff] %v10138_v30  ;;  %v10156_v40 = vmul.f32 %v9940_v16, %v16558_v49  ;;  %v16561_v30 = vsub.f32 %v16560_v51, %v9445_v6  ;;  %v16569_v49 = vld [vmem:[#allocation48_spill] sm:$0xff] }
 0x40d   :  { %16556 = vst [vmem:[#allocation222_spill] sm:$0xff] %v10150_v5  ;;  %v10168_v19 = vmul.f32 %v9940_v16, %v16564_v27  ;;  %v16567_v5 = vsub.f32 %v16566_v15, %v9445_v6  ;;  %v16575_v27 = vld [vmem:[#allocation52_spill] sm:$0xff] }
 0x40e   :  { %16559 = vst [vmem:[#allocation223_spill] sm:$0xff] %v10156_v40  ;;  %v10162_v62 = vmul.f32 %v9940_v16, %v16561_v30  ;;  %v16570_v40 = vsub.f32 %v16569_v49, %v9445_v6  ;;  %v16572_v30 = vld [vmem:[#allocation51_spill] sm:$0xff] }
 0x40f   :  { %16565 = vst [vmem:[#allocation6_spill] sm:$0xff] %v10168_v19  ;;  %v10174_v34 = vmul.f32 %v9940_v16, %v16567_v5  ;;  %v16576_v19 = vsub.f32 %v16575_v27, %v9445_v6  ;;  %v16578_v5 = vld [vmem:[#allocation54_spill] sm:$0xff] }
 0x410   :  { %16562 = vst [vmem:[#allocation5_spill] sm:$0xff] %v10162_v62  ;;  %v10180_v51 = vmul.f32 %v9940_v16, %v16570_v40  ;;  %v16573_v62 = vsub.f32 %v16572_v30, %v9445_v6  ;;  %v16581_v40 = vld [vmem:[#allocation55_spill] sm:$0xff] }
 0x411   :  { %16568 = vst [vmem:[#allocation8_spill] sm:$0xff] %v10174_v34  ;;  %v10192_v15 = vmul.f32 %v9940_v16, %v16576_v19  ;;  %v16579_v34 = vsub.f32 %v16578_v5, %v9445_v6  ;;  %v16587_v19 = vld [vmem:[#allocation59_spill] sm:$0xff] }
 0x412   :  { %16571 = vst [vmem:[#allocation9_spill] sm:$0xff] %v10180_v51  ;;  %v10186_v32 = vmul.f32 %v9940_v16, %v16573_v62  ;;  %v16582_v51 = vsub.f32 %v16581_v40, %v9445_v6  ;;  %v16584_v62 = vld [vmem:[#allocation58_spill] sm:$0xff] }
 0x413   :  { %16577 = vst [vmem:[#allocation11_spill] sm:$0xff] %v10192_v15  ;;  %v10198_v49 = vmul.f32 %v9940_v16, %v16579_v34  ;;  %v16588_v15 = vsub.f32 %v16587_v19, %v9445_v6  ;;  %v16590_v34 = vld [vmem:[#allocation61_spill] sm:$0xff] }
 0x414   :  { %16574 = vst [vmem:[#allocation10_spill] sm:$0xff] %v10186_v32  ;;  %v10204_v30 = vmul.f32 %v9940_v16, %v16582_v51  ;;  %v16585_v32 = vsub.f32 %v16584_v62, %v9445_v6  ;;  %v16593_v51 = vld [vmem:[#allocation62_spill] sm:$0xff] }
 0x415   :  { %16580 = vst [vmem:[#allocation12_spill] sm:$0xff] %v10198_v49  ;;  %v10216_v5 = vmul.f32 %v9940_v16, %v16588_v15  ;;  %v16591_v49 = vsub.f32 %v16590_v34, %v9445_v6  ;;  %v16599_v15 = vld [vmem:[#allocation66_spill] sm:$0xff] }
 0x416   :  { %16583 = vst [vmem:[#allocation13_spill] sm:$0xff] %v10204_v30  ;;  %v10210_v27 = vmul.f32 %v9940_v16, %v16585_v32  ;;  %v16594_v30 = vsub.f32 %v16593_v51, %v9445_v6  ;;  %v16596_v32 = vld [vmem:[#allocation65_spill] sm:$0xff] }
 0x417   :  { %16589 = vst [vmem:[#allocation15_spill] sm:$0xff] %v10216_v5  ;;  %v10222_v40 = vmul.f32 %v9940_v16, %v16591_v49  ;;  %v16600_v5 = vsub.f32 %v16599_v15, %v9445_v6  ;;  %v16602_v49 = vld [vmem:[#allocation68_spill] sm:$0xff] }
 0x418   :  { %16586 = vst [vmem:[#allocation14_spill] sm:$0xff] %v10210_v27  ;;  %v10228_v62 = vmul.f32 %v9940_v16, %v16594_v30  ;;  %v16597_v27 = vsub.f32 %v16596_v32, %v9445_v6  ;;  %v16605_v30 = vld [vmem:[#allocation69_spill] sm:$0xff] }
 0x419   :  { %16592 = vst [vmem:[#allocation16_spill] sm:$0xff] %v10222_v40  ;;  %v10240_v34 = vmul.f32 %v9940_v16, %v16600_v5  ;;  %v16603_v40 = vsub.f32 %v16602_v49, %v9445_v6  ;;  %v16611_v5 = vld [vmem:[#allocation73_spill] sm:$0xff] }
 0x41a   :  { %16595 = vst [vmem:[#allocation17_spill] sm:$0xff] %v10228_v62  ;;  %v10234_v19 = vmul.f32 %v9940_v16, %v16597_v27  ;;  %v16606_v62 = vsub.f32 %v16605_v30, %v9445_v6  ;;  %v16608_v27 = vld [vmem:[#allocation72_spill] sm:$0xff] }
 0x41b   :  { %16601 = vst [vmem:[#allocation19_spill] sm:$0xff] %v10240_v34  ;;  %v10246_v51 = vmul.f32 %v9940_v16, %v16603_v40  ;;  %v16612_v34 = vsub.f32 %v16611_v5, %v9445_v6  ;;  %v16614_v40 = vld [vmem:[#allocation75_spill] sm:$0xff] }
 0x41c   :  { %16598 = vst [vmem:[#allocation18_spill] sm:$0xff] %v10234_v19  ;;  %v10252_v32 = vmul.f32 %v9940_v16, %v16606_v62  ;;  %v16609_v19 = vsub.f32 %v16608_v27, %v9445_v6  ;;  %v16617_v62 = vld [vmem:[#allocation76_spill] sm:$0xff] }
 0x41d   :  { %16604 = vst [vmem:[#allocation20_spill] sm:$0xff] %v10246_v51  ;;  %v10264_v49 = vmul.f32 %v9940_v16, %v16612_v34  ;;  %v16615_v51 = vsub.f32 %v16614_v40, %v9445_v6  ;;  %v16623_v34 = vld [vmem:[#allocation80_spill] sm:$0xff] }
 0x41e   :  { %16607 = vst [vmem:[#allocation21_spill] sm:$0xff] %v10252_v32  ;;  %v10258_v15 = vmul.f32 %v9940_v16, %v16609_v19  ;;  %v16618_v32 = vsub.f32 %v16617_v62, %v9445_v6  ;;  %v16620_v19 = vld [vmem:[#allocation79_spill] sm:$0xff] }
 0x41f   :  { %16613 = vst [vmem:[#allocation23_spill] sm:$0xff] %v10264_v49  ;;  %v10270_v30 = vmul.f32 %v9940_v16, %v16615_v51  ;;  %v16624_v49 = vsub.f32 %v16623_v34, %v9445_v6  ;;  %v16626_v51 = vld [vmem:[#allocation82_spill] sm:$0xff] }
 0x420   :  { %16610 = vst [vmem:[#allocation22_spill] sm:$0xff] %v10258_v15  ;;  %v10276_v27 = vmul.f32 %v9940_v16, %v16618_v32  ;;  %v16621_v15 = vsub.f32 %v16620_v19, %v9445_v6  ;;  %v16628_v32 = vld [vmem:[#allocation83_spill] sm:$0xff] }
 0x421   :  { %16616 = vst [vmem:[#allocation24_spill] sm:$0xff] %v10270_v30  ;;  %v10288_v40 = vmul.f32 %v9940_v16, %v16624_v49  ;;  %v16627_v30 = vsub.f32 %v16626_v51, %v9445_v6  ;;  %v16634_v49 = vld [vmem:[#allocation87_spill] sm:$0xff] }
 0x422   :  { %16619 = vst [vmem:[#allocation25_spill] sm:$0xff] %v10276_v27  ;;  %v10282_v5 = vmul.f32 %v9940_v16, %v16621_v15  ;;  %v16629_v27 = vsub.f32 %v16628_v32, %v9445_v6  ;;  %v16631_v15 = vld [vmem:[#allocation86_spill] sm:$0xff] }
 0x423   :  { %16625 = vst [vmem:[#allocation27_spill] sm:$0xff] %v10288_v40  ;;  %v10294_v62 = vmul.f32 %v9940_v16, %v16627_v30  ;;  %v16635_v40 = vsub.f32 %v16634_v49, %v9445_v6  ;;  %v16637_v30 = vsub.f32 %v16320_v58, %v9445_v6 }
 0x424   :  { %16622 = vst [vmem:[#allocation26_spill] sm:$0xff] %v10282_v5  ;;  %v10300_v19 = vmul.f32 %v9940_v16, %v16629_v27  ;;  %v16632_v5 = vsub.f32 %v16631_v15, %v9445_v6  ;;  %v16639_v27 = vld [vmem:[#allocation91_spill] sm:$0xff] }
 0x425   :  { %v10312_v51 = vmul.f32 %v9940_v16, %v16635_v40  ;;  %v10318_v32 = vmul.f32 %v9940_v16, %v16637_v30  ;;  %v16645_v40 = vld [vmem:[#allocation95_spill] sm:$0xff]  ;;  %v16648_v30 = vld [vmem:[#allocation98_spill] sm:$0xff] }
 0x426   :  { %16630 = vst [vmem:[#allocation28_spill] sm:$0xff] %v10300_v19  ;;  %v10306_v34 = vmul.f32 %v9940_v16, %v16632_v5  ;;  %v16640_v19 = vsub.f32 %v16639_v27, %v9445_v6  ;;  %v16642_v5 = vld [vmem:[#allocation94_spill] sm:$0xff] }
 0x427   :  { %16636 = vst [vmem:[#allocation30_spill] sm:$0xff] %v10312_v51  ;;  %16638 = vst [vmem:[#allocation31_spill] sm:$0xff] %v10318_v32  ;;  %v16646_v51 = vsub.f32 %v16645_v40, %v9445_v6  ;;  %v16649_v32 = vsub.f32 %v16648_v30, %v9445_v6 }
 0x428   :  { %16633 = vst [vmem:[#allocation29_spill] sm:$0xff] %v10306_v34  ;;  %v10324_v15 = vmul.f32 %v9940_v16, %v16640_v19  ;;  %v16643_v34 = vsub.f32 %v16642_v5, %v9445_v6  ;;  %v16651_v19 = vld [vmem:[#allocation99_spill] sm:$0xff] }
 0x429   :  { %v10336_v58 = vmul.f32 %v9940_v16, %v16646_v51  ;;  %v10342_v27 = vmul.f32 %v9940_v16, %v16649_v32  ;;  %v16657_v51 = vld [vmem:[#allocation103_spill] sm:$0xff]  ;;  %v16660_v32 = vld [vmem:[#allocation106_spill] sm:$0xff] }
 0x42a   :  { %16641 = vst [vmem:[#allocation33_spill] sm:$0xff] %v10324_v15  ;;  %v10330_v49 = vmul.f32 %v9940_v16, %v16643_v34  ;;  %v16652_v15 = vsub.f32 %v16651_v19, %v9445_v6  ;;  %v16654_v34 = vld [vmem:[#allocation102_spill] sm:$0xff] }
 0x42b   :  { %16647 = vst [vmem:[#allocation37_spill] sm:$0xff] %v10336_v58  ;;  %16650 = vst [vmem:[#allocation38_spill] sm:$0xff] %v10342_v27  ;;  %v16658_v58 = vsub.f32 %v16657_v51, %v9445_v6  ;;  %v16661_v27 = vsub.f32 %v16660_v32, %v9445_v6 }
 0x42c   :  { %16644 = vst [vmem:[#allocation34_spill] sm:$0xff] %v10330_v49  ;;  %v10348_v5 = vmul.f32 %v9940_v16, %v16652_v15  ;;  %v16655_v49 = vsub.f32 %v16654_v34, %v9445_v6  ;;  %v16663_v15 = vld [vmem:[#allocation107_spill] sm:$0xff] }
 0x42d   :  { %v10360_v30 = vmul.f32 %v9940_v16, %v16658_v58  ;;  %v10366_v19 = vmul.f32 %v9940_v16, %v16661_v27  ;;  %v16669_v58 = vld [vmem:[#allocation111_spill] sm:$0xff]  ;;  %v16672_v27 = vld [vmem:[#allocation114_spill] sm:$0xff] }
 0x42e   :  { %16653 = vst [vmem:[#allocation40_spill] sm:$0xff] %v10348_v5  ;;  %v10354_v40 = vmul.f32 %v9940_v16, %v16655_v49  ;;  %v16664_v5 = vsub.f32 %v16663_v15, %v9445_v6  ;;  %v16666_v49 = vld [vmem:[#allocation110_spill] sm:$0xff] }
 0x42f   :  { %16659 = vst [vmem:[#allocation44_spill] sm:$0xff] %v10360_v30  ;;  %16662 = vst [vmem:[#allocation45_spill] sm:$0xff] %v10366_v19  ;;  %v16670_v30 = vsub.f32 %v16669_v58, %v9445_v6  ;;  %v16673_v19 = vsub.f32 %v16672_v27, %v9445_v6 }
 0x430   :  { %16656 = vst [vmem:[#allocation41_spill] sm:$0xff] %v10354_v40  ;;  %v10372_v34 = vmul.f32 %v9940_v16, %v16664_v5  ;;  %v16667_v40 = vsub.f32 %v16666_v49, %v9445_v6  ;;  %v16675_v5 = vld [vmem:[#allocation115_spill] sm:$0xff] }
 0x431   :  { %v10384_v32 = vmul.f32 %v9940_v16, %v16670_v30  ;;  %v10390_v15 = vmul.f32 %v9940_v16, %v16673_v19  ;;  %v16681_v30 = vld [vmem:[#allocation119_spill] sm:$0xff]  ;;  %v16684_v19 = vld [vmem:[#allocation122_spill] sm:$0xff] }
 0x432   :  { %16665 = vst [vmem:[#allocation47_spill] sm:$0xff] %v10372_v34  ;;  %v10378_v51 = vmul.f32 %v9940_v16, %v16667_v40  ;;  %v16676_v34 = vsub.f32 %v16675_v5, %v9445_v6  ;;  %v16678_v40 = vld [vmem:[#allocation118_spill] sm:$0xff] }
 0x433   :  { %16671 = vst [vmem:[#allocation51_spill] sm:$0xff] %v10384_v32  ;;  %16674 = vst [vmem:[#allocation52_spill] sm:$0xff] %v10390_v15  ;;  %v16682_v32 = vsub.f32 %v16681_v30, %v9445_v6  ;;  %v16685_v15 = vsub.f32 %v16684_v19, %v9445_v6 }
 0x434   :  { %16668 = vst [vmem:[#allocation48_spill] sm:$0xff] %v10378_v51  ;;  %v10396_v49 = vmul.f32 %v9940_v16, %v16676_v34  ;;  %v16679_v51 = vsub.f32 %v16678_v40, %v9445_v6  ;;  %v16687_v34 = vld [vmem:[#allocation123_spill] sm:$0xff] }
 0x435   :  { %v10408_v27 = vmul.f32 %v9940_v16, %v16682_v32  ;;  %v10414_v5 = vmul.f32 %v9940_v16, %v16685_v15  ;;  %v16693_v32 = vld [vmem:[#allocation127_spill] sm:$0xff]  ;;  %v16696_v15 = vld [vmem:[#allocation130_spill] sm:$0xff] }
 0x436   :  { %16677 = vst [vmem:[#allocation54_spill] sm:$0xff] %v10396_v49  ;;  %v10402_v58 = vmul.f32 %v9940_v16, %v16679_v51  ;;  %v16688_v49 = vsub.f32 %v16687_v34, %v9445_v6  ;;  %v16690_v51 = vld [vmem:[#allocation126_spill] sm:$0xff] }
 0x437   :  { %16683 = vst [vmem:[#allocation58_spill] sm:$0xff] %v10408_v27  ;;  %16686 = vst [vmem:[#allocation59_spill] sm:$0xff] %v10414_v5  ;;  %v16694_v27 = vsub.f32 %v16693_v32, %v9445_v6  ;;  %v16697_v5 = vsub.f32 %v16696_v15, %v9445_v6 }
 0x438   :  { %16680 = vst [vmem:[#allocation55_spill] sm:$0xff] %v10402_v58  ;;  %v10420_v40 = vmul.f32 %v9940_v16, %v16688_v49  ;;  %v16691_v58 = vsub.f32 %v16690_v51, %v9445_v6  ;;  %v16699_v49 = vld [vmem:[#allocation131_spill] sm:$0xff] }
 0x439   :  { %v10432_v19 = vmul.f32 %v9940_v16, %v16694_v27  ;;  %v10438_v34 = vmul.f32 %v9940_v16, %v16697_v5  ;;  %v16705_v27 = vld [vmem:[#allocation135_spill] sm:$0xff]  ;;  %v16708_v5 = vld [vmem:[#allocation138_spill] sm:$0xff] }
 0x43a   :  { %16689 = vst [vmem:[#allocation61_spill] sm:$0xff] %v10420_v40  ;;  %v10426_v30 = vmul.f32 %v9940_v16, %v16691_v58  ;;  %v16700_v40 = vsub.f32 %v16699_v49, %v9445_v6  ;;  %v16702_v58 = vld [vmem:[#allocation134_spill] sm:$0xff] }
 0x43b   :  { %16695 = vst [vmem:[#allocation65_spill] sm:$0xff] %v10432_v19  ;;  %16698 = vst [vmem:[#allocation66_spill] sm:$0xff] %v10438_v34  ;;  %v16706_v19 = vsub.f32 %v16705_v27, %v9445_v6  ;;  %v16709_v34 = vsub.f32 %v16708_v5, %v9445_v6 }
 0x43c   :  { %16692 = vst [vmem:[#allocation62_spill] sm:$0xff] %v10426_v30  ;;  %v10444_v51 = vmul.f32 %v9940_v16, %v16700_v40  ;;  %v16703_v30 = vsub.f32 %v16702_v58, %v9445_v6  ;;  %v16711_v40 = vld [vmem:[#allocation139_spill] sm:$0xff] }
 0x43d   :  { %v10456_v15 = vmul.f32 %v9940_v16, %v16706_v19  ;;  %v10462_v49 = vmul.f32 %v9940_v16, %v16709_v34  ;;  %v16717_v19 = vld [vmem:[#allocation143_spill] sm:$0xff]  ;;  %v16720_v34 = vld [vmem:[#allocation146_spill] sm:$0xff] }
 0x43e   :  { %16701 = vst [vmem:[#allocation68_spill] sm:$0xff] %v10444_v51  ;;  %v10450_v32 = vmul.f32 %v9940_v16, %v16703_v30  ;;  %v16712_v51 = vsub.f32 %v16711_v40, %v9445_v6  ;;  %v16714_v30 = vld [vmem:[#allocation142_spill] sm:$0xff] }
 0x43f   :  { %16707 = vst [vmem:[#allocation72_spill] sm:$0xff] %v10456_v15  ;;  %16710 = vst [vmem:[#allocation73_spill] sm:$0xff] %v10462_v49  ;;  %v16718_v15 = vsub.f32 %v16717_v19, %v9445_v6  ;;  %v16721_v49 = vsub.f32 %v16720_v34, %v9445_v6 }
 0x440   :  { %16704 = vst [vmem:[#allocation69_spill] sm:$0xff] %v10450_v32  ;;  %v10468_v58 = vmul.f32 %v9940_v16, %v16712_v51  ;;  %v16715_v32 = vsub.f32 %v16714_v30, %v9445_v6  ;;  %v16723_v51 = vld [vmem:[#allocation147_spill] sm:$0xff] }
 0x441   :  { %v10480_v5 = vmul.f32 %v9940_v16, %v16718_v15  ;;  %v10486_v40 = vmul.f32 %v9940_v16, %v16721_v49  ;;  %v16729_v15 = vld [vmem:[#allocation151_spill] sm:$0xff]  ;;  %v16732_v49 = vld [vmem:[#allocation154_spill] sm:$0xff] }
 0x442   :  { %16713 = vst [vmem:[#allocation75_spill] sm:$0xff] %v10468_v58  ;;  %v10474_v27 = vmul.f32 %v9940_v16, %v16715_v32  ;;  %v16724_v58 = vsub.f32 %v16723_v51, %v9445_v6  ;;  %v16726_v32 = vld [vmem:[#allocation150_spill] sm:$0xff] }
 0x443   :  { %16719 = vst [vmem:[#allocation79_spill] sm:$0xff] %v10480_v5  ;;  %16722 = vst [vmem:[#allocation80_spill] sm:$0xff] %v10486_v40  ;;  %v16730_v5 = vsub.f32 %v16729_v15, %v9445_v6  ;;  %v16733_v40 = vsub.f32 %v16732_v49, %v9445_v6 }
 0x444   :  { %16716 = vst [vmem:[#allocation76_spill] sm:$0xff] %v10474_v27  ;;  %v10492_v30 = vmul.f32 %v9940_v16, %v16724_v58  ;;  %v16727_v27 = vsub.f32 %v16726_v32, %v9445_v6  ;;  %v16735_v58 = vld [vmem:[#allocation155_spill] sm:$0xff] }
 0x445   :  { %v10504_v34 = vmul.f32 %v9940_v16, %v16730_v5  ;;  %v10510_v51 = vmul.f32 %v9940_v16, %v16733_v40  ;;  %v16741_v5 = vld [vmem:[#allocation159_spill] sm:$0xff]  ;;  %v16744_v40 = vld [vmem:[#allocation162_spill] sm:$0xff] }
 0x446   :  { %16725 = vst [vmem:[#allocation82_spill] sm:$0xff] %v10492_v30  ;;  %v10498_v19 = vmul.f32 %v9940_v16, %v16727_v27  ;;  %v16736_v30 = vsub.f32 %v16735_v58, %v9445_v6  ;;  %v16738_v27 = vld [vmem:[#allocation158_spill] sm:$0xff] }
 0x447   :  { %16731 = vst [vmem:[#allocation86_spill] sm:$0xff] %v10504_v34  ;;  %16734 = vst [vmem:[#allocation87_spill] sm:$0xff] %v10510_v51  ;;  %v16742_v34 = vsub.f32 %v16741_v5, %v9445_v6  ;;  %v16745_v51 = vsub.f32 %v16744_v40, %v9445_v6 }
 0x448   :  { %16728 = vst [vmem:[#allocation83_spill] sm:$0xff] %v10498_v19  ;;  %v10516_v32 = vmul.f32 %v9940_v16, %v16736_v30  ;;  %v16739_v19 = vsub.f32 %v16738_v27, %v9445_v6  ;;  %v16747_v30 = vld [vmem:[#allocation163_spill] sm:$0xff] }
 0x449   :  { %v10528_v49 = vmul.f32 %v9940_v16, %v16742_v34  ;;  %v10534_v58 = vmul.f32 %v9940_v16, %v16745_v51  ;;  %v16753_v34 = vld [vmem:[#allocation167_spill] sm:$0xff]  ;;  %v16756_v51 = vld [vmem:[#allocation170_spill] sm:$0xff] }
 0x44a   :  { %16737 = vst [vmem:[#allocation91_spill] sm:$0xff] %v10516_v32  ;;  %v10522_v15 = vmul.f32 %v9940_v16, %v16739_v19  ;;  %v16748_v32 = vsub.f32 %v16747_v30, %v9445_v6  ;;  %v16750_v19 = vld [vmem:[#allocation166_spill] sm:$0xff] }
 0x44b   :  { %16743 = vst [vmem:[#allocation95_spill] sm:$0xff] %v10528_v49  ;;  %16746 = vst [vmem:[#allocation98_spill] sm:$0xff] %v10534_v58  ;;  %v16754_v49 = vsub.f32 %v16753_v34, %v9445_v6  ;;  %v16757_v58 = vsub.f32 %v16756_v51, %v9445_v6 }
 0x44c   :  { %16740 = vst [vmem:[#allocation94_spill] sm:$0xff] %v10522_v15  ;;  %v10540_v27 = vmul.f32 %v9940_v16, %v16748_v32  ;;  %v16751_v15 = vsub.f32 %v16750_v19, %v9445_v6  ;;  %v16759_v32 = vld [vmem:[#allocation171_spill] sm:$0xff] }
 0x44d   :  { %v10552_v40 = vmul.f32 %v9940_v16, %v16754_v49  ;;  %v10558_v30 = vmul.f32 %v9940_v16, %v16757_v58  ;;  %v16765_v49 = vld [vmem:[#allocation175_spill] sm:$0xff]  ;;  %v16768_v58 = vld [vmem:[#allocation178_spill] sm:$0xff] }
 0x44e   :  { %16749 = vst [vmem:[#allocation99_spill] sm:$0xff] %v10540_v27  ;;  %v10546_v5 = vmul.f32 %v9940_v16, %v16751_v15  ;;  %v16760_v27 = vsub.f32 %v16759_v32, %v9445_v6  ;;  %v16762_v15 = vld [vmem:[#allocation174_spill] sm:$0xff] }
 0x44f   :  { %16755 = vst [vmem:[#allocation103_spill] sm:$0xff] %v10552_v40  ;;  %16758 = vst [vmem:[#allocation106_spill] sm:$0xff] %v10558_v30  ;;  %v16766_v40 = vsub.f32 %v16765_v49, %v9445_v6  ;;  %v16769_v30 = vsub.f32 %v16768_v58, %v9445_v6 }
 0x450   :  { %16752 = vst [vmem:[#allocation102_spill] sm:$0xff] %v10546_v5  ;;  %v10564_v19 = vmul.f32 %v9940_v16, %v16760_v27  ;;  %v16763_v5 = vsub.f32 %v16762_v15, %v9445_v6  ;;  %v16771_v27 = vld [vmem:[#allocation179_spill] sm:$0xff] }
 0x451   :  { %v10576_v51 = vmul.f32 %v9940_v16, %v16766_v40  ;;  %v10582_v32 = vmul.f32 %v9940_v16, %v16769_v30  ;;  %v16777_v40 = vld [vmem:[#allocation183_spill] sm:$0xff]  ;;  %v16780_v30 = vld [vmem:[#allocation186_spill] sm:$0xff] }
 0x452   :  { %16761 = vst [vmem:[#allocation107_spill] sm:$0xff] %v10564_v19  ;;  %v10570_v34 = vmul.f32 %v9940_v16, %v16763_v5  ;;  %v16772_v19 = vsub.f32 %v16771_v27, %v9445_v6  ;;  %v16774_v5 = vld [vmem:[#allocation182_spill] sm:$0xff] }
 0x453   :  { %16767 = vst [vmem:[#allocation111_spill] sm:$0xff] %v10576_v51  ;;  %16770 = vst [vmem:[#allocation114_spill] sm:$0xff] %v10582_v32  ;;  %v16778_v51 = vsub.f32 %v16777_v40, %v9445_v6  ;;  %v16781_v32 = vsub.f32 %v16780_v30, %v9445_v6 }
 0x454   :  { %16764 = vst [vmem:[#allocation110_spill] sm:$0xff] %v10570_v34  ;;  %v10588_v15 = vmul.f32 %v9940_v16, %v16772_v19  ;;  %v16775_v34 = vsub.f32 %v16774_v5, %v9445_v6  ;;  %v16783_v19 = vld [vmem:[#allocation187_spill] sm:$0xff] }
 0x455   :  { %v10600_v58 = vmul.f32 %v9940_v16, %v16778_v51  ;;  %v10606_v27 = vmul.f32 %v9940_v16, %v16781_v32  ;;  %v16788_v51 = vld [vmem:[#allocation191_spill] sm:$0xff]  ;;  %v16791_v32 = vld [vmem:[#allocation194_spill] sm:$0xff] }
 0x456   :  { %16773 = vst [vmem:[#allocation115_spill] sm:$0xff] %v10588_v15  ;;  %v10594_v49 = vmul.f32 %v9940_v16, %v16775_v34  ;;  %v16784_v15 = vsub.f32 %v16783_v19, %v9445_v6  ;;  %v16785_v34 = vld [vmem:[#allocation190_spill] sm:$0xff] }
 0x457   :  { %16779 = vst [vmem:[#allocation119_spill] sm:$0xff] %v10600_v58  ;;  %16782 = vst [vmem:[#allocation122_spill] sm:$0xff] %v10606_v27  ;;  %v16789_v58 = vsub.f32 %v16788_v51, %v9445_v6  ;;  %v16792_v27 = vsub.f32 %v16791_v32, %v9445_v6 }
 0x458   :  { %16776 = vst [vmem:[#allocation118_spill] sm:$0xff] %v10594_v49  ;;  %v10612_v5 = vmul.f32 %v9940_v16, %v16784_v15  ;;  %v16786_v49 = vsub.f32 %v16785_v34, %v9445_v6  ;;  %v16793_v15 = vsub.f32 %v16373_v31, %v9445_v6 }
 0x459   :  { %v10624_v30 = vmul.f32 %v9940_v16, %v16789_v58  ;;  %v10630_v19 = vmul.f32 %v9940_v16, %v16792_v27  ;;  %v16797_v58 = vld [vmem:[#allocation199_spill] sm:$0xff]  ;;  %v16800_v27 = vsub.f32 %v16376_v18, %v9445_v6 }
 0x45a   :  { %v10618_v40 = vmul.f32 %v9940_v16, %v16786_v49  ;;  %v10636_v34 = vmul.f32 %v9940_v16, %v16793_v15  ;;  %v16794_v49 = vld [vmem:[#allocation198_spill] sm:$0xff]  ;;  %v16801_v15 = vsub.f32 %v16377_v26, %v9445_v6 }
 0x45b   :  { %16790 = vst [vmem:[#allocation126_spill] sm:$0xff] %v10624_v30  ;;  %v16798_v30 = vsub.f32 %v16797_v58, %v9445_v6  ;;  %v10654_v31 = vmul.f32 %v9940_v16, %v16800_v27  ;;  %v16808_v27 = vsub.f32 %v8130_v21, %v9445_v6 }
 0x45c   :  { %16787 = vst [vmem:[#allocation123_spill] sm:$0xff] %v10618_v40  ;;  %v16795_v40 = vsub.f32 %v16794_v49, %v9445_v6  ;;  %v10660_v49 = vmul.f32 %v9940_v16, %v16801_v15  ;;  %v16809_v15 = vsub.f32 %v16380_v29, %v9445_v6 }
 0x45d   :  { %v10648_v32 = vmul.f32 %v9940_v16, %v16798_v30  ;;  %v16805_v30 = vld [vmem:[#allocation207_spill] sm:$0xff]  ;;  %v10678_v26 = vmul.f32 %v9940_v16, %v16808_v27  ;;  %v16816_v27 = vsub.f32 %v8178_v20, %v9445_v6 }
 0x45e   :  { %v10642_v51 = vmul.f32 %v9940_v16, %v16795_v40  ;;  %v16802_v40 = vld [vmem:[#allocation206_spill] sm:$0xff] }
 0x45f   :  { %16799 = vst [vmem:[#allocation130_spill] sm:$0xff] %v10648_v32  ;;  %v16806_v32 = vsub.f32 %v16805_v30, %v9445_v6  ;;  %v10702_v29 = vmul.f32 %v9940_v16, %v16816_v27  ;;  %v16824_v27 = vsub.f32 %v8226_v46, %v9445_v6 }
 0x460   :  { %16796 = vst [vmem:[#allocation127_spill] sm:$0xff] %v10642_v51  ;;  %v16803_v51 = vsub.f32 %v16802_v40, %v9445_v6  ;;  %v10684_v40 = vmul.f32 %v9940_v16, %v16809_v15  ;;  %v16817_v15 = vsub.f32 %v16382_v7, %v9445_v6 }
 0x461   :  { %v10672_v18 = vmul.f32 %v9940_v16, %v16806_v32  ;;  %v16813_v32 = vld [vmem:[#allocation36_spill] sm:$0xff]  ;;  %v10726_v7 = vmul.f32 %v9940_v16, %v16824_v27  ;;  %v16832_v27 = vsub.f32 %v8274_v22, %v9445_v6 }
 0x462   :  { %v10666_v58 = vmul.f32 %v9940_v16, %v16803_v51  ;;  %v16810_v51 = vld [vmem:[#allocation35_spill] sm:$0xff] }
 0x463   :  { %16807 = vst [vmem:[#allocation134_spill] sm:$0xff] %v10672_v18  ;;  %v16814_v18 = vsub.f32 %v16813_v32, %v9445_v6 }
 0x464   :  { %16804 = vst [vmem:[#allocation131_spill] sm:$0xff] %v10666_v58  ;;  %v16811_v58 = vsub.f32 %v16810_v51, %v9445_v6  ;;  %v10708_v51 = vmul.f32 %v9940_v16, %v16817_v15  ;;  %v16825_v15 = vsub.f32 %v16384_v1, %v9445_v6  ;;  %v10750_v1 = vmul.f32 %v9940_v16, %v16832_v27 }
 0x465   :  { %v10696_v21 = vmul.f32 %v9940_v16, %v16814_v18  ;;  %v16821_v18 = vld [vmem:[#allocation43_spill] sm:$0xff]  ;;  %v16840_v27 = vsub.f32 %v8322_v0, %v9445_v6 }
 0x466   :  { %v10690_v30 = vmul.f32 %v9940_v16, %v16811_v58  ;;  %v16818_v58 = vld [vmem:[#allocation42_spill] sm:$0xff] }
 0x467   :  { %16815 = vst [vmem:[#allocation138_spill] sm:$0xff] %v10696_v21  ;;  %v16822_v21 = vsub.f32 %v16821_v18, %v9445_v6 }
 0x468   :  { %16812 = vst [vmem:[#allocation135_spill] sm:$0xff] %v10690_v30  ;;  %v16819_v30 = vsub.f32 %v16818_v58, %v9445_v6  ;;  %v10732_v58 = vmul.f32 %v9940_v16, %v16825_v15  ;;  %v16833_v15 = vsub.f32 %v16386_v37, %v9445_v6  ;;  %v10774_v37 = vmul.f32 %v9940_v16, %v16840_v27 }
 0x469   :  { %v10720_v20 = vmul.f32 %v9940_v16, %v16822_v21  ;;  %v16829_v21 = vld [vmem:[#allocation50_spill] sm:$0xff]  ;;  %v16848_v27 = vsub.f32 %v8370_v41, %v9445_v6 }
 0x46a   :  { %v10714_v32 = vmul.f32 %v9940_v16, %v16819_v30  ;;  %v16826_v30 = vld [vmem:[#allocation49_spill] sm:$0xff] }
 0x46b   :  { %16823 = vst [vmem:[#allocation142_spill] sm:$0xff] %v10720_v20  ;;  %v16830_v20 = vsub.f32 %v16829_v21, %v9445_v6 }
 0x46c   :  { %16820 = vst [vmem:[#allocation139_spill] sm:$0xff] %v10714_v32  ;;  %v16827_v32 = vsub.f32 %v16826_v30, %v9445_v6  ;;  %v10756_v30 = vmul.f32 %v9940_v16, %v16833_v15  ;;  %v16841_v15 = vsub.f32 %v16388_v55, %v9445_v6  ;;  %v10798_v55 = vmul.f32 %v9940_v16, %v16848_v27 }
 0x46d   :  { %v10744_v46 = vmul.f32 %v9940_v16, %v16830_v20  ;;  %v16837_v20 = vld [vmem:[#allocation57_spill] sm:$0xff]  ;;  %v16856_v27 = vsub.f32 %v8418_v33, %v9445_v6 }
 0x46e   :  { %v10738_v18 = vmul.f32 %v9940_v16, %v16827_v32  ;;  %v16834_v32 = vld [vmem:[#allocation56_spill] sm:$0xff] }
 0x46f   :  { %16831 = vst [vmem:[#allocation146_spill] sm:$0xff] %v10744_v46  ;;  %v16838_v46 = vsub.f32 %v16837_v20, %v9445_v6 }
 0x470   :  { %16828 = vst [vmem:[#allocation143_spill] sm:$0xff] %v10738_v18  ;;  %v16835_v18 = vsub.f32 %v16834_v32, %v9445_v6  ;;  %v10780_v32 = vmul.f32 %v9940_v16, %v16841_v15  ;;  %v16849_v15 = vsub.f32 %v16390_v4, %v9445_v6  ;;  %v10822_v4 = vmul.f32 %v9940_v16, %v16856_v27 }
 0x471   :  { %v10768_v22 = vmul.f32 %v9940_v16, %v16838_v46  ;;  %v16845_v46 = vld [vmem:[#allocation64_spill] sm:$0xff]  ;;  %v16865_v27 = vsub.f32 %v8466_v10, %v9445_v6 }
 0x472   :  { %v10762_v21 = vmul.f32 %v9940_v16, %v16835_v18  ;;  %v16842_v18 = vld [vmem:[#allocation63_spill] sm:$0xff] }
 0x473   :  { %16839 = vst [vmem:[#allocation150_spill] sm:$0xff] %v10768_v22  ;;  %v16846_v22 = vsub.f32 %v16845_v46, %v9445_v6 }
 0x474   :  { %16836 = vst [vmem:[#allocation147_spill] sm:$0xff] %v10762_v21  ;;  %v16843_v21 = vsub.f32 %v16842_v18, %v9445_v6  ;;  %v10804_v18 = vmul.f32 %v9940_v16, %v16849_v15  ;;  %v16857_v15 = vsub.f32 %v16392_v14, %v9445_v6  ;;  %v10846_v14 = vmul.f32 %v9940_v16, %v16865_v27  ;;  %v16876_v27 = vld [vmem:[#allocation88_spill] sm:$0xff] }
 0x475   :  { %v10792_v0 = vmul.f32 %v9940_v16, %v16846_v22  ;;  %v16853_v22 = vld [vmem:[#allocation71_spill] sm:$0xff] }
 0x476   :  { %v10786_v20 = vmul.f32 %v9940_v16, %v16843_v21  ;;  %v16850_v21 = vld [vmem:[#allocation70_spill] sm:$0xff]  ;;  %16866 = vst [vmem:[#allocation166_spill] sm:$0xff] %v10846_v14  ;;  %v16877_v14 = vsub.f32 %v16876_v27, %v9445_v6 }
 0x477   :  { %16847 = vst [vmem:[#allocation154_spill] sm:$0xff] %v10792_v0  ;;  %v16854_v0 = vsub.f32 %v16853_v22, %v9445_v6 }
 0x478   :  { %16844 = vst [vmem:[#allocation151_spill] sm:$0xff] %v10786_v20  ;;  %v16851_v20 = vsub.f32 %v16850_v21, %v9445_v6  ;;  %v10828_v21 = vmul.f32 %v9940_v16, %v16857_v15  ;;  %v16867_v15 = vld [vmem:[#allocation81_spill] sm:$0xff] }
 0x479   :  { %v10816_v41 = vmul.f32 %v9940_v16, %v16854_v0  ;;  %v16862_v0 = vld [vmem:[#allocation78_spill] sm:$0xff] }
 0x47a   :  { %v10810_v46 = vmul.f32 %v9940_v16, %v16851_v20  ;;  %16858 = vst [vmem:[#allocation159_spill] sm:$0xff] %v10828_v21  ;;  %v16859_v20 = vld [vmem:[#allocation77_spill] sm:$0xff]  ;;  %v16868_v21 = vsub.f32 %v16867_v15, %v9445_v6  ;;  %v10870_v15 = vmul.f32 %v9940_v16, %v16877_v14  ;;  %v16888_v14 = vld [vmem:[#allocation96_spill] sm:$0xff] }
 0x47b   :  { %16855 = vst [vmem:[#allocation158_spill] sm:$0xff] %v10816_v41  ;;  %v16863_v41 = vsub.f32 %v16862_v0, %v9445_v6 }
 0x47c   :  { %16852 = vst [vmem:[#allocation155_spill] sm:$0xff] %v10810_v46  ;;  %v16860_v46 = vsub.f32 %v16859_v20, %v9445_v6  ;;  %v10852_v20 = vmul.f32 %v9940_v16, %v16868_v21  ;;  %16878 = vst [vmem:[#allocation174_spill] sm:$0xff] %v10870_v15  ;;  %v16879_v21 = vld [vmem:[#allocation89_spill] sm:$0xff]  ;;  %v16889_v15 = vsub.f32 %v16888_v14, %v9445_v6 }
 0x47d   :  { %v10840_v33 = vmul.f32 %v9940_v16, %v16863_v41  ;;  %v16873_v41 = vld [vmem:[#allocation85_spill] sm:$0xff] }
 0x47e   :  { %v10834_v22 = vmul.f32 %v9940_v16, %v16860_v46  ;;  %16869 = vst [vmem:[#allocation167_spill] sm:$0xff] %v10852_v20  ;;  %v16870_v46 = vld [vmem:[#allocation84_spill] sm:$0xff]  ;;  %v16880_v20 = vsub.f32 %v16879_v21, %v9445_v6  ;;  %v10894_v21 = vmul.f32 %v9940_v16, %v16889_v15 }
 0x47f   :  { %16864 = vst [vmem:[#allocation163_spill] sm:$0xff] %v10840_v33  ;;  %v16874_v33 = vsub.f32 %v16873_v41, %v9445_v6  ;;  %v16900_v15 = vld [vmem:[#allocation104_spill] sm:$0xff] }
 0x480   :  { %16861 = vst [vmem:[#allocation162_spill] sm:$0xff] %v10834_v22  ;;  %v16871_v22 = vsub.f32 %v16870_v46, %v9445_v6  ;;  %v10876_v46 = vmul.f32 %v9940_v16, %v16880_v20  ;;  %16890 = vst [vmem:[#allocation182_spill] sm:$0xff] %v10894_v21  ;;  %v16891_v20 = vld [vmem:[#allocation97_spill] sm:$0xff]  ;;  %v16901_v21 = vsub.f32 %v16900_v15, %v9445_v6 }
 0x481   :  { %v10864_v10 = vmul.f32 %v9940_v16, %v16874_v33  ;;  %v16885_v33 = vld [vmem:[#allocation93_spill] sm:$0xff] }
 0x482   :  { %v10858_v0 = vmul.f32 %v9940_v16, %v16871_v22  ;;  %16881 = vst [vmem:[#allocation175_spill] sm:$0xff] %v10876_v46  ;;  %v16882_v22 = vld [vmem:[#allocation92_spill] sm:$0xff]  ;;  %v16892_v46 = vsub.f32 %v16891_v20, %v9445_v6  ;;  %v10918_v20 = vmul.f32 %v9940_v16, %v16901_v21 }
 0x483   :  { %16875 = vst [vmem:[#allocation171_spill] sm:$0xff] %v10864_v10  ;;  %v16886_v10 = vsub.f32 %v16885_v33, %v9445_v6  ;;  %v16912_v21 = vld [vmem:[#allocation112_spill] sm:$0xff] }
 0x484   :  { %16872 = vst [vmem:[#allocation170_spill] sm:$0xff] %v10858_v0  ;;  %v16883_v0 = vsub.f32 %v16882_v22, %v9445_v6  ;;  %v10900_v22 = vmul.f32 %v9940_v16, %v16892_v46  ;;  %16902 = vst [vmem:[#allocation190_spill] sm:$0xff] %v10918_v20  ;;  %v16903_v46 = vld [vmem:[#allocation105_spill] sm:$0xff]  ;;  %v16913_v20 = vsub.f32 %v16912_v21, %v9445_v6 }
 0x485   :  { %v10888_v27 = vmul.f32 %v9940_v16, %v16886_v10  ;;  %v16897_v10 = vld [vmem:[#allocation101_spill] sm:$0xff] }
 0x486   :  { %v10882_v41 = vmul.f32 %v9940_v16, %v16883_v0  ;;  %16893 = vst [vmem:[#allocation183_spill] sm:$0xff] %v10900_v22  ;;  %v16894_v0 = vld [vmem:[#allocation100_spill] sm:$0xff]  ;;  %v16904_v22 = vsub.f32 %v16903_v46, %v9445_v6  ;;  %v10942_v46 = vmul.f32 %v9940_v16, %v16913_v20 }
 0x487   :  { %16887 = vst [vmem:[#allocation179_spill] sm:$0xff] %v10888_v27  ;;  %v16898_v27 = vsub.f32 %v16897_v10, %v9445_v6  ;;  %v16924_v20 = vld [vmem:[#allocation120_spill] sm:$0xff] }
 0x488   :  { %16884 = vst [vmem:[#allocation178_spill] sm:$0xff] %v10882_v41  ;;  %v16895_v41 = vsub.f32 %v16894_v0, %v9445_v6  ;;  %v10924_v0 = vmul.f32 %v9940_v16, %v16904_v22  ;;  %16914 = vst [vmem:[#allocation199_spill] sm:$0xff] %v10942_v46  ;;  %v16915_v22 = vld [vmem:[#allocation113_spill] sm:$0xff]  ;;  %v16925_v46 = vsub.f32 %v16924_v20, %v9445_v6 }
 0x489   :  { %v10912_v14 = vmul.f32 %v9940_v16, %v16898_v27  ;;  %v16909_v27 = vld [vmem:[#allocation109_spill] sm:$0xff] }
 0x48a   :  { %v10906_v33 = vmul.f32 %v9940_v16, %v16895_v41  ;;  %16905 = vst [vmem:[#allocation191_spill] sm:$0xff] %v10924_v0  ;;  %v16906_v41 = vld [vmem:[#allocation108_spill] sm:$0xff]  ;;  %v16916_v0 = vsub.f32 %v16915_v22, %v9445_v6  ;;  %v10966_v22 = vmul.f32 %v9940_v16, %v16925_v46  ;;  %v16934_v46 = vsub.f32 %v16414_v35, %v9445_v6 }
 0x48b   :  { %16899 = vst [vmem:[#allocation187_spill] sm:$0xff] %v10912_v14  ;;  %v16910_v14 = vsub.f32 %v16909_v27, %v9445_v6 }
 0x48c   :  { %16896 = vst [vmem:[#allocation186_spill] sm:$0xff] %v10906_v33  ;;  %v16907_v33 = vsub.f32 %v16906_v41, %v9445_v6  ;;  %v10948_v41 = vmul.f32 %v9940_v16, %v16916_v0  ;;  %v16926_v0 = vld [vmem:[#allocation121_spill] sm:$0xff] }
 0x48d   :  { %v10936_v15 = vmul.f32 %v9940_v16, %v16910_v14  ;;  %v16921_v14 = vld [vmem:[#allocation117_spill] sm:$0xff] }
 0x48e   :  { %v10930_v10 = vmul.f32 %v9940_v16, %v16907_v33  ;;  %16917 = vst [vmem:[#allocation206_spill] sm:$0xff] %v10948_v41  ;;  %v16918_v33 = vld [vmem:[#allocation116_spill] sm:$0xff]  ;;  %v16927_v41 = vsub.f32 %v16926_v0, %v9445_v6  ;;  %v10990_v0 = vmul.f32 %v9940_v16, %v16934_v46 }
 0x48f   :  { %16911 = vst [vmem:[#allocation198_spill] sm:$0xff] %v10936_v15  ;;  %v16922_v15 = vsub.f32 %v16921_v14, %v9445_v6  ;;  %v16944_v46 = vld [vmem:[#allocation136_spill] sm:$0xff] }
 0x490   :  { %16908 = vst [vmem:[#allocation194_spill] sm:$0xff] %v10930_v10  ;;  %v16919_v10 = vsub.f32 %v16918_v33, %v9445_v6  ;;  %v10972_v33 = vmul.f32 %v9940_v16, %v16927_v41  ;;  %16935 = vst [vmem:[#allocation43_spill] sm:$0xff] %v10990_v0  ;;  %v16936_v41 = vld [vmem:[#allocation129_spill] sm:$0xff]  ;;  %v16945_v0 = vsub.f32 %v16944_v46, %v9445_v6 }
 0x491   :  { %v10960_v21 = vmul.f32 %v9940_v16, %v16922_v15  ;;  %v16931_v15 = vld [vmem:[#allocation125_spill] sm:$0xff] }
 0x492   :  { %v10954_v27 = vmul.f32 %v9940_v16, %v16919_v10  ;;  %16928 = vst [vmem:[#allocation36_spill] sm:$0xff] %v10972_v33  ;;  %v16929_v10 = vld [vmem:[#allocation124_spill] sm:$0xff]  ;;  %v16937_v33 = vsub.f32 %v16936_v41, %v9445_v6  ;;  %v11014_v41 = vmul.f32 %v9940_v16, %v16945_v0 }
 0x493   :  { %16923 = vst [vmem:[#allocation35_spill] sm:$0xff] %v10960_v21  ;;  %v16932_v21 = vsub.f32 %v16931_v15, %v9445_v6  ;;  %v16956_v0 = vld [vmem:[#allocation144_spill] sm:$0xff] }
 0x494   :  { %16920 = vst [vmem:[#allocation207_spill] sm:$0xff] %v10954_v27  ;;  %v16930_v27 = vsub.f32 %v16929_v10, %v9445_v6  ;;  %v10996_v10 = vmul.f32 %v9940_v16, %v16937_v33  ;;  %16946 = vst [vmem:[#allocation57_spill] sm:$0xff] %v11014_v41  ;;  %v16947_v33 = vld [vmem:[#allocation137_spill] sm:$0xff]  ;;  %v16957_v41 = vsub.f32 %v16956_v0, %v9445_v6 }
 0x495   :  { %v10984_v20 = vmul.f32 %v9940_v16, %v16932_v21  ;;  %v16941_v21 = vld [vmem:[#allocation133_spill] sm:$0xff] }
 0x496   :  { %v10978_v14 = vmul.f32 %v9940_v16, %v16930_v27  ;;  %16938 = vst [vmem:[#allocation49_spill] sm:$0xff] %v10996_v10  ;;  %v16939_v27 = vsub.f32 %v16416_v11, %v9445_v6  ;;  %v16948_v10 = vsub.f32 %v16947_v33, %v9445_v6  ;;  %v11038_v33 = vmul.f32 %v9940_v16, %v16957_v41  ;;  %v16968_v41 = vld [vmem:[#allocation152_spill] sm:$0xff] }
 0x497   :  { %16933 = vst [vmem:[#allocation42_spill] sm:$0xff] %v10984_v20  ;;  %v16942_v20 = vsub.f32 %v16941_v21, %v9445_v6 }
 0x498   :  { %v11002_v15 = vmul.f32 %v9940_v16, %v16939_v27  ;;  %v11020_v11 = vmul.f32 %v9940_v16, %v16948_v10  ;;  %v16950_v27 = vld [vmem:[#allocation140_spill] sm:$0xff]  ;;  %16958 = vst [vmem:[#allocation71_spill] sm:$0xff] %v11038_v33  ;;  %v16959_v10 = vld [vmem:[#allocation145_spill] sm:$0xff]  ;;  %v16969_v33 = vsub.f32 %v16968_v41, %v9445_v6 }
 0x499   :  { %v11008_v35 = vmul.f32 %v9940_v16, %v16942_v20  ;;  %v16953_v20 = vld [vmem:[#allocation141_spill] sm:$0xff] }
 0x49a   :  { %16940 = vst [vmem:[#allocation50_spill] sm:$0xff] %v11002_v15  ;;  %16949 = vst [vmem:[#allocation63_spill] sm:$0xff] %v11020_v11  ;;  %v16951_v15 = vsub.f32 %v16950_v27, %v9445_v6  ;;  %v16960_v11 = vsub.f32 %v16959_v10, %v9445_v6  ;;  %v11062_v10 = vmul.f32 %v9940_v16, %v16969_v33  ;;  %v16980_v33 = vld [vmem:[#allocation160_spill] sm:$0xff] }
 0x49b   :  { %16943 = vst [vmem:[#allocation56_spill] sm:$0xff] %v11008_v35  ;;  %v16954_v35 = vsub.f32 %v16953_v20, %v9445_v6 }
 0x49c   :  { %v11026_v21 = vmul.f32 %v9940_v16, %v16951_v15  ;;  %v11044_v27 = vmul.f32 %v9940_v16, %v16960_v11  ;;  %v16962_v15 = vld [vmem:[#allocation148_spill] sm:$0xff]  ;;  %16970 = vst [vmem:[#allocation84_spill] sm:$0xff] %v11062_v10  ;;  %v16971_v11 = vld [vmem:[#allocation153_spill] sm:$0xff]  ;;  %v16981_v10 = vsub.f32 %v16980_v33, %v9445_v6 }
 0x49d   :  { %v11032_v46 = vmul.f32 %v9940_v16, %v16954_v35  ;;  %v16965_v35 = vld [vmem:[#allocation149_spill] sm:$0xff] }
 0x49e   :  { %16952 = vst [vmem:[#allocation64_spill] sm:$0xff] %v11026_v21  ;;  %16961 = vst [vmem:[#allocation77_spill] sm:$0xff] %v11044_v27  ;;  %v16963_v21 = vsub.f32 %v16962_v15, %v9445_v6  ;;  %v16972_v27 = vsub.f32 %v16971_v11, %v9445_v6  ;;  %v11086_v11 = vmul.f32 %v9940_v16, %v16981_v10  ;;  %v16992_v10 = vld [vmem:[#allocation168_spill] sm:$0xff] }
 0x49f   :  { %16955 = vst [vmem:[#allocation70_spill] sm:$0xff] %v11032_v46  ;;  %v16966_v46 = vsub.f32 %v16965_v35, %v9445_v6 }
 0x4a0   :  { %v11050_v20 = vmul.f32 %v9940_v16, %v16963_v21  ;;  %v11068_v15 = vmul.f32 %v9940_v16, %v16972_v27  ;;  %v16974_v21 = vld [vmem:[#allocation156_spill] sm:$0xff]  ;;  %16982 = vst [vmem:[#allocation92_spill] sm:$0xff] %v11086_v11  ;;  %v16983_v27 = vld [vmem:[#allocation161_spill] sm:$0xff]  ;;  %v16993_v11 = vsub.f32 %v16992_v10, %v9445_v6 }
 0x4a1   :  { %v11056_v0 = vmul.f32 %v9940_v16, %v16966_v46  ;;  %v16977_v46 = vld [vmem:[#allocation157_spill] sm:$0xff] }
 0x4a2   :  { %16964 = vst [vmem:[#allocation78_spill] sm:$0xff] %v11050_v20  ;;  %16973 = vst [vmem:[#allocation85_spill] sm:$0xff] %v11068_v15  ;;  %v16975_v20 = vsub.f32 %v16974_v21, %v9445_v6  ;;  %v16984_v15 = vsub.f32 %v16983_v27, %v9445_v6  ;;  %v11110_v27 = vmul.f32 %v9940_v16, %v16993_v11  ;;  %v17004_v11 = vld [vmem:[#allocation176_spill] sm:$0xff] }
 0x4a3   :  { %16967 = vst [vmem:[#allocation81_spill] sm:$0xff] %v11056_v0  ;;  %v16978_v0 = vsub.f32 %v16977_v46, %v9445_v6 }
 0x4a4   :  { %v11074_v35 = vmul.f32 %v9940_v16, %v16975_v20  ;;  %v11092_v21 = vmul.f32 %v9940_v16, %v16984_v15  ;;  %v16986_v20 = vld [vmem:[#allocation164_spill] sm:$0xff]  ;;  %16994 = vst [vmem:[#allocation100_spill] sm:$0xff] %v11110_v27  ;;  %v16995_v15 = vld [vmem:[#allocation169_spill] sm:$0xff]  ;;  %v17005_v27 = vsub.f32 %v17004_v11, %v9445_v6 }
 0x4a5   :  { %v11080_v41 = vmul.f32 %v9940_v16, %v16978_v0  ;;  %v16989_v0 = vld [vmem:[#allocation165_spill] sm:$0xff] }
 0x4a6   :  { %16976 = vst [vmem:[#allocation88_spill] sm:$0xff] %v11074_v35  ;;  %16985 = vst [vmem:[#allocation93_spill] sm:$0xff] %v11092_v21  ;;  %v16987_v35 = vsub.f32 %v16986_v20, %v9445_v6  ;;  %v16996_v21 = vsub.f32 %v16995_v15, %v9445_v6  ;;  %v11134_v15 = vmul.f32 %v9940_v16, %v17005_v27  ;;  %v17013_v27 = vld [vmem:[#allocation184_spill] sm:$0xff] }
 0x4a7   :  { %16979 = vst [vmem:[#allocation89_spill] sm:$0xff] %v11080_v41  ;;  %v16990_v41 = vsub.f32 %v16989_v0, %v9445_v6 }
 0x4a8   :  { %v11098_v46 = vmul.f32 %v9940_v16, %v16987_v35  ;;  %v11116_v20 = vmul.f32 %v9940_v16, %v16996_v21  ;;  %v16998_v35 = vld [vmem:[#allocation172_spill] sm:$0xff]  ;;  %17006 = vst [vmem:[#allocation108_spill] sm:$0xff] %v11134_v15  ;;  %v17007_v21 = vld [vmem:[#allocation177_spill] sm:$0xff]  ;;  %v17014_v15 = vsub.f32 %v17013_v27, %v9445_v6 }
 0x4a9   :  { %v11104_v33 = vmul.f32 %v9940_v16, %v16990_v41  ;;  %v17001_v41 = vld [vmem:[#allocation173_spill] sm:$0xff] }
 0x4aa   :  { %16988 = vst [vmem:[#allocation96_spill] sm:$0xff] %v11098_v46  ;;  %16997 = vst [vmem:[#allocation101_spill] sm:$0xff] %v11116_v20  ;;  %v16999_v46 = vsub.f32 %v16998_v35, %v9445_v6  ;;  %v17008_v20 = vsub.f32 %v17007_v21, %v9445_v6  ;;  %v11158_v21 = vmul.f32 %v9940_v16, %v17014_v15 }
 0x4ab   :  { %16991 = vst [vmem:[#allocation97_spill] sm:$0xff] %v11104_v33  ;;  %v17002_v33 = vsub.f32 %v17001_v41, %v9445_v6  ;;  %v17018_v15 = vsub.f32 %v16444_v2, %v9445_v6 }
 0x4ac   :  { %v11122_v0 = vmul.f32 %v9940_v16, %v16999_v46  ;;  %v11140_v35 = vmul.f32 %v9940_v16, %v17008_v20  ;;  %v17009_v46 = vld [vmem:[#allocation180_spill] sm:$0xff]  ;;  %v17015_v20 = vsub.f32 %v16441_v43, %v9445_v6 }
 0x4ad   :  { %v11128_v10 = vmul.f32 %v9940_v16, %v17002_v33  ;;  %v17011_v33 = vld [vmem:[#allocation181_spill] sm:$0xff]  ;;  %v11182_v43 = vmul.f32 %v9940_v16, %v17018_v15  ;;  %v17022_v15 = vsub.f32 %v16254_v8, %v9445_v6 }
 0x4ae   :  { %17000 = vst [vmem:[#allocation104_spill] sm:$0xff] %v11122_v0  ;;  %v17010_v0 = vsub.f32 %v17009_v46, %v9445_v6  ;;  %v11164_v46 = vmul.f32 %v9940_v16, %v17015_v20  ;;  %v17019_v20 = vsub.f32 %v16445_v44, %v9445_v6 }
 0x4af   :  { %17003 = vst [vmem:[#allocation105_spill] sm:$0xff] %v11128_v10  ;;  %v17012_v10 = vsub.f32 %v17011_v33, %v9445_v6  ;;  %v11206_v44 = vmul.f32 %v9940_v16, %v17022_v15  ;;  %v17026_v15 = vsub.f32 %v9035_v57, %v9445_v6 }
 0x4b0   :  { %v11146_v41 = vmul.f32 %v9940_v16, %v17010_v0  ;;  %v17016_v0 = vsub.f32 %v16442_v39, %v9445_v6  ;;  %v11188_v39 = vmul.f32 %v9940_v16, %v17019_v20  ;;  %v17023_v20 = vsub.f32 %v16255_v25, %v9445_v6 }
 0x4b1   :  { %v11152_v11 = vmul.f32 %v9940_v16, %v17012_v10  ;;  %v17017_v10 = vsub.f32 %v16443_v17, %v9445_v6  ;;  %v11230_v25 = vmul.f32 %v9940_v16, %v17026_v15  ;;  %v17030_v15 = vsub.f32 %v9067_v38, %v9445_v6 }
 0x4b2   :  { %v11170_v33 = vmul.f32 %v9940_v16, %v17016_v0  ;;  %v17020_v0 = vsub.f32 %v16446_v50, %v9445_v6  ;;  %v11212_v50 = vmul.f32 %v9940_v16, %v17023_v20  ;;  %v17027_v20 = vsub.f32 %v9040_v54, %v9445_v6 }
 0x4b3   :  { %v11176_v27 = vmul.f32 %v9940_v16, %v17017_v10  ;;  %v17021_v10 = vsub.f32 %v16447_v12, %v9445_v6  ;;  %v11254_v54 = vmul.f32 %v9940_v16, %v17030_v15  ;;  %v17036_v15 = vsub.f32 %v9099_v9, %v9445_v6 }
 0x4b4   :  { %v11194_v17 = vmul.f32 %v9940_v16, %v17020_v0  ;;  %v17024_v0 = vsub.f32 %v16256_v13, %v9445_v6  ;;  %v11236_v13 = vmul.f32 %v9940_v16, %v17027_v20  ;;  %v17031_v20 = vsub.f32 %v9072_v42, %v9445_v6 }
 0x4b5   :  { %v11200_v2 = vmul.f32 %v9940_v16, %v17021_v10  ;;  %v17025_v10 = vsub.f32 %v16257_v56, %v9445_v6  ;;  %v11278_v42 = vmul.f32 %v9940_v16, %v17036_v15  ;;  %v17046_v15 = vld [vmem:[#allocation210_spill] sm:$0xff] }
 0x4b6   :  { %v11218_v12 = vmul.f32 %v9940_v16, %v17024_v0  ;;  %v17028_v0 = vsub.f32 %v9051_v60, %v9445_v6  ;;  %v11260_v60 = vmul.f32 %v9940_v16, %v17031_v20  ;;  %v17038_v20 = vsub.f32 %v9104_v24, %v9445_v6 }
 0x4b7   :  { %v11224_v8 = vmul.f32 %v9940_v16, %v17025_v10  ;;  %v17029_v10 = vsub.f32 %v9056_v59, %v9445_v6  ;;  %17037 = vst [vmem:[#allocation113_spill] sm:$0xff] %v11278_v42  ;;  %v17047_v42 = vsub.f32 %v17046_v15, %v9445_v6 }
 0x4b8   :  { %v11242_v56 = vmul.f32 %v9940_v16, %v17028_v0  ;;  %v17032_v0 = vsub.f32 %v9083_v48, %v9445_v6  ;;  %v11284_v48 = vmul.f32 %v9940_v16, %v17038_v20  ;;  %v17049_v20 = vld [vmem:[#allocation211_spill] sm:$0xff] }
 0x4b9   :  { %v11248_v57 = vmul.f32 %v9940_v16, %v17029_v10  ;;  %v17034_v10 = vsub.f32 %v9088_v63, %v9445_v6  ;;  %v11302_v24 = vmul.f32 %v9940_v16, %v17047_v42  ;;  %v17057_v42 = vld [vmem:[#allocation214_spill] sm:$0xff] }
 0x4ba   :  { %v11266_v59 = vmul.f32 %v9940_v16, %v17032_v0  ;;  %17039 = vst [vmem:[#allocation116_spill] sm:$0xff] %v11284_v48  ;;  %v17040_v0 = vld [vmem:[#allocation208_spill] sm:$0xff]  ;;  %v17050_v48 = vsub.f32 %v17049_v20, %v9445_v6 }
 0x4bb   :  { %v11272_v38 = vmul.f32 %v9940_v16, %v17034_v10  ;;  %v17043_v10 = vld [vmem:[#allocation209_spill] sm:$0xff]  ;;  %17048 = vst [vmem:[#allocation121_spill] sm:$0xff] %v11302_v24  ;;  %v17058_v24 = vsub.f32 %v17057_v42, %v9445_v6 }
 0x4bc   :  { %17033 = vst [vmem:[#allocation109_spill] sm:$0xff] %v11266_v59  ;;  %v17041_v59 = vsub.f32 %v17040_v0, %v9445_v6  ;;  %v11308_v0 = vmul.f32 %v9940_v16, %v17050_v48  ;;  %v17060_v48 = vld [vmem:[#allocation215_spill] sm:$0xff] }
 0x4bd   :  { %17035 = vst [vmem:[#allocation112_spill] sm:$0xff] %v11272_v38  ;;  %v17044_v38 = vsub.f32 %v17043_v10, %v9445_v6  ;;  %v11326_v20 = vmul.f32 %v9940_v16, %v17058_v24  ;;  %v17065_v24 = vld [vmem:[#allocation218_spill] sm:$0xff] }
 0x4be   :  { %v11290_v63 = vmul.f32 %v9940_v16, %v17041_v59  ;;  %17051 = vst [vmem:[#allocation124_spill] sm:$0xff] %v11308_v0  ;;  %v17052_v59 = vld [vmem:[#allocation212_spill] sm:$0xff]  ;;  %v17061_v0 = vsub.f32 %v17060_v48, %v9445_v6 }
 0x4bf   :  { %v11296_v9 = vmul.f32 %v9940_v16, %v17044_v38  ;;  %v17055_v38 = vld [vmem:[#allocation213_spill] sm:$0xff]  ;;  %17059 = vst [vmem:[#allocation129_spill] sm:$0xff] %v11326_v20  ;;  %v17066_v20 = vsub.f32 %v17065_v24, %v9445_v6 }
 0x4c0   :  { %17042 = vst [vmem:[#allocation117_spill] sm:$0xff] %v11290_v63  ;;  %v17053_v63 = vsub.f32 %v17052_v59, %v9445_v6  ;;  %v11332_v59 = vmul.f32 %v9940_v16, %v17061_v0  ;;  %v17067_v0 = vsub.f32 %v16452_v36, %v9445_v6 }
 0x4c1   :  { %17045 = vst [vmem:[#allocation120_spill] sm:$0xff] %v11296_v9  ;;  %v17056_v9 = vsub.f32 %v17055_v38, %v9445_v6  ;;  %v11350_v48 = vmul.f32 %v9940_v16, %v17066_v20  ;;  %v17070_v20 = vsub.f32 %v16455_v23, %v9445_v6 }
 0x4c2   :  { %v11314_v10 = vmul.f32 %v9940_v16, %v17053_v63  ;;  %v17062_v63 = vld [vmem:[#allocation216_spill] sm:$0xff] }
 0x4c3   :  { %v11320_v15 = vmul.f32 %v9940_v16, %v17056_v9  ;;  %v17064_v9 = vsub.f32 %v16450_v52, %v9445_v6  ;;  %v11374_v36 = vmul.f32 %v9940_v16, %v17070_v20  ;;  %v17076_v20 = vld [vmem:[#allocation200_spill] sm:$0xff] }
 0x4c4   :  { %17054 = vst [vmem:[#allocation125_spill] sm:$0xff] %v11314_v10  ;;  %v17063_v10 = vsub.f32 %v17062_v63, %v9445_v6  ;;  %v11356_v63 = vmul.f32 %v9940_v16, %v17067_v0  ;;  %v17071_v0 = vsub.f32 %v16456_v28, %v9445_v6 }
 0x4c5   :  { %v11344_v42 = vmul.f32 %v9940_v16, %v17064_v9  ;;  %v17069_v9 = vsub.f32 %v16454_v45, %v9445_v6 }
 0x4c6   :  { %v11338_v38 = vmul.f32 %v9940_v16, %v17063_v10  ;;  %v17068_v10 = vsub.f32 %v16453_v53, %v9445_v6  ;;  %v11380_v53 = vmul.f32 %v9940_v16, %v17071_v0 }
 0x4c7   :  { %v11368_v24 = vmul.f32 %v9940_v16, %v17069_v9  ;;  %v11391_v9 = vld [vmem:[%s15323_s3] ss:$0 sm:$0xff] }
 0x4c8   :  { %v11362_v52 = vmul.f32 %v9940_v16, %v17068_v10  ;;  %v17072_v10 = vsub.f32 %v9243_v3, %v9445_v6  ;;  %v11395_v23 = vadd.f32 %v11391_v9, %v9946_v61  ;;  %v11399_v28 = vadd.f32 %v11391_v9, %v9952_v47  ;;  %v17078_v6 = vld [vmem:[#allocation201_spill] sm:$0xff]  ;;  %v17080_v3 = vld [vmem:[#allocation204_spill] sm:$0xff] }
 0x4c9   :  { %v11403_v0 = vadd.f32 %v11391_v9, %v17076_v20 }
 0x4ca   :  { %v11386_v45 = vmul.f32 %v9940_v16, %v17072_v10  ;;  %17074 = vst [vmem:[#allocation136_spill] sm:$0xff] %v11395_v23  ;;  %17075 = vst [vmem:[#allocation137_spill] sm:$0xff] %v11399_v28  ;;  %v11407_v16 = vadd.f32 %v11391_v9, %v17078_v6  ;;  %v11411_v10 = vadd.f32 %v11391_v9, %v17080_v3  ;;  %v17084_v23 = vld [vmem:[#allocation2_spill] sm:$0xff]  ;;  %v17086_v28 = vld [vmem:[#allocation3_spill] sm:$0xff] }
 0x4cb   :  { %17077 = vst [vmem:[#allocation140_spill] sm:$0xff] %v11403_v0  ;;  %v11419_v47 = vadd.f32 %v11391_v9, %v17084_v23  ;;  %v11423_v20 = vadd.f32 %v11391_v9, %v17086_v28  ;;  %v17088_v0 = vld [vmem:[#allocation4_spill] sm:$0xff] }
 0x4cc   :  { %17073 = vst [vmem:[#allocation133_spill] sm:$0xff] %v11386_v45  ;;  %17079 = vst [vmem:[#allocation141_spill] sm:$0xff] %v11407_v16  ;;  %v17082_v45 = vld [vmem:[#allocation205_spill] sm:$0xff]  ;;  %v11427_v6 = vadd.f32 %v11391_v9, %v17088_v0  ;;  %v17090_v16 = vld [vmem:[#allocation7_spill] sm:$0xff] }
 0x4cd   :  { %17081 = vst [vmem:[#allocation144_spill] sm:$0xff] %v11411_v10  ;;  %v11415_v61 = vadd.f32 %v11391_v9, %v17082_v45  ;;  %17085 = vst [vmem:[#allocation148_spill] sm:$0xff] %v11419_v47  ;;  %v11431_v3 = vadd.f32 %v11391_v9, %v17090_v16  ;;  %v17092_v10 = vld [vmem:[#allocation90_spill] sm:$0xff] }
 0x4ce   :  { %17087 = vst [vmem:[#allocation149_spill] sm:$0xff] %v11423_v20  ;;  %17089 = vst [vmem:[#allocation152_spill] sm:$0xff] %v11427_v6  ;;  %v11435_v45 = vadd.f32 %v11391_v9, %v17092_v10  ;;  %v17096_v47 = vld [vmem:[#allocation202_spill] sm:$0xff]  ;;  %v17098_v20 = vld [vmem:[#allocation203_spill] sm:$0xff] }
 0x4cf   :  { %17083 = vst [vmem:[#allocation145_spill] sm:$0xff] %v11415_v61  ;;  %17091 = vst [vmem:[#allocation153_spill] sm:$0xff] %v11431_v3  ;;  %v17094_v61 = vld [vmem:[#allocation195_spill] sm:$0xff]  ;;  %v11443_v28 = vadd.f32 %v11391_v9, %v17096_v47  ;;  %v11447_v0 = vadd.f32 %v11391_v9, %v17098_v20  ;;  %v17100_v6 = vld [vmem:[#allocation32_spill] sm:$0xff] }
 0x4d0   :  { %17093 = vst [vmem:[#allocation156_spill] sm:$0xff] %v11435_v45  ;;  %v11439_v23 = vadd.f32 %v11391_v9, %v17094_v61  ;;  %v11451_v16 = vadd.f32 %v11391_v9, %v17100_v6  ;;  %v17102_v3 = vld [vmem:[#allocation39_spill] sm:$0xff]  ;;  %v17104_v45 = vld [vmem:[#allocation46_spill] sm:$0xff] }
 0x4d1   :  { %17097 = vst [vmem:[#allocation160_spill] sm:$0xff] %v11443_v28  ;;  %17099 = vst [vmem:[#allocation161_spill] sm:$0xff] %v11447_v0  ;;  %v11455_v10 = vadd.f32 %v11391_v9, %v17102_v3  ;;  %v11459_v61 = vadd.f32 %v11391_v9, %v17104_v45  ;;  %v17108_v28 = vld [vmem:[#allocation60_spill] sm:$0xff]  ;;  %v17110_v0 = vld [vmem:[#allocation67_spill] sm:$0xff] }
 0x4d2   :  { %17095 = vst [vmem:[#allocation157_spill] sm:$0xff] %v11439_v23  ;;  %17101 = vst [vmem:[#allocation164_spill] sm:$0xff] %v11451_v16  ;;  %v17106_v23 = vld [vmem:[#allocation53_spill] sm:$0xff]  ;;  %v11467_v20 = vadd.f32 %v11391_v9, %v17108_v28  ;;  %v11471_v6 = vadd.f32 %v11391_v9, %v17110_v0  ;;  %v17112_v16 = vld [vmem:[#allocation74_spill] sm:$0xff] }
 0x4d3   :  { %17103 = vst [vmem:[#allocation165_spill] sm:$0xff] %v11455_v10  ;;  %17105 = vst [vmem:[#allocation168_spill] sm:$0xff] %v11459_v61  ;;  %v11463_v47 = vadd.f32 %v11391_v9, %v17106_v23  ;;  %v11475_v3 = vadd.f32 %v11391_v9, %v17112_v16  ;;  %v17114_v10 = vld [vmem:[#allocation128_spill] sm:$0xff] }
 0x4d4   :  { %17109 = vst [vmem:[#allocation172_spill] sm:$0xff] %v11467_v20  ;;  %17111 = vst [vmem:[#allocation173_spill] sm:$0xff] %v11471_v6  ;;  %v11479_v45 = vadd.f32 %v11391_v9, %v17114_v10  ;;  %v17116_v61 = vld [vmem:[#allocation132_spill] sm:$0xff]  ;;  %v17122_v6 = vld [vmem:[#allocation189_spill] sm:$0xff] }
 0x4d5   :  { %17107 = vst [vmem:[#allocation169_spill] sm:$0xff] %v11463_v47  ;;  %17113 = vst [vmem:[#allocation176_spill] sm:$0xff] %v11475_v3  ;;  %v11483_v23 = vadd.f32 %v11391_v9, %v17116_v61  ;;  %v17118_v47 = vld [vmem:[#allocation185_spill] sm:$0xff]  ;;  %v17120_v20 = vld [vmem:[#allocation188_spill] sm:$0xff]  ;;  %v11495_v16 = vadd.f32 %v11391_v9, %v17122_v6 }
 0x4d6   :  { %17115 = vst [vmem:[#allocation177_spill] sm:$0xff] %v11479_v45  ;;  %v11487_v28 = vadd.f32 %v11391_v9, %v17118_v47  ;;  %v11491_v0 = vadd.f32 %v11391_v9, %v17120_v20  ;;  %v17124_v3 = vld [vmem:[#allocation192_spill] sm:$0xff]  ;;  %v17126_v45 = vld [vmem:[#allocation193_spill] sm:$0xff] }
 0x4d7   :  { %17117 = vst [vmem:[#allocation180_spill] sm:$0xff] %v11483_v23  ;;  %17123 = vst [vmem:[#allocation208_spill] sm:$0xff] %v11495_v16  ;;  %v11499_v10 = vadd.f32 %v11391_v9, %v17124_v3  ;;  %v11503_v61 = vadd.f32 %v11391_v9, %v17126_v45  ;;  %v17128_v23 = vld [vmem:[#allocation196_spill] sm:$0xff]  ;;  %v17134_v16 = vld [vmem:[#allocation219_spill] sm:$0xff] }
 0x4d8   :  { %17119 = vst [vmem:[#allocation181_spill] sm:$0xff] %v11487_v28  ;;  %17121 = vst [vmem:[#allocation184_spill] sm:$0xff] %v11491_v0  ;;  %v11507_v47 = vadd.f32 %v11391_v9, %v17128_v23  ;;  %v17130_v28 = vld [vmem:[#allocation197_spill] sm:$0xff]  ;;  %v11519_v3 = vadd.f32 %v11391_v9, %v17134_v16 }
 0x4d9   :  { %17125 = vst [vmem:[#allocation209_spill] sm:$0xff] %v11499_v10  ;;  %17127 = vst [vmem:[#allocation210_spill] sm:$0xff] %v11503_v61  ;;  %v11511_v20 = vadd.f32 %v11391_v9, %v17130_v28  ;;  %v17132_v0 = vld [vmem:[#allocation217_spill] sm:$0xff]  ;;  %v17136_v10 = vld [vmem:[#allocation220_spill] sm:$0xff] }
 0x4da   :  { %17129 = vst [vmem:[#allocation211_spill] sm:$0xff] %v11507_v47  ;;  %v11515_v6 = vadd.f32 %v11391_v9, %v17132_v0  ;;  %17135 = vst [vmem:[#allocation214_spill] sm:$0xff] %v11519_v3  ;;  %v11523_v45 = vadd.f32 %v11391_v9, %v17136_v10  ;;  %v17138_v61 = vld [vmem:[#allocation221_spill] sm:$0xff]  ;;  %v17140_v47 = vld [vmem:[#allocation222_spill] sm:$0xff] }
 0x4db   :  { %17131 = vst [vmem:[#allocation212_spill] sm:$0xff] %v11511_v20  ;;  %v11527_v23 = vadd.f32 %v11391_v9, %v17138_v61  ;;  %v11531_v28 = vadd.f32 %v11391_v9, %v17140_v47  ;;  %v17142_v20 = vld [vmem:[#allocation223_spill] sm:$0xff]  ;;  %v17146_v3 = vld [vmem:[#allocation6_spill] sm:$0xff] }
 0x4dc   :  { %17133 = vst [vmem:[#allocation213_spill] sm:$0xff] %v11515_v6  ;;  %17137 = vst [vmem:[#allocation215_spill] sm:$0xff] %v11523_v45  ;;  %v11535_v0 = vadd.f32 %v11391_v9, %v17142_v20  ;;  %v17144_v6 = vld [vmem:[#allocation5_spill] sm:$0xff]  ;;  %v11543_v10 = vadd.f32 %v11391_v9, %v17146_v3  ;;  %v17148_v45 = vld [vmem:[#allocation8_spill] sm:$0xff] }
 0x4dd   :  { %17139 = vst [vmem:[#allocation216_spill] sm:$0xff] %v11527_v23  ;;  %17141 = vst [vmem:[#allocation218_spill] sm:$0xff] %v11531_v28  ;;  %v11539_v16 = vadd.f32 %v11391_v9, %v17144_v6  ;;  %v11547_v61 = vadd.f32 %v11391_v9, %v17148_v45  ;;  %v17150_v23 = vld [vmem:[#allocation9_spill] sm:$0xff]  ;;  %v17152_v28 = vld [vmem:[#allocation10_spill] sm:$0xff] }
 0x4de   :  { %17143 = vst [vmem:[#allocation200_spill] sm:$0xff] %v11535_v0  ;;  %17147 = vst [vmem:[#allocation204_spill] sm:$0xff] %v11543_v10  ;;  %v11551_v47 = vadd.f32 %v11391_v9, %v17150_v23  ;;  %v11555_v20 = vadd.f32 %v11391_v9, %v17152_v28  ;;  %v17154_v0 = vld [vmem:[#allocation11_spill] sm:$0xff]  ;;  %v17158_v10 = vld [vmem:[#allocation13_spill] sm:$0xff] }
 0x4df   :  { %17145 = vst [vmem:[#allocation201_spill] sm:$0xff] %v11539_v16  ;;  %17149 = vst [vmem:[#allocation205_spill] sm:$0xff] %v11547_v61  ;;  %v11559_v6 = vadd.f32 %v11391_v9, %v17154_v0  ;;  %v17156_v16 = vld [vmem:[#allocation12_spill] sm:$0xff]  ;;  %v11567_v45 = vadd.f32 %v11391_v9, %v17158_v10  ;;  %v17160_v61 = vld [vmem:[#allocation14_spill] sm:$0xff] }
 0x4e0   :  { %17151 = vst [vmem:[#allocation2_spill] sm:$0xff] %v11551_v47  ;;  %17153 = vst [vmem:[#allocation3_spill] sm:$0xff] %v11555_v20  ;;  %v11563_v3 = vadd.f32 %v11391_v9, %v17156_v16  ;;  %v11571_v23 = vadd.f32 %v11391_v9, %v17160_v61  ;;  %v17162_v47 = vld [vmem:[#allocation15_spill] sm:$0xff]  ;;  %v17164_v20 = vld [vmem:[#allocation16_spill] sm:$0xff] }
 0x4e1   :  { %17155 = vst [vmem:[#allocation4_spill] sm:$0xff] %v11559_v6  ;;  %17159 = vst [vmem:[#allocation90_spill] sm:$0xff] %v11567_v45  ;;  %v11575_v28 = vadd.f32 %v11391_v9, %v17162_v47  ;;  %v11579_v0 = vadd.f32 %v11391_v9, %v17164_v20  ;;  %v17166_v6 = vld [vmem:[#allocation17_spill] sm:$0xff]  ;;  %v17170_v45 = vld [vmem:[#allocation19_spill] sm:$0xff] }
 0x4e2   :  { %17157 = vst [vmem:[#allocation7_spill] sm:$0xff] %v11563_v3  ;;  %17161 = vst [vmem:[#allocation195_spill] sm:$0xff] %v11571_v23  ;;  %v11583_v16 = vadd.f32 %v11391_v9, %v17166_v6  ;;  %v17168_v3 = vld [vmem:[#allocation18_spill] sm:$0xff]  ;;  %v11591_v61 = vadd.f32 %v11391_v9, %v17170_v45  ;;  %v17172_v23 = vld [vmem:[#allocation20_spill] sm:$0xff] }
 0x4e3   :  { %17163 = vst [vmem:[#allocation202_spill] sm:$0xff] %v11575_v28  ;;  %17165 = vst [vmem:[#allocation203_spill] sm:$0xff] %v11579_v0  ;;  %v11587_v10 = vadd.f32 %v11391_v9, %v17168_v3  ;;  %v11595_v47 = vadd.f32 %v11391_v9, %v17172_v23  ;;  %v17174_v28 = vld [vmem:[#allocation21_spill] sm:$0xff]  ;;  %v17176_v0 = vld [vmem:[#allocation22_spill] sm:$0xff] }
 0x4e4   :  { %17167 = vst [vmem:[#allocation32_spill] sm:$0xff] %v11583_v16  ;;  %17171 = vst [vmem:[#allocation46_spill] sm:$0xff] %v11591_v61  ;;  %v11599_v20 = vadd.f32 %v11391_v9, %v17174_v28  ;;  %v11603_v6 = vadd.f32 %v11391_v9, %v17176_v0  ;;  %v17177_v16 = vld [vmem:[#allocation23_spill] sm:$0xff]  ;;  %v17181_v61 = vld [vmem:[#allocation25_spill] sm:$0xff] }
 0x4e5   :  { %17169 = vst [vmem:[#allocation39_spill] sm:$0xff] %v11587_v10  ;;  %17173 = vst [vmem:[#allocation53_spill] sm:$0xff] %v11595_v47  ;;  %v11607_v3 = vadd.f32 %v11391_v9, %v17177_v16  ;;  %v17179_v10 = vld [vmem:[#allocation24_spill] sm:$0xff]  ;;  %v11615_v23 = vadd.f32 %v11391_v9, %v17181_v61  ;;  %v17183_v47 = vld [vmem:[#allocation26_spill] sm:$0xff]  ;;  %v11627_v16 = vadd.f32 %v11391_v9, %v10294_v62 }
 0x4e6   :  { %17175 = vst [vmem:[#allocation60_spill] sm:$0xff] %v11599_v20  ;;  %v11611_v45 = vadd.f32 %v11391_v9, %v17179_v10  ;;  %v11619_v28 = vadd.f32 %v11391_v9, %v17183_v47  ;;  %v17185_v20 = vld [vmem:[#allocation27_spill] sm:$0xff] }
 0x4e7   :  { %17178 = vst [vmem:[#allocation67_spill] sm:$0xff] %v11607_v3  ;;  %17182 = vst [vmem:[#allocation128_spill] sm:$0xff] %v11615_v23  ;;  %v11623_v0 = vadd.f32 %v11391_v9, %v17185_v20  ;;  %v17188_v3 = vld [vmem:[#allocation28_spill] sm:$0xff]  ;;  %v17192_v23 = vld [vmem:[#allocation30_spill] sm:$0xff] }
 0x4e8   :  { %17180 = vst [vmem:[#allocation74_spill] sm:$0xff] %v11611_v45  ;;  %17184 = vst [vmem:[#allocation132_spill] sm:$0xff] %v11619_v28  ;;  %v11631_v10 = vadd.f32 %v11391_v9, %v17188_v3  ;;  %v17190_v45 = vld [vmem:[#allocation29_spill] sm:$0xff]  ;;  %v11639_v47 = vadd.f32 %v11391_v9, %v17192_v23  ;;  %v17194_v28 = vld [vmem:[#allocation31_spill] sm:$0xff] }
 0x4e9   :  { %17186 = vst [vmem:[#allocation185_spill] sm:$0xff] %v11623_v0  ;;  %17187 = vst [vmem:[#allocation188_spill] sm:$0xff] %v11627_v16  ;;  %v11635_v61 = vadd.f32 %v11391_v9, %v17190_v45  ;;  %v11643_v20 = vadd.f32 %v11391_v9, %v17194_v28  ;;  %v17196_v0 = vld [vmem:[#allocation33_spill] sm:$0xff]  ;;  %v17198_v16 = vld [vmem:[#allocation34_spill] sm:$0xff] }
 0x4ea   :  { %17189 = vst [vmem:[#allocation189_spill] sm:$0xff] %v11631_v10  ;;  %17193 = vst [vmem:[#allocation193_spill] sm:$0xff] %v11639_v47  ;;  %v11647_v62 = vadd.f32 %v11391_v9, %v17196_v0  ;;  %v11651_v3 = vadd.f32 %v11391_v9, %v17198_v16  ;;  %v17200_v10 = vld [vmem:[#allocation37_spill] sm:$0xff]  ;;  %v17204_v47 = vld [vmem:[#allocation40_spill] sm:$0xff] }
 0x4eb   :  { %17191 = vst [vmem:[#allocation192_spill] sm:$0xff] %v11635_v61  ;;  %17195 = vst [vmem:[#allocation196_spill] sm:$0xff] %v11643_v20  ;;  %v11655_v45 = vadd.f32 %v11391_v9, %v17200_v10  ;;  %v17202_v61 = vld [vmem:[#allocation38_spill] sm:$0xff]  ;;  %v11663_v28 = vadd.f32 %v11391_v9, %v17204_v47  ;;  %v17206_v20 = vld [vmem:[#allocation41_spill] sm:$0xff] }
 0x4ec   :  { %17197 = vst [vmem:[#allocation197_spill] sm:$0xff] %v11647_v62  ;;  %17199 = vst [vmem:[#allocation217_spill] sm:$0xff] %v11651_v3  ;;  %v11659_v23 = vadd.f32 %v11391_v9, %v17202_v61  ;;  %v11667_v0 = vadd.f32 %v11391_v9, %v17206_v20  ;;  %v17208_v62 = vld [vmem:[#allocation44_spill] sm:$0xff]  ;;  %v17210_v3 = vld [vmem:[#allocation45_spill] sm:$0xff] }
 0x4ed   :  { %17201 = vst [vmem:[#allocation219_spill] sm:$0xff] %v11655_v45  ;;  %17205 = vst [vmem:[#allocation221_spill] sm:$0xff] %v11663_v28  ;;  %v11671_v16 = vadd.f32 %v11391_v9, %v17208_v62  ;;  %v11675_v10 = vadd.f32 %v11391_v9, %v17210_v3  ;;  %v17212_v45 = vld [vmem:[#allocation47_spill] sm:$0xff] }
 0x4ee   :  { %17203 = vst [vmem:[#allocation220_spill] sm:$0xff] %v11659_v23  ;;  %17207 = vst [vmem:[#allocation222_spill] sm:$0xff] %v11667_v0  ;;  %v11679_v61 = vadd.f32 %v11391_v9, %v17212_v45  ;;  %v17214_v23 = vld [vmem:[#allocation48_spill] sm:$0xff]  ;;  %v17216_v28 = vld [vmem:[#allocation51_spill] sm:$0xff] }
 0x4ef   :  { %17209 = vst [vmem:[#allocation223_spill] sm:$0xff] %v11671_v16  ;;  %17211 = vst [vmem:[#allocation5_spill] sm:$0xff] %v11675_v10  ;;  %v11683_v47 = vadd.f32 %v11391_v9, %v17214_v23  ;;  %v11687_v20 = vadd.f32 %v11391_v9, %v17216_v28  ;;  %v17218_v0 = vld [vmem:[#allocation52_spill] sm:$0xff]  ;;  %v17220_v16 = vld [vmem:[#allocation54_spill] sm:$0xff] }
 0x4f0   :  { %17213 = vst [vmem:[#allocation6_spill] sm:$0xff] %v11679_v61  ;;  %v11691_v62 = vadd.f32 %v11391_v9, %v17218_v0  ;;  %v11695_v3 = vadd.f32 %v11391_v9, %v17220_v16  ;;  %v17222_v10 = vld [vmem:[#allocation55_spill] sm:$0xff]  ;;  %v17224_v61 = vld [vmem:[#allocation58_spill] sm:$0xff] }
 0x4f1   :  { %17215 = vst [vmem:[#allocation8_spill] sm:$0xff] %v11683_v47  ;;  %17217 = vst [vmem:[#allocation9_spill] sm:$0xff] %v11687_v20  ;;  %v11699_v45 = vadd.f32 %v11391_v9, %v17222_v10  ;;  %v11703_v23 = vadd.f32 %v11391_v9, %v17224_v61  ;;  %v17226_v47 = vld [vmem:[#allocation59_spill] sm:$0xff]  ;;  %v17228_v20 = vld [vmem:[#allocation61_spill] sm:$0xff] }
 0x4f2   :  { %17219 = vst [vmem:[#allocation10_spill] sm:$0xff] %v11691_v62  ;;  %17221 = vst [vmem:[#allocation11_spill] sm:$0xff] %v11695_v3  ;;  %v11707_v28 = vadd.f32 %v11391_v9, %v17226_v47  ;;  %v11711_v0 = vadd.f32 %v11391_v9, %v17228_v20  ;;  %v17230_v62 = vld [vmem:[#allocation62_spill] sm:$0xff]  ;;  %v17232_v3 = vld [vmem:[#allocation65_spill] sm:$0xff] }
 0x4f3   :  { %17223 = vst [vmem:[#allocation12_spill] sm:$0xff] %v11699_v45  ;;  %17225 = vst [vmem:[#allocation13_spill] sm:$0xff] %v11703_v23  ;;  %v11715_v16 = vadd.f32 %v11391_v9, %v17230_v62  ;;  %v11719_v10 = vadd.f32 %v11391_v9, %v17232_v3  ;;  %v17234_v45 = vld [vmem:[#allocation66_spill] sm:$0xff]  ;;  %v17236_v23 = vld [vmem:[#allocation68_spill] sm:$0xff] }
 0x4f4   :  { %17227 = vst [vmem:[#allocation14_spill] sm:$0xff] %v11707_v28  ;;  %17229 = vst [vmem:[#allocation15_spill] sm:$0xff] %v11711_v0  ;;  %v11723_v61 = vadd.f32 %v11391_v9, %v17234_v45  ;;  %v11727_v47 = vadd.f32 %v11391_v9, %v17236_v23  ;;  %v17238_v28 = vld [vmem:[#allocation69_spill] sm:$0xff]  ;;  %v17240_v0 = vld [vmem:[#allocation72_spill] sm:$0xff] }
 0x4f5   :  { %17231 = vst [vmem:[#allocation16_spill] sm:$0xff] %v11715_v16  ;;  %17233 = vst [vmem:[#allocation17_spill] sm:$0xff] %v11719_v10  ;;  %v11731_v20 = vadd.f32 %v11391_v9, %v17238_v28  ;;  %v11735_v62 = vadd.f32 %v11391_v9, %v17240_v0  ;;  %v17242_v16 = vld [vmem:[#allocation73_spill] sm:$0xff]  ;;  %v17244_v10 = vld [vmem:[#allocation75_spill] sm:$0xff] }
 0x4f6   :  { %17235 = vst [vmem:[#allocation18_spill] sm:$0xff] %v11723_v61  ;;  %17237 = vst [vmem:[#allocation19_spill] sm:$0xff] %v11727_v47  ;;  %v11739_v3 = vadd.f32 %v11391_v9, %v17242_v16  ;;  %v11743_v45 = vadd.f32 %v11391_v9, %v17244_v10  ;;  %v17246_v61 = vld [vmem:[#allocation76_spill] sm:$0xff]  ;;  %v17248_v47 = vld [vmem:[#allocation79_spill] sm:$0xff] }
 0x4f7   :  { %17239 = vst [vmem:[#allocation20_spill] sm:$0xff] %v11731_v20  ;;  %17241 = vst [vmem:[#allocation21_spill] sm:$0xff] %v11735_v62  ;;  %v11747_v23 = vadd.f32 %v11391_v9, %v17246_v61  ;;  %v11751_v28 = vadd.f32 %v11391_v9, %v17248_v47  ;;  %v17250_v20 = vld [vmem:[#allocation80_spill] sm:$0xff]  ;;  %v17252_v62 = vld [vmem:[#allocation82_spill] sm:$0xff] }
 0x4f8   :  { %17243 = vst [vmem:[#allocation22_spill] sm:$0xff] %v11739_v3  ;;  %17245 = vst [vmem:[#allocation23_spill] sm:$0xff] %v11743_v45  ;;  %v11755_v0 = vadd.f32 %v11391_v9, %v17250_v20  ;;  %v11759_v16 = vadd.f32 %v11391_v9, %v17252_v62  ;;  %v17254_v3 = vld [vmem:[#allocation83_spill] sm:$0xff]  ;;  %v17256_v45 = vld [vmem:[#allocation86_spill] sm:$0xff] }
 0x4f9   :  { %17247 = vst [vmem:[#allocation24_spill] sm:$0xff] %v11747_v23  ;;  %17249 = vst [vmem:[#allocation25_spill] sm:$0xff] %v11751_v28  ;;  %v11763_v10 = vadd.f32 %v11391_v9, %v17254_v3  ;;  %v11767_v61 = vadd.f32 %v11391_v9, %v17256_v45  ;;  %v17258_v23 = vld [vmem:[#allocation87_spill] sm:$0xff] }
 0x4fa   :  { %17251 = vst [vmem:[#allocation26_spill] sm:$0xff] %v11755_v0  ;;  %17253 = vst [vmem:[#allocation27_spill] sm:$0xff] %v11759_v16  ;;  %v11771_v47 = vadd.f32 %v11391_v9, %v17258_v23  ;;  %v17260_v28 = vld [vmem:[#allocation91_spill] sm:$0xff]  ;;  %v17262_v0 = vld [vmem:[#allocation94_spill] sm:$0xff] }
 0x4fb   :  { %17255 = vst [vmem:[#allocation28_spill] sm:$0xff] %v11763_v10  ;;  %17257 = vst [vmem:[#allocation29_spill] sm:$0xff] %v11767_v61  ;;  %v11775_v20 = vadd.f32 %v11391_v9, %v17260_v28  ;;  %v11779_v62 = vadd.f32 %v11391_v9, %v17262_v0  ;;  %v17264_v16 = vld [vmem:[#allocation95_spill] sm:$0xff]  ;;  %v17266_v10 = vld [vmem:[#allocation98_spill] sm:$0xff] }
 0x4fc   :  { %17259 = vst [vmem:[#allocation30_spill] sm:$0xff] %v11771_v47  ;;  %v11783_v3 = vadd.f32 %v11391_v9, %v17264_v16  ;;  %v11787_v45 = vadd.f32 %v11391_v9, %v17266_v10  ;;  %v17268_v61 = vld [vmem:[#allocation99_spill] sm:$0xff]  ;;  %v17270_v47 = vld [vmem:[#allocation102_spill] sm:$0xff] }
 0x4fd   :  { %17261 = vst [vmem:[#allocation31_spill] sm:$0xff] %v11775_v20  ;;  %17263 = vst [vmem:[#allocation33_spill] sm:$0xff] %v11779_v62  ;;  %v11791_v23 = vadd.f32 %v11391_v9, %v17268_v61  ;;  %v11795_v28 = vadd.f32 %v11391_v9, %v17270_v47  ;;  %v17272_v20 = vld [vmem:[#allocation103_spill] sm:$0xff]  ;;  %v17274_v62 = vld [vmem:[#allocation106_spill] sm:$0xff] }
 0x4fe   :  { %17265 = vst [vmem:[#allocation34_spill] sm:$0xff] %v11783_v3  ;;  %17267 = vst [vmem:[#allocation37_spill] sm:$0xff] %v11787_v45  ;;  %v11799_v0 = vadd.f32 %v11391_v9, %v17272_v20  ;;  %v11803_v16 = vadd.f32 %v11391_v9, %v17274_v62  ;;  %v17276_v3 = vld [vmem:[#allocation107_spill] sm:$0xff]  ;;  %v17278_v45 = vld [vmem:[#allocation110_spill] sm:$0xff] }
 0x4ff   :  { %17269 = vst [vmem:[#allocation38_spill] sm:$0xff] %v11791_v23  ;;  %17271 = vst [vmem:[#allocation40_spill] sm:$0xff] %v11795_v28  ;;  %v11807_v10 = vadd.f32 %v11391_v9, %v17276_v3  ;;  %v11811_v61 = vadd.f32 %v11391_v9, %v17278_v45  ;;  %v17280_v23 = vld [vmem:[#allocation111_spill] sm:$0xff]  ;;  %v17282_v28 = vld [vmem:[#allocation114_spill] sm:$0xff] }
 0x500   :  { %17273 = vst [vmem:[#allocation41_spill] sm:$0xff] %v11799_v0  ;;  %17275 = vst [vmem:[#allocation44_spill] sm:$0xff] %v11803_v16  ;;  %v11815_v47 = vadd.f32 %v11391_v9, %v17280_v23  ;;  %v11819_v20 = vadd.f32 %v11391_v9, %v17282_v28  ;;  %v17284_v0 = vld [vmem:[#allocation115_spill] sm:$0xff]  ;;  %v17286_v16 = vld [vmem:[#allocation118_spill] sm:$0xff]  ;;  %v11839_v28 = vadd.f32 %v11391_v9, %v10612_v5 }
 0x501   :  { %17277 = vst [vmem:[#allocation45_spill] sm:$0xff] %v11807_v10  ;;  %17279 = vst [vmem:[#allocation47_spill] sm:$0xff] %v11811_v61  ;;  %v11823_v62 = vadd.f32 %v11391_v9, %v17284_v0  ;;  %v11827_v3 = vadd.f32 %v11391_v9, %v17286_v16  ;;  %v17288_v10 = vld [vmem:[#allocation119_spill] sm:$0xff]  ;;  %v17290_v61 = vld [vmem:[#allocation122_spill] sm:$0xff] }
 0x502   :  { %17281 = vst [vmem:[#allocation48_spill] sm:$0xff] %v11815_v47  ;;  %17283 = vst [vmem:[#allocation51_spill] sm:$0xff] %v11819_v20  ;;  %v11831_v45 = vadd.f32 %v11391_v9, %v17288_v10  ;;  %v11835_v23 = vadd.f32 %v11391_v9, %v17290_v61  ;;  %v17293_v20 = vld [vmem:[#allocation123_spill] sm:$0xff]  ;;  %v11851_v10 = vadd.f32 %v11391_v9, %v10630_v19 }
 0x503   :  { %17285 = vst [vmem:[#allocation52_spill] sm:$0xff] %v11823_v62  ;;  %17287 = vst [vmem:[#allocation54_spill] sm:$0xff] %v11827_v3  ;;  %v11843_v0 = vadd.f32 %v11391_v9, %v17293_v20  ;;  %v17295_v62 = vld [vmem:[#allocation126_spill] sm:$0xff]  ;;  %v11855_v61 = vadd.f32 %v11391_v9, %v10636_v34  ;;  %v11871_v19 = vadd.f32 %v11391_v9, %v10660_v49 }
 0x504   :  { %17289 = vst [vmem:[#allocation55_spill] sm:$0xff] %v11831_v45  ;;  %17291 = vst [vmem:[#allocation58_spill] sm:$0xff] %v11835_v23  ;;  %v11847_v16 = vadd.f32 %v11391_v9, %v17295_v62  ;;  %v17299_v23 = vld [vmem:[#allocation127_spill] sm:$0xff]  ;;  %v11867_v62 = vadd.f32 %v11391_v9, %v10654_v31  ;;  %v11887_v31 = vadd.f32 %v11391_v9, %v10684_v40 }
 0x505   :  { %17292 = vst [vmem:[#allocation59_spill] sm:$0xff] %v11839_v28  ;;  %17294 = vst [vmem:[#allocation61_spill] sm:$0xff] %v11843_v0  ;;  %v11859_v5 = vadd.f32 %v11391_v9, %v17299_v23  ;;  %v17301_v28 = vld [vmem:[#allocation130_spill] sm:$0xff] }
 0x506   :  { %17296 = vst [vmem:[#allocation62_spill] sm:$0xff] %v11847_v16  ;;  %17297 = vst [vmem:[#allocation65_spill] sm:$0xff] %v11851_v10  ;;  %v11863_v20 = vadd.f32 %v11391_v9, %v17301_v28  ;;  %v17305_v10 = vld [vmem:[#allocation131_spill] sm:$0xff]  ;;  %v11883_v28 = vadd.f32 %v11391_v9, %v10678_v26  ;;  %v11903_v26 = vadd.f32 %v11391_v9, %v10708_v51  ;;  %v17557_v0 = vld [vmem:[#allocation2_spill] sm:$0xff] }
 0x507   :  { %17298 = vst [vmem:[#allocation66_spill] sm:$0xff] %v11855_v61  ;;  %17300 = vst [vmem:[#allocation68_spill] sm:$0xff] %v11859_v5  ;;  %v11875_v34 = vadd.f32 %v11391_v9, %v17305_v10  ;;  %v17307_v61 = vld [vmem:[#allocation134_spill] sm:$0xff]  ;;  %v12521_v45 = vmul.f32 0.2, %v17557_v0 }
 0x508   :  { %17302 = vst [vmem:[#allocation69_spill] sm:$0xff] %v11863_v20  ;;  %17303 = vst [vmem:[#allocation72_spill] sm:$0xff] %v11867_v62  ;;  %v11879_v23 = vadd.f32 %v11391_v9, %v17307_v61  ;;  %v17311_v62 = vld [vmem:[#allocation135_spill] sm:$0xff]  ;;  %v11899_v61 = vadd.f32 %v11391_v9, %v10702_v29  ;;  %v11919_v29 = vadd.f32 %v11391_v9, %v10732_v58 }
 0x509   :  { %17304 = vst [vmem:[#allocation73_spill] sm:$0xff] %v11871_v19  ;;  %17306 = vst [vmem:[#allocation75_spill] sm:$0xff] %v11875_v34  ;;  %v11891_v49 = vadd.f32 %v11391_v9, %v17311_v62  ;;  %v17313_v19 = vld [vmem:[#allocation138_spill] sm:$0xff]  ;;  %v17550_v34 = vld [vmem:[#allocation201_spill] sm:$0xff] }
 0x50a   :  { %17308 = vst [vmem:[#allocation76_spill] sm:$0xff] %v11879_v23  ;;  %17309 = vst [vmem:[#allocation79_spill] sm:$0xff] %v11883_v28  ;;  %v11895_v10 = vadd.f32 %v11391_v9, %v17313_v19  ;;  %v17317_v28 = vld [vmem:[#allocation139_spill] sm:$0xff]  ;;  %v11915_v19 = vadd.f32 %v11391_v9, %v10726_v7  ;;  %v11935_v7 = vadd.f32 %v11391_v9, %v10756_v30  ;;  %v12506_v20 = vmul.f32 0.2, %v17550_v34 }
 0x50b   :  { %17310 = vst [vmem:[#allocation80_spill] sm:$0xff] %v11887_v31  ;;  %17312 = vst [vmem:[#allocation82_spill] sm:$0xff] %v11891_v49  ;;  %v11907_v40 = vadd.f32 %v11391_v9, %v17317_v28  ;;  %v17319_v31 = vld [vmem:[#allocation142_spill] sm:$0xff] }
 0x50c   :  { %17314 = vst [vmem:[#allocation83_spill] sm:$0xff] %v11895_v10  ;;  %17315 = vst [vmem:[#allocation86_spill] sm:$0xff] %v11899_v61  ;;  %v11911_v62 = vadd.f32 %v11391_v9, %v17319_v31  ;;  %v17323_v61 = vld [vmem:[#allocation143_spill] sm:$0xff]  ;;  %v11931_v31 = vadd.f32 %v11391_v9, %v10750_v1  ;;  %v11951_v1 = vadd.f32 %v11391_v9, %v10780_v32 }
 0x50d   :  { %17316 = vst [vmem:[#allocation87_spill] sm:$0xff] %v11903_v26  ;;  %17318 = vst [vmem:[#allocation91_spill] sm:$0xff] %v11907_v40  ;;  %v11923_v51 = vadd.f32 %v11391_v9, %v17323_v61  ;;  %v17325_v26 = vld [vmem:[#allocation146_spill] sm:$0xff]  ;;  %v17543_v40 = vld [vmem:[#allocation216_spill] sm:$0xff] }
 0x50e   :  { %17320 = vst [vmem:[#allocation94_spill] sm:$0xff] %v11911_v62  ;;  %17321 = vst [vmem:[#allocation95_spill] sm:$0xff] %v11915_v19  ;;  %v11927_v28 = vadd.f32 %v11391_v9, %v17325_v26  ;;  %v17329_v19 = vld [vmem:[#allocation147_spill] sm:$0xff]  ;;  %v11947_v26 = vadd.f32 %v11391_v9, %v10774_v37  ;;  %v11967_v37 = vadd.f32 %v11391_v9, %v10804_v18  ;;  %v12491_v10 = vmul.f32 0.2, %v17543_v40 }
 0x50f   :  { %17322 = vst [vmem:[#allocation98_spill] sm:$0xff] %v11919_v29  ;;  %17324 = vst [vmem:[#allocation99_spill] sm:$0xff] %v11923_v51  ;;  %v11939_v58 = vadd.f32 %v11391_v9, %v17329_v19  ;;  %v17331_v29 = vld [vmem:[#allocation150_spill] sm:$0xff] }
 0x510   :  { %17326 = vst [vmem:[#allocation102_spill] sm:$0xff] %v11927_v28  ;;  %17327 = vst [vmem:[#allocation103_spill] sm:$0xff] %v11931_v31  ;;  %v11943_v61 = vadd.f32 %v11391_v9, %v17331_v29  ;;  %v17335_v31 = vld [vmem:[#allocation151_spill] sm:$0xff]  ;;  %v11963_v29 = vadd.f32 %v11391_v9, %v10798_v55 }
 0x511   :  { %17328 = vst [vmem:[#allocation106_spill] sm:$0xff] %v11935_v7  ;;  %17330 = vst [vmem:[#allocation107_spill] sm:$0xff] %v11939_v58  ;;  %v11955_v30 = vadd.f32 %v11391_v9, %v17335_v31  ;;  %v17337_v7 = vld [vmem:[#allocation154_spill] sm:$0xff]  ;;  %v17539_v58 = vld [vmem:[#allocation213_spill] sm:$0xff] }
 0x512   :  { %17332 = vst [vmem:[#allocation110_spill] sm:$0xff] %v11943_v61  ;;  %17333 = vst [vmem:[#allocation111_spill] sm:$0xff] %v11947_v26  ;;  %v11959_v19 = vadd.f32 %v11391_v9, %v17337_v7  ;;  %v17341_v26 = vld [vmem:[#allocation155_spill] sm:$0xff]  ;;  %v11979_v7 = vadd.f32 %v11391_v9, %v10822_v4  ;;  %v12476_v28 = vmul.f32 0.2, %v17539_v58 }
 0x513   :  { %17334 = vst [vmem:[#allocation114_spill] sm:$0xff] %v11951_v1  ;;  %17336 = vst [vmem:[#allocation115_spill] sm:$0xff] %v11955_v30  ;;  %v11971_v32 = vadd.f32 %v11391_v9, %v17341_v26  ;;  %v17343_v1 = vld [vmem:[#allocation158_spill] sm:$0xff] }
 0x514   :  { %17338 = vst [vmem:[#allocation118_spill] sm:$0xff] %v11959_v19  ;;  %17339 = vst [vmem:[#allocation119_spill] sm:$0xff] %v11963_v29  ;;  %v11975_v31 = vadd.f32 %v11391_v9, %v17343_v1  ;;  %v17346_v19 = vld [vmem:[#allocation159_spill] sm:$0xff]  ;;  %v17348_v29 = vld [vmem:[#allocation162_spill] sm:$0xff] }
 0x515   :  { %17340 = vst [vmem:[#allocation122_spill] sm:$0xff] %v11967_v37  ;;  %17342 = vst [vmem:[#allocation123_spill] sm:$0xff] %v11971_v32  ;;  %v11983_v55 = vadd.f32 %v11391_v9, %v17346_v19  ;;  %v11987_v18 = vadd.f32 %v11391_v9, %v17348_v29  ;;  %v17350_v37 = vld [vmem:[#allocation163_spill] sm:$0xff]  ;;  %v17352_v32 = vld [vmem:[#allocation166_spill] sm:$0xff] }
 0x516   :  { %17344 = vst [vmem:[#allocation126_spill] sm:$0xff] %v11975_v31  ;;  %17345 = vst [vmem:[#allocation127_spill] sm:$0xff] %v11979_v7  ;;  %v11991_v26 = vadd.f32 %v11391_v9, %v17350_v37  ;;  %v11995_v1 = vadd.f32 %v11391_v9, %v17352_v32  ;;  %v17354_v31 = vld [vmem:[#allocation167_spill] sm:$0xff]  ;;  %v17356_v7 = vld [vmem:[#allocation170_spill] sm:$0xff] }
 0x517   :  { %17347 = vst [vmem:[#allocation130_spill] sm:$0xff] %v11983_v55  ;;  %17349 = vst [vmem:[#allocation131_spill] sm:$0xff] %v11987_v18  ;;  %v11999_v4 = vadd.f32 %v11391_v9, %v17354_v31  ;;  %v12003_v19 = vadd.f32 %v11391_v9, %v17356_v7  ;;  %v17358_v55 = vld [vmem:[#allocation171_spill] sm:$0xff]  ;;  %v17360_v18 = vld [vmem:[#allocation174_spill] sm:$0xff] }
 0x518   :  { %17351 = vst [vmem:[#allocation134_spill] sm:$0xff] %v11991_v26  ;;  %17353 = vst [vmem:[#allocation135_spill] sm:$0xff] %v11995_v1  ;;  %v12007_v29 = vadd.f32 %v11391_v9, %v17358_v55  ;;  %v12011_v37 = vadd.f32 %v11391_v9, %v17360_v18  ;;  %v17362_v26 = vld [vmem:[#allocation175_spill] sm:$0xff]  ;;  %v17364_v1 = vld [vmem:[#allocation178_spill] sm:$0xff] }
 0x519   :  { %17355 = vst [vmem:[#allocation138_spill] sm:$0xff] %v11999_v4  ;;  %17357 = vst [vmem:[#allocation139_spill] sm:$0xff] %v12003_v19  ;;  %v12015_v32 = vadd.f32 %v11391_v9, %v17362_v26  ;;  %v12019_v31 = vadd.f32 %v11391_v9, %v17364_v1  ;;  %v17366_v4 = vld [vmem:[#allocation179_spill] sm:$0xff]  ;;  %v17368_v19 = vld [vmem:[#allocation182_spill] sm:$0xff] }
 0x51a   :  { %17359 = vst [vmem:[#allocation142_spill] sm:$0xff] %v12007_v29  ;;  %17361 = vst [vmem:[#allocation143_spill] sm:$0xff] %v12011_v37  ;;  %v12023_v7 = vadd.f32 %v11391_v9, %v17366_v4  ;;  %v12027_v55 = vadd.f32 %v11391_v9, %v17368_v19  ;;  %v17370_v29 = vld [vmem:[#allocation183_spill] sm:$0xff]  ;;  %v17372_v37 = vld [vmem:[#allocation186_spill] sm:$0xff] }
 0x51b   :  { %17363 = vst [vmem:[#allocation146_spill] sm:$0xff] %v12015_v32  ;;  %17365 = vst [vmem:[#allocation147_spill] sm:$0xff] %v12019_v31  ;;  %v12031_v18 = vadd.f32 %v11391_v9, %v17370_v29  ;;  %v12035_v26 = vadd.f32 %v11391_v9, %v17372_v37  ;;  %v17374_v32 = vld [vmem:[#allocation187_spill] sm:$0xff]  ;;  %v17376_v31 = vld [vmem:[#allocation190_spill] sm:$0xff] }
 0x51c   :  { %17367 = vst [vmem:[#allocation150_spill] sm:$0xff] %v12023_v7  ;;  %17369 = vst [vmem:[#allocation151_spill] sm:$0xff] %v12027_v55  ;;  %v12039_v1 = vadd.f32 %v11391_v9, %v17374_v32  ;;  %v12043_v4 = vadd.f32 %v11391_v9, %v17376_v31  ;;  %v17378_v7 = vld [vmem:[#allocation191_spill] sm:$0xff]  ;;  %v17380_v55 = vld [vmem:[#allocation194_spill] sm:$0xff] }
 0x51d   :  { %17371 = vst [vmem:[#allocation154_spill] sm:$0xff] %v12031_v18  ;;  %17373 = vst [vmem:[#allocation155_spill] sm:$0xff] %v12035_v26  ;;  %v12047_v19 = vadd.f32 %v11391_v9, %v17378_v7  ;;  %v12051_v29 = vadd.f32 %v11391_v9, %v17380_v55  ;;  %v17382_v18 = vld [vmem:[#allocation198_spill] sm:$0xff]  ;;  %v17384_v26 = vld [vmem:[#allocation199_spill] sm:$0xff] }
 0x51e   :  { %17375 = vst [vmem:[#allocation158_spill] sm:$0xff] %v12039_v1  ;;  %17377 = vst [vmem:[#allocation159_spill] sm:$0xff] %v12043_v4  ;;  %v12055_v37 = vadd.f32 %v11391_v9, %v17382_v18  ;;  %v12059_v32 = vadd.f32 %v11391_v9, %v17384_v26  ;;  %v17386_v1 = vld [vmem:[#allocation206_spill] sm:$0xff]  ;;  %v17388_v4 = vld [vmem:[#allocation207_spill] sm:$0xff]  ;;  %v12075_v18 = vadd.f32 %v11391_v9, %v10966_v22 }
 0x51f   :  { %17379 = vst [vmem:[#allocation162_spill] sm:$0xff] %v12047_v19  ;;  %17381 = vst [vmem:[#allocation163_spill] sm:$0xff] %v12051_v29  ;;  %v12063_v31 = vadd.f32 %v11391_v9, %v17386_v1  ;;  %v12067_v7 = vadd.f32 %v11391_v9, %v17388_v4  ;;  %v17390_v19 = vld [vmem:[#allocation35_spill] sm:$0xff]  ;;  %v12083_v1 = vadd.f32 %v11391_v9, %v10978_v14 }
 0x520   :  { %17383 = vst [vmem:[#allocation166_spill] sm:$0xff] %v12055_v37  ;;  %17385 = vst [vmem:[#allocation167_spill] sm:$0xff] %v12059_v32  ;;  %v12071_v55 = vadd.f32 %v11391_v9, %v17390_v19  ;;  %v17393_v37 = vld [vmem:[#allocation36_spill] sm:$0xff]  ;;  %v17535_v32 = vld [vmem:[#allocation210_spill] sm:$0xff] }
 0x521   :  { %17387 = vst [vmem:[#allocation170_spill] sm:$0xff] %v12063_v31  ;;  %17389 = vst [vmem:[#allocation171_spill] sm:$0xff] %v12067_v7  ;;  %v12079_v26 = vadd.f32 %v11391_v9, %v17393_v37  ;;  %v17396_v31 = vld [vmem:[#allocation42_spill] sm:$0xff]  ;;  %v17398_v7 = vld [vmem:[#allocation43_spill] sm:$0xff]  ;;  %v12461_v29 = vmul.f32 0.2, %v17535_v32 }
 0x522   :  { %17391 = vst [vmem:[#allocation174_spill] sm:$0xff] %v12071_v55  ;;  %17392 = vst [vmem:[#allocation175_spill] sm:$0xff] %v12075_v18  ;;  %v12087_v4 = vadd.f32 %v11391_v9, %v17396_v31  ;;  %v12091_v19 = vadd.f32 %v11391_v9, %v17398_v7  ;;  %v17400_v55 = vld [vmem:[#allocation49_spill] sm:$0xff]  ;;  %v17402_v18 = vld [vmem:[#allocation50_spill] sm:$0xff] }
 0x523   :  { %17394 = vst [vmem:[#allocation178_spill] sm:$0xff] %v12079_v26  ;;  %17395 = vst [vmem:[#allocation179_spill] sm:$0xff] %v12083_v1  ;;  %v12095_v22 = vadd.f32 %v11391_v9, %v17400_v55  ;;  %v12099_v37 = vadd.f32 %v11391_v9, %v17402_v18  ;;  %v17404_v26 = vld [vmem:[#allocation56_spill] sm:$0xff]  ;;  %v17406_v1 = vld [vmem:[#allocation57_spill] sm:$0xff] }
 0x524   :  { %17397 = vst [vmem:[#allocation182_spill] sm:$0xff] %v12087_v4  ;;  %17399 = vst [vmem:[#allocation183_spill] sm:$0xff] %v12091_v19  ;;  %v12103_v14 = vadd.f32 %v11391_v9, %v17404_v26  ;;  %v12107_v31 = vadd.f32 %v11391_v9, %v17406_v1  ;;  %v17408_v4 = vld [vmem:[#allocation63_spill] sm:$0xff]  ;;  %v17410_v19 = vld [vmem:[#allocation64_spill] sm:$0xff] }
 0x525   :  { %17401 = vst [vmem:[#allocation186_spill] sm:$0xff] %v12095_v22  ;;  %17403 = vst [vmem:[#allocation187_spill] sm:$0xff] %v12099_v37  ;;  %v12111_v7 = vadd.f32 %v11391_v9, %v17408_v4  ;;  %v12115_v55 = vadd.f32 %v11391_v9, %v17410_v19  ;;  %v17412_v22 = vld [vmem:[#allocation70_spill] sm:$0xff]  ;;  %v17414_v37 = vld [vmem:[#allocation71_spill] sm:$0xff] }
 0x526   :  { %17405 = vst [vmem:[#allocation190_spill] sm:$0xff] %v12103_v14  ;;  %17407 = vst [vmem:[#allocation191_spill] sm:$0xff] %v12107_v31  ;;  %v12119_v18 = vadd.f32 %v11391_v9, %v17412_v22  ;;  %v12123_v26 = vadd.f32 %v11391_v9, %v17414_v37  ;;  %v17416_v14 = vld [vmem:[#allocation77_spill] sm:$0xff]  ;;  %v17418_v31 = vld [vmem:[#allocation78_spill] sm:$0xff] }
 0x527   :  { %17409 = vst [vmem:[#allocation194_spill] sm:$0xff] %v12111_v7  ;;  %17411 = vst [vmem:[#allocation198_spill] sm:$0xff] %v12115_v55  ;;  %v12127_v1 = vadd.f32 %v11391_v9, %v17416_v14  ;;  %v12131_v4 = vadd.f32 %v11391_v9, %v17418_v31  ;;  %v17420_v7 = vld [vmem:[#allocation81_spill] sm:$0xff]  ;;  %v17422_v55 = vld [vmem:[#allocation84_spill] sm:$0xff] }
 0x528   :  { %17413 = vst [vmem:[#allocation199_spill] sm:$0xff] %v12119_v18  ;;  %17415 = vst [vmem:[#allocation206_spill] sm:$0xff] %v12123_v26  ;;  %v12135_v19 = vadd.f32 %v11391_v9, %v17420_v7  ;;  %v12139_v22 = vadd.f32 %v11391_v9, %v17422_v55  ;;  %v17424_v18 = vld [vmem:[#allocation85_spill] sm:$0xff]  ;;  %v17426_v26 = vld [vmem:[#allocation88_spill] sm:$0xff] }
 0x529   :  { %17417 = vst [vmem:[#allocation207_spill] sm:$0xff] %v12127_v1  ;;  %17419 = vst [vmem:[#allocation35_spill] sm:$0xff] %v12131_v4  ;;  %v12143_v37 = vadd.f32 %v11391_v9, %v17424_v18  ;;  %v12147_v14 = vadd.f32 %v11391_v9, %v17426_v26  ;;  %v17428_v1 = vld [vmem:[#allocation89_spill] sm:$0xff]  ;;  %v17430_v4 = vld [vmem:[#allocation92_spill] sm:$0xff] }
 0x52a   :  { %17421 = vst [vmem:[#allocation36_spill] sm:$0xff] %v12135_v19  ;;  %17423 = vst [vmem:[#allocation42_spill] sm:$0xff] %v12139_v22  ;;  %v12151_v31 = vadd.f32 %v11391_v9, %v17428_v1  ;;  %v12155_v7 = vadd.f32 %v11391_v9, %v17430_v4  ;;  %v17432_v19 = vld [vmem:[#allocation93_spill] sm:$0xff]  ;;  %v17434_v22 = vld [vmem:[#allocation96_spill] sm:$0xff] }
 0x52b   :  { %17425 = vst [vmem:[#allocation43_spill] sm:$0xff] %v12143_v37  ;;  %17427 = vst [vmem:[#allocation49_spill] sm:$0xff] %v12147_v14  ;;  %v12159_v55 = vadd.f32 %v11391_v9, %v17432_v19  ;;  %v12163_v18 = vadd.f32 %v11391_v9, %v17434_v22  ;;  %v17436_v37 = vld [vmem:[#allocation97_spill] sm:$0xff]  ;;  %v17438_v14 = vld [vmem:[#allocation100_spill] sm:$0xff] }
 0x52c   :  { %17429 = vst [vmem:[#allocation50_spill] sm:$0xff] %v12151_v31  ;;  %17431 = vst [vmem:[#allocation56_spill] sm:$0xff] %v12155_v7  ;;  %v12167_v26 = vadd.f32 %v11391_v9, %v17436_v37  ;;  %v12171_v1 = vadd.f32 %v11391_v9, %v17438_v14  ;;  %v17440_v31 = vld [vmem:[#allocation101_spill] sm:$0xff]  ;;  %v17442_v7 = vld [vmem:[#allocation104_spill] sm:$0xff]  ;;  %v12191_v14 = vadd.f32 %v11391_v9, %v11140_v35 }
 0x52d   :  { %17433 = vst [vmem:[#allocation57_spill] sm:$0xff] %v12159_v55  ;;  %17435 = vst [vmem:[#allocation63_spill] sm:$0xff] %v12163_v18  ;;  %v12175_v4 = vadd.f32 %v11391_v9, %v17440_v31  ;;  %v12179_v19 = vadd.f32 %v11391_v9, %v17442_v7  ;;  %v17444_v55 = vld [vmem:[#allocation105_spill] sm:$0xff]  ;;  %v17446_v18 = vld [vmem:[#allocation108_spill] sm:$0xff]  ;;  %v12195_v31 = vadd.f32 %v11391_v9, %v11146_v41 }
 0x52e   :  { %17437 = vst [vmem:[#allocation64_spill] sm:$0xff] %v12167_v26  ;;  %17439 = vst [vmem:[#allocation70_spill] sm:$0xff] %v12171_v1  ;;  %v12183_v22 = vadd.f32 %v11391_v9, %v17444_v55  ;;  %v12187_v37 = vadd.f32 %v11391_v9, %v17446_v18  ;;  %v12199_v7 = vadd.f32 %v11391_v9, %v11152_v11 }
 0x52f   :  { %17441 = vst [vmem:[#allocation71_spill] sm:$0xff] %v12175_v4  ;;  %17443 = vst [vmem:[#allocation77_spill] sm:$0xff] %v12179_v19  ;;  %v12203_v55 = vadd.f32 %v11391_v9, %v11158_v21  ;;  %v12207_v18 = vadd.f32 %v11391_v9, %v11164_v46  ;;  %v12211_v35 = vadd.f32 %v11391_v9, %v11170_v33  ;;  %v17531_v19 = vld [vmem:[#allocation184_spill] sm:$0xff] }
 0x530   :  { %17445 = vst [vmem:[#allocation78_spill] sm:$0xff] %v12183_v22  ;;  %17447 = vst [vmem:[#allocation81_spill] sm:$0xff] %v12187_v37  ;;  %v12215_v41 = vadd.f32 %v11391_v9, %v11176_v27  ;;  %v12219_v11 = vadd.f32 %v11391_v9, %v11182_v43  ;;  %v12223_v21 = vadd.f32 %v11391_v9, %v11188_v39  ;;  %v12446_v4 = vmul.f32 0.2, %v17531_v19 }
 0x531   :  { %17448 = vst [vmem:[#allocation84_spill] sm:$0xff] %v12191_v14  ;;  %17449 = vst [vmem:[#allocation85_spill] sm:$0xff] %v12195_v31  ;;  %v12227_v46 = vadd.f32 %v11391_v9, %v11194_v17  ;;  %v12231_v33 = vadd.f32 %v11391_v9, %v11200_v2  ;;  %v12235_v27 = vadd.f32 %v11391_v9, %v11206_v44  ;;  %v17527_v31 = vld [vmem:[#allocation177_spill] sm:$0xff] }
 0x532   :  { %17450 = vst [vmem:[#allocation88_spill] sm:$0xff] %v12199_v7  ;;  %17451 = vst [vmem:[#allocation89_spill] sm:$0xff] %v12203_v55  ;;  %v12239_v43 = vadd.f32 %v11391_v9, %v11212_v50  ;;  %v12243_v39 = vadd.f32 %v11391_v9, %v11218_v12  ;;  %v12247_v17 = vadd.f32 %v11391_v9, %v11224_v8  ;;  %v12431_v14 = vmul.f32 0.2, %v17527_v31 }
 0x533   :  { %17452 = vst [vmem:[#allocation92_spill] sm:$0xff] %v12207_v18  ;;  %17453 = vst [vmem:[#allocation93_spill] sm:$0xff] %v12211_v35  ;;  %v12251_v2 = vadd.f32 %v11391_v9, %v11230_v25  ;;  %v12255_v44 = vadd.f32 %v11391_v9, %v11236_v13  ;;  %v12259_v50 = vadd.f32 %v11391_v9, %v11242_v56 }
 0x534   :  { %17454 = vst [vmem:[#allocation96_spill] sm:$0xff] %v12215_v41  ;;  %17455 = vst [vmem:[#allocation97_spill] sm:$0xff] %v12219_v11  ;;  %v12263_v12 = vadd.f32 %v11391_v9, %v11248_v57  ;;  %v12267_v8 = vadd.f32 %v11391_v9, %v11254_v54  ;;  %v12271_v25 = vadd.f32 %v11391_v9, %v11260_v60  ;;  %v17521_v41 = vld [vmem:[#allocation168_spill] sm:$0xff] }
 0x535   :  { %17456 = vst [vmem:[#allocation100_spill] sm:$0xff] %v12223_v21  ;;  %17457 = vst [vmem:[#allocation101_spill] sm:$0xff] %v12227_v46  ;;  %v17518_v46 = vld [vmem:[#allocation164_spill] sm:$0xff]  ;;  %v12410_v35 = vmul.f32 0.2, %v17521_v41 }
 0x536   :  { %17458 = vst [vmem:[#allocation104_spill] sm:$0xff] %v12231_v33  ;;  %17459 = vst [vmem:[#allocation105_spill] sm:$0xff] %v12235_v27  ;;  %v17516_v27 = vld [vmem:[#allocation161_spill] sm:$0xff]  ;;  %vm3538_vm15 = vcmp.ge.f32.partialorder %v17518_v46, 0.0 }
 0x537   :  { %17460 = vst [vmem:[#allocation108_spill] sm:$0xff] %v12239_v43  ;;  %17461 = vst [vmem:[#allocation224_spill] sm:$0xff] %v12243_v39  ;;  %vm3537_vm14 = vcmp.ge.f32.partialorder %v17516_v27, 0.0  ;;  %v3778_v21 = vmul.f32 0.2, %v17516_v27 }
 0x538   :  { %17462 = vst [vmem:[#allocation225_spill] sm:$0xff] %v12247_v17  ;;  %17463 = vst [vmem:[#allocation226_spill] sm:$0xff] %v12251_v2  ;;  %v17469_v2 = vld [vmem:[#allocation109_spill] sm:$0xff] }
 0x539   :  { %17464 = vst [vmem:[#allocation227_spill] sm:$0xff] %v12255_v44  ;;  %17465 = vst [vmem:[#allocation228_spill] sm:$0xff] %v12259_v50  ;;  %v12275_v13 = vadd.f32 %v11391_v9, %v17469_v2  ;;  %v17471_v44 = vld [vmem:[#allocation112_spill] sm:$0xff]  ;;  %v17473_v50 = vld [vmem:[#allocation113_spill] sm:$0xff] }
 0x53a   :  { %17466 = vst [vmem:[#allocation229_spill] sm:$0xff] %v12263_v12  ;;  %17467 = vst [vmem:[#allocation230_spill] sm:$0xff] %v12267_v8  ;;  %v12279_v56 = vadd.f32 %v11391_v9, %v17471_v44  ;;  %v12283_v57 = vadd.f32 %v11391_v9, %v17473_v50  ;;  %v17475_v12 = vld [vmem:[#allocation116_spill] sm:$0xff]  ;;  %v17477_v8 = vld [vmem:[#allocation117_spill] sm:$0xff] }
 0x53b   :  { %17468 = vst [vmem:[#allocation231_spill] sm:$0xff] %v12271_v25  ;;  %17470 = vst [vmem:[#allocation109_spill] sm:$0xff] %v12275_v13  ;;  %v12287_v54 = vadd.f32 %v11391_v9, %v17475_v12  ;;  %v12291_v60 = vadd.f32 %v11391_v9, %v17477_v8  ;;  %v17479_v25 = vld [vmem:[#allocation120_spill] sm:$0xff]  ;;  %v17481_v13 = vld [vmem:[#allocation121_spill] sm:$0xff]  ;;  %v12311_v8 = vadd.f32 %v11391_v9, %v11320_v15 }
 0x53c   :  { %17472 = vst [vmem:[#allocation112_spill] sm:$0xff] %v12279_v56  ;;  %17474 = vst [vmem:[#allocation113_spill] sm:$0xff] %v12283_v57  ;;  %v12295_v2 = vadd.f32 %v11391_v9, %v17479_v25  ;;  %v12299_v44 = vadd.f32 %v11391_v9, %v17481_v13  ;;  %v17483_v56 = vld [vmem:[#allocation124_spill] sm:$0xff]  ;;  %v17485_v57 = vld [vmem:[#allocation125_spill] sm:$0xff]  ;;  %v12319_v13 = vadd.f32 %v11391_v9, %v11332_v59 }
 0x53d   :  { %17476 = vst [vmem:[#allocation116_spill] sm:$0xff] %v12287_v54  ;;  %17478 = vst [vmem:[#allocation117_spill] sm:$0xff] %v12291_v60  ;;  %v12303_v50 = vadd.f32 %v11391_v9, %v17483_v56  ;;  %v12307_v12 = vadd.f32 %v11391_v9, %v17485_v57  ;;  %v17488_v60 = vld [vmem:[#allocation129_spill] sm:$0xff]  ;;  %v12323_v56 = vadd.f32 %v11391_v9, %v11338_v38 }
 0x53e   :  { %17480 = vst [vmem:[#allocation120_spill] sm:$0xff] %v12295_v2  ;;  %17482 = vst [vmem:[#allocation121_spill] sm:$0xff] %v12299_v44  ;;  %v12315_v25 = vadd.f32 %v11391_v9, %v17488_v60  ;;  %v12327_v57 = vadd.f32 %v11391_v9, %v11344_v42  ;;  %v12331_v15 = vadd.f32 %v11391_v9, %v11350_v48 }
 0x53f   :  { %17484 = vst [vmem:[#allocation124_spill] sm:$0xff] %v12303_v50  ;;  %17486 = vst [vmem:[#allocation125_spill] sm:$0xff] %v12307_v12  ;;  %v12335_v60 = vadd.f32 %v11391_v9, %v11356_v63  ;;  %v12339_v59 = vadd.f32 %v11391_v9, %v11362_v52  ;;  %v12343_v38 = vadd.f32 %v11391_v9, %v11368_v24  ;;  %v17500_v63 = vld [vmem:[#allocation137_spill] sm:$0xff] }
 0x540   :  { %17487 = vst [vmem:[#allocation232_spill] sm:$0xff] %v12311_v8  ;;  %17489 = vst [vmem:[#allocation129_spill] sm:$0xff] %v12315_v25  ;;  %v12347_v42 = vadd.f32 %v11391_v9, %v11374_v36  ;;  %v12351_v48 = vadd.f32 %v11391_v9, %v11380_v53  ;;  %vm3525_vm2 = vcmp.ge.f32.partialorder %v17500_v63, 0.0  ;;  %v17502_v52 = vld [vmem:[#allocation141_spill] sm:$0xff]  ;;  %v3766_v25 = vmul.f32 0.2, %v17500_v63 }
 0x541   :  { %17490 = vst [vmem:[#allocation233_spill] sm:$0xff] %v12319_v13  ;;  %17491 = vst [vmem:[#allocation234_spill] sm:$0xff] %v12323_v56  ;;  %vm3527_vm4 = vcmp.ge.f32.partialorder %v17502_v52, 0.0  ;;  %v17504_v24 = vld [vmem:[#allocation145_spill] sm:$0xff]  ;;  %v17511_v13 = vld [vmem:[#allocation156_spill] sm:$0xff] }
 0x542   :  { %17492 = vst [vmem:[#allocation235_spill] sm:$0xff] %v12327_v57  ;;  %17493 = vst [vmem:[#allocation236_spill] sm:$0xff] %v12331_v15  ;;  %v17499_v15 = vld [vmem:[#allocation136_spill] sm:$0xff]  ;;  %vm3529_vm6 = vcmp.ge.f32.partialorder %v17504_v24, 0.0  ;;  %v17506_v36 = vld [vmem:[#allocation149_spill] sm:$0xff]  ;;  %vm3534_vm11 = vcmp.ge.f32.partialorder %v17511_v13, 0.0  ;;  %v12388_v43 = vsel %vm3525_vm2, %v17500_v63, %v3766_v25 }
 0x543   :  { %17494 = vst [vmem:[#allocation237_spill] sm:$0xff] %v12335_v60  ;;  %17495 = vst [vmem:[#allocation238_spill] sm:$0xff] %v12339_v59  ;;  %vm3524_vm1 = vcmp.ge.f32.partialorder %v17499_v15, 0.0  ;;  %v17501_v60 = vld [vmem:[#allocation140_spill] sm:$0xff]  ;;  %vm3531_vm8 = vcmp.ge.f32.partialorder %v17506_v36, 0.0  ;;  %v17508_v53 = vld [vmem:[#allocation153_spill] sm:$0xff] }
 0x544   :  { %17496 = vst [vmem:[#allocation239_spill] sm:$0xff] %v12343_v38  ;;  %17497 = vst [vmem:[#allocation240_spill] sm:$0xff] %v12347_v42  ;;  %vm3526_vm3 = vcmp.ge.f32.partialorder %v17501_v60, 0.0  ;;  %v17503_v59 = vld [vmem:[#allocation144_spill] sm:$0xff]  ;;  %vm3533_vm10 = vcmp.ge.f32.partialorder %v17508_v53, 0.0  ;;  %v17509_v57 = vld [vmem:[#allocation133_spill] sm:$0xff] }
 0x545   :  { %17498 = vst [vmem:[#allocation241_spill] sm:$0xff] %v12351_v48  ;;  %vm3528_vm5 = vcmp.ge.f32.partialorder %v17503_v59, 0.0  ;;  %v17505_v38 = vld [vmem:[#allocation148_spill] sm:$0xff]  ;;  %v3765_v48 = vmul.f32 0.2, %v17499_v15  ;;  %v12366_v56 = vadd.f32 %v11391_v9, %v17509_v57  ;;  %v17512_v50 = vld [vmem:[#allocation157_spill] sm:$0xff] }
 0x546   :  { %vm3530_vm7 = vcmp.ge.f32.partialorder %v17505_v38, 0.0  ;;  %v17507_v42 = vld [vmem:[#allocation152_spill] sm:$0xff]  ;;  %v3767_v8 = vmul.f32 0.2, %v17501_v60  ;;  %v3768_v12 = vmul.f32 0.2, %v17502_v52 }
 0x547   :  { %vm3532_vm9 = vcmp.ge.f32.partialorder %v17507_v42, 0.0  ;;  %17510 = vst [vmem:[#allocation136_spill] sm:$0xff] %v12366_v56  ;;  %vm3535_vm12 = vcmp.ge.f32.partialorder %v17512_v50, 0.0  ;;  %v3769_v44 = vmul.f32 0.2, %v17503_v59  ;;  %v12379_v9 = vsel %vm3524_vm1, %v17499_v15, %v3765_v48  ;;  %v17514_v57 = vld [vmem:[#allocation160_spill] sm:$0xff] }
 0x548   :  { %v3770_v2 = vmul.f32 0.2, %v17504_v24  ;;  %v3771_v54 = vmul.f32 0.2, %v17505_v38  ;;  %17513 = vst [vmem:[#allocation137_spill] sm:$0xff] %v12379_v9  ;;  %vm3536_vm13 = vcmp.ge.f32.partialorder %v17514_v57, 0.0  ;;  %v12397_v9 = vsel %vm3526_vm3, %v17501_v60, %v3767_v8 }
 0x549   :  { %v3772_v56 = vmul.f32 0.2, %v17506_v36  ;;  %v3773_v17 = vmul.f32 0.2, %v17507_v42  ;;  %v3774_v39 = vmul.f32 0.2, %v17508_v53  ;;  %v12406_v11 = vsel %vm3527_vm4, %v17502_v52, %v3768_v12 }
 0x54a   :  { %17515 = vst [vmem:[#allocation140_spill] sm:$0xff] %v12388_v43  ;;  %v3775_v33 = vmul.f32 0.2, %v17511_v13  ;;  %v3776_v15 = vmul.f32 0.2, %v17512_v50  ;;  %17517 = vst [vmem:[#allocation141_spill] sm:$0xff] %v12397_v9  ;;  %v12421_v55 = vsel %vm3528_vm5, %v17503_v59, %v3769_v44  ;;  %v12436_v37 = vsel %vm3529_vm6, %v17504_v24, %v3770_v2 }
 0x54b   :  { %v3777_v48 = vmul.f32 0.2, %v17514_v57  ;;  %v3779_v25 = vmul.f32 0.2, %v17518_v46  ;;  %v17519_v63 = vld [vmem:[#allocation165_spill] sm:$0xff]  ;;  %17520 = vst [vmem:[#allocation144_spill] sm:$0xff] %v12406_v11  ;;  %v12451_v1 = vsel %vm3530_vm7, %v17505_v38, %v3771_v54  ;;  %v12466_v30 = vsel %vm3531_vm8, %v17506_v36, %v3772_v56 }
 0x54c   :  { %v3780_v43 = vmul.f32 0.2, %v17519_v63  ;;  %vm3539_vm0 = vcmp.ge.f32.partialorder %v17519_v63, 0.0  ;;  %v17522_v8 = vld [vmem:[#allocation169_spill] sm:$0xff]  ;;  %v17523_v9 = vld [vmem:[#allocation172_spill] sm:$0xff]  ;;  %17524 = vst [vmem:[#allocation145_spill] sm:$0xff] %v12421_v55  ;;  %v12481_v51 = vsel %vm3532_vm9, %v17507_v42, %v3773_v17  ;;  %v12496_v49 = vsel %vm3533_vm10, %v17508_v53, %v3774_v39 }
 0x54d   :  { %v12413_v60 = vmul.f32 0.2, %v17522_v8  ;;  %v12416_v18 = vmul.f32 0.2, %v17523_v9  ;;  %vm3540_vm1 = vcmp.ge.f32.partialorder %v17521_v41, 0.0  ;;  %v17525_v12 = vld [vmem:[#allocation173_spill] sm:$0xff]  ;;  %v12511_v5 = vsel %vm3534_vm11, %v17511_v13, %v3775_v33 }
 0x54e   :  { %v12425_v52 = vmul.f32 0.2, %v17525_v12  ;;  %v17526_v11 = vld [vmem:[#allocation176_spill] sm:$0xff]  ;;  %17528 = vst [vmem:[#allocation148_spill] sm:$0xff] %v12436_v37  ;;  %vm3541_vm2 = vcmp.ge.f32.partialorder %v17522_v8, 0.0  ;;  %v17530_v55 = vld [vmem:[#allocation181_spill] sm:$0xff] }
 0x54f   :  { %v12428_v7 = vmul.f32 0.2, %v17526_v11  ;;  %v17529_v44 = vld [vmem:[#allocation180_spill] sm:$0xff]  ;;  %v12443_v22 = vmul.f32 0.2, %v17530_v55  ;;  %17532 = vst [vmem:[#allocation149_spill] sm:$0xff] %v12451_v1 }
 0x550   :  { %v12440_v59 = vmul.f32 0.2, %v17529_v44  ;;  %vm3542_vm3 = vcmp.ge.f32.partialorder %v17523_v9, 0.0  ;;  %v17533_v2 = vld [vmem:[#allocation208_spill] sm:$0xff]  ;;  %v17534_v37 = vld [vmem:[#allocation209_spill] sm:$0xff]  ;;  %17536 = vst [vmem:[#allocation152_spill] sm:$0xff] %v12466_v30 }
 0x551   :  { %v12455_v24 = vmul.f32 0.2, %v17533_v2  ;;  %v12458_v26 = vmul.f32 0.2, %v17534_v37  ;;  %vm3543_vm4 = vcmp.ge.f32.partialorder %v17525_v12, 0.0  ;;  %v17537_v54 = vld [vmem:[#allocation211_spill] sm:$0xff] }
 0x552   :  { %v12470_v38 = vmul.f32 0.2, %v17537_v54  ;;  %v17538_v1 = vld [vmem:[#allocation212_spill] sm:$0xff]  ;;  %17540 = vst [vmem:[#allocation153_spill] sm:$0xff] %v12481_v51  ;;  %vm3544_vm5 = vcmp.ge.f32.partialorder %v17526_v11, 0.0  ;;  %v17541_v56 = vld [vmem:[#allocation214_spill] sm:$0xff] }
 0x553   :  { %v12473_v61 = vmul.f32 0.2, %v17538_v1  ;;  %v12485_v36 = vmul.f32 0.2, %v17541_v56  ;;  %v17542_v30 = vld [vmem:[#allocation215_spill] sm:$0xff]  ;;  %17544 = vst [vmem:[#allocation133_spill] sm:$0xff] %v12491_v10 }
 0x554   :  { %v12488_v62 = vmul.f32 0.2, %v17542_v30  ;;  %17545 = vst [vmem:[#allocation156_spill] sm:$0xff] %v12496_v49  ;;  %vm3545_vm6 = vcmp.ge.f32.partialorder %v17527_v31, 0.0  ;;  %v17546_v17 = vld [vmem:[#allocation218_spill] sm:$0xff]  ;;  %v17548_v51 = vld [vmem:[#allocation200_spill] sm:$0xff] }
 0x555   :  { %v12500_v42 = vmul.f32 0.2, %v17546_v17  ;;  %v12503_v23 = vmul.f32 0.2, %v17548_v51  ;;  %17551 = vst [vmem:[#allocation161_spill] sm:$0xff] %v12506_v20  ;;  %17552 = vst [vmem:[#allocation164_spill] sm:$0xff] %v12511_v5  ;;  %v12526_v20 = vsel %vm3535_vm12, %v17512_v50, %v3776_v15 }
 0x556   :  { %vm3546_vm7 = vcmp.ge.f32.partialorder %v17529_v44, 0.0  ;;  %v17553_v39 = vld [vmem:[#allocation204_spill] sm:$0xff]  ;;  %v17555_v49 = vld [vmem:[#allocation205_spill] sm:$0xff]  ;;  %17558 = vst [vmem:[#allocation169_spill] sm:$0xff] %v12521_v45  ;;  %17559 = vst [vmem:[#allocation172_spill] sm:$0xff] %v12526_v20  ;;  %vm3547_vm8 = vcmp.ge.f32.partialorder %v17530_v55, 0.0  ;;  %v12541_v45 = vsel %vm3536_vm13, %v17514_v57, %v3777_v48 }
 0x557   :  { %17547 = vst [vmem:[#allocation157_spill] sm:$0xff] %v12500_v42  ;;  %17549 = vst [vmem:[#allocation160_spill] sm:$0xff] %v12503_v23  ;;  %v12515_v53 = vmul.f32 0.2, %v17553_v39  ;;  %v12518_v16 = vmul.f32 0.2, %v17555_v49 }
 0x558   :  { %v17560_v33 = vld [vmem:[#allocation3_spill] sm:$0xff]  ;;  %v17562_v5 = vld [vmem:[#allocation4_spill] sm:$0xff]  ;;  %17566 = vst [vmem:[#allocation180_spill] sm:$0xff] %v12541_v45  ;;  %vm3548_vm9 = vcmp.ge.f32.partialorder %v17531_v19, 0.0  ;;  %v17567_v50 = vld [vmem:[#allocation90_spill] sm:$0xff]  ;;  %vm3549_vm10 = vcmp.ge.f32.partialorder %v17533_v2, 0.0 }
 0x559   :  { %17554 = vst [vmem:[#allocation165_spill] sm:$0xff] %v12515_v53  ;;  %17556 = vst [vmem:[#allocation168_spill] sm:$0xff] %v12518_v16  ;;  %v12530_v13 = vmul.f32 0.2, %v17560_v33  ;;  %v12533_v23 = vmul.f32 0.2, %v17562_v5 }
 0x55a   :  { %v17564_v53 = vld [vmem:[#allocation7_spill] sm:$0xff]  ;;  %v12545_v15 = vmul.f32 0.2, %v17567_v50  ;;  %v17576_v45 = vld [vmem:[#allocation32_spill] sm:$0xff]  ;;  %vm3550_vm11 = vcmp.ge.f32.partialorder %v17534_v37, 0.0  ;;  %vm3551_vm12 = vcmp.ge.f32.partialorder %v17535_v32, 0.0 }
 0x55b   :  { %17561 = vst [vmem:[#allocation173_spill] sm:$0xff] %v12530_v13  ;;  %17563 = vst [vmem:[#allocation176_spill] sm:$0xff] %v12533_v23  ;;  %v12536_v42 = vmul.f32 0.2, %v17564_v53  ;;  %v17569_v20 = vld [vmem:[#allocation195_spill] sm:$0xff]  ;;  %v17571_v13 = vld [vmem:[#allocation202_spill] sm:$0xff] }
 0x55c   :  { %17568 = vst [vmem:[#allocation181_spill] sm:$0xff] %v12545_v15  ;;  %v12548_v16 = vmul.f32 0.2, %v17569_v20  ;;  %v12551_v3 = vmul.f32 0.2, %v17571_v13  ;;  %v17574_v57 = vld [vmem:[#allocation203_spill] sm:$0xff] }
 0x55d   :  { %17565 = vst [vmem:[#allocation177_spill] sm:$0xff] %v12536_v42  ;;  %v12556_v42 = vsel %vm3537_vm14, %v17516_v27, %v3778_v21  ;;  %v12560_v48 = vmul.f32 0.2, %v17574_v57  ;;  %v12563_v23 = vmul.f32 0.2, %v17576_v45  ;;  %v17578_v15 = vld [vmem:[#allocation39_spill] sm:$0xff] }
 0x55e   :  { %17570 = vst [vmem:[#allocation184_spill] sm:$0xff] %v12548_v16  ;;  %17572 = vst [vmem:[#allocation208_spill] sm:$0xff] %v12551_v3  ;;  %v12566_v10 = vmul.f32 0.2, %v17578_v15  ;;  %v12571_v3 = vsel %vm3538_vm15, %v17518_v46, %v3779_v25  ;;  %v17581_v21 = vld [vmem:[#allocation46_spill] sm:$0xff]  ;;  %v17589_v25 = vld [vmem:[#allocation67_spill] sm:$0xff] }
 0x55f   :  { %17573 = vst [vmem:[#allocation209_spill] sm:$0xff] %v12556_v42  ;;  %17575 = vst [vmem:[#allocation210_spill] sm:$0xff] %v12560_v48  ;;  %v12575_v27 = vmul.f32 0.2, %v17581_v21  ;;  %v17583_v42 = vld [vmem:[#allocation53_spill] sm:$0xff]  ;;  %v17585_v48 = vld [vmem:[#allocation60_spill] sm:$0xff] }
 0x560   :  { %17577 = vst [vmem:[#allocation211_spill] sm:$0xff] %v12563_v23  ;;  %17579 = vst [vmem:[#allocation212_spill] sm:$0xff] %v12566_v10  ;;  %v12578_v16 = vmul.f32 0.2, %v17583_v42  ;;  %v12581_v57 = vmul.f32 0.2, %v17585_v48  ;;  %v12586_v10 = vsel %vm3539_vm0, %v17519_v63, %v3780_v43 }
 0x561   :  { %17580 = vst [vmem:[#allocation213_spill] sm:$0xff] %v12571_v3  ;;  %17582 = vst [vmem:[#allocation214_spill] sm:$0xff] %v12575_v27  ;;  %v12590_v46 = vmul.f32 0.2, %v11603_v6  ;;  %v12593_v3 = vmul.f32 0.2, %v17589_v25 }
 0x562   :  { %17584 = vst [vmem:[#allocation215_spill] sm:$0xff] %v12578_v16  ;;  %17586 = vst [vmem:[#allocation216_spill] sm:$0xff] %v12581_v57  ;;  %v17591_v27 = vld [vmem:[#allocation74_spill] sm:$0xff]  ;;  %v12602_v57 = vsel %vm3540_vm1, %v17521_v41, %v12410_v35  ;;  %vm3552_vm13 = vcmp.ge.f32.partialorder %v17537_v54, 0.0  ;;  %v17594_v43 = vld [vmem:[#allocation128_spill] sm:$0xff]  ;;  %vm3553_vm14 = vcmp.ge.f32.partialorder %v17538_v1, 0.0 }
 0x563   :  { %17587 = vst [vmem:[#allocation218_spill] sm:$0xff] %v12586_v10  ;;  %17588 = vst [vmem:[#allocation200_spill] sm:$0xff] %v12590_v46  ;;  %v12596_v23 = vmul.f32 0.2, %v17591_v27  ;;  %v12606_v63 = vmul.f32 0.2, %v17594_v43 }
 0x564   :  { %17590 = vst [vmem:[#allocation201_spill] sm:$0xff] %v12593_v3  ;;  %17593 = vst [vmem:[#allocation205_spill] sm:$0xff] %v12602_v57  ;;  %v17596_v10 = vld [vmem:[#allocation132_spill] sm:$0xff]  ;;  %v17598_v46 = vld [vmem:[#allocation185_spill] sm:$0xff]  ;;  %vm3554_vm15 = vcmp.ge.f32.partialorder %v17539_v58, 0.0  ;;  %vm3555_vm0 = vcmp.ge.f32.partialorder %v17541_v56, 0.0 }
 0x565   :  { %17592 = vst [vmem:[#allocation204_spill] sm:$0xff] %v12596_v23  ;;  %17595 = vst [vmem:[#allocation2_spill] sm:$0xff] %v12606_v63  ;;  %v12609_v16 = vmul.f32 0.2, %v17596_v10  ;;  %v12612_v25 = vmul.f32 0.2, %v17598_v46  ;;  %v12618_v23 = vsel %vm3541_vm2, %v17522_v8, %v12413_v60 }
 0x566   :  { %17600 = vst [vmem:[#allocation7_spill] sm:$0xff] %v12618_v23  ;;  %v17601_v35 = vld [vmem:[#allocation188_spill] sm:$0xff]  ;;  %v17603_v57 = vld [vmem:[#allocation189_spill] sm:$0xff]  ;;  %vm3556_vm1 = vcmp.ge.f32.partialorder %v17542_v30, 0.0  ;;  %vm3557_vm2 = vcmp.ge.f32.partialorder %v17543_v40, 0.0 }
 0x567   :  { %17597 = vst [vmem:[#allocation3_spill] sm:$0xff] %v12609_v16  ;;  %17599 = vst [vmem:[#allocation4_spill] sm:$0xff] %v12612_v25  ;;  %v12622_v41 = vmul.f32 0.2, %v17601_v35  ;;  %v12625_v3 = vmul.f32 0.2, %v17603_v57  ;;  %v12634_v25 = vsel %vm3542_vm3, %v17523_v9, %v12416_v18 }
 0x568   :  { %v17605_v63 = vld [vmem:[#allocation192_spill] sm:$0xff]  ;;  %17607 = vst [vmem:[#allocation32_spill] sm:$0xff] %v12634_v25  ;;  %v17608_v8 = vld [vmem:[#allocation193_spill] sm:$0xff]  ;;  %v17617_v25 = vld [vmem:[#allocation219_spill] sm:$0xff]  ;;  %vm3558_vm3 = vcmp.ge.f32.partialorder %v17546_v17, 0.0 }
 0x569   :  { %17602 = vst [vmem:[#allocation90_spill] sm:$0xff] %v12622_v41  ;;  %17604 = vst [vmem:[#allocation195_spill] sm:$0xff] %v12625_v3  ;;  %v12628_v10 = vmul.f32 0.2, %v17605_v63  ;;  %v12638_v60 = vmul.f32 0.2, %v17608_v8 }
 0x56a   :  { %v17610_v23 = vld [vmem:[#allocation196_spill] sm:$0xff]  ;;  %v17612_v41 = vld [vmem:[#allocation197_spill] sm:$0xff]  ;;  %v12657_v3 = vmul.f32 0.2, %v17617_v25 }
 0x56b   :  { %17606 = vst [vmem:[#allocation202_spill] sm:$0xff] %v12628_v10  ;;  %17609 = vst [vmem:[#allocation39_spill] sm:$0xff] %v12638_v60  ;;  %v12641_v16 = vmul.f32 0.2, %v17610_v23  ;;  %v12644_v57 = vmul.f32 0.2, %v17612_v41  ;;  %v12650_v10 = vsel %vm3543_vm4, %v17525_v12, %v12425_v52 }
 0x56c   :  { %17614 = vst [vmem:[#allocation60_spill] sm:$0xff] %v12650_v10  ;;  %v17615_v18 = vld [vmem:[#allocation217_spill] sm:$0xff]  ;;  %17618 = vst [vmem:[#allocation128_spill] sm:$0xff] %v12657_v3  ;;  %v17619_v60 = vld [vmem:[#allocation220_spill] sm:$0xff]  ;;  %vm3559_vm4 = vcmp.ge.f32.partialorder %v17548_v51, 0.0 }
 0x56d   :  { %17611 = vst [vmem:[#allocation46_spill] sm:$0xff] %v12641_v16  ;;  %17613 = vst [vmem:[#allocation53_spill] sm:$0xff] %v12644_v57  ;;  %v12654_v9 = vmul.f32 0.2, %v17615_v18  ;;  %v12660_v23 = vmul.f32 0.2, %v17619_v60  ;;  %v12666_v57 = vsel %vm3544_vm5, %v17526_v11, %v12428_v7 }
 0x56e   :  { %17621 = vst [vmem:[#allocation188_spill] sm:$0xff] %v12666_v57  ;;  %v17622_v12 = vld [vmem:[#allocation221_spill] sm:$0xff]  ;;  %v17624_v10 = vld [vmem:[#allocation222_spill] sm:$0xff]  ;;  %vm3560_vm5 = vcmp.ge.f32.partialorder %v17550_v34, 0.0 }
 0x56f   :  { %17616 = vst [vmem:[#allocation74_spill] sm:$0xff] %v12654_v9  ;;  %17620 = vst [vmem:[#allocation185_spill] sm:$0xff] %v12660_v23  ;;  %v12670_v52 = vmul.f32 0.2, %v17622_v12  ;;  %v12673_v16 = vmul.f32 0.2, %v17624_v10  ;;  %v12682_v23 = vsel %vm3545_vm6, %v17527_v31, %v12431_v14 }
 0x570   :  { %v17626_v9 = vld [vmem:[#allocation223_spill] sm:$0xff]  ;;  %17628 = vst [vmem:[#allocation217_spill] sm:$0xff] %v12682_v23  ;;  %v17629_v7 = vld [vmem:[#allocation5_spill] sm:$0xff]  ;;  %v17631_v57 = vld [vmem:[#allocation6_spill] sm:$0xff]  ;;  %vm3561_vm6 = vcmp.ge.f32.partialorder %v17553_v39, 0.0 }
 0x571   :  { %17623 = vst [vmem:[#allocation192_spill] sm:$0xff] %v12670_v52  ;;  %17625 = vst [vmem:[#allocation193_spill] sm:$0xff] %v12673_v16  ;;  %v12676_v25 = vmul.f32 0.2, %v17626_v9  ;;  %v12686_v11 = vmul.f32 0.2, %v17629_v7 }
 0x572   :  { %v12689_v3 = vmul.f32 0.2, %v17631_v57  ;;  %v17633_v52 = vld [vmem:[#allocation8_spill] sm:$0xff]  ;;  %v17636_v14 = vld [vmem:[#allocation9_spill] sm:$0xff]  ;;  %v17638_v23 = vld [vmem:[#allocation10_spill] sm:$0xff] }
 0x573   :  { %17627 = vst [vmem:[#allocation197_spill] sm:$0xff] %v12676_v25  ;;  %17630 = vst [vmem:[#allocation220_spill] sm:$0xff] %v12686_v11  ;;  %v12692_v10 = vmul.f32 0.2, %v17633_v52  ;;  %v12698_v25 = vsel %vm3546_vm7, %v17529_v44, %v12440_v59  ;;  %v12702_v31 = vmul.f32 0.2, %v17636_v14 }
 0x574   :  { %17632 = vst [vmem:[#allocation221_spill] sm:$0xff] %v12689_v3  ;;  %17635 = vst [vmem:[#allocation5_spill] sm:$0xff] %v12698_v25  ;;  %v12705_v16 = vmul.f32 0.2, %v17638_v23  ;;  %v17640_v11 = vld [vmem:[#allocation11_spill] sm:$0xff]  ;;  %v17643_v44 = vld [vmem:[#allocation12_spill] sm:$0xff] }
 0x575   :  { %17634 = vst [vmem:[#allocation223_spill] sm:$0xff] %v12692_v10  ;;  %17637 = vst [vmem:[#allocation8_spill] sm:$0xff] %v12702_v31  ;;  %v12708_v57 = vmul.f32 0.2, %v17640_v11  ;;  %v12714_v10 = vsel %vm3547_vm8, %v17530_v55, %v12443_v22  ;;  %v12718_v59 = vmul.f32 0.2, %v17643_v44 }
 0x576   :  { %17639 = vst [vmem:[#allocation9_spill] sm:$0xff] %v12705_v16  ;;  %17642 = vst [vmem:[#allocation242_spill] sm:$0xff] %v12714_v10  ;;  %v17645_v25 = vld [vmem:[#allocation13_spill] sm:$0xff]  ;;  %v17647_v31 = vld [vmem:[#allocation14_spill] sm:$0xff]  ;;  %vm3562_vm7 = vcmp.ge.f32.partialorder %v17555_v49, 0.0  ;;  %vm3563_vm8 = vcmp.ge.f32.partialorder %v17557_v0, 0.0 }
 0x577   :  { %17641 = vst [vmem:[#allocation11_spill] sm:$0xff] %v12708_v57  ;;  %17644 = vst [vmem:[#allocation12_spill] sm:$0xff] %v12718_v59  ;;  %v12721_v3 = vmul.f32 0.2, %v17645_v25  ;;  %v12724_v23 = vmul.f32 0.2, %v17647_v31  ;;  %v12730_v57 = vsel %vm3548_vm9, %v17531_v19, %v12446_v4 }
 0x578   :  { %17649 = vst [vmem:[#allocation244_spill] sm:$0xff] %v12730_v57  ;;  %v17650_v22 = vld [vmem:[#allocation15_spill] sm:$0xff]  ;;  %v17652_v10 = vld [vmem:[#allocation16_spill] sm:$0xff]  ;;  %v17654_v59 = vld [vmem:[#allocation17_spill] sm:$0xff]  ;;  %vm3564_vm9 = vcmp.ge.f32.partialorder %v17560_v33, 0.0 }
 0x579   :  { %17646 = vst [vmem:[#allocation243_spill] sm:$0xff] %v12721_v3  ;;  %17648 = vst [vmem:[#allocation14_spill] sm:$0xff] %v12724_v23  ;;  %v12734_v55 = vmul.f32 0.2, %v17650_v22  ;;  %v12737_v16 = vmul.f32 0.2, %v17652_v10  ;;  %v12746_v23 = vsel %vm3549_vm10, %v17533_v2, %v12455_v24 }
 0x57a   :  { %v12740_v25 = vmul.f32 0.2, %v17654_v59  ;;  %17656 = vst [vmem:[#allocation246_spill] sm:$0xff] %v12746_v23  ;;  %v17657_v4 = vld [vmem:[#allocation18_spill] sm:$0xff]  ;;  %v17659_v57 = vld [vmem:[#allocation19_spill] sm:$0xff]  ;;  %v17664_v2 = vld [vmem:[#allocation21_spill] sm:$0xff] }
 0x57b   :  { %17651 = vst [vmem:[#allocation15_spill] sm:$0xff] %v12734_v55  ;;  %17653 = vst [vmem:[#allocation245_spill] sm:$0xff] %v12737_v16  ;;  %v12750_v19 = vmul.f32 0.2, %v17657_v4  ;;  %v12753_v3 = vmul.f32 0.2, %v17659_v57 }
 0x57c   :  { %17655 = vst [vmem:[#allocation17_spill] sm:$0xff] %v12740_v25  ;;  %v17661_v55 = vld [vmem:[#allocation20_spill] sm:$0xff]  ;;  %v12762_v25 = vsel %vm3550_vm11, %v17534_v37, %v12458_v26  ;;  %v12766_v24 = vmul.f32 0.2, %v17664_v2  ;;  %v17666_v23 = vld [vmem:[#allocation22_spill] sm:$0xff]  ;;  %vm3565_vm10 = vcmp.ge.f32.partialorder %v17562_v5, 0.0 }
 0x57d   :  { %17658 = vst [vmem:[#allocation18_spill] sm:$0xff] %v12750_v19  ;;  %17660 = vst [vmem:[#allocation247_spill] sm:$0xff] %v12753_v3  ;;  %v12756_v10 = vmul.f32 0.2, %v17661_v55  ;;  %v12769_v16 = vmul.f32 0.2, %v17666_v23 }
 0x57e   :  { %17663 = vst [vmem:[#allocation248_spill] sm:$0xff] %v12762_v25  ;;  %17665 = vst [vmem:[#allocation21_spill] sm:$0xff] %v12766_v24  ;;  %v17668_v19 = vld [vmem:[#allocation23_spill] sm:$0xff]  ;;  %v17671_v26 = vld [vmem:[#allocation24_spill] sm:$0xff]  ;;  %vm3566_vm11 = vcmp.ge.f32.partialorder %v17564_v53, 0.0 }
 0x57f   :  { %17662 = vst [vmem:[#allocation20_spill] sm:$0xff] %v12756_v10  ;;  %17667 = vst [vmem:[#allocation249_spill] sm:$0xff] %v12769_v16  ;;  %v12772_v57 = vmul.f32 0.2, %v17668_v19  ;;  %v12778_v10 = vsel %vm3551_vm12, %v17535_v32, %v12461_v29  ;;  %v12782_v37 = vmul.f32 0.2, %v17671_v26 }
 0x580   :  { %17670 = vst [vmem:[#allocation250_spill] sm:$0xff] %v12778_v10  ;;  %v17673_v25 = vld [vmem:[#allocation25_spill] sm:$0xff]  ;;  %v17675_v24 = vld [vmem:[#allocation26_spill] sm:$0xff]  ;;  %v17678_v29 = vld [vmem:[#allocation27_spill] sm:$0xff]  ;;  %vm3567_vm12 = vcmp.ge.f32.partialorder %v17567_v50, 0.0 }
 0x581   :  { %17669 = vst [vmem:[#allocation23_spill] sm:$0xff] %v12772_v57  ;;  %17672 = vst [vmem:[#allocation24_spill] sm:$0xff] %v12782_v37  ;;  %v12785_v3 = vmul.f32 0.2, %v17673_v25  ;;  %v12788_v23 = vmul.f32 0.2, %v17675_v24  ;;  %v12794_v57 = vsel %vm3552_vm13, %v17537_v54, %v12470_v38 }
 0x582   :  { %17677 = vst [vmem:[#allocation252_spill] sm:$0xff] %v12794_v57  ;;  %v12798_v32 = vmul.f32 0.2, %v17678_v29  ;;  %v17680_v10 = vld [vmem:[#allocation28_spill] sm:$0xff]  ;;  %v17682_v37 = vld [vmem:[#allocation29_spill] sm:$0xff]  ;;  %v17685_v54 = vld [vmem:[#allocation30_spill] sm:$0xff] }
 0x583   :  { %17674 = vst [vmem:[#allocation251_spill] sm:$0xff] %v12785_v3  ;;  %17676 = vst [vmem:[#allocation26_spill] sm:$0xff] %v12788_v23  ;;  %v12801_v16 = vmul.f32 0.2, %v17680_v10  ;;  %v12804_v25 = vmul.f32 0.2, %v17682_v37  ;;  %v12810_v23 = vsel %vm3553_vm14, %v17538_v1, %v12473_v61 }
 0x584   :  { %17679 = vst [vmem:[#allocation27_spill] sm:$0xff] %v12798_v32  ;;  %17684 = vst [vmem:[#allocation254_spill] sm:$0xff] %v12810_v23  ;;  %v12814_v38 = vmul.f32 0.2, %v17685_v54  ;;  %v17687_v57 = vld [vmem:[#allocation31_spill] sm:$0xff]  ;;  %v17689_v32 = vld [vmem:[#allocation33_spill] sm:$0xff] }
 0x585   :  { %17681 = vst [vmem:[#allocation253_spill] sm:$0xff] %v12801_v16  ;;  %17683 = vst [vmem:[#allocation29_spill] sm:$0xff] %v12804_v25  ;;  %v12817_v3 = vmul.f32 0.2, %v17687_v57  ;;  %v12820_v10 = vmul.f32 0.2, %v17689_v32  ;;  %v12826_v25 = vsel %vm3554_vm15, %v17539_v58, %v12476_v28 }
 0x586   :  { %17686 = vst [vmem:[#allocation30_spill] sm:$0xff] %v12814_v38  ;;  %17691 = vst [vmem:[#allocation256_spill] sm:$0xff] %v12826_v25  ;;  %v17692_v61 = vld [vmem:[#allocation34_spill] sm:$0xff]  ;;  %v17694_v23 = vld [vmem:[#allocation37_spill] sm:$0xff]  ;;  %vm3568_vm13 = vcmp.ge.f32.partialorder %v17569_v20, 0.0  ;;  %vm3569_vm14 = vcmp.ge.f32.partialorder %v17571_v13, 0.0 }
 0x587   :  { %17688 = vst [vmem:[#allocation255_spill] sm:$0xff] %v12817_v3  ;;  %17690 = vst [vmem:[#allocation33_spill] sm:$0xff] %v12820_v10  ;;  %v12830_v1 = vmul.f32 0.2, %v17692_v61  ;;  %v12833_v16 = vmul.f32 0.2, %v17694_v23  ;;  %v12842_v10 = vsel %vm3555_vm0, %v17541_v56, %v12485_v36 }
 0x588   :  { %v17696_v38 = vld [vmem:[#allocation38_spill] sm:$0xff]  ;;  %17698 = vst [vmem:[#allocation258_spill] sm:$0xff] %v12842_v10  ;;  %v17699_v28 = vld [vmem:[#allocation40_spill] sm:$0xff]  ;;  %v17701_v25 = vld [vmem:[#allocation41_spill] sm:$0xff]  ;;  %vm3571_vm0 = vcmp.ge.f32.partialorder %v17576_v45, 0.0 }
 0x589   :  { %17693 = vst [vmem:[#allocation34_spill] sm:$0xff] %v12830_v1  ;;  %17695 = vst [vmem:[#allocation257_spill] sm:$0xff] %v12833_v16  ;;  %v12836_v57 = vmul.f32 0.2, %v17696_v38  ;;  %v12846_v58 = vmul.f32 0.2, %v17699_v28 }
 0x58a   :  { %v12849_v3 = vmul.f32 0.2, %v17701_v25  ;;  %v17703_v1 = vld [vmem:[#allocation44_spill] sm:$0xff]  ;;  %v17706_v56 = vld [vmem:[#allocation45_spill] sm:$0xff]  ;;  %v17708_v10 = vld [vmem:[#allocation47_spill] sm:$0xff] }
 0x58b   :  { %17697 = vst [vmem:[#allocation38_spill] sm:$0xff] %v12836_v57  ;;  %17700 = vst [vmem:[#allocation40_spill] sm:$0xff] %v12846_v58  ;;  %v12852_v23 = vmul.f32 0.2, %v17703_v1  ;;  %v12858_v57 = vsel %vm3556_vm1, %v17542_v30, %v12488_v62  ;;  %v12862_v36 = vmul.f32 0.2, %v17706_v56 }
 0x58c   :  { %17702 = vst [vmem:[#allocation41_spill] sm:$0xff] %v12849_v3  ;;  %17705 = vst [vmem:[#allocation259_spill] sm:$0xff] %v12858_v57  ;;  %v12865_v16 = vmul.f32 0.2, %v17708_v10  ;;  %v12868_v58 = vmul.f32 0.2, %v11815_v47 }
 0x58d   :  { %17704 = vst [vmem:[#allocation44_spill] sm:$0xff] %v12852_v23  ;;  %17707 = vst [vmem:[#allocation260_spill] sm:$0xff] %v12862_v36  ;;  %v17711_v3 = vld [vmem:[#allocation133_spill] sm:$0xff]  ;;  %v17713_v62 = vld [vmem:[#allocation51_spill] sm:$0xff]  ;;  %vm3572_vm1 = vcmp.ge.f32.partialorder %v17578_v15, 0.0 }
 0x58e   :  { %17709 = vst [vmem:[#allocation261_spill] sm:$0xff] %v12865_v16  ;;  %17710 = vst [vmem:[#allocation262_spill] sm:$0xff] %v12868_v58  ;;  %v12874_v23 = vsel %vm3557_vm2, %v17543_v40, %v17711_v3  ;;  %v12878_v30 = vmul.f32 0.2, %v17713_v62  ;;  %v17715_v57 = vld [vmem:[#allocation52_spill] sm:$0xff]  ;;  %v17717_v36 = vld [vmem:[#allocation54_spill] sm:$0xff] }
 0x58f   :  { %17712 = vst [vmem:[#allocation133_spill] sm:$0xff] %v12874_v23  ;;  %v12881_v56 = vmul.f32 0.2, %v17715_v57  ;;  %v12884_v10 = vmul.f32 0.2, %v17717_v36  ;;  %v17719_v16 = vld [vmem:[#allocation157_spill] sm:$0xff] }
 0x590   :  { %17714 = vst [vmem:[#allocation263_spill] sm:$0xff] %v12878_v30  ;;  %v12890_v58 = vsel %vm3558_vm3, %v17546_v17, %v17719_v16  ;;  %v17721_v47 = vld [vmem:[#allocation203_spill] sm:$0xff]  ;;  %v17724_v23 = vld [vmem:[#allocation58_spill] sm:$0xff]  ;;  %v17730_v16 = vld [vmem:[#allocation61_spill] sm:$0xff]  ;;  %vm3573_vm2 = vcmp.ge.f32.partialorder %v17581_v21, 0.0  ;;  %vm3574_vm3 = vcmp.ge.f32.partialorder %v17583_v42, 0.0 }
 0x591   :  { %17716 = vst [vmem:[#allocation264_spill] sm:$0xff] %v12881_v56  ;;  %17718 = vst [vmem:[#allocation54_spill] sm:$0xff] %v12884_v10  ;;  %vm3570_vm15 = vcmp.ge.f32.partialorder %v17721_v47, 0.0  ;;  %v17722_v3 = vld [vmem:[#allocation55_spill] sm:$0xff]  ;;  %v12897_v62 = vmul.f32 0.2, %v17724_v23 }
 0x592   :  { %17720 = vst [vmem:[#allocation157_spill] sm:$0xff] %v12890_v58  ;;  %v12894_v40 = vmul.f32 0.2, %v17722_v3  ;;  %v17726_v30 = vld [vmem:[#allocation59_spill] sm:$0xff]  ;;  %v17728_v56 = vld [vmem:[#allocation160_spill] sm:$0xff]  ;;  %v17732_v58 = vld [vmem:[#allocation62_spill] sm:$0xff] }
 0x593   :  { %17725 = vst [vmem:[#allocation265_spill] sm:$0xff] %v12897_v62  ;;  %v12900_v57 = vmul.f32 0.2, %v17726_v30  ;;  %v12906_v10 = vsel %vm3559_vm4, %v17548_v51, %v17728_v56  ;;  %v12910_v17 = vmul.f32 0.2, %v17730_v16  ;;  %v17736_v62 = vld [vmem:[#allocation161_spill] sm:$0xff] }
 0x594   :  { %17723 = vst [vmem:[#allocation203_spill] sm:$0xff] %v12894_v40  ;;  %17729 = vst [vmem:[#allocation160_spill] sm:$0xff] %v12906_v10  ;;  %v12913_v3 = vmul.f32 0.2, %v17732_v58  ;;  %v17734_v40 = vld [vmem:[#allocation65_spill] sm:$0xff]  ;;  %v17738_v51 = vld [vmem:[#allocation66_spill] sm:$0xff] }
 0x595   :  { %17727 = vst [vmem:[#allocation59_spill] sm:$0xff] %v12900_v57  ;;  %17731 = vst [vmem:[#allocation266_spill] sm:$0xff] %v12910_v17  ;;  %v12916_v23 = vmul.f32 0.2, %v17734_v40  ;;  %v12922_v57 = vsel %vm3560_vm5, %v17550_v34, %v17736_v62  ;;  %v12926_v56 = vmul.f32 0.2, %v17738_v51 }
 0x596   :  { %17733 = vst [vmem:[#allocation267_spill] sm:$0xff] %v12913_v3  ;;  %17737 = vst [vmem:[#allocation161_spill] sm:$0xff] %v12922_v57  ;;  %v17740_v10 = vld [vmem:[#allocation68_spill] sm:$0xff]  ;;  %v17742_v17 = vld [vmem:[#allocation69_spill] sm:$0xff]  ;;  %vm3575_vm4 = vcmp.ge.f32.partialorder %v17585_v48, 0.0  ;;  %vm3576_vm5 = vcmp.ge.f32.partialorder %v11603_v6, 0.0 }
 0x597   :  { %17735 = vst [vmem:[#allocation65_spill] sm:$0xff] %v12916_v23  ;;  %17739 = vst [vmem:[#allocation268_spill] sm:$0xff] %v12926_v56  ;;  %v12929_v16 = vmul.f32 0.2, %v17740_v10  ;;  %v12932_v58 = vmul.f32 0.2, %v17742_v17 }
 0x598   :  { %v17744_v3 = vld [vmem:[#allocation165_spill] sm:$0xff]  ;;  %v17746_v34 = vld [vmem:[#allocation72_spill] sm:$0xff]  ;;  %v17750_v56 = vld [vmem:[#allocation75_spill] sm:$0xff] }
 0x599   :  { %17741 = vst [vmem:[#allocation269_spill] sm:$0xff] %v12929_v16  ;;  %17743 = vst [vmem:[#allocation69_spill] sm:$0xff] %v12932_v58  ;;  %v12938_v23 = vsel %vm3561_vm6, %v17553_v39, %v17744_v3  ;;  %v12942_v62 = vmul.f32 0.2, %v17746_v34  ;;  %v17748_v57 = vld [vmem:[#allocation73_spill] sm:$0xff]  ;;  %v17752_v16 = vld [vmem:[#allocation168_spill] sm:$0xff] }
 0x59a   :  { %17745 = vst [vmem:[#allocation165_spill] sm:$0xff] %v12938_v23  ;;  %v12945_v51 = vmul.f32 0.2, %v17748_v57  ;;  %v12948_v10 = vmul.f32 0.2, %v17750_v56  ;;  %v12954_v58 = vsel %vm3562_vm7, %v17555_v49, %v17752_v16  ;;  %v17754_v39 = vld [vmem:[#allocation76_spill] sm:$0xff] }
 0x59b   :  { %17747 = vst [vmem:[#allocation270_spill] sm:$0xff] %v12942_v62  ;;  %17753 = vst [vmem:[#allocation168_spill] sm:$0xff] %v12954_v58  ;;  %v12958_v3 = vmul.f32 0.2, %v17754_v39  ;;  %v17756_v23 = vld [vmem:[#allocation79_spill] sm:$0xff]  ;;  %v17758_v62 = vld [vmem:[#allocation80_spill] sm:$0xff] }
 0x59c   :  { %17749 = vst [vmem:[#allocation271_spill] sm:$0xff] %v12945_v51  ;;  %17751 = vst [vmem:[#allocation75_spill] sm:$0xff] %v12948_v10  ;;  %v12961_v34 = vmul.f32 0.2, %v17756_v23  ;;  %v12964_v57 = vmul.f32 0.2, %v17758_v62 }
 0x59d   :  { %17755 = vst [vmem:[#allocation272_spill] sm:$0xff] %v12958_v3  ;;  %v17760_v51 = vld [vmem:[#allocation169_spill] sm:$0xff]  ;;  %v17762_v49 = vld [vmem:[#allocation82_spill] sm:$0xff]  ;;  %v17764_v58 = vld [vmem:[#allocation83_spill] sm:$0xff]  ;;  %vm3578_vm7 = vcmp.ge.f32.partialorder %v17591_v27, 0.0 }
 0x59e   :  { %17757 = vst [vmem:[#allocation273_spill] sm:$0xff] %v12961_v34  ;;  %17759 = vst [vmem:[#allocation80_spill] sm:$0xff] %v12964_v57  ;;  %v12970_v10 = vsel %vm3563_vm8, %v17557_v0, %v17760_v51  ;;  %v12974_v16 = vmul.f32 0.2, %v17762_v49  ;;  %v12977_v39 = vmul.f32 0.2, %v17764_v58 }
 0x59f   :  { %17761 = vst [vmem:[#allocation169_spill] sm:$0xff] %v12970_v10  ;;  %v17766_v3 = vld [vmem:[#allocation86_spill] sm:$0xff]  ;;  %v17768_v34 = vld [vmem:[#allocation173_spill] sm:$0xff]  ;;  %v17770_v0 = vld [vmem:[#allocation87_spill] sm:$0xff]  ;;  %vm3579_vm8 = vcmp.ge.f32.partialorder %v17594_v43, 0.0 }
 0x5a0   :  { %17763 = vst [vmem:[#allocation274_spill] sm:$0xff] %v12974_v16  ;;  %17765 = vst [vmem:[#allocation275_spill] sm:$0xff] %v12977_v39  ;;  %v12980_v23 = vmul.f32 0.2, %v17766_v3  ;;  %v12986_v57 = vsel %vm3564_vm9, %v17560_v33, %v17768_v34  ;;  %v12990_v51 = vmul.f32 0.2, %v17770_v0 }
 0x5a1   :  { %17769 = vst [vmem:[#allocation173_spill] sm:$0xff] %v12986_v57  ;;  %v17772_v10 = vld [vmem:[#allocation91_spill] sm:$0xff]  ;;  %v17774_v16 = vld [vmem:[#allocation94_spill] sm:$0xff]  ;;  %v17776_v39 = vld [vmem:[#allocation176_spill] sm:$0xff] }
 0x5a2   :  { %17767 = vst [vmem:[#allocation276_spill] sm:$0xff] %v12980_v23  ;;  %17771 = vst [vmem:[#allocation277_spill] sm:$0xff] %v12990_v51  ;;  %v12993_v49 = vmul.f32 0.2, %v17772_v10  ;;  %v12996_v58 = vmul.f32 0.2, %v17774_v16  ;;  %v13002_v23 = vsel %vm3565_vm10, %v17562_v5, %v17776_v39 }
 0x5a3   :  { %17777 = vst [vmem:[#allocation176_spill] sm:$0xff] %v13002_v23  ;;  %v17778_v3 = vld [vmem:[#allocation67_spill] sm:$0xff]  ;;  %v17781_v57 = vld [vmem:[#allocation98_spill] sm:$0xff]  ;;  %vm3581_vm10 = vcmp.ge.f32.partialorder %v17598_v46, 0.0 }
 0x5a4   :  { %17773 = vst [vmem:[#allocation278_spill] sm:$0xff] %v12993_v49  ;;  %17775 = vst [vmem:[#allocation94_spill] sm:$0xff] %v12996_v58  ;;  %vm3577_vm6 = vcmp.ge.f32.partialorder %v17778_v3, 0.0  ;;  %v17779_v33 = vld [vmem:[#allocation95_spill] sm:$0xff]  ;;  %v13009_v0 = vmul.f32 0.2, %v17781_v57 }
 0x5a5   :  { %v13006_v34 = vmul.f32 0.2, %v17779_v33  ;;  %v17783_v51 = vld [vmem:[#allocation99_spill] sm:$0xff]  ;;  %v17785_v49 = vld [vmem:[#allocation177_spill] sm:$0xff]  ;;  %v17787_v5 = vld [vmem:[#allocation102_spill] sm:$0xff] }
 0x5a6   :  { %17782 = vst [vmem:[#allocation279_spill] sm:$0xff] %v13009_v0  ;;  %v13012_v10 = vmul.f32 0.2, %v17783_v51  ;;  %v13018_v58 = vsel %vm3566_vm11, %v17564_v53, %v17785_v49  ;;  %v13022_v39 = vmul.f32 0.2, %v17787_v5  ;;  %v17789_v23 = vld [vmem:[#allocation103_spill] sm:$0xff] }
 0x5a7   :  { %17780 = vst [vmem:[#allocation67_spill] sm:$0xff] %v13006_v34  ;;  %17786 = vst [vmem:[#allocation177_spill] sm:$0xff] %v13018_v58  ;;  %v13025_v33 = vmul.f32 0.2, %v17789_v23  ;;  %v17791_v34 = vld [vmem:[#allocation106_spill] sm:$0xff]  ;;  %v17793_v0 = vld [vmem:[#allocation181_spill] sm:$0xff] }
 0x5a8   :  { %17784 = vst [vmem:[#allocation99_spill] sm:$0xff] %v13012_v10  ;;  %17788 = vst [vmem:[#allocation280_spill] sm:$0xff] %v13022_v39  ;;  %v13028_v57 = vmul.f32 0.2, %v17791_v34  ;;  %v13034_v10 = vsel %vm3567_vm12, %v17567_v50, %v17793_v0  ;;  %v17795_v53 = vld [vmem:[#allocation107_spill] sm:$0xff]  ;;  %v17797_v58 = vld [vmem:[#allocation110_spill] sm:$0xff] }
 0x5a9   :  { %17790 = vst [vmem:[#allocation281_spill] sm:$0xff] %v13025_v33  ;;  %17794 = vst [vmem:[#allocation181_spill] sm:$0xff] %v13034_v10  ;;  %v13038_v49 = vmul.f32 0.2, %v17795_v53  ;;  %v13041_v5 = vmul.f32 0.2, %v17797_v58 }
 0x5aa   :  { %17792 = vst [vmem:[#allocation282_spill] sm:$0xff] %v13028_v57  ;;  %v17799_v39 = vld [vmem:[#allocation111_spill] sm:$0xff]  ;;  %v17801_v33 = vld [vmem:[#allocation184_spill] sm:$0xff]  ;;  %v17804_v50 = vld [vmem:[#allocation114_spill] sm:$0xff]  ;;  %vm3582_vm11 = vcmp.ge.f32.partialorder %v17601_v35, 0.0 }
 0x5ab   :  { %17796 = vst [vmem:[#allocation283_spill] sm:$0xff] %v13038_v49  ;;  %17798 = vst [vmem:[#allocation284_spill] sm:$0xff] %v13041_v5  ;;  %v13044_v23 = vmul.f32 0.2, %v17799_v39  ;;  %v13050_v57 = vsel %vm3568_vm13, %v17569_v20, %v17801_v33  ;;  %v17803_v34 = vld [vmem:[#allocation132_spill] sm:$0xff]  ;;  %v17806_v10 = vld [vmem:[#allocation115_spill] sm:$0xff] }
 0x5ac   :  { %17802 = vst [vmem:[#allocation184_spill] sm:$0xff] %v13050_v57  ;;  %vm3580_vm9 = vcmp.ge.f32.partialorder %v17803_v34, 0.0  ;;  %v13054_v0 = vmul.f32 0.2, %v17804_v50  ;;  %v13057_v53 = vmul.f32 0.2, %v17806_v10 }
 0x5ad   :  { %17800 = vst [vmem:[#allocation111_spill] sm:$0xff] %v13044_v23  ;;  %v17808_v49 = vld [vmem:[#allocation118_spill] sm:$0xff]  ;;  %v17810_v5 = vld [vmem:[#allocation208_spill] sm:$0xff]  ;;  %v17812_v20 = vld [vmem:[#allocation119_spill] sm:$0xff]  ;;  %vm3584_vm13 = vcmp.ge.f32.partialorder %v17605_v63, 0.0 }
 0x5ae   :  { %17805 = vst [vmem:[#allocation132_spill] sm:$0xff] %v13054_v0  ;;  %17807 = vst [vmem:[#allocation285_spill] sm:$0xff] %v13057_v53  ;;  %v13060_v58 = vmul.f32 0.2, %v17808_v49  ;;  %v13066_v23 = vsel %vm3569_vm14, %v17571_v13, %v17810_v5  ;;  %v13070_v33 = vmul.f32 0.2, %v17812_v20 }
 0x5af   :  { %17811 = vst [vmem:[#allocation208_spill] sm:$0xff] %v13066_v23  ;;  %v17814_v57 = vld [vmem:[#allocation122_spill] sm:$0xff]  ;;  %v17816_v0 = vld [vmem:[#allocation123_spill] sm:$0xff]  ;;  %vm3585_vm14 = vcmp.ge.f32.partialorder %v17608_v8, 0.0 }
 0x5b0   :  { %17809 = vst [vmem:[#allocation118_spill] sm:$0xff] %v13060_v58  ;;  %17813 = vst [vmem:[#allocation286_spill] sm:$0xff] %v13070_v33  ;;  %v13073_v50 = vmul.f32 0.2, %v17814_v57  ;;  %v13076_v10 = vmul.f32 0.2, %v17816_v0 }
 0x5b1   :  { %v17818_v53 = vld [vmem:[#allocation210_spill] sm:$0xff]  ;;  %v17822_v23 = vld [vmem:[#allocation127_spill] sm:$0xff]  ;;  %v17828_v0 = vld [vmem:[#allocation189_spill] sm:$0xff] }
 0x5b2   :  { %17815 = vst [vmem:[#allocation287_spill] sm:$0xff] %v13073_v50  ;;  %17817 = vst [vmem:[#allocation288_spill] sm:$0xff] %v13076_v10  ;;  %v13082_v58 = vsel %vm3570_vm15, %v17721_v47, %v17818_v53  ;;  %v17820_v13 = vld [vmem:[#allocation126_spill] sm:$0xff]  ;;  %v13089_v20 = vmul.f32 0.2, %v17822_v23  ;;  %v17826_v50 = vld [vmem:[#allocation211_spill] sm:$0xff] }
 0x5b3   :  { %17819 = vst [vmem:[#allocation210_spill] sm:$0xff] %v13082_v58  ;;  %v13086_v5 = vmul.f32 0.2, %v17820_v13  ;;  %v17824_v33 = vld [vmem:[#allocation130_spill] sm:$0xff]  ;;  %v13098_v10 = vsel %vm3571_vm0, %v17576_v45, %v17826_v50  ;;  %vm3583_vm12 = vcmp.ge.f32.partialorder %v17828_v0, 0.0  ;;  %v17829_v47 = vld [vmem:[#allocation131_spill] sm:$0xff] }
 0x5b4   :  { %17823 = vst [vmem:[#allocation290_spill] sm:$0xff] %v13089_v20  ;;  %v13092_v57 = vmul.f32 0.2, %v17824_v33  ;;  %17827 = vst [vmem:[#allocation211_spill] sm:$0xff] %v13098_v10  ;;  %v13102_v53 = vmul.f32 0.2, %v17829_v47 }
 0x5b5   :  { %17821 = vst [vmem:[#allocation289_spill] sm:$0xff] %v13086_v5  ;;  %v17831_v58 = vld [vmem:[#allocation134_spill] sm:$0xff]  ;;  %v17833_v5 = vld [vmem:[#allocation135_spill] sm:$0xff]  ;;  %v17835_v20 = vld [vmem:[#allocation212_spill] sm:$0xff]  ;;  %vm3587_vm0 = vcmp.ge.f32.partialorder %v17612_v41, 0.0 }
 0x5b6   :  { %17825 = vst [vmem:[#allocation130_spill] sm:$0xff] %v13092_v57  ;;  %17830 = vst [vmem:[#allocation189_spill] sm:$0xff] %v13102_v53  ;;  %v13105_v13 = vmul.f32 0.2, %v17831_v58  ;;  %v13108_v23 = vmul.f32 0.2, %v17833_v5  ;;  %v13114_v57 = vsel %vm3572_vm1, %v17578_v15, %v17835_v20 }
 0x5b7   :  { %17836 = vst [vmem:[#allocation212_spill] sm:$0xff] %v13114_v57  ;;  %v17837_v45 = vld [vmem:[#allocation138_spill] sm:$0xff]  ;;  %v17839_v10 = vld [vmem:[#allocation139_spill] sm:$0xff]  ;;  %vm3588_vm1 = vcmp.ge.f32.partialorder %v17615_v18, 0.0 }
 0x5b8   :  { %17832 = vst [vmem:[#allocation291_spill] sm:$0xff] %v13105_v13  ;;  %17834 = vst [vmem:[#allocation135_spill] sm:$0xff] %v13108_v23  ;;  %v13118_v50 = vmul.f32 0.2, %v17837_v45  ;;  %v13121_v47 = vmul.f32 0.2, %v17839_v10 }
 0x5b9   :  { %v17841_v53 = vld [vmem:[#allocation142_spill] sm:$0xff]  ;;  %v17845_v15 = vld [vmem:[#allocation143_spill] sm:$0xff] }
 0x5ba   :  { %17838 = vst [vmem:[#allocation292_spill] sm:$0xff] %v13118_v50  ;;  %17840 = vst [vmem:[#allocation293_spill] sm:$0xff] %v13121_v47  ;;  %v13124_v58 = vmul.f32 0.2, %v17841_v53  ;;  %v17843_v13 = vld [vmem:[#allocation214_spill] sm:$0xff]  ;;  %v17849_v50 = vld [vmem:[#allocation147_spill] sm:$0xff] }
 0x5bb   :  { %v13130_v23 = vsel %vm3573_vm2, %v17581_v21, %v17843_v13  ;;  %v13134_v20 = vmul.f32 0.2, %v17845_v15  ;;  %v17847_v57 = vld [vmem:[#allocation146_spill] sm:$0xff]  ;;  %v13140_v10 = vmul.f32 0.2, %v17849_v50  ;;  %v17851_v47 = vld [vmem:[#allocation215_spill] sm:$0xff] }
 0x5bc   :  { %17842 = vst [vmem:[#allocation294_spill] sm:$0xff] %v13124_v58  ;;  %17844 = vst [vmem:[#allocation214_spill] sm:$0xff] %v13130_v23  ;;  %v13137_v45 = vmul.f32 0.2, %v17847_v57  ;;  %v13146_v58 = vsel %vm3574_vm3, %v17583_v42, %v17851_v47  ;;  %v17853_v53 = vld [vmem:[#allocation196_spill] sm:$0xff]  ;;  %v17854_v21 = vld [vmem:[#allocation150_spill] sm:$0xff] }
 0x5bd   :  { %17846 = vst [vmem:[#allocation295_spill] sm:$0xff] %v13134_v20  ;;  %17850 = vst [vmem:[#allocation147_spill] sm:$0xff] %v13140_v10  ;;  %vm3586_vm15 = vcmp.ge.f32.partialorder %v17853_v53, 0.0  ;;  %v13150_v13 = vmul.f32 0.2, %v17854_v21  ;;  %v17856_v23 = vld [vmem:[#allocation151_spill] sm:$0xff] }
 0x5be   :  { %17848 = vst [vmem:[#allocation296_spill] sm:$0xff] %v13137_v45  ;;  %17852 = vst [vmem:[#allocation215_spill] sm:$0xff] %v13146_v58  ;;  %v13153_v15 = vmul.f32 0.2, %v17856_v23  ;;  %v17858_v20 = vld [vmem:[#allocation154_spill] sm:$0xff]  ;;  %v17860_v45 = vld [vmem:[#allocation216_spill] sm:$0xff] }
 0x5bf   :  { %17855 = vst [vmem:[#allocation196_spill] sm:$0xff] %v13150_v13  ;;  %v13156_v57 = vmul.f32 0.2, %v17858_v20  ;;  %v13162_v10 = vsel %vm3575_vm4, %v17585_v48, %v17860_v45  ;;  %v17862_v42 = vld [vmem:[#allocation155_spill] sm:$0xff]  ;;  %v17864_v58 = vld [vmem:[#allocation158_spill] sm:$0xff]  ;;  %vm3590_vm3 = vcmp.ge.f32.partialorder %v17619_v60, 0.0 }
 0x5c0   :  { %17857 = vst [vmem:[#allocation297_spill] sm:$0xff] %v13153_v15  ;;  %17861 = vst [vmem:[#allocation216_spill] sm:$0xff] %v13162_v10  ;;  %v13166_v47 = vmul.f32 0.2, %v17862_v42  ;;  %v13169_v21 = vmul.f32 0.2, %v17864_v58 }
 0x5c1   :  { %17859 = vst [vmem:[#allocation154_spill] sm:$0xff] %v13156_v57  ;;  %v17866_v13 = vld [vmem:[#allocation159_spill] sm:$0xff]  ;;  %v17868_v15 = vld [vmem:[#allocation200_spill] sm:$0xff]  ;;  %v17870_v48 = vld [vmem:[#allocation162_spill] sm:$0xff]  ;;  %vm3591_vm4 = vcmp.ge.f32.partialorder %v17622_v12, 0.0 }
 0x5c2   :  { %17863 = vst [vmem:[#allocation298_spill] sm:$0xff] %v13166_v47  ;;  %17865 = vst [vmem:[#allocation299_spill] sm:$0xff] %v13169_v21  ;;  %v13172_v23 = vmul.f32 0.2, %v17866_v13  ;;  %v13178_v57 = vsel %vm3576_vm5, %v11603_v6, %v17868_v15  ;;  %v13182_v45 = vmul.f32 0.2, %v17870_v48 }
 0x5c3   :  { %17869 = vst [vmem:[#allocation200_spill] sm:$0xff] %v13178_v57  ;;  %v17872_v10 = vld [vmem:[#allocation163_spill] sm:$0xff]  ;;  %v17874_v47 = vld [vmem:[#allocation166_spill] sm:$0xff]  ;;  %v17876_v21 = vld [vmem:[#allocation201_spill] sm:$0xff] }
 0x5c4   :  { %17867 = vst [vmem:[#allocation300_spill] sm:$0xff] %v13172_v23  ;;  %17871 = vst [vmem:[#allocation301_spill] sm:$0xff] %v13182_v45  ;;  %v13185_v42 = vmul.f32 0.2, %v17872_v10  ;;  %v13188_v58 = vmul.f32 0.2, %v17874_v47  ;;  %v13194_v23 = vsel %vm3577_vm6, %v17778_v3, %v17876_v21 }
 0x5c5   :  { %17877 = vst [vmem:[#allocation201_spill] sm:$0xff] %v13194_v23  ;;  %v17878_v13 = vld [vmem:[#allocation219_spill] sm:$0xff]  ;;  %v17881_v57 = vld [vmem:[#allocation170_spill] sm:$0xff]  ;;  %vm3593_vm6 = vcmp.ge.f32.partialorder %v17626_v9, 0.0 }
 0x5c6   :  { %17873 = vst [vmem:[#allocation302_spill] sm:$0xff] %v13185_v42  ;;  %17875 = vst [vmem:[#allocation303_spill] sm:$0xff] %v13188_v58  ;;  %vm3589_vm2 = vcmp.ge.f32.partialorder %v17878_v13, 0.0  ;;  %v17879_v6 = vld [vmem:[#allocation167_spill] sm:$0xff]  ;;  %v13201_v48 = vmul.f32 0.2, %v17881_v57 }
 0x5c7   :  { %v13198_v15 = vmul.f32 0.2, %v17879_v6  ;;  %v17883_v45 = vld [vmem:[#allocation171_spill] sm:$0xff]  ;;  %v17885_v42 = vld [vmem:[#allocation204_spill] sm:$0xff]  ;;  %v17887_v3 = vld [vmem:[#allocation174_spill] sm:$0xff] }
 0x5c8   :  { %17882 = vst [vmem:[#allocation304_spill] sm:$0xff] %v13201_v48  ;;  %v13204_v10 = vmul.f32 0.2, %v17883_v45  ;;  %v13210_v58 = vsel %vm3578_vm7, %v17591_v27, %v17885_v42  ;;  %v13214_v21 = vmul.f32 0.2, %v17887_v3  ;;  %v17889_v23 = vld [vmem:[#allocation175_spill] sm:$0xff] }
 0x5c9   :  { %17880 = vst [vmem:[#allocation219_spill] sm:$0xff] %v13198_v15  ;;  %17886 = vst [vmem:[#allocation204_spill] sm:$0xff] %v13210_v58  ;;  %v13217_v6 = vmul.f32 0.2, %v17889_v23  ;;  %v17891_v15 = vld [vmem:[#allocation178_spill] sm:$0xff]  ;;  %v17895_v27 = vld [vmem:[#allocation179_spill] sm:$0xff] }
 0x5ca   :  { %17884 = vst [vmem:[#allocation305_spill] sm:$0xff] %v13204_v10  ;;  %17888 = vst [vmem:[#allocation306_spill] sm:$0xff] %v13214_v21  ;;  %v13220_v57 = vmul.f32 0.2, %v17891_v15  ;;  %v17893_v48 = vld [vmem:[#allocation2_spill] sm:$0xff]  ;;  %v17899_v21 = vld [vmem:[#allocation183_spill] sm:$0xff] }
 0x5cb   :  { %17890 = vst [vmem:[#allocation307_spill] sm:$0xff] %v13217_v6  ;;  %v13226_v10 = vsel %vm3579_vm8, %v17594_v43, %v17893_v48  ;;  %v13230_v42 = vmul.f32 0.2, %v17895_v27  ;;  %v17897_v58 = vld [vmem:[#allocation182_spill] sm:$0xff]  ;;  %v13236_v23 = vmul.f32 0.2, %v17899_v21 }
 0x5cc   :  { %17892 = vst [vmem:[#allocation308_spill] sm:$0xff] %v13220_v57  ;;  %17894 = vst [vmem:[#allocation2_spill] sm:$0xff] %v13226_v10  ;;  %v13233_v3 = vmul.f32 0.2, %v17897_v58  ;;  %v17901_v6 = vld [vmem:[#allocation3_spill] sm:$0xff]  ;;  %v17903_v15 = vld [vmem:[#allocation222_spill] sm:$0xff] }
 0x5cd   :  { %17896 = vst [vmem:[#allocation309_spill] sm:$0xff] %v13230_v42  ;;  %17900 = vst [vmem:[#allocation311_spill] sm:$0xff] %v13236_v23  ;;  %v13242_v57 = vsel %vm3580_vm9, %v17803_v34, %v17901_v6  ;;  %vm3592_vm5 = vcmp.ge.f32.partialorder %v17903_v15, 0.0  ;;  %v17904_v43 = vld [vmem:[#allocation186_spill] sm:$0xff]  ;;  %v17906_v10 = vld [vmem:[#allocation187_spill] sm:$0xff]  ;;  %vm3594_vm7 = vcmp.ge.f32.partialorder %v17629_v7, 0.0 }
 0x5ce   :  { %17898 = vst [vmem:[#allocation310_spill] sm:$0xff] %v13233_v3  ;;  %17902 = vst [vmem:[#allocation3_spill] sm:$0xff] %v13242_v57  ;;  %v13246_v48 = vmul.f32 0.2, %v17904_v43  ;;  %v13249_v27 = vmul.f32 0.2, %v17906_v10 }
 0x5cf   :  { %v17908_v42 = vld [vmem:[#allocation190_spill] sm:$0xff]  ;;  %v17910_v3 = vld [vmem:[#allocation4_spill] sm:$0xff]  ;;  %v17912_v34 = vld [vmem:[#allocation191_spill] sm:$0xff]  ;;  %vm3596_vm9 = vcmp.ge.f32.partialorder %v17633_v52, 0.0 }
 0x5d0   :  { %17905 = vst [vmem:[#allocation222_spill] sm:$0xff] %v13246_v48  ;;  %17907 = vst [vmem:[#allocation312_spill] sm:$0xff] %v13249_v27  ;;  %v13252_v58 = vmul.f32 0.2, %v17908_v42  ;;  %v13258_v23 = vsel %vm3581_vm10, %v17598_v46, %v17910_v3  ;;  %v13262_v6 = vmul.f32 0.2, %v17912_v34 }
 0x5d1   :  { %17911 = vst [vmem:[#allocation4_spill] sm:$0xff] %v13258_v23  ;;  %v17914_v57 = vld [vmem:[#allocation194_spill] sm:$0xff]  ;;  %v17920_v46 = vld [vmem:[#allocation199_spill] sm:$0xff]  ;;  %vm3597_vm10 = vcmp.ge.f32.partialorder %v17636_v14, 0.0 }
 0x5d2   :  { %17909 = vst [vmem:[#allocation313_spill] sm:$0xff] %v13252_v58  ;;  %17913 = vst [vmem:[#allocation314_spill] sm:$0xff] %v13262_v6  ;;  %v13265_v43 = vmul.f32 0.2, %v17914_v57  ;;  %v17916_v48 = vld [vmem:[#allocation198_spill] sm:$0xff]  ;;  %v17924_v6 = vld [vmem:[#allocation207_spill] sm:$0xff] }
 0x5d3   :  { %v13268_v10 = vmul.f32 0.2, %v17916_v48  ;;  %v17918_v27 = vld [vmem:[#allocation90_spill] sm:$0xff]  ;;  %v13278_v3 = vmul.f32 0.2, %v17920_v46  ;;  %v18092_v21 = vld [vmem:[#allocation243_spill] sm:$0xff] }
 0x5d4   :  { %17915 = vst [vmem:[#allocation315_spill] sm:$0xff] %v13265_v43  ;;  %v13274_v58 = vsel %vm3582_vm11, %v17601_v35, %v17918_v27  ;;  %v17922_v23 = vld [vmem:[#allocation206_spill] sm:$0xff]  ;;  %v13284_v57 = vmul.f32 0.2, %v17924_v6  ;;  %v17926_v43 = vld [vmem:[#allocation195_spill] sm:$0xff]  ;;  %v18081_v6 = vld [vmem:[#allocation12_spill] sm:$0xff] }
 0x5d5   :  { %17917 = vst [vmem:[#allocation316_spill] sm:$0xff] %v13268_v10  ;;  %17919 = vst [vmem:[#allocation90_spill] sm:$0xff] %v13274_v58  ;;  %v13281_v34 = vmul.f32 0.2, %v17922_v23  ;;  %v13290_v10 = vsel %vm3583_vm12, %v17828_v0, %v17926_v43  ;;  %v17928_v48 = vld [vmem:[#allocation6_spill] sm:$0xff]  ;;  %v17929_v35 = vld [vmem:[#allocation35_spill] sm:$0xff] }
 0x5d6   :  { %17921 = vst [vmem:[#allocation317_spill] sm:$0xff] %v13278_v3  ;;  %17925 = vst [vmem:[#allocation319_spill] sm:$0xff] %v13284_v57  ;;  %vm3595_vm8 = vcmp.ge.f32.partialorder %v17928_v48, 0.0  ;;  %v13294_v27 = vmul.f32 0.2, %v17929_v35  ;;  %v17931_v58 = vld [vmem:[#allocation36_spill] sm:$0xff] }
 0x5d7   :  { %17923 = vst [vmem:[#allocation318_spill] sm:$0xff] %v13281_v34  ;;  %17927 = vst [vmem:[#allocation195_spill] sm:$0xff] %v13290_v10  ;;  %v13297_v46 = vmul.f32 0.2, %v17931_v58  ;;  %v17933_v3 = vld [vmem:[#allocation42_spill] sm:$0xff]  ;;  %v17937_v0 = vld [vmem:[#allocation43_spill] sm:$0xff] }
 0x5d8   :  { %17930 = vst [vmem:[#allocation6_spill] sm:$0xff] %v13294_v27  ;;  %v13300_v23 = vmul.f32 0.2, %v17933_v3  ;;  %v17935_v34 = vld [vmem:[#allocation202_spill] sm:$0xff]  ;;  %v13310_v43 = vmul.f32 0.2, %v17937_v0 }
 0x5d9   :  { %17932 = vst [vmem:[#allocation320_spill] sm:$0xff] %v13297_v46  ;;  %v13306_v57 = vsel %vm3584_vm13, %v17605_v63, %v17935_v34  ;;  %v17939_v10 = vld [vmem:[#allocation49_spill] sm:$0xff]  ;;  %v17941_v27 = vld [vmem:[#allocation50_spill] sm:$0xff]  ;;  %v17943_v46 = vld [vmem:[#allocation39_spill] sm:$0xff]  ;;  %vm3599_vm12 = vcmp.ge.f32.partialorder %v17640_v11, 0.0  ;;  %vm3600_vm13 = vcmp.ge.f32.partialorder %v17643_v44, 0.0 }
 0x5da   :  { %17934 = vst [vmem:[#allocation321_spill] sm:$0xff] %v13300_v23  ;;  %17936 = vst [vmem:[#allocation202_spill] sm:$0xff] %v13306_v57  ;;  %v13313_v35 = vmul.f32 0.2, %v17939_v10  ;;  %v13316_v58 = vmul.f32 0.2, %v17941_v27  ;;  %v13322_v23 = vsel %vm3585_vm14, %v17608_v8, %v17943_v46 }
 0x5db   :  { %17938 = vst [vmem:[#allocation322_spill] sm:$0xff] %v13310_v43  ;;  %17944 = vst [vmem:[#allocation39_spill] sm:$0xff] %v13322_v23  ;;  %v17945_v63 = vld [vmem:[#allocation56_spill] sm:$0xff]  ;;  %v17947_v57 = vld [vmem:[#allocation57_spill] sm:$0xff] }
 0x5dc   :  { %17940 = vst [vmem:[#allocation323_spill] sm:$0xff] %v13313_v35  ;;  %17942 = vst [vmem:[#allocation324_spill] sm:$0xff] %v13316_v58  ;;  %v13326_v34 = vmul.f32 0.2, %v17945_v63  ;;  %v13329_v0 = vmul.f32 0.2, %v17947_v57 }
 0x5dd   :  { %v17949_v43 = vld [vmem:[#allocation63_spill] sm:$0xff]  ;;  %v17951_v35 = vld [vmem:[#allocation46_spill] sm:$0xff]  ;;  %v17954_v8 = vld [vmem:[#allocation64_spill] sm:$0xff] }
 0x5de   :  { %17946 = vst [vmem:[#allocation325_spill] sm:$0xff] %v13326_v34  ;;  %17948 = vst [vmem:[#allocation326_spill] sm:$0xff] %v13329_v0  ;;  %v13332_v10 = vmul.f32 0.2, %v17949_v43  ;;  %v13338_v58 = vsel %vm3586_vm15, %v17853_v53, %v17951_v35  ;;  %v17953_v27 = vld [vmem:[#allocation10_spill] sm:$0xff]  ;;  %v17958_v34 = vld [vmem:[#allocation71_spill] sm:$0xff] }
 0x5df   :  { %17952 = vst [vmem:[#allocation46_spill] sm:$0xff] %v13338_v58  ;;  %vm3598_vm11 = vcmp.ge.f32.partialorder %v17953_v27, 0.0  ;;  %v13342_v46 = vmul.f32 0.2, %v17954_v8  ;;  %v17956_v23 = vld [vmem:[#allocation70_spill] sm:$0xff]  ;;  %v17960_v0 = vld [vmem:[#allocation53_spill] sm:$0xff] }
 0x5e0   :  { %17950 = vst [vmem:[#allocation327_spill] sm:$0xff] %v13332_v10  ;;  %v13345_v63 = vmul.f32 0.2, %v17956_v23  ;;  %v13348_v57 = vmul.f32 0.2, %v17958_v34  ;;  %v13354_v10 = vsel %vm3587_vm0, %v17612_v41, %v17960_v0  ;;  %v17962_v53 = vld [vmem:[#allocation77_spill] sm:$0xff] }
 0x5e1   :  { %17955 = vst [vmem:[#allocation10_spill] sm:$0xff] %v13342_v46  ;;  %17961 = vst [vmem:[#allocation53_spill] sm:$0xff] %v13354_v10  ;;  %v13358_v35 = vmul.f32 0.2, %v17962_v53  ;;  %v17964_v58 = vld [vmem:[#allocation78_spill] sm:$0xff]  ;;  %v17966_v46 = vld [vmem:[#allocation81_spill] sm:$0xff] }
 0x5e2   :  { %17957 = vst [vmem:[#allocation328_spill] sm:$0xff] %v13345_v63  ;;  %17959 = vst [vmem:[#allocation329_spill] sm:$0xff] %v13348_v57  ;;  %v13361_v8 = vmul.f32 0.2, %v17964_v58  ;;  %v13364_v23 = vmul.f32 0.2, %v17966_v46 }
 0x5e3   :  { %17963 = vst [vmem:[#allocation330_spill] sm:$0xff] %v13358_v35  ;;  %v17968_v63 = vld [vmem:[#allocation74_spill] sm:$0xff]  ;;  %v17970_v41 = vld [vmem:[#allocation84_spill] sm:$0xff]  ;;  %v17972_v10 = vld [vmem:[#allocation85_spill] sm:$0xff]  ;;  %vm3602_vm15 = vcmp.ge.f32.partialorder %v17647_v31, 0.0  ;;  %vm3603_vm0 = vcmp.ge.f32.partialorder %v17650_v22, 0.0 }
 0x5e4   :  { %17965 = vst [vmem:[#allocation331_spill] sm:$0xff] %v13361_v8  ;;  %17967 = vst [vmem:[#allocation332_spill] sm:$0xff] %v13364_v23  ;;  %v13370_v57 = vsel %vm3588_vm1, %v17615_v18, %v17968_v63  ;;  %v13374_v0 = vmul.f32 0.2, %v17970_v41  ;;  %v13377_v53 = vmul.f32 0.2, %v17972_v10 }
 0x5e5   :  { %17969 = vst [vmem:[#allocation74_spill] sm:$0xff] %v13370_v57  ;;  %v17974_v35 = vld [vmem:[#allocation88_spill] sm:$0xff]  ;;  %v17978_v46 = vld [vmem:[#allocation13_spill] sm:$0xff]  ;;  %v18071_v3 = vld [vmem:[#allocation11_spill] sm:$0xff] }
 0x5e6   :  { %17971 = vst [vmem:[#allocation333_spill] sm:$0xff] %v13374_v0  ;;  %17973 = vst [vmem:[#allocation334_spill] sm:$0xff] %v13377_v53  ;;  %v13380_v58 = vmul.f32 0.2, %v17974_v35  ;;  %v17976_v8 = vld [vmem:[#allocation128_spill] sm:$0xff]  ;;  %vm3601_vm14 = vcmp.ge.f32.partialorder %v17978_v46, 0.0 }
 0x5e7   :  { %v13386_v23 = vsel %vm3589_vm2, %v17878_v13, %v17976_v8  ;;  %v17979_v18 = vld [vmem:[#allocation89_spill] sm:$0xff]  ;;  %v17981_v57 = vld [vmem:[#allocation92_spill] sm:$0xff]  ;;  %v18103_v47 = vld [vmem:[#allocation14_spill] sm:$0xff]  ;;  %vm18116_vm2 = vcmp.ge.f32.partialorder %v17657_v4, 0.0 }
 0x5e8   :  { %17975 = vst [vmem:[#allocation335_spill] sm:$0xff] %v13380_v58  ;;  %17977 = vst [vmem:[#allocation128_spill] sm:$0xff] %v13386_v23  ;;  %v13390_v63 = vmul.f32 0.2, %v17979_v18  ;;  %v13393_v41 = vmul.f32 0.2, %v17981_v57 }
 0x5e9   :  { %v17983_v0 = vld [vmem:[#allocation93_spill] sm:$0xff]  ;;  %v17987_v13 = vld [vmem:[#allocation96_spill] sm:$0xff] }
 0x5ea   :  { %17980 = vst [vmem:[#allocation13_spill] sm:$0xff] %v13390_v63  ;;  %17982 = vst [vmem:[#allocation336_spill] sm:$0xff] %v13393_v41  ;;  %v13396_v10 = vmul.f32 0.2, %v17983_v0  ;;  %v17985_v53 = vld [vmem:[#allocation185_spill] sm:$0xff]  ;;  %v17991_v63 = vld [vmem:[#allocation100_spill] sm:$0xff] }
 0x5eb   :  { %v13402_v58 = vsel %vm3590_vm3, %v17619_v60, %v17985_v53  ;;  %v13406_v8 = vmul.f32 0.2, %v17987_v13  ;;  %v17989_v23 = vld [vmem:[#allocation97_spill] sm:$0xff]  ;;  %v13412_v57 = vmul.f32 0.2, %v17991_v63  ;;  %v17993_v41 = vld [vmem:[#allocation192_spill] sm:$0xff] }
 0x5ec   :  { %17984 = vst [vmem:[#allocation337_spill] sm:$0xff] %v13396_v10  ;;  %17986 = vst [vmem:[#allocation185_spill] sm:$0xff] %v13402_v58  ;;  %v13409_v18 = vmul.f32 0.2, %v17989_v23  ;;  %v13418_v10 = vsel %vm3591_vm4, %v17622_v12, %v17993_v41  ;;  %v17995_v60 = vld [vmem:[#allocation16_spill] sm:$0xff]  ;;  %v17996_v53 = vld [vmem:[#allocation101_spill] sm:$0xff] }
 0x5ed   :  { %17988 = vst [vmem:[#allocation338_spill] sm:$0xff] %v13406_v8  ;;  %17992 = vst [vmem:[#allocation340_spill] sm:$0xff] %v13412_v57  ;;  %v13425_v58 = vmul.f32 0.2, %v17996_v53  ;;  %v18000_v57 = vld [vmem:[#allocation105_spill] sm:$0xff]  ;;  %v18004_v41 = vld [vmem:[#allocation19_spill] sm:$0xff] }
 0x5ee   :  { %17990 = vst [vmem:[#allocation339_spill] sm:$0xff] %v13409_v18  ;;  %17994 = vst [vmem:[#allocation192_spill] sm:$0xff] %v13418_v10  ;;  %v17998_v18 = vld [vmem:[#allocation104_spill] sm:$0xff]  ;;  %v13431_v63 = vmul.f32 0.2, %v18000_v57  ;;  %v18002_v23 = vld [vmem:[#allocation193_spill] sm:$0xff] }
 0x5ef   :  { %17997 = vst [vmem:[#allocation16_spill] sm:$0xff] %v13425_v58  ;;  %v13428_v8 = vmul.f32 0.2, %v17998_v18  ;;  %v13437_v12 = vsel %vm3592_vm5, %v17903_v15, %v18002_v23  ;;  %vm3607_vm4 = vcmp.ge.f32.partialorder %v18004_v41, 0.0  ;;  %v18005_v10 = vld [vmem:[#allocation22_spill] sm:$0xff]  ;;  %v18006_v58 = vld [vmem:[#allocation108_spill] sm:$0xff] }
 0x5f0   :  { %18001 = vst [vmem:[#allocation342_spill] sm:$0xff] %v13431_v63  ;;  %18003 = vst [vmem:[#allocation193_spill] sm:$0xff] %v13437_v12  ;;  %v13444_v18 = vmul.f32 0.2, %v18006_v58  ;;  %v18010_v63 = vld [vmem:[#allocation225_spill] sm:$0xff]  ;;  %vm3611_vm5 = vcmp.ge.f32.partialorder %v17668_v19, 0.0 }
 0x5f1   :  { %17999 = vst [vmem:[#allocation341_spill] sm:$0xff] %v13428_v8  ;;  %v18008_v8 = vld [vmem:[#allocation224_spill] sm:$0xff]  ;;  %v13450_v53 = vmul.f32 0.2, %v18010_v63  ;;  %v18012_v13 = vld [vmem:[#allocation197_spill] sm:$0xff]  ;;  %v18015_v12 = vld [vmem:[#allocation226_spill] sm:$0xff] }
 0x5f2   :  { %18007 = vst [vmem:[#allocation19_spill] sm:$0xff] %v13444_v18  ;;  %v13447_v57 = vmul.f32 0.2, %v18008_v8  ;;  %v13456_v23 = vsel %vm3593_vm6, %v17626_v9, %v18012_v13  ;;  %v18014_v15 = vld [vmem:[#allocation25_spill] sm:$0xff]  ;;  %v13463_v18 = vmul.f32 0.2, %v18015_v12 }
 0x5f3   :  { %18011 = vst [vmem:[#allocation343_spill] sm:$0xff] %v13450_v53  ;;  %18013 = vst [vmem:[#allocation197_spill] sm:$0xff] %v13456_v23  ;;  %v18019_v53 = vld [vmem:[#allocation228_spill] sm:$0xff]  ;;  %vm3615_vm6 = vcmp.ge.f32.partialorder %v17678_v29, 0.0  ;;  %v18024_v23 = vld [vmem:[#allocation229_spill] sm:$0xff] }
 0x5f4   :  { %18009 = vst [vmem:[#allocation22_spill] sm:$0xff] %v13447_v57  ;;  %18016 = vst [vmem:[#allocation25_spill] sm:$0xff] %v13463_v18  ;;  %v18017_v57 = vld [vmem:[#allocation227_spill] sm:$0xff]  ;;  %v13469_v8 = vmul.f32 0.2, %v18019_v53  ;;  %v18021_v58 = vld [vmem:[#allocation220_spill] sm:$0xff] }
 0x5f5   :  { %v13466_v63 = vmul.f32 0.2, %v18017_v57  ;;  %v13475_v9 = vsel %vm3594_vm7, %v17629_v7, %v18021_v58  ;;  %v18023_v13 = vld [vmem:[#allocation28_spill] sm:$0xff]  ;;  %v13482_v18 = vmul.f32 0.2, %v18024_v23  ;;  %v18030_v12 = vld [vmem:[#allocation221_spill] sm:$0xff] }
 0x5f6   :  { %18020 = vst [vmem:[#allocation345_spill] sm:$0xff] %v13469_v8  ;;  %18022 = vst [vmem:[#allocation220_spill] sm:$0xff] %v13475_v9  ;;  %v18028_v8 = vld [vmem:[#allocation231_spill] sm:$0xff]  ;;  %v13494_v7 = vsel %vm3595_vm8, %v17928_v48, %v18030_v12  ;;  %v18033_v9 = vld [vmem:[#allocation37_spill] sm:$0xff]  ;;  %vm3623_vm8 = vcmp.ge.f32.partialorder %v17696_v38, 0.0 }
 0x5f7   :  { %18018 = vst [vmem:[#allocation344_spill] sm:$0xff] %v13466_v63  ;;  %18025 = vst [vmem:[#allocation28_spill] sm:$0xff] %v13482_v18  ;;  %v18026_v63 = vld [vmem:[#allocation230_spill] sm:$0xff]  ;;  %v13488_v57 = vmul.f32 0.2, %v18028_v8  ;;  %v18032_v58 = vld [vmem:[#allocation31_spill] sm:$0xff] }
 0x5f8   :  { %v13485_v53 = vmul.f32 0.2, %v18026_v63  ;;  %18031 = vst [vmem:[#allocation221_spill] sm:$0xff] %v13494_v7  ;;  %vm3619_vm7 = vcmp.ge.f32.partialorder %v18032_v58, 0.0  ;;  %v18034_v18 = vld [vmem:[#allocation109_spill] sm:$0xff]  ;;  %v18040_v0 = vld [vmem:[#allocation223_spill] sm:$0xff] }
 0x5f9   :  { %18029 = vst [vmem:[#allocation347_spill] sm:$0xff] %v13488_v57  ;;  %v13501_v63 = vmul.f32 0.2, %v18034_v18  ;;  %v18038_v57 = vld [vmem:[#allocation113_spill] sm:$0xff]  ;;  %v13513_v48 = vsel %vm3596_vm9, %v17633_v52, %v18040_v0  ;;  %v18042_v12 = vld [vmem:[#allocation116_spill] sm:$0xff] }
 0x5fa   :  { %18027 = vst [vmem:[#allocation346_spill] sm:$0xff] %v13485_v53  ;;  %v18036_v53 = vld [vmem:[#allocation112_spill] sm:$0xff]  ;;  %v13507_v23 = vmul.f32 0.2, %v18038_v57  ;;  %18041 = vst [vmem:[#allocation223_spill] sm:$0xff] %v13513_v48  ;;  %v18050_v0 = vld [vmem:[#allocation45_spill] sm:$0xff] }
 0x5fb   :  { %18035 = vst [vmem:[#allocation31_spill] sm:$0xff] %v13501_v63  ;;  %v13504_v8 = vmul.f32 0.2, %v18036_v53  ;;  %v13520_v7 = vmul.f32 0.2, %v18042_v12  ;;  %v18048_v53 = vld [vmem:[#allocation8_spill] sm:$0xff] }
 0x5fc   :  { %18039 = vst [vmem:[#allocation348_spill] sm:$0xff] %v13507_v23  ;;  %v18046_v23 = vld [vmem:[#allocation120_spill] sm:$0xff]  ;;  %v13532_v52 = vsel %vm3597_vm10, %v17636_v14, %v18048_v53  ;;  %vm3627_vm9 = vcmp.ge.f32.partialorder %v18050_v0, 0.0  ;;  %v18051_v48 = vld [vmem:[#allocation47_spill] sm:$0xff]  ;;  %v18060_v34 = vld [vmem:[#allocation9_spill] sm:$0xff] }
 0x5fd   :  { %18037 = vst [vmem:[#allocation37_spill] sm:$0xff] %v13504_v8  ;;  %18043 = vst [vmem:[#allocation349_spill] sm:$0xff] %v13520_v7  ;;  %v18044_v8 = vld [vmem:[#allocation117_spill] sm:$0xff]  ;;  %v13526_v57 = vmul.f32 0.2, %v18046_v23  ;;  %v18052_v18 = vld [vmem:[#allocation48_spill] sm:$0xff]  ;;  %v13551_v14 = vsel %vm3598_vm11, %v17953_v27, %v18060_v34  ;;  %v13570_v27 = vsel %vm3599_vm12, %v17640_v11, %v18071_v3  ;;  %v13589_v11 = vsel %vm3600_vm13, %v17643_v44, %v18081_v6 }
 0x5fe   :  { %v13523_v63 = vmul.f32 0.2, %v18044_v8  ;;  %18049 = vst [vmem:[#allocation8_spill] sm:$0xff] %v13532_v52  ;;  %v18053_v12 = vld [vmem:[#allocation51_spill] sm:$0xff]  ;;  %v18054_v7 = vld [vmem:[#allocation121_spill] sm:$0xff]  ;;  %v18062_v53 = vld [vmem:[#allocation52_spill] sm:$0xff]  ;;  %v13608_v44 = vsel %vm3601_vm14, %v17978_v46, %v18092_v21  ;;  %v13627_v21 = vsel %vm3602_vm15, %v17647_v31, %v18103_v47 }
 0x5ff   :  { %18047 = vst [vmem:[#allocation351_spill] sm:$0xff] %v13526_v57  ;;  %v13539_v8 = vmul.f32 0.2, %v18054_v7  ;;  %v18058_v57 = vld [vmem:[#allocation125_spill] sm:$0xff]  ;;  %18061 = vst [vmem:[#allocation51_spill] sm:$0xff] %v13551_v14  ;;  %vm3631_vm10 = vcmp.ge.f32.partialorder %v18062_v53, 0.0 }
 0x600   :  { %18045 = vst [vmem:[#allocation350_spill] sm:$0xff] %v13523_v63  ;;  %v18056_v63 = vld [vmem:[#allocation124_spill] sm:$0xff]  ;;  %v13545_v35 = vmul.f32 0.2, %v18058_v57  ;;  %v18063_v52 = vld [vmem:[#allocation55_spill] sm:$0xff]  ;;  %v18064_v7 = vld [vmem:[#allocation58_spill] sm:$0xff] }
 0x601   :  { %18055 = vst [vmem:[#allocation45_spill] sm:$0xff] %v13539_v8  ;;  %v13542_v23 = vmul.f32 0.2, %v18056_v63  ;;  %v18065_v8 = vld [vmem:[#allocation232_spill] sm:$0xff]  ;;  %18072 = vst [vmem:[#allocation58_spill] sm:$0xff] %v13570_v27  ;;  %vm3635_vm11 = vcmp.ge.f32.partialorder %v17726_v30, 0.0 }
 0x602   :  { %18059 = vst [vmem:[#allocation48_spill] sm:$0xff] %v13545_v35  ;;  %v13558_v63 = vmul.f32 0.2, %v18065_v8  ;;  %v18069_v35 = vld [vmem:[#allocation233_spill] sm:$0xff]  ;;  %v18074_v14 = vld [vmem:[#allocation62_spill] sm:$0xff]  ;;  %18082 = vst [vmem:[#allocation12_spill] sm:$0xff] %v13589_v11 }
 0x603   :  { %18057 = vst [vmem:[#allocation47_spill] sm:$0xff] %v13542_v23  ;;  %v18067_v23 = vld [vmem:[#allocation129_spill] sm:$0xff]  ;;  %v13564_v43 = vmul.f32 0.2, %v18069_v35  ;;  %v18083_v3 = vld [vmem:[#allocation66_spill] sm:$0xff]  ;;  %v18084_v27 = vld [vmem:[#allocation68_spill] sm:$0xff] }
 0x604   :  { %18066 = vst [vmem:[#allocation9_spill] sm:$0xff] %v13558_v63  ;;  %v13561_v57 = vmul.f32 0.2, %v18067_v23  ;;  %v18073_v34 = vld [vmem:[#allocation61_spill] sm:$0xff]  ;;  %v18075_v63 = vld [vmem:[#allocation234_spill] sm:$0xff]  ;;  %vm3639_vm12 = vcmp.ge.f32.partialorder %v18083_v3, 0.0 }
 0x605   :  { %18070 = vst [vmem:[#allocation55_spill] sm:$0xff] %v13564_v43  ;;  %v13577_v23 = vmul.f32 0.2, %v18075_v63  ;;  %v18079_v43 = vld [vmem:[#allocation236_spill] sm:$0xff]  ;;  %18093 = vst [vmem:[#allocation243_spill] sm:$0xff] %v13608_v44  ;;  %v18094_v6 = vld [vmem:[#allocation73_spill] sm:$0xff] }
 0x606   :  { %18068 = vst [vmem:[#allocation52_spill] sm:$0xff] %v13561_v57  ;;  %v18077_v57 = vld [vmem:[#allocation235_spill] sm:$0xff]  ;;  %v13583_v8 = vmul.f32 0.2, %v18079_v43  ;;  %v18085_v63 = vld [vmem:[#allocation72_spill] sm:$0xff]  ;;  %18104 = vst [vmem:[#allocation14_spill] sm:$0xff] %v13627_v21 }
 0x607   :  { %18076 = vst [vmem:[#allocation11_spill] sm:$0xff] %v13577_v23  ;;  %v13580_v35 = vmul.f32 0.2, %v18077_v57  ;;  %v18086_v23 = vld [vmem:[#allocation237_spill] sm:$0xff]  ;;  %v18095_v11 = vld [vmem:[#allocation76_spill] sm:$0xff]  ;;  %vm3647_vm14 = vcmp.ge.f32.partialorder %v17758_v62, 0.0 }
 0x608   :  { %18080 = vst [vmem:[#allocation62_spill] sm:$0xff] %v13583_v8  ;;  %v13596_v57 = vmul.f32 0.2, %v18086_v23  ;;  %v18090_v8 = vld [vmem:[#allocation239_spill] sm:$0xff]  ;;  %v18105_v46 = vld [vmem:[#allocation82_spill] sm:$0xff]  ;;  %vm18110_vm13 = vcmp.ge.f32.partialorder %v17995_v60, 0.0 }
 0x609   :  { %18078 = vst [vmem:[#allocation61_spill] sm:$0xff] %v13580_v35  ;;  %v18088_v35 = vld [vmem:[#allocation238_spill] sm:$0xff]  ;;  %v13602_v42 = vmul.f32 0.2, %v18090_v8  ;;  %v18096_v23 = vld [vmem:[#allocation79_spill] sm:$0xff]  ;;  %v18112_v47 = vld [vmem:[#allocation17_spill] sm:$0xff] }
 0x60a   :  { %18087 = vst [vmem:[#allocation66_spill] sm:$0xff] %v13596_v57  ;;  %v13599_v43 = vmul.f32 0.2, %v18088_v35  ;;  %v18097_v57 = vld [vmem:[#allocation240_spill] sm:$0xff]  ;;  %v18106_v44 = vld [vmem:[#allocation83_spill] sm:$0xff]  ;;  %vm18113_vm15 = vcmp.ge.f32.partialorder %v17654_v59, 0.0 }
 0x60b   :  { %18091 = vst [vmem:[#allocation72_spill] sm:$0xff] %v13602_v42  ;;  %v13615_v35 = vmul.f32 0.2, %v18097_v57  ;;  %v18101_v42 = vld [vmem:[#allocation136_spill] sm:$0xff]  ;;  %v18107_v57 = vld [vmem:[#allocation86_spill] sm:$0xff]  ;;  %v13649_v21 = vsel %vm18113_vm15, %v17654_v59, %v18112_v47  ;;  %vm18123_vm15 = vcmp.ge.f32.partialorder %v17661_v55, 0.0 }
 0x60c   :  { %18089 = vst [vmem:[#allocation68_spill] sm:$0xff] %v13599_v43  ;;  %v18099_v43 = vld [vmem:[#allocation241_spill] sm:$0xff]  ;;  %v13621_v45 = vmul.f32 0.2, %v18101_v42  ;;  %18114 = vst [vmem:[#allocation83_spill] sm:$0xff] %v13649_v21  ;;  %v18115_v42 = vld [vmem:[#allocation18_spill] sm:$0xff] }
 0x60d   :  { %18098 = vst [vmem:[#allocation73_spill] sm:$0xff] %v13615_v35  ;;  %v13618_v8 = vmul.f32 0.2, %v18099_v43  ;;  %v18108_v35 = vld [vmem:[#allocation15_spill] sm:$0xff]  ;;  %v13655_v43 = vsel %vm18116_vm2, %v17657_v4, %v18115_v42  ;;  %v18122_v47 = vld [vmem:[#allocation20_spill] sm:$0xff]  ;;  %v18125_v42 = vld [vmem:[#allocation21_spill] sm:$0xff] }
 0x60e   :  { %18102 = vst [vmem:[#allocation79_spill] sm:$0xff] %v13621_v45  ;;  %v18109_v45 = vld [vmem:[#allocation245_spill] sm:$0xff]  ;;  %18117 = vst [vmem:[#allocation86_spill] sm:$0xff] %v13655_v43  ;;  %v13671_v4 = vsel %vm18123_vm15, %v17661_v55, %v18122_v47  ;;  %vm18126_vm2 = vcmp.ge.f32.partialorder %v17664_v2, 0.0  ;;  %v18133_v55 = vld [vmem:[#allocation103_spill] sm:$0xff]  ;;  %vm18142_vm15 = vcmp.ge.f32.partialorder %v17675_v24, 0.0 }
 0x60f   :  { %18100 = vst [vmem:[#allocation76_spill] sm:$0xff] %v13618_v8  ;;  %v13637_v8 = vsel %vm3603_vm0, %v17650_v22, %v18108_v35  ;;  %v13643_v31 = vsel %vm18110_vm13, %v17995_v60, %v18109_v45  ;;  %v18118_v22 = vld [vmem:[#allocation87_spill] sm:$0xff]  ;;  %18124 = vst [vmem:[#allocation15_spill] sm:$0xff] %v13671_v4  ;;  %v13677_v43 = vsel %vm18126_vm2, %v17664_v2, %v18125_v42  ;;  %v18128_v21 = vld [vmem:[#allocation249_spill] sm:$0xff]  ;;  %vm18129_vm13 = vcmp.ge.f32.partialorder %v18005_v10, 0.0 }
 0x610   :  { %18111 = vst [vmem:[#allocation82_spill] sm:$0xff] %v13643_v31  ;;  %vm3651_vm0 = vcmp.ge.f32.partialorder %v18118_v22, 0.0  ;;  %v18119_v35 = vld [vmem:[#allocation91_spill] sm:$0xff]  ;;  %18127 = vst [vmem:[#allocation245_spill] sm:$0xff] %v13677_v43  ;;  %v13683_v31 = vsel %vm18129_vm13, %v18005_v10, %v18128_v21  ;;  %v18136_v42 = vld [vmem:[#allocation24_spill] sm:$0xff]  ;;  %vm18137_vm2 = vcmp.ge.f32.partialorder %v17671_v26, 0.0 }
 0x611   :  { %v18120_v45 = vld [vmem:[#allocation95_spill] sm:$0xff]  ;;  %18130 = vst [vmem:[#allocation17_spill] sm:$0xff] %v13683_v31  ;;  %v13699_v10 = vsel %vm18137_vm2, %v17671_v26, %v18136_v42  ;;  %vm18139_vm13 = vcmp.ge.f32.partialorder %v18014_v15, 0.0  ;;  %v18141_v43 = vld [vmem:[#allocation26_spill] sm:$0xff]  ;;  %v18148_v42 = vld [vmem:[#allocation253_spill] sm:$0xff]  ;;  %vm18155_vm2 = vcmp.ge.f32.partialorder %v17685_v54, 0.0 }
 0x612   :  { %v18121_v60 = vld [vmem:[#allocation247_spill] sm:$0xff]  ;;  %v13711_v4 = vsel %vm18142_vm15, %v17675_v24, %v18141_v43  ;;  %v18151_v43 = vld [vmem:[#allocation29_spill] sm:$0xff]  ;;  %vm18152_vm15 = vcmp.ge.f32.partialorder %v17682_v37, 0.0 }
 0x613   :  { %v13665_v59 = vsel %vm3607_vm4, %v18004_v41, %v18121_v60  ;;  %v18131_v41 = vld [vmem:[#allocation98_spill] sm:$0xff]  ;;  %v18134_v47 = vld [vmem:[#allocation23_spill] sm:$0xff]  ;;  %18143 = vst [vmem:[#allocation91_spill] sm:$0xff] %v13711_v4 }
 0x614   :  { %vm3655_vm4 = vcmp.ge.f32.partialorder %v18131_v41, 0.0  ;;  %v18132_v60 = vld [vmem:[#allocation102_spill] sm:$0xff]  ;;  %v13693_v2 = vsel %vm3611_vm5, %v17668_v19, %v18134_v47  ;;  %v18138_v21 = vld [vmem:[#allocation251_spill] sm:$0xff] }
 0x615   :  { %18135 = vst [vmem:[#allocation18_spill] sm:$0xff] %v13693_v2  ;;  %v13705_v31 = vsel %vm18139_vm13, %v18014_v15, %v18138_v21  ;;  %v18144_v19 = vld [vmem:[#allocation106_spill] sm:$0xff]  ;;  %v18145_v47 = vld [vmem:[#allocation107_spill] sm:$0xff]  ;;  %vm18149_vm13 = vcmp.ge.f32.partialorder %v18023_v13, 0.0  ;;  %v13733_v21 = vsel %vm18152_vm15, %v17682_v37, %v18151_v43  ;;  %v18162_v43 = vld [vmem:[#allocation33_spill] sm:$0xff]  ;;  %vm18163_vm15 = vcmp.ge.f32.partialorder %v17689_v32, 0.0 }
 0x616   :  { %18140 = vst [vmem:[#allocation87_spill] sm:$0xff] %v13705_v31  ;;  %vm3659_vm5 = vcmp.ge.f32.partialorder %v18144_v19, 0.0  ;;  %v18146_v2 = vld [vmem:[#allocation110_spill] sm:$0xff]  ;;  %v18147_v26 = vld [vmem:[#allocation27_spill] sm:$0xff]  ;;  %v13727_v24 = vsel %vm18149_vm13, %v18023_v13, %v18148_v42  ;;  %18153 = vst [vmem:[#allocation247_spill] sm:$0xff] %v13733_v21  ;;  %vm18169_vm13 = vcmp.ge.f32.partialorder %v18033_v9, 0.0 }
 0x617   :  { %v13721_v15 = vsel %vm3615_vm6, %v17678_v29, %v18147_v26  ;;  %18150 = vst [vmem:[#allocation95_spill] sm:$0xff] %v13727_v24  ;;  %v18154_v4 = vld [vmem:[#allocation30_spill] sm:$0xff]  ;;  %v18158_v26 = vld [vmem:[#allocation115_spill] sm:$0xff]  ;;  %v18168_v21 = vld [vmem:[#allocation257_spill] sm:$0xff] }
 0x618   :  { %v13739_v31 = vsel %vm18155_vm2, %v17685_v54, %v18154_v4  ;;  %v18157_v29 = vld [vmem:[#allocation114_spill] sm:$0xff]  ;;  %v18159_v13 = vld [vmem:[#allocation119_spill] sm:$0xff]  ;;  %v13755_v54 = vsel %vm18163_vm15, %v17689_v32, %v18162_v43  ;;  %vm18166_vm2 = vcmp.ge.f32.partialorder %v17692_v61, 0.0  ;;  %v13767_v24 = vsel %vm18169_vm13, %v18033_v9, %v18168_v21  ;;  %v18178_v21 = vld [vmem:[#allocation41_spill] sm:$0xff] }
 0x619   :  { %18156 = vst [vmem:[#allocation20_spill] sm:$0xff] %v13739_v31  ;;  %vm3663_vm6 = vcmp.ge.f32.partialorder %v18157_v29, 0.0  ;;  %v18160_v42 = vld [vmem:[#allocation255_spill] sm:$0xff]  ;;  %18164 = vst [vmem:[#allocation249_spill] sm:$0xff] %v13755_v54  ;;  %v18165_v4 = vld [vmem:[#allocation34_spill] sm:$0xff]  ;;  %vm18179_vm13 = vcmp.ge.f32.partialorder %v17701_v25, 0.0 }
 0x61a   :  { %v13749_v37 = vsel %vm3619_vm7, %v18032_v58, %v18160_v42  ;;  %v13761_v31 = vsel %vm18166_vm2, %v17692_v61, %v18165_v4  ;;  %18170 = vst [vmem:[#allocation102_spill] sm:$0xff] %v13767_v24  ;;  %v18171_v58 = vld [vmem:[#allocation122_spill] sm:$0xff]  ;;  %v18172_v42 = vld [vmem:[#allocation123_spill] sm:$0xff]  ;;  %v18176_v4 = vld [vmem:[#allocation40_spill] sm:$0xff]  ;;  %vm18177_vm2 = vcmp.ge.f32.partialorder %v17699_v28, 0.0  ;;  %v13789_v24 = vsel %vm18179_vm13, %v17701_v25, %v18178_v21 }
 0x61b   :  { %18161 = vst [vmem:[#allocation21_spill] sm:$0xff] %v13749_v37  ;;  %18167 = vst [vmem:[#allocation98_spill] sm:$0xff] %v13761_v31  ;;  %vm3667_vm7 = vcmp.ge.f32.partialorder %v18171_v58, 0.0  ;;  %v18173_v37 = vld [vmem:[#allocation126_spill] sm:$0xff]  ;;  %v18174_v32 = vld [vmem:[#allocation127_spill] sm:$0xff]  ;;  %v13783_v9 = vsel %vm18177_vm2, %v17699_v28, %v18176_v4  ;;  %vm18182_vm15 = vcmp.ge.f32.partialorder %v17703_v1, 0.0 }
 0x61c   :  { %v18175_v43 = vld [vmem:[#allocation38_spill] sm:$0xff]  ;;  %18180 = vst [vmem:[#allocation103_spill] sm:$0xff] %v13789_v24  ;;  %v18181_v31 = vld [vmem:[#allocation44_spill] sm:$0xff]  ;;  %v18188_v4 = vld [vmem:[#allocation261_spill] sm:$0xff]  ;;  %vm18189_vm13 = vcmp.ge.f32.partialorder %v18051_v48, 0.0  ;;  %vm18195_vm2 = vcmp.ge.f32.partialorder %v18053_v12, 0.0 }
 0x61d   :  { %v13777_v61 = vsel %vm3623_vm8, %v17696_v38, %v18175_v43  ;;  %v13795_v54 = vsel %vm18182_vm15, %v17703_v1, %v18181_v31  ;;  %vm3671_vm8 = vcmp.ge.f32.partialorder %v17824_v33, 0.0  ;;  %v18184_v38 = vld [vmem:[#allocation131_spill] sm:$0xff]  ;;  %v18185_v43 = vld [vmem:[#allocation134_spill] sm:$0xff]  ;;  %v18186_v28 = vld [vmem:[#allocation260_spill] sm:$0xff]  ;;  %v13811_v1 = vsel %vm18189_vm13, %v18051_v48, %v18188_v4 }
 0x61e   :  { %18183 = vst [vmem:[#allocation23_spill] sm:$0xff] %v13795_v54  ;;  %v13805_v25 = vsel %vm3627_vm9, %v18050_v0, %v18186_v28  ;;  %18190 = vst [vmem:[#allocation251_spill] sm:$0xff] %v13811_v1  ;;  %v18191_v31 = vld [vmem:[#allocation262_spill] sm:$0xff]  ;;  %vm18192_vm15 = vcmp.ge.f32.partialorder %v18052_v18, 0.0  ;;  %v18194_v54 = vld [vmem:[#allocation263_spill] sm:$0xff]  ;;  %vm18209_vm13 = vcmp.ge.f32.partialorder %v18064_v7, 0.0 }
 0x61f   :  { %18187 = vst [vmem:[#allocation24_spill] sm:$0xff] %v13805_v25  ;;  %v13817_v21 = vsel %vm18192_vm15, %v18052_v18, %v18191_v31  ;;  %v13823_v24 = vsel %vm18195_vm2, %v18053_v12, %v18194_v54  ;;  %v18197_v0 = vld [vmem:[#allocation138_spill] sm:$0xff]  ;;  %v18198_v28 = vld [vmem:[#allocation139_spill] sm:$0xff]  ;;  %v18201_v4 = vld [vmem:[#allocation264_spill] sm:$0xff]  ;;  %vm18203_vm15 = vcmp.ge.f32.partialorder %v17717_v36, 0.0  ;;  %vm18206_vm2 = vcmp.ge.f32.partialorder %v18063_v52, 0.0 }
 0x620   :  { %18193 = vst [vmem:[#allocation26_spill] sm:$0xff] %v13817_v21  ;;  %18196 = vst [vmem:[#allocation106_spill] sm:$0xff] %v13823_v24  ;;  %vm3675_vm9 = vcmp.ge.f32.partialorder %v18197_v0, 0.0  ;;  %v18199_v25 = vld [vmem:[#allocation142_spill] sm:$0xff]  ;;  %v18200_v48 = vld [vmem:[#allocation143_spill] sm:$0xff]  ;;  %v13833_v18 = vsel %vm3631_vm10, %v18062_v53, %v18201_v4 }
 0x621   :  { %v18202_v31 = vld [vmem:[#allocation54_spill] sm:$0xff]  ;;  %v18205_v54 = vld [vmem:[#allocation203_spill] sm:$0xff]  ;;  %v18208_v21 = vld [vmem:[#allocation265_spill] sm:$0xff] }
 0x622   :  { %v13839_v12 = vsel %vm18203_vm15, %v17717_v36, %v18202_v31  ;;  %v13845_v24 = vsel %vm18206_vm2, %v18063_v52, %v18205_v54  ;;  %v13851_v1 = vsel %vm18209_vm13, %v18064_v7, %v18208_v21  ;;  %v18211_v53 = vld [vmem:[#allocation146_spill] sm:$0xff]  ;;  %v18213_v36 = vld [vmem:[#allocation151_spill] sm:$0xff]  ;;  %vm18216_vm2 = vcmp.ge.f32.partialorder %v18073_v34, 0.0 }
 0x623   :  { %18204 = vst [vmem:[#allocation107_spill] sm:$0xff] %v13839_v12  ;;  %18207 = vst [vmem:[#allocation110_spill] sm:$0xff] %v13845_v24  ;;  %vm3679_vm10 = vcmp.ge.f32.partialorder %v18211_v53, 0.0  ;;  %v18212_v4 = vld [vmem:[#allocation150_spill] sm:$0xff]  ;;  %v18214_v31 = vld [vmem:[#allocation59_spill] sm:$0xff]  ;;  %vm18219_vm13 = vcmp.ge.f32.partialorder %v18074_v14, 0.0 }
 0x624   :  { %18210 = vst [vmem:[#allocation27_spill] sm:$0xff] %v13851_v1  ;;  %v13861_v52 = vsel %vm3635_vm11, %v17726_v30, %v18214_v31  ;;  %v18215_v54 = vld [vmem:[#allocation266_spill] sm:$0xff]  ;;  %v18218_v21 = vld [vmem:[#allocation267_spill] sm:$0xff]  ;;  %v18221_v24 = vld [vmem:[#allocation65_spill] sm:$0xff]  ;;  %vm18222_vm15 = vcmp.ge.f32.partialorder %v17734_v40, 0.0  ;;  %vm18243_vm11 = vcmp.ge.f32.partialorder %v18094_v6, 0.0 }
 0x625   :  { %v13867_v7 = vsel %vm18216_vm2, %v18073_v34, %v18215_v54  ;;  %v13873_v1 = vsel %vm18219_vm13, %v18074_v14, %v18218_v21  ;;  %v13879_v12 = vsel %vm18222_vm15, %v17734_v40, %v18221_v24  ;;  %v18224_v30 = vld [vmem:[#allocation155_spill] sm:$0xff]  ;;  %v18225_v31 = vld [vmem:[#allocation158_spill] sm:$0xff]  ;;  %v18227_v54 = vld [vmem:[#allocation268_spill] sm:$0xff]  ;;  %vm18230_vm13 = vcmp.ge.f32.partialorder %v18084_v27, 0.0 }
 0x626   :  { %18217 = vst [vmem:[#allocation253_spill] sm:$0xff] %v13867_v7  ;;  %18220 = vst [vmem:[#allocation29_spill] sm:$0xff] %v13873_v1  ;;  %v18226_v34 = vld [vmem:[#allocation159_spill] sm:$0xff]  ;;  %v13889_v14 = vsel %vm3639_vm12, %v18083_v3, %v18227_v54  ;;  %v18229_v21 = vld [vmem:[#allocation269_spill] sm:$0xff]  ;;  %vm18233_vm15 = vcmp.ge.f32.partialorder %v17742_v17, 0.0  ;;  %vm18236_vm2 = vcmp.ge.f32.partialorder %v18085_v63, 0.0 }
 0x627   :  { %18223 = vst [vmem:[#allocation30_spill] sm:$0xff] %v13879_v12  ;;  %18228 = vst [vmem:[#allocation114_spill] sm:$0xff] %v13889_v14  ;;  %v13895_v40 = vsel %vm18230_vm13, %v18084_v27, %v18229_v21  ;;  %v18232_v24 = vld [vmem:[#allocation69_spill] sm:$0xff]  ;;  %v18235_v1 = vld [vmem:[#allocation270_spill] sm:$0xff]  ;;  %vm18252_vm13 = vcmp.ge.f32.partialorder %v18096_v23, 0.0 }
 0x628   :  { %18231 = vst [vmem:[#allocation115_spill] sm:$0xff] %v13895_v40  ;;  %v13901_v12 = vsel %vm18233_vm15, %v17742_v17, %v18232_v24  ;;  %v13907_v7 = vsel %vm18236_vm2, %v18085_v63, %v18235_v1  ;;  %v18238_v3 = vld [vmem:[#allocation162_spill] sm:$0xff]  ;;  %v18239_v54 = vld [vmem:[#allocation163_spill] sm:$0xff]  ;;  %vm18246_vm15 = vcmp.ge.f32.partialorder %v17750_v56, 0.0  ;;  %v18248_v1 = vld [vmem:[#allocation272_spill] sm:$0xff]  ;;  %vm18249_vm2 = vcmp.ge.f32.partialorder %v18095_v11, 0.0 }
 0x629   :  { %18234 = vst [vmem:[#allocation119_spill] sm:$0xff] %v13901_v12  ;;  %18237 = vst [vmem:[#allocation255_spill] sm:$0xff] %v13907_v7  ;;  %vm3687_vm12 = vcmp.ge.f32.partialorder %v18238_v3, 0.0  ;;  %v18240_v14 = vld [vmem:[#allocation166_spill] sm:$0xff]  ;;  %v18241_v27 = vld [vmem:[#allocation167_spill] sm:$0xff]  ;;  %v13929_v7 = vsel %vm18249_vm2, %v18095_v11, %v18248_v1  ;;  %vm18261_vm2 = vcmp.ge.f32.partialorder %v18105_v46, 0.0 }
 0x62a   :  { %v18242_v21 = vld [vmem:[#allocation271_spill] sm:$0xff]  ;;  %18250 = vst [vmem:[#allocation257_spill] sm:$0xff] %v13929_v7  ;;  %v18251_v12 = vld [vmem:[#allocation273_spill] sm:$0xff]  ;;  %v18260_v1 = vld [vmem:[#allocation274_spill] sm:$0xff] }
 0x62b   :  { %v13917_v17 = vsel %vm18243_vm11, %v18094_v6, %v18242_v21  ;;  %v18245_v24 = vld [vmem:[#allocation75_spill] sm:$0xff]  ;;  %v13935_v40 = vsel %vm18252_vm13, %v18096_v23, %v18251_v12  ;;  %v18254_v6 = vld [vmem:[#allocation170_spill] sm:$0xff]  ;;  %v13951_v23 = vsel %vm18261_vm2, %v18105_v46, %v18260_v1  ;;  %vm18264_vm13 = vcmp.ge.f32.partialorder %v18106_v44, 0.0  ;;  %v18266_v7 = vld [vmem:[#allocation276_spill] sm:$0xff] }
 0x62c   :  { %18244 = vst [vmem:[#allocation33_spill] sm:$0xff] %v13917_v17  ;;  %v13923_v63 = vsel %vm18246_vm15, %v17750_v56, %v18245_v24  ;;  %18253 = vst [vmem:[#allocation122_spill] sm:$0xff] %v13935_v40  ;;  %vm3691_vm11 = vcmp.ge.f32.partialorder %v18254_v6, 0.0  ;;  %v18255_v21 = vld [vmem:[#allocation171_spill] sm:$0xff]  ;;  %v18256_v17 = vld [vmem:[#allocation174_spill] sm:$0xff]  ;;  %vm18267_vm15 = vcmp.ge.f32.partialorder %v18107_v57, 0.0 }
 0x62d   :  { %18247 = vst [vmem:[#allocation34_spill] sm:$0xff] %v13923_v63  ;;  %v18257_v56 = vld [vmem:[#allocation175_spill] sm:$0xff]  ;;  %v18258_v24 = vld [vmem:[#allocation80_spill] sm:$0xff]  ;;  %18262 = vst [vmem:[#allocation126_spill] sm:$0xff] %v13951_v23  ;;  %v13963_v63 = vsel %vm18267_vm15, %v18107_v57, %v18266_v7  ;;  %vm18279_vm15 = vcmp.ge.f32.partialorder %v17774_v16, 0.0  ;;  %vm18282_vm2 = vcmp.ge.f32.partialorder %v18120_v45, 0.0 }
 0x62e   :  { %v13945_v11 = vsel %vm3647_vm14, %v17758_v62, %v18258_v24  ;;  %v18263_v12 = vld [vmem:[#allocation275_spill] sm:$0xff]  ;;  %18268 = vst [vmem:[#allocation38_spill] sm:$0xff] %v13963_v63  ;;  %v18269_v62 = vld [vmem:[#allocation178_spill] sm:$0xff]  ;;  %v18273_v1 = vld [vmem:[#allocation277_spill] sm:$0xff] }
 0x62f   :  { %18259 = vst [vmem:[#allocation123_spill] sm:$0xff] %v13945_v11  ;;  %v13957_v40 = vsel %vm18264_vm13, %v18106_v44, %v18263_v12  ;;  %vm3695_vm14 = vcmp.ge.f32.partialorder %v18269_v62, 0.0  ;;  %v18270_v24 = vld [vmem:[#allocation179_spill] sm:$0xff]  ;;  %v18271_v11 = vld [vmem:[#allocation182_spill] sm:$0xff]  ;;  %v13973_v44 = vsel %vm3651_vm0, %v18118_v22, %v18273_v1  ;;  %vm18276_vm13 = vcmp.ge.f32.partialorder %v18119_v35, 0.0 }
 0x630   :  { %18265 = vst [vmem:[#allocation127_spill] sm:$0xff] %v13957_v40  ;;  %v18272_v46 = vld [vmem:[#allocation183_spill] sm:$0xff]  ;;  %18274 = vst [vmem:[#allocation40_spill] sm:$0xff] %v13973_v44  ;;  %v18275_v12 = vld [vmem:[#allocation278_spill] sm:$0xff] }
 0x631   :  { %v13979_v57 = vsel %vm18276_vm13, %v18119_v35, %v18275_v12  ;;  %v18278_v7 = vld [vmem:[#allocation94_spill] sm:$0xff]  ;;  %v18281_v40 = vld [vmem:[#allocation67_spill] sm:$0xff]  ;;  %vm18297_vm13 = vcmp.ge.f32.partialorder %v18133_v55, 0.0 }
 0x632   :  { %18277 = vst [vmem:[#allocation41_spill] sm:$0xff] %v13979_v57  ;;  %v13985_v63 = vsel %vm18279_vm15, %v17774_v16, %v18278_v7  ;;  %v13991_v23 = vsel %vm18282_vm2, %v18120_v45, %v18281_v40  ;;  %v18284_v22 = vld [vmem:[#allocation186_spill] sm:$0xff]  ;;  %v18285_v1 = vld [vmem:[#allocation187_spill] sm:$0xff]  ;;  %vm18291_vm15 = vcmp.ge.f32.partialorder %v17783_v51, 0.0  ;;  %v18293_v40 = vld [vmem:[#allocation280_spill] sm:$0xff]  ;;  %vm18294_vm2 = vcmp.ge.f32.partialorder %v18132_v60, 0.0 }
 0x633   :  { %18280 = vst [vmem:[#allocation44_spill] sm:$0xff] %v13985_v63  ;;  %18283 = vst [vmem:[#allocation131_spill] sm:$0xff] %v13991_v23  ;;  %vm3699_vm0 = vcmp.ge.f32.partialorder %v18284_v22, 0.0  ;;  %v18286_v44 = vld [vmem:[#allocation190_spill] sm:$0xff]  ;;  %v18287_v35 = vld [vmem:[#allocation191_spill] sm:$0xff]  ;;  %v14013_v23 = vsel %vm18294_vm2, %v18132_v60, %v18293_v40  ;;  %vm18306_vm2 = vcmp.ge.f32.partialorder %v18145_v47, 0.0 }
 0x634   :  { %v18288_v12 = vld [vmem:[#allocation279_spill] sm:$0xff]  ;;  %18295 = vst [vmem:[#allocation261_spill] sm:$0xff] %v14013_v23  ;;  %v18296_v63 = vld [vmem:[#allocation281_spill] sm:$0xff] }
 0x635   :  { %v14001_v16 = vsel %vm3655_vm4, %v18131_v41, %v18288_v12  ;;  %v18290_v7 = vld [vmem:[#allocation99_spill] sm:$0xff]  ;;  %v14019_v57 = vsel %vm18297_vm13, %v18133_v55, %v18296_v63  ;;  %v18299_v41 = vld [vmem:[#allocation194_spill] sm:$0xff]  ;;  %v18308_v63 = vld [vmem:[#allocation284_spill] sm:$0xff]  ;;  %vm18309_vm13 = vcmp.ge.f32.partialorder %v18146_v2, 0.0 }
 0x636   :  { %18289 = vst [vmem:[#allocation134_spill] sm:$0xff] %v14001_v16  ;;  %v14007_v45 = vsel %vm18291_vm15, %v17783_v51, %v18290_v7  ;;  %18298 = vst [vmem:[#allocation262_spill] sm:$0xff] %v14019_v57  ;;  %vm3703_vm4 = vcmp.ge.f32.partialorder %v18299_v41, 0.0  ;;  %v18300_v12 = vld [vmem:[#allocation198_spill] sm:$0xff]  ;;  %v18301_v16 = vld [vmem:[#allocation199_spill] sm:$0xff]  ;;  %v14041_v57 = vsel %vm18309_vm13, %v18146_v2, %v18308_v63  ;;  %vm18312_vm15 = vcmp.ge.f32.partialorder %v17799_v39, 0.0 }
 0x637   :  { %18292 = vst [vmem:[#allocation260_spill] sm:$0xff] %v14007_v45  ;;  %v18302_v51 = vld [vmem:[#allocation206_spill] sm:$0xff]  ;;  %v18305_v40 = vld [vmem:[#allocation283_spill] sm:$0xff]  ;;  %18310 = vst [vmem:[#allocation139_spill] sm:$0xff] %v14041_v57  ;;  %vm18321_vm13 = vcmp.ge.f32.partialorder %v18158_v26, 0.0 }
 0x638   :  { %v18303_v7 = vld [vmem:[#allocation282_spill] sm:$0xff]  ;;  %v14035_v55 = vsel %vm18306_vm2, %v18145_v47, %v18305_v40  ;;  %v18311_v23 = vld [vmem:[#allocation111_spill] sm:$0xff]  ;;  %v18318_v40 = vld [vmem:[#allocation132_spill] sm:$0xff]  ;;  %vm18327_vm2 = vcmp.ge.f32.partialorder %v18159_v13, 0.0 }
 0x639   :  { %v14029_v60 = vsel %vm3659_vm5, %v18144_v19, %v18303_v7  ;;  %18307 = vst [vmem:[#allocation138_spill] sm:$0xff] %v14035_v55  ;;  %v14047_v45 = vsel %vm18312_vm15, %v17799_v39, %v18311_v23  ;;  %v18314_v19 = vld [vmem:[#allocation207_spill] sm:$0xff]  ;;  %v18317_v47 = vld [vmem:[#allocation42_spill] sm:$0xff]  ;;  %v14057_v2 = vsel %vm3663_vm6, %v18157_v29, %v18318_v40  ;;  %v18320_v63 = vld [vmem:[#allocation285_spill] sm:$0xff]  ;;  %vm18324_vm15 = vcmp.ge.f32.partialorder %v17808_v49, 0.0 }
 0x63a   :  { %18304 = vst [vmem:[#allocation263_spill] sm:$0xff] %v14029_v60  ;;  %18313 = vst [vmem:[#allocation142_spill] sm:$0xff] %v14047_v45  ;;  %vm3707_vm5 = vcmp.ge.f32.partialorder %v18314_v19, 0.0  ;;  %v18315_v7 = vld [vmem:[#allocation35_spill] sm:$0xff]  ;;  %v18316_v60 = vld [vmem:[#allocation36_spill] sm:$0xff]  ;;  %v14063_v39 = vsel %vm18321_vm13, %v18158_v26, %v18320_v63  ;;  %vm18342_vm13 = vcmp.ge.f32.partialorder %v18174_v32, 0.0 }
 0x63b   :  { %18319 = vst [vmem:[#allocation143_spill] sm:$0xff] %v14057_v2  ;;  %18322 = vst [vmem:[#allocation264_spill] sm:$0xff] %v14063_v39  ;;  %v18323_v23 = vld [vmem:[#allocation118_spill] sm:$0xff]  ;;  %v18329_v29 = vld [vmem:[#allocation43_spill] sm:$0xff] }
 0x63c   :  { %v14069_v45 = vsel %vm18324_vm15, %v17808_v49, %v18323_v23  ;;  %v18326_v57 = vld [vmem:[#allocation286_spill] sm:$0xff]  ;;  %vm3711_vm6 = vcmp.ge.f32.partialorder %v18329_v29, 0.0  ;;  %v18330_v40 = vld [vmem:[#allocation49_spill] sm:$0xff]  ;;  %v18332_v26 = vld [vmem:[#allocation56_spill] sm:$0xff]  ;;  %vm18336_vm15 = vcmp.ge.f32.partialorder %v18172_v42, 0.0 }
 0x63d   :  { %18325 = vst [vmem:[#allocation54_spill] sm:$0xff] %v14069_v45  ;;  %v14075_v55 = vsel %vm18327_vm2, %v18159_v13, %v18326_v57  ;;  %v18331_v2 = vld [vmem:[#allocation50_spill] sm:$0xff]  ;;  %v18333_v63 = vld [vmem:[#allocation287_spill] sm:$0xff]  ;;  %v18335_v23 = vld [vmem:[#allocation288_spill] sm:$0xff]  ;;  %vm18339_vm2 = vcmp.ge.f32.partialorder %v18173_v37, 0.0 }
 0x63e   :  { %18328 = vst [vmem:[#allocation203_spill] sm:$0xff] %v14075_v55  ;;  %v14085_v49 = vsel %vm3667_vm7, %v18171_v58, %v18333_v63  ;;  %v14091_v13 = vsel %vm18336_vm15, %v18172_v42, %v18335_v23  ;;  %v18338_v57 = vld [vmem:[#allocation289_spill] sm:$0xff]  ;;  %v18341_v45 = vld [vmem:[#allocation290_spill] sm:$0xff]  ;;  %v18345_v63 = vld [vmem:[#allocation63_spill] sm:$0xff]  ;;  %vm18357_vm15 = vcmp.ge.f32.partialorder %v17833_v5, 0.0 }
 0x63f   :  { %18334 = vst [vmem:[#allocation265_spill] sm:$0xff] %v14085_v49  ;;  %18337 = vst [vmem:[#allocation146_spill] sm:$0xff] %v14091_v13  ;;  %v14097_v55 = vsel %vm18339_vm2, %v18173_v37, %v18338_v57  ;;  %v14103_v39 = vsel %vm18342_vm13, %v18174_v32, %v18341_v45  ;;  %v18344_v58 = vld [vmem:[#allocation57_spill] sm:$0xff]  ;;  %v18346_v49 = vld [vmem:[#allocation64_spill] sm:$0xff]  ;;  %vm18351_vm2 = vcmp.ge.f32.partialorder %v18184_v38, 0.0  ;;  %vm18354_vm13 = vcmp.ge.f32.partialorder %v18185_v43, 0.0 }
 0x640   :  { %18340 = vst [vmem:[#allocation150_spill] sm:$0xff] %v14097_v55  ;;  %18343 = vst [vmem:[#allocation151_spill] sm:$0xff] %v14103_v39  ;;  %vm3715_vm7 = vcmp.ge.f32.partialorder %v18344_v58, 0.0  ;;  %v18347_v42 = vld [vmem:[#allocation70_spill] sm:$0xff]  ;;  %v18350_v57 = vld [vmem:[#allocation189_spill] sm:$0xff] }
 0x641   :  { %v18348_v23 = vld [vmem:[#allocation130_spill] sm:$0xff]  ;;  %v14119_v32 = vsel %vm18351_vm2, %v18184_v38, %v18350_v57  ;;  %v18353_v45 = vld [vmem:[#allocation291_spill] sm:$0xff]  ;;  %v18362_v38 = vld [vmem:[#allocation81_spill] sm:$0xff]  ;;  %vm18372_vm2 = vcmp.ge.f32.partialorder %v18200_v48, 0.0 }
 0x642   :  { %v14113_v37 = vsel %vm3671_vm8, %v17824_v33, %v18348_v23  ;;  %18352 = vst [vmem:[#allocation266_spill] sm:$0xff] %v14119_v32  ;;  %v14125_v39 = vsel %vm18354_vm13, %v18185_v43, %v18353_v45  ;;  %v18356_v55 = vld [vmem:[#allocation135_spill] sm:$0xff]  ;;  %v18360_v23 = vld [vmem:[#allocation77_spill] sm:$0xff]  ;;  %v18363_v57 = vld [vmem:[#allocation292_spill] sm:$0xff]  ;;  %vm18366_vm13 = vcmp.ge.f32.partialorder %v18198_v28, 0.0 }
 0x643   :  { %18349 = vst [vmem:[#allocation59_spill] sm:$0xff] %v14113_v37  ;;  %18355 = vst [vmem:[#allocation267_spill] sm:$0xff] %v14125_v39  ;;  %v14131_v13 = vsel %vm18357_vm15, %v17833_v5, %v18356_v55  ;;  %v18359_v33 = vld [vmem:[#allocation71_spill] sm:$0xff]  ;;  %v18361_v37 = vld [vmem:[#allocation78_spill] sm:$0xff]  ;;  %v14141_v43 = vsel %vm3675_vm9, %v18197_v0, %v18363_v57  ;;  %vm18369_vm15 = vcmp.ge.f32.partialorder %v18199_v25, 0.0  ;;  %vm18394_vm9 = vcmp.ge.f32.partialorder %v17858_v20, 0.0 }
 0x644   :  { %18358 = vst [vmem:[#allocation65_spill] sm:$0xff] %v14131_v13  ;;  %vm3719_vm8 = vcmp.ge.f32.partialorder %v18359_v33, 0.0  ;;  %18364 = vst [vmem:[#allocation155_spill] sm:$0xff] %v14141_v43  ;;  %v18365_v45 = vld [vmem:[#allocation293_spill] sm:$0xff]  ;;  %v18368_v55 = vld [vmem:[#allocation294_spill] sm:$0xff] }
 0x645   :  { %v14147_v5 = vsel %vm18366_vm13, %v18198_v28, %v18365_v45  ;;  %v14153_v13 = vsel %vm18369_vm15, %v18199_v25, %v18368_v55  ;;  %v18371_v39 = vld [vmem:[#allocation295_spill] sm:$0xff]  ;;  %v18374_v0 = vld [vmem:[#allocation84_spill] sm:$0xff]  ;;  %v18375_v57 = vld [vmem:[#allocation85_spill] sm:$0xff]  ;;  %vm18381_vm15 = vcmp.ge.f32.partialorder %v17849_v50, 0.0  ;;  %vm18387_vm13 = vcmp.ge.f32.partialorder %v18213_v36, 0.0 }
 0x646   :  { %18367 = vst [vmem:[#allocation158_spill] sm:$0xff] %v14147_v5  ;;  %18370 = vst [vmem:[#allocation159_spill] sm:$0xff] %v14153_v13  ;;  %v14159_v32 = vsel %vm18372_vm2, %v18200_v48, %v18371_v39  ;;  %v18376_v43 = vld [vmem:[#allocation88_spill] sm:$0xff]  ;;  %v18377_v28 = vld [vmem:[#allocation89_spill] sm:$0xff]  ;;  %vm18384_vm2 = vcmp.ge.f32.partialorder %v18212_v4, 0.0 }
 0x647   :  { %18373 = vst [vmem:[#allocation268_spill] sm:$0xff] %v14159_v32  ;;  %v18378_v45 = vld [vmem:[#allocation296_spill] sm:$0xff]  ;;  %v18380_v55 = vld [vmem:[#allocation147_spill] sm:$0xff]  ;;  %v18386_v13 = vld [vmem:[#allocation297_spill] sm:$0xff] }
 0x648   :  { %v14169_v25 = vsel %vm3679_vm10, %v18211_v53, %v18378_v45  ;;  %v14175_v48 = vsel %vm18381_vm15, %v17849_v50, %v18380_v55  ;;  %v18383_v39 = vld [vmem:[#allocation196_spill] sm:$0xff]  ;;  %v14187_v5 = vsel %vm18387_vm13, %v18213_v36, %v18386_v13  ;;  %v18390_v45 = vld [vmem:[#allocation93_spill] sm:$0xff]  ;;  %v18393_v55 = vld [vmem:[#allocation154_spill] sm:$0xff]  ;;  %vm18400_vm13 = vcmp.ge.f32.partialorder %v18225_v31, 0.0 }
 0x649   :  { %18379 = vst [vmem:[#allocation269_spill] sm:$0xff] %v14169_v25  ;;  %18382 = vst [vmem:[#allocation69_spill] sm:$0xff] %v14175_v48  ;;  %v14181_v32 = vsel %vm18384_vm2, %v18212_v4, %v18383_v39  ;;  %v18389_v53 = vld [vmem:[#allocation92_spill] sm:$0xff]  ;;  %v18392_v50 = vld [vmem:[#allocation97_spill] sm:$0xff]  ;;  %v14197_v4 = vsel %vm18394_vm9, %v17858_v20, %v18393_v55  ;;  %vm18397_vm2 = vcmp.ge.f32.partialorder %v18224_v30, 0.0  ;;  %vm18403_vm15 = vcmp.ge.f32.partialorder %v18226_v34, 0.0 }
 0x64a   :  { %18385 = vst [vmem:[#allocation270_spill] sm:$0xff] %v14181_v32  ;;  %18388 = vst [vmem:[#allocation162_spill] sm:$0xff] %v14187_v5  ;;  %vm3727_vm10 = vcmp.ge.f32.partialorder %v18389_v53, 0.0  ;;  %v18391_v25 = vld [vmem:[#allocation96_spill] sm:$0xff]  ;;  %v18396_v39 = vld [vmem:[#allocation298_spill] sm:$0xff] }
 0x64b   :  { %18395 = vst [vmem:[#allocation163_spill] sm:$0xff] %v14197_v4  ;;  %v14203_v36 = vsel %vm18397_vm2, %v18224_v30, %v18396_v39  ;;  %v18399_v13 = vld [vmem:[#allocation299_spill] sm:$0xff]  ;;  %v18402_v32 = vld [vmem:[#allocation300_spill] sm:$0xff]  ;;  %v18406_v55 = vld [vmem:[#allocation101_spill] sm:$0xff]  ;;  %vm18418_vm2 = vcmp.ge.f32.partialorder %v18241_v27, 0.0 }
 0x64c   :  { %18398 = vst [vmem:[#allocation166_spill] sm:$0xff] %v14203_v36  ;;  %v14209_v5 = vsel %vm18400_vm13, %v18225_v31, %v18399_v13  ;;  %v14215_v48 = vsel %vm18403_vm15, %v18226_v34, %v18402_v32  ;;  %v18405_v20 = vld [vmem:[#allocation100_spill] sm:$0xff]  ;;  %v18408_v30 = vld [vmem:[#allocation105_spill] sm:$0xff]  ;;  %v18411_v13 = vld [vmem:[#allocation302_spill] sm:$0xff]  ;;  %vm18412_vm13 = vcmp.ge.f32.partialorder %v18239_v54, 0.0  ;;  %vm18415_vm15 = vcmp.ge.f32.partialorder %v18240_v14, 0.0 }
 0x64d   :  { %18401 = vst [vmem:[#allocation167_spill] sm:$0xff] %v14209_v5  ;;  %18404 = vst [vmem:[#allocation271_spill] sm:$0xff] %v14215_v48  ;;  %vm3731_vm9 = vcmp.ge.f32.partialorder %v18405_v20, 0.0  ;;  %v18407_v4 = vld [vmem:[#allocation104_spill] sm:$0xff]  ;;  %v18409_v39 = vld [vmem:[#allocation301_spill] sm:$0xff]  ;;  %v14231_v34 = vsel %vm18412_vm13, %v18239_v54, %v18411_v13  ;;  %vm18433_vm13 = vcmp.ge.f32.partialorder %v18257_v56, 0.0 }
 0x64e   :  { %v14225_v31 = vsel %vm3687_vm12, %v18238_v3, %v18409_v39  ;;  %18413 = vst [vmem:[#allocation272_spill] sm:$0xff] %v14231_v34  ;;  %v18414_v32 = vld [vmem:[#allocation303_spill] sm:$0xff]  ;;  %v18420_v3 = vld [vmem:[#allocation108_spill] sm:$0xff]  ;;  %v18423_v54 = vld [vmem:[#allocation226_spill] sm:$0xff] }
 0x64f   :  { %18410 = vst [vmem:[#allocation75_spill] sm:$0xff] %v14225_v31  ;;  %v14237_v48 = vsel %vm18415_vm15, %v18240_v14, %v18414_v32  ;;  %v18417_v5 = vld [vmem:[#allocation219_spill] sm:$0xff]  ;;  %vm3735_vm12 = vcmp.ge.f32.partialorder %v18420_v3, 0.0  ;;  %v18421_v39 = vld [vmem:[#allocation224_spill] sm:$0xff]  ;;  %v18422_v31 = vld [vmem:[#allocation225_spill] sm:$0xff]  ;;  %vm18427_vm15 = vcmp.ge.f32.partialorder %v18255_v21, 0.0 }
 0x650   :  { %18416 = vst [vmem:[#allocation273_spill] sm:$0xff] %v14237_v48  ;;  %v14243_v36 = vsel %vm18418_vm2, %v18241_v27, %v18417_v5  ;;  %v18424_v13 = vld [vmem:[#allocation304_spill] sm:$0xff]  ;;  %v18426_v32 = vld [vmem:[#allocation305_spill] sm:$0xff]  ;;  %v18429_v5 = vld [vmem:[#allocation306_spill] sm:$0xff]  ;;  %vm18430_vm2 = vcmp.ge.f32.partialorder %v18256_v17, 0.0 }
 0x651   :  { %18419 = vst [vmem:[#allocation170_spill] sm:$0xff] %v14243_v36  ;;  %v14253_v14 = vsel %vm3691_vm11, %v18254_v6, %v18424_v13  ;;  %v14259_v27 = vsel %vm18427_vm15, %v18255_v21, %v18426_v32  ;;  %v14265_v36 = vsel %vm18430_vm2, %v18256_v17, %v18429_v5  ;;  %v18432_v48 = vld [vmem:[#allocation307_spill] sm:$0xff]  ;;  %v18436_v13 = vld [vmem:[#allocation228_spill] sm:$0xff]  ;;  %v18438_v21 = vld [vmem:[#allocation230_spill] sm:$0xff]  ;;  %vm18442_vm2 = vcmp.ge.f32.partialorder %v18270_v24, 0.0 }
 0x652   :  { %18425 = vst [vmem:[#allocation171_spill] sm:$0xff] %v14253_v14  ;;  %18428 = vst [vmem:[#allocation174_spill] sm:$0xff] %v14259_v27  ;;  %v14271_v34 = vsel %vm18433_vm13, %v18257_v56, %v18432_v48  ;;  %v18435_v6 = vld [vmem:[#allocation227_spill] sm:$0xff]  ;;  %v18437_v14 = vld [vmem:[#allocation229_spill] sm:$0xff]  ;;  %vm18445_vm13 = vcmp.ge.f32.partialorder %v18271_v11, 0.0  ;;  %vm18448_vm15 = vcmp.ge.f32.partialorder %v18272_v46, 0.0 }
 0x653   :  { %18431 = vst [vmem:[#allocation175_spill] sm:$0xff] %v14265_v36  ;;  %18434 = vst [vmem:[#allocation80_spill] sm:$0xff] %v14271_v34  ;;  %vm3739_vm11 = vcmp.ge.f32.partialorder %v18435_v6, 0.0  ;;  %v18439_v32 = vld [vmem:[#allocation308_spill] sm:$0xff]  ;;  %v18441_v5 = vld [vmem:[#allocation309_spill] sm:$0xff] }
 0x654   :  { %v14281_v17 = vsel %vm3695_vm14, %v18269_v62, %v18439_v32  ;;  %v14287_v56 = vsel %vm18442_vm2, %v18270_v24, %v18441_v5  ;;  %v18444_v48 = vld [vmem:[#allocation310_spill] sm:$0xff]  ;;  %v18447_v36 = vld [vmem:[#allocation311_spill] sm:$0xff]  ;;  %v18451_v32 = vld [vmem:[#allocation109_spill] sm:$0xff]  ;;  %vm18463_vm2 = vcmp.ge.f32.partialorder %v18287_v35, 0.0 }
 0x655   :  { %18440 = vst [vmem:[#allocation274_spill] sm:$0xff] %v14281_v17  ;;  %18443 = vst [vmem:[#allocation275_spill] sm:$0xff] %v14287_v56  ;;  %v14293_v34 = vsel %vm18445_vm13, %v18271_v11, %v18444_v48  ;;  %v14299_v27 = vsel %vm18448_vm15, %v18272_v46, %v18447_v36  ;;  %v18450_v62 = vld [vmem:[#allocation231_spill] sm:$0xff]  ;;  %v18452_v17 = vld [vmem:[#allocation112_spill] sm:$0xff]  ;;  %vm18457_vm13 = vcmp.ge.f32.partialorder %v18285_v1, 0.0  ;;  %vm18460_vm15 = vcmp.ge.f32.partialorder %v18286_v44, 0.0 }
 0x656   :  { %18446 = vst [vmem:[#allocation276_spill] sm:$0xff] %v14293_v34  ;;  %18449 = vst [vmem:[#allocation178_spill] sm:$0xff] %v14299_v27  ;;  %vm3743_vm14 = vcmp.ge.f32.partialorder %v18450_v62, 0.0  ;;  %v18453_v24 = vld [vmem:[#allocation113_spill] sm:$0xff]  ;;  %v18454_v5 = vld [vmem:[#allocation222_spill] sm:$0xff] }
 0x657   :  { %v14309_v11 = vsel %vm3699_vm0, %v18284_v22, %v18454_v5  ;;  %v18456_v48 = vld [vmem:[#allocation312_spill] sm:$0xff]  ;;  %v18459_v36 = vld [vmem:[#allocation313_spill] sm:$0xff]  ;;  %v18462_v34 = vld [vmem:[#allocation314_spill] sm:$0xff] }
 0x658   :  { %18455 = vst [vmem:[#allocation179_spill] sm:$0xff] %v14309_v11  ;;  %v14315_v46 = vsel %vm18457_vm13, %v18285_v1, %v18456_v48  ;;  %v14321_v27 = vsel %vm18460_vm15, %v18286_v44, %v18459_v36  ;;  %v14327_v56 = vsel %vm18463_vm2, %v18287_v35, %v18462_v34  ;;  %v18465_v22 = vld [vmem:[#allocation116_spill] sm:$0xff]  ;;  %v18466_v5 = vld [vmem:[#allocation117_spill] sm:$0xff]  ;;  %v18469_v48 = vld [vmem:[#allocation315_spill] sm:$0xff]  ;;  %vm18472_vm15 = vcmp.ge.f32.partialorder %v18300_v12, 0.0 }
 0x659   :  { %18458 = vst [vmem:[#allocation182_spill] sm:$0xff] %v14315_v46  ;;  %18461 = vst [vmem:[#allocation183_spill] sm:$0xff] %v14321_v27  ;;  %vm3747_vm0 = vcmp.ge.f32.partialorder %v18465_v22, 0.0  ;;  %v18467_v11 = vld [vmem:[#allocation120_spill] sm:$0xff]  ;;  %v18468_v1 = vld [vmem:[#allocation121_spill] sm:$0xff]  ;;  %v14337_v44 = vsel %vm3703_vm4, %v18299_v41, %v18469_v48  ;;  %vm18475_vm2 = vcmp.ge.f32.partialorder %v18301_v16, 0.0 }
 0x65a   :  { %18464 = vst [vmem:[#allocation277_spill] sm:$0xff] %v14327_v56  ;;  %18470 = vst [vmem:[#allocation278_spill] sm:$0xff] %v14337_v44  ;;  %v18471_v36 = vld [vmem:[#allocation316_spill] sm:$0xff]  ;;  %v18474_v34 = vld [vmem:[#allocation317_spill] sm:$0xff]  ;;  %vm18478_vm13 = vcmp.ge.f32.partialorder %v18302_v51, 0.0 }
 0x65b   :  { %v14343_v35 = vsel %vm18472_vm15, %v18300_v12, %v18471_v36  ;;  %v14349_v56 = vsel %vm18475_vm2, %v18301_v16, %v18474_v34  ;;  %v18477_v27 = vld [vmem:[#allocation318_spill] sm:$0xff]  ;;  %v18480_v41 = vld [vmem:[#allocation124_spill] sm:$0xff]  ;;  %v18481_v48 = vld [vmem:[#allocation125_spill] sm:$0xff]  ;;  %vm18487_vm2 = vcmp.ge.f32.partialorder %v18315_v7, 0.0  ;;  %vm18493_vm15 = vcmp.ge.f32.partialorder %v18317_v47, 0.0 }
 0x65c   :  { %18473 = vst [vmem:[#allocation94_spill] sm:$0xff] %v14343_v35  ;;  %18476 = vst [vmem:[#allocation67_spill] sm:$0xff] %v14349_v56  ;;  %v14355_v46 = vsel %vm18478_vm13, %v18302_v51, %v18477_v27  ;;  %vm3751_vm4 = vcmp.ge.f32.partialorder %v18480_v41, 0.0  ;;  %v18482_v44 = vld [vmem:[#allocation232_spill] sm:$0xff]  ;;  %v18483_v12 = vld [vmem:[#allocation129_spill] sm:$0xff]  ;;  %vm18490_vm13 = vcmp.ge.f32.partialorder %v18316_v60, 0.0 }
 0x65d   :  { %18479 = vst [vmem:[#allocation186_spill] sm:$0xff] %v14355_v46  ;;  %v18484_v36 = vld [vmem:[#allocation319_spill] sm:$0xff]  ;;  %v18486_v34 = vld [vmem:[#allocation6_spill] sm:$0xff]  ;;  %v18489_v27 = vld [vmem:[#allocation320_spill] sm:$0xff] }
 0x65e   :  { %v14365_v16 = vsel %vm3707_vm5, %v18314_v19, %v18484_v36  ;;  %v14371_v51 = vsel %vm18487_vm2, %v18315_v7, %v18486_v34  ;;  %v14377_v46 = vsel %vm18490_vm13, %v18316_v60, %v18489_v27  ;;  %v18492_v56 = vld [vmem:[#allocation321_spill] sm:$0xff]  ;;  %v18496_v36 = vld [vmem:[#allocation234_spill] sm:$0xff]  ;;  %v18498_v7 = vld [vmem:[#allocation236_spill] sm:$0xff]  ;;  %vm18502_vm13 = vcmp.ge.f32.partialorder %v18330_v40, 0.0 }
 0x65f   :  { %18485 = vst [vmem:[#allocation187_spill] sm:$0xff] %v14365_v16  ;;  %18488 = vst [vmem:[#allocation190_spill] sm:$0xff] %v14371_v51  ;;  %v14383_v35 = vsel %vm18493_vm15, %v18317_v47, %v18492_v56  ;;  %v18495_v19 = vld [vmem:[#allocation233_spill] sm:$0xff]  ;;  %v18497_v16 = vld [vmem:[#allocation235_spill] sm:$0xff]  ;;  %vm18505_vm15 = vcmp.ge.f32.partialorder %v18331_v2, 0.0  ;;  %vm18508_vm2 = vcmp.ge.f32.partialorder %v18332_v26, 0.0 }
 0x660   :  { %18491 = vst [vmem:[#allocation191_spill] sm:$0xff] %v14377_v46  ;;  %18494 = vst [vmem:[#allocation279_spill] sm:$0xff] %v14383_v35  ;;  %vm3755_vm5 = vcmp.ge.f32.partialorder %v18495_v19, 0.0  ;;  %v18499_v34 = vld [vmem:[#allocation322_spill] sm:$0xff]  ;;  %v18501_v27 = vld [vmem:[#allocation323_spill] sm:$0xff] }
 0x661   :  { %v14393_v60 = vsel %vm3711_vm6, %v18329_v29, %v18499_v34  ;;  %v14399_v47 = vsel %vm18502_vm13, %v18330_v40, %v18501_v27  ;;  %v18504_v56 = vld [vmem:[#allocation324_spill] sm:$0xff]  ;;  %v18507_v46 = vld [vmem:[#allocation325_spill] sm:$0xff]  ;;  %v18511_v34 = vld [vmem:[#allocation238_spill] sm:$0xff]  ;;  %vm18521_vm13 = vcmp.ge.f32.partialorder %v18347_v42, 0.0 }
 0x662   :  { %18500 = vst [vmem:[#allocation99_spill] sm:$0xff] %v14393_v60  ;;  %18503 = vst [vmem:[#allocation280_spill] sm:$0xff] %v14399_v47  ;;  %v14405_v35 = vsel %vm18505_vm15, %v18331_v2, %v18504_v56  ;;  %v14411_v51 = vsel %vm18508_vm2, %v18332_v26, %v18507_v46  ;;  %v18510_v29 = vld [vmem:[#allocation237_spill] sm:$0xff]  ;;  %vm3760_vm3 = vcmp.ge.f32.partialorder %v18511_v34, 0.0  ;;  %v18512_v60 = vld [vmem:[#allocation239_spill] sm:$0xff]  ;;  %vm18517_vm15 = vcmp.ge.f32.partialorder %v18345_v63, 0.0 }
 0x663   :  { %18506 = vst [vmem:[#allocation281_spill] sm:$0xff] %v14405_v35  ;;  %18509 = vst [vmem:[#allocation194_spill] sm:$0xff] %v14411_v51  ;;  %vm3759_vm6 = vcmp.ge.f32.partialorder %v18510_v29, 0.0  ;;  %v18513_v40 = vld [vmem:[#allocation240_spill] sm:$0xff]  ;;  %v18514_v27 = vld [vmem:[#allocation326_spill] sm:$0xff]  ;;  %vm18519_vm2 = vcmp.ge.f32.partialorder %v18346_v49, 0.0 }
 0x664   :  { %v14421_v2 = vsel %vm3715_vm7, %v18344_v58, %v18514_v27  ;;  %v18516_v56 = vld [vmem:[#allocation327_spill] sm:$0xff]  ;;  %v18518_v46 = vld [vmem:[#allocation10_spill] sm:$0xff]  ;;  %v18520_v35 = vld [vmem:[#allocation328_spill] sm:$0xff] }
 0x665   :  { %18515 = vst [vmem:[#allocation198_spill] sm:$0xff] %v14421_v2  ;;  %v14427_v26 = vsel %vm18517_vm15, %v18345_v63, %v18516_v56  ;;  %v14433_v51 = vsel %vm18519_vm2, %v18346_v49, %v18518_v46  ;;  %v14439_v47 = vsel %vm18521_vm13, %v18347_v42, %v18520_v35  ;;  %v18523_v58 = vld [vmem:[#allocation241_spill] sm:$0xff]  ;;  %v18524_v27 = vld [vmem:[#allocation136_spill] sm:$0xff]  ;;  %v18526_v56 = vld [vmem:[#allocation330_spill] sm:$0xff]  ;;  %vm18527_vm15 = vcmp.ge.f32.partialorder %v18360_v23, 0.0 }
 0x666   :  { %18522 = vst [vmem:[#allocation199_spill] sm:$0xff] %v14439_v47  ;;  %vm3763_vm7 = vcmp.ge.f32.partialorder %v18523_v58, 0.0  ;;  %vm3764_vm1 = vcmp.ge.f32.partialorder %v18524_v27, 0.0  ;;  %v18525_v2 = vld [vmem:[#allocation329_spill] sm:$0xff]  ;;  %v14453_v49 = vsel %vm18527_vm15, %v18360_v23, %v18526_v56  ;;  %v18528_v46 = vld [vmem:[#allocation331_spill] sm:$0xff]  ;;  %vm18529_vm13 = vcmp.ge.f32.partialorder %v18361_v37, 0.0 }
 0x667   :  { %v14447_v63 = vsel %vm3719_vm8, %v18359_v33, %v18525_v2  ;;  %v14459_v42 = vsel %vm18529_vm13, %v18361_v37, %v18528_v46  ;;  %v18530_v35 = vld [vmem:[#allocation332_spill] sm:$0xff]  ;;  %vm18531_vm2 = vcmp.ge.f32.partialorder %v18362_v38, 0.0  ;;  %v18532_v33 = vld [vmem:[#allocation333_spill] sm:$0xff]  ;;  %vm18533_vm8 = vcmp.ge.f32.partialorder %v18374_v0, 0.0  ;;  %v18534_v23 = vld [vmem:[#allocation334_spill] sm:$0xff] }
 0x668   :  { %v14465_v47 = vsel %vm18531_vm2, %v18362_v38, %v18530_v35  ;;  %v14471_v2 = vsel %vm18533_vm8, %v18374_v0, %v18532_v33  ;;  %vm18535_vm15 = vcmp.ge.f32.partialorder %v18375_v57, 0.0  ;;  %v18536_v37 = vld [vmem:[#allocation335_spill] sm:$0xff]  ;;  %vm18537_vm13 = vcmp.ge.f32.partialorder %v18376_v43, 0.0  ;;  %v18538_v38 = vld [vmem:[#allocation13_spill] sm:$0xff]  ;;  %v18540_v0 = vld [vmem:[#allocation336_spill] sm:$0xff] }
 0x669   :  { %v14477_v56 = vsel %vm18535_vm15, %v18375_v57, %v18534_v23  ;;  %v14483_v46 = vsel %vm18537_vm13, %v18376_v43, %v18536_v37  ;;  %vm18539_vm2 = vcmp.ge.f32.partialorder %v18377_v28, 0.0  ;;  %v14495_v33 = vsel %vm3727_vm10, %v18389_v53, %v18540_v0  ;;  %v18541_v57 = vld [vmem:[#allocation337_spill] sm:$0xff]  ;;  %v18543_v43 = vld [vmem:[#allocation338_spill] sm:$0xff]  ;;  %v18547_v53 = vld [vmem:[#allocation340_spill] sm:$0xff] }
 0x66a   :  { %v14489_v35 = vsel %vm18539_vm2, %v18377_v28, %v18538_v38  ;;  %vm18542_vm8 = vcmp.ge.f32.partialorder %v18390_v45, 0.0  ;;  %vm18544_vm15 = vcmp.ge.f32.partialorder %v18391_v25, 0.0  ;;  %v18545_v28 = vld [vmem:[#allocation339_spill] sm:$0xff]  ;;  %vm18546_vm13 = vcmp.ge.f32.partialorder %v18392_v50, 0.0 }
 0x66b   :  { %v14501_v23 = vsel %vm18542_vm8, %v18390_v45, %v18541_v57  ;;  %v14507_v37 = vsel %vm18544_vm15, %v18391_v25, %v18543_v43  ;;  %v14513_v38 = vsel %vm18546_vm13, %v18392_v50, %v18545_v28  ;;  %v14519_v0 = vsel %vm3731_vm9, %v18405_v20, %v18547_v53  ;;  %v18548_v45 = vld [vmem:[#allocation16_spill] sm:$0xff]  ;;  %v18550_v25 = vld [vmem:[#allocation341_spill] sm:$0xff]  ;;  %v18552_v50 = vld [vmem:[#allocation342_spill] sm:$0xff] }
 0x66c   :  { %vm18549_vm10 = vcmp.ge.f32.partialorder %v18406_v55, 0.0  ;;  %vm18551_vm2 = vcmp.ge.f32.partialorder %v18407_v4, 0.0  ;;  %vm18553_vm8 = vcmp.ge.f32.partialorder %v18408_v30, 0.0  ;;  %v18554_v20 = vld [vmem:[#allocation19_spill] sm:$0xff]  ;;  %vm18556_vm9 = vcmp.ge.f32.partialorder %v18421_v39, 0.0 }
 0x66d   :  { %v14525_v57 = vsel %vm18549_vm10, %v18406_v55, %v18548_v45  ;;  %v14531_v43 = vsel %vm18551_vm2, %v18407_v4, %v18550_v25  ;;  %v14537_v28 = vsel %vm18553_vm8, %v18408_v30, %v18552_v50  ;;  %v14543_v53 = vsel %vm3735_vm12, %v18420_v3, %v18554_v20  ;;  %v18555_v55 = vld [vmem:[#allocation22_spill] sm:$0xff]  ;;  %v18557_v4 = vld [vmem:[#allocation343_spill] sm:$0xff]  ;;  %v18559_v30 = vld [vmem:[#allocation25_spill] sm:$0xff] }
 0x66e   :  { %v14549_v45 = vsel %vm18556_vm9, %v18421_v39, %v18555_v55  ;;  %vm18558_vm15 = vcmp.ge.f32.partialorder %v18422_v31, 0.0  ;;  %vm18560_vm13 = vcmp.ge.f32.partialorder %v18423_v54, 0.0  ;;  %v18561_v3 = vld [vmem:[#allocation344_spill] sm:$0xff]  ;;  %v18562_v39 = vld [vmem:[#allocation345_spill] sm:$0xff]  ;;  %vm18563_vm12 = vcmp.ge.f32.partialorder %v18436_v13, 0.0 }
 0x66f   :  { %v14555_v25 = vsel %vm18558_vm15, %v18422_v31, %v18557_v4  ;;  %v14561_v50 = vsel %vm18560_vm13, %v18423_v54, %v18559_v30  ;;  %v14567_v20 = vsel %vm3739_vm11, %v18435_v6, %v18561_v3  ;;  %v14573_v55 = vsel %vm18563_vm12, %v18436_v13, %v18562_v39  ;;  %v18564_v31 = vld [vmem:[#allocation28_spill] sm:$0xff]  ;;  %v18566_v54 = vld [vmem:[#allocation346_spill] sm:$0xff]  ;;  %v18568_v6 = vld [vmem:[#allocation347_spill] sm:$0xff] }
 0x670   :  { %vm18565_vm10 = vcmp.ge.f32.partialorder %v18437_v14, 0.0  ;;  %vm18567_vm2 = vcmp.ge.f32.partialorder %v18438_v21, 0.0  ;;  %v14591_v3 = vsel %vm3743_vm14, %v18450_v62, %v18568_v6  ;;  %v18569_v13 = vld [vmem:[#allocation31_spill] sm:$0xff]  ;;  %vm18570_vm11 = vcmp.ge.f32.partialorder %v18451_v32, 0.0  ;;  %v18575_v62 = vld [vmem:[#allocation349_spill] sm:$0xff] }
 0x671   :  { %v14579_v4 = vsel %vm18565_vm10, %v18437_v14, %v18564_v31  ;;  %v14585_v30 = vsel %vm18567_vm2, %v18438_v21, %v18566_v54  ;;  %v14597_v39 = vsel %vm18570_vm11, %v18451_v32, %v18569_v13  ;;  %v18571_v14 = vld [vmem:[#allocation37_spill] sm:$0xff]  ;;  %vm18572_vm8 = vcmp.ge.f32.partialorder %v18452_v17, 0.0  ;;  %v18573_v21 = vld [vmem:[#allocation348_spill] sm:$0xff]  ;;  %v18576_v32 = vld [vmem:[#allocation350_spill] sm:$0xff] }
 0x672   :  { %v14603_v31 = vsel %vm18572_vm8, %v18452_v17, %v18571_v14  ;;  %vm18574_vm9 = vcmp.ge.f32.partialorder %v18453_v24, 0.0  ;;  %v14615_v6 = vsel %vm3747_vm0, %v18465_v22, %v18575_v62  ;;  %vm18577_vm14 = vcmp.ge.f32.partialorder %v18466_v5, 0.0  ;;  %v18578_v17 = vld [vmem:[#allocation351_spill] sm:$0xff] }
 0x673   :  { %v14609_v54 = vsel %vm18574_vm9, %v18453_v24, %v18573_v21  ;;  %v14621_v13 = vsel %vm18577_vm14, %v18466_v5, %v18576_v32  ;;  %vm18579_vm15 = vcmp.ge.f32.partialorder %v18467_v11, 0.0  ;;  %v18580_v24 = vld [vmem:[#allocation45_spill] sm:$0xff]  ;;  %vm18581_vm13 = vcmp.ge.f32.partialorder %v18468_v1, 0.0  ;;  %v18582_v22 = vld [vmem:[#allocation47_spill] sm:$0xff]  ;;  %v18583_v5 = vld [vmem:[#allocation48_spill] sm:$0xff] }
 0x674   :  { %v14627_v14 = vsel %vm18579_vm15, %v18467_v11, %v18578_v17  ;;  %v14633_v21 = vsel %vm18581_vm13, %v18468_v1, %v18580_v24  ;;  %v14639_v62 = vsel %vm3751_vm4, %v18480_v41, %v18582_v22  ;;  %vm18584_vm0 = vcmp.ge.f32.partialorder %v18481_v48, 0.0  ;;  %v18585_v11 = vld [vmem:[#allocation9_spill] sm:$0xff]  ;;  %v18587_v1 = vld [vmem:[#allocation52_spill] sm:$0xff]  ;;  %v18590_v41 = vld [vmem:[#allocation55_spill] sm:$0xff] }
 0x675   :  { %v14645_v32 = vsel %vm18584_vm0, %v18481_v48, %v18583_v5  ;;  %vm18586_vm12 = vcmp.ge.f32.partialorder %v18482_v44, 0.0  ;;  %vm18588_vm10 = vcmp.ge.f32.partialorder %v18483_v12, 0.0  ;;  %v14663_v22 = vsel %vm3755_vm5, %v18495_v19, %v18590_v41  ;;  %v18592_v48 = vld [vmem:[#allocation11_spill] sm:$0xff]  ;;  %v18601_v19 = vld [vmem:[#allocation66_spill] sm:$0xff] }
 0x676   :  { %v14651_v17 = vsel %vm18586_vm12, %v18482_v44, %v18585_v11  ;;  %v14657_v24 = vsel %vm18588_vm10, %v18483_v12, %v18587_v1  ;;  %18591 = vst [vmem:[#allocation282_spill] sm:$0xff] %v14663_v22  ;;  %vm18593_vm4 = vcmp.ge.f32.partialorder %v18496_v36, 0.0  ;;  %v18595_v44 = vld [vmem:[#allocation61_spill] sm:$0xff]  ;;  %vm18596_vm2 = vcmp.ge.f32.partialorder %v18497_v16, 0.0  ;;  %v18598_v12 = vld [vmem:[#allocation62_spill] sm:$0xff]  ;;  %v18621_v22 = vld [vmem:[#allocation152_spill] sm:$0xff] }
 0x677   :  { %18589 = vst [vmem:[#allocation206_spill] sm:$0xff] %v14657_v24  ;;  %v14669_v5 = vsel %vm18593_vm4, %v18496_v36, %v18592_v48  ;;  %v14675_v11 = vsel %vm18596_vm2, %v18497_v16, %v18595_v44  ;;  %vm18599_vm11 = vcmp.ge.f32.partialorder %v18498_v7, 0.0  ;;  %v14687_v41 = vsel %vm3759_vm6, %v18510_v29, %v18601_v19  ;;  %v18603_v36 = vld [vmem:[#allocation68_spill] sm:$0xff] }
 0x678   :  { %18594 = vst [vmem:[#allocation283_spill] sm:$0xff] %v14669_v5  ;;  %18597 = vst [vmem:[#allocation284_spill] sm:$0xff] %v14675_v11  ;;  %v14681_v1 = vsel %vm18599_vm11, %v18498_v7, %v18598_v12  ;;  %v14693_v48 = vsel %vm3760_vm3, %v18511_v34, %v18603_v36  ;;  %v18605_v16 = vld [vmem:[#allocation72_spill] sm:$0xff]  ;;  %vm18606_vm5 = vcmp.ge.f32.partialorder %v18512_v60, 0.0  ;;  %v18608_v7 = vld [vmem:[#allocation73_spill] sm:$0xff]  ;;  %vm18609_vm8 = vcmp.ge.f32.partialorder %v18513_v40, 0.0 }
 0x679   :  { %18600 = vst [vmem:[#allocation111_spill] sm:$0xff] %v14681_v1  ;;  %18602 = vst [vmem:[#allocation207_spill] sm:$0xff] %v14687_v41  ;;  %v14699_v44 = vsel %vm18606_vm5, %v18512_v60, %v18605_v16  ;;  %v14705_v12 = vsel %vm18609_vm8, %v18513_v40, %v18608_v7  ;;  %v18611_v29 = vld [vmem:[#allocation76_spill] sm:$0xff]  ;;  %v18613_v34 = vld [vmem:[#allocation79_spill] sm:$0xff] }
 0x67a   :  { %18604 = vst [vmem:[#allocation35_spill] sm:$0xff] %v14693_v48  ;;  %18607 = vst [vmem:[#allocation36_spill] sm:$0xff] %v14699_v44  ;;  %v14711_v19 = vsel %vm3763_vm7, %v18523_v58, %v18611_v29  ;;  %v4246_v36 = vsel %vm3764_vm1, %v18524_v27, %v18613_v34  ;;  %v18614_v48 = vld [vmem:[#allocation137_spill] sm:$0xff]  ;;  %v18615_v60 = vld [vmem:[#allocation140_spill] sm:$0xff] }
 0x67b   :  { %18610 = vst [vmem:[#allocation42_spill] sm:$0xff] %v14705_v12  ;;  %18612 = vst [vmem:[#allocation132_spill] sm:$0xff] %v14711_v19  ;;  %v6072_v16 = vpack.c.bf16 %v18615_v60, %v18614_v48  ;;  %v18616_v44 = vld [vmem:[#allocation141_spill] sm:$0xff]  ;;  %v18617_v41 = vld [vmem:[#allocation144_spill] sm:$0xff]  ;;  %v6068_v11 = vpack.c.bf16 %v4246_v36, %v4246_v36 }
 0x67c   :  { %v6077_v1 = vpack.c.bf16 %v18617_v41, %v18616_v44  ;;  %v18618_v40 = vld [vmem:[#allocation145_spill] sm:$0xff]  ;;  %v18619_v7 = vld [vmem:[#allocation148_spill] sm:$0xff] }
 0x67d   :  { %v6082_v12 = vpack.c.bf16 %v18619_v7, %v18618_v40  ;;  %v18620_v5 = vld [vmem:[#allocation149_spill] sm:$0xff]  ;;  %v18623_v29 = vld [vmem:[#allocation156_spill] sm:$0xff]  ;;  %6073 = vst [vmem:[%s15324_s4] sm:$0xff] %v6072_v16   ;;  %v18629_v40 = vld [vmem:[#allocation218_spill] sm:$0xff] }
 0x67e   :  { %v6087_v24 = vpack.c.bf16 %v18621_v22, %v18620_v5  ;;  %v18622_v58 = vld [vmem:[#allocation153_spill] sm:$0xff]  ;;  %6669 = vst [vmem:[%s15324_s4 + $0x8] sm:$0xff] %v6077_v1   ;;  %v18624_v27 = vld [vmem:[#allocation164_spill] sm:$0xff]  ;;  %v18631_v7 = vld [vmem:[#allocation7_spill] sm:$0xff] }
 0x67f   :  { %v6092_v19 = vpack.c.bf16 %v18623_v29, %v18622_v58  ;;  %v18625_v41 = vld [vmem:[#allocation172_spill] sm:$0xff]  ;;  %v18627_v34 = vld [vmem:[#allocation209_spill] sm:$0xff]  ;;  %6670 = vst [vmem:[%s15324_s4 + $0x10] sm:$0xff] %v6082_v12   ;;  %5452 = vst [vmem:[%s15324_s4 + $0x3c0] sm:$0xf] %v6068_v11 }
 0x680   :  { %v6097_v48 = vpack.c.bf16 %v18625_v41, %v18624_v27  ;;  %v18626_v44 = vld [vmem:[#allocation180_spill] sm:$0xff]  ;;  %v18628_v60 = vld [vmem:[#allocation213_spill] sm:$0xff]  ;;  %6671 = vst [vmem:[%s15324_s4 + $0x18] sm:$0xff] %v6087_v24  }
 0x681   :  { %v6102_v36 = vpack.c.bf16 %v18627_v34, %v18626_v44  ;;  %v6107_v22 = vpack.c.bf16 %v18629_v40, %v18628_v60  ;;  %v18630_v5 = vld [vmem:[#allocation205_spill] sm:$0xff]  ;;  %6672 = vst [vmem:[%s15324_s4 + $0x20] sm:$0xff] %v6092_v19   ;;  %v18632_v1 = vld [vmem:[#allocation32_spill] sm:$0xff]  ;;  %v18637_v60 = vld [vmem:[#allocation242_spill] sm:$0xff] }
 0x682   :  { %v6112_v58 = vpack.c.bf16 %v18631_v7, %v18630_v5  ;;  %v18633_v16 = vld [vmem:[#allocation60_spill] sm:$0xff]  ;;  %v18635_v41 = vld [vmem:[#allocation217_spill] sm:$0xff]  ;;  %v18639_v7 = vld [vmem:[#allocation246_spill] sm:$0xff]  ;;  %6673 = vst [vmem:[%s15324_s4 + $0x28] sm:$0xff] %v6097_v48  }
 0x683   :  { %v6117_v29 = vpack.c.bf16 %v18633_v16, %v18632_v1  ;;  %v18634_v27 = vld [vmem:[#allocation188_spill] sm:$0xff]  ;;  %v18636_v34 = vld [vmem:[#allocation5_spill] sm:$0xff]  ;;  %6674 = vst [vmem:[%s15324_s4 + $0x30] sm:$0xff] %v6102_v36   ;;  %6675 = vst [vmem:[%s15324_s4 + $0x38] sm:$0xff] %v6107_v22  }
 0x684   :  { %v6122_v44 = vpack.c.bf16 %v18635_v41, %v18634_v27  ;;  %v6127_v40 = vpack.c.bf16 %v18637_v60, %v18636_v34  ;;  %v18638_v5 = vld [vmem:[#allocation244_spill] sm:$0xff]  ;;  %6676 = vst [vmem:[%s15324_s4 + $0x40] sm:$0xff] %v6112_v58   ;;  %v18641_v19 = vld [vmem:[#allocation250_spill] sm:$0xff]  ;;  %v18646_v60 = vld [vmem:[#allocation259_spill] sm:$0xff] }
 0x685   :  { %v6132_v12 = vpack.c.bf16 %v18639_v7, %v18638_v5  ;;  %v18640_v24 = vld [vmem:[#allocation248_spill] sm:$0xff]  ;;  %v18643_v16 = vld [vmem:[#allocation254_spill] sm:$0xff]  ;;  %v18647_v5 = vld [vmem:[#allocation133_spill] sm:$0xff]  ;;  %6677 = vst [vmem:[%s15324_s4 + $0x48] sm:$0xff] %v6117_v29  }
 0x686   :  { %v6137_v1 = vpack.c.bf16 %v18641_v19, %v18640_v24  ;;  %v18642_v11 = vld [vmem:[#allocation252_spill] sm:$0xff]  ;;  %v18645_v48 = vld [vmem:[#allocation258_spill] sm:$0xff]  ;;  %v6152_v36 = vpack.c.bf16 %v18647_v5, %v18646_v60  ;;  %6678 = vst [vmem:[%s15324_s4 + $0x50] sm:$0xff] %v6122_v44   ;;  %6679 = vst [vmem:[%s15324_s4 + $0x58] sm:$0xff] %v6127_v40  }
 0x687   :  { %v6142_v27 = vpack.c.bf16 %v18643_v16, %v18642_v11  ;;  %v18644_v41 = vld [vmem:[#allocation256_spill] sm:$0xff]  ;;  %6680 = vst [vmem:[%s15324_s4 + $0x60] sm:$0xff] %v6132_v12   ;;  %v18648_v22 = vld [vmem:[#allocation157_spill] sm:$0xff] }
 0x688   :  { %v6147_v34 = vpack.c.bf16 %v18645_v48, %v18644_v41  ;;  %v18649_v58 = vld [vmem:[#allocation160_spill] sm:$0xff]  ;;  %v18650_v24 = vld [vmem:[#allocation161_spill] sm:$0xff]  ;;  %6681 = vst [vmem:[%s15324_s4 + $0x68] sm:$0xff] %v6137_v1   ;;  %6684 = vst [vmem:[%s15324_s4 + $0x80] sm:$0xff] %v6152_v36  }
 0x689   :  { %v6157_v7 = vpack.c.bf16 %v18649_v58, %v18648_v22  ;;  %v18651_v19 = vld [vmem:[#allocation165_spill] sm:$0xff]  ;;  %v18652_v16 = vld [vmem:[#allocation168_spill] sm:$0xff]  ;;  %6682 = vst [vmem:[%s15324_s4 + $0x70] sm:$0xff] %v6142_v27   ;;  %v18661_v1 = vld [vmem:[#allocation211_spill] sm:$0xff] }
 0x68a   :  { %v6162_v11 = vpack.c.bf16 %v18651_v19, %v18650_v24  ;;  %v18653_v29 = vld [vmem:[#allocation169_spill] sm:$0xff]  ;;  %v18655_v60 = vld [vmem:[#allocation176_spill] sm:$0xff]  ;;  %6683 = vst [vmem:[%s15324_s4 + $0x78] sm:$0xff] %v6147_v34   ;;  %v18660_v19 = vld [vmem:[#allocation210_spill] sm:$0xff] }
 0x68b   :  { %v6167_v41 = vpack.c.bf16 %v18653_v29, %v18652_v16  ;;  %v18654_v48 = vld [vmem:[#allocation173_spill] sm:$0xff]  ;;  %v18658_v22 = vld [vmem:[#allocation184_spill] sm:$0xff]  ;;  %v6187_v16 = vpack.c.bf16 %v18661_v1, %v18660_v19  ;;  %6685 = vst [vmem:[%s15324_s4 + $0x88] sm:$0xff] %v6157_v7   ;;  %v18664_v34 = vld [vmem:[#allocation215_spill] sm:$0xff] }
 0x68c   :  { %v6172_v44 = vpack.c.bf16 %v18655_v60, %v18654_v48  ;;  %v18656_v40 = vld [vmem:[#allocation177_spill] sm:$0xff]  ;;  %v18659_v58 = vld [vmem:[#allocation208_spill] sm:$0xff]  ;;  %v18663_v48 = vld [vmem:[#allocation214_spill] sm:$0xff]  ;;  %6686 = vst [vmem:[%s15324_s4 + $0x90] sm:$0xff] %v6162_v11  }
 0x68d   :  { %v18657_v12 = vld [vmem:[#allocation181_spill] sm:$0xff]  ;;  %v6182_v24 = vpack.c.bf16 %v18659_v58, %v18658_v22  ;;  %v18662_v29 = vld [vmem:[#allocation212_spill] sm:$0xff]  ;;  %6687 = vst [vmem:[%s15324_s4 + $0x98] sm:$0xff] %v6167_v41   ;;  %v18669_v7 = vld [vmem:[#allocation2_spill] sm:$0xff] }
 0x68e   :  { %v6177_v5 = vpack.c.bf16 %v18657_v12, %v18656_v40  ;;  %v6192_v27 = vpack.c.bf16 %v18663_v48, %v18662_v29  ;;  %6688 = vst [vmem:[%s15324_s4 + $0xa0] sm:$0xff] %v6172_v44   ;;  %v18665_v36 = vld [vmem:[#allocation216_spill] sm:$0xff]  ;;  %v18667_v12 = vld [vmem:[#allocation201_spill] sm:$0xff]  ;;  %v18670_v1 = vld [vmem:[#allocation3_spill] sm:$0xff] }
 0x68f   :  { %v6197_v60 = vpack.c.bf16 %v18665_v36, %v18664_v34  ;;  %v18666_v40 = vld [vmem:[#allocation200_spill] sm:$0xff]  ;;  %6690 = vst [vmem:[%s15324_s4 + $0xb0] sm:$0xff] %v6182_v24   ;;  %6691 = vst [vmem:[%s15324_s4 + $0xb8] sm:$0xff] %v6187_v16   ;;  %v18672_v41 = vld [vmem:[#allocation90_spill] sm:$0xff] }
 0x690   :  { %v6202_v22 = vpack.c.bf16 %v18667_v12, %v18666_v40  ;;  %v18668_v58 = vld [vmem:[#allocation204_spill] sm:$0xff]  ;;  %6689 = vst [vmem:[%s15324_s4 + $0xa8] sm:$0xff] %v6177_v5   ;;  %6692 = vst [vmem:[%s15324_s4 + $0xc0] sm:$0xff] %v6192_v27   ;;  %v18673_v44 = vld [vmem:[#allocation195_spill] sm:$0xff] }
 0x691   :  { %v6207_v19 = vpack.c.bf16 %v18669_v7, %v18668_v58  ;;  %v18671_v29 = vld [vmem:[#allocation4_spill] sm:$0xff]  ;;  %v6217_v48 = vpack.c.bf16 %v18673_v44, %v18672_v41  ;;  %v18674_v34 = vld [vmem:[#allocation202_spill] sm:$0xff]  ;;  %v18675_v36 = vld [vmem:[#allocation39_spill] sm:$0xff]  ;;  %6693 = vst [vmem:[%s15324_s4 + $0xc8] sm:$0xff] %v6197_v60  }
 0x692   :  { %v6212_v11 = vpack.c.bf16 %v18671_v29, %v18670_v1  ;;  %v6222_v40 = vpack.c.bf16 %v18675_v36, %v18674_v34  ;;  %v18676_v12 = vld [vmem:[#allocation46_spill] sm:$0xff]  ;;  %v18677_v5 = vld [vmem:[#allocation53_spill] sm:$0xff]  ;;  %v18679_v1 = vld [vmem:[#allocation128_spill] sm:$0xff]  ;;  %6694 = vst [vmem:[%s15324_s4 + $0xd0] sm:$0xff] %v6202_v22  }
 0x693   :  { %v6227_v58 = vpack.c.bf16 %v18677_v5, %v18676_v12  ;;  %v18678_v7 = vld [vmem:[#allocation74_spill] sm:$0xff]  ;;  %6695 = vst [vmem:[%s15324_s4 + $0xd8] sm:$0xff] %v6207_v19   ;;  %v18680_v16 = vld [vmem:[#allocation185_spill] sm:$0xff]  ;;  %v18681_v27 = vld [vmem:[#allocation192_spill] sm:$0xff] }
 0x694   :  { %v6232_v24 = vpack.c.bf16 %v18679_v1, %v18678_v7  ;;  %6696 = vst [vmem:[%s15324_s4 + $0xe0] sm:$0xff] %v6212_v11   ;;  %v6237_v29 = vpack.c.bf16 %v18681_v27, %v18680_v16  ;;  %v18682_v41 = vld [vmem:[#allocation193_spill] sm:$0xff]  ;;  %v18684_v36 = vld [vmem:[#allocation220_spill] sm:$0xff]  ;;  %v18686_v5 = vld [vmem:[#allocation223_spill] sm:$0xff] }
 0x695   :  { %v18683_v44 = vld [vmem:[#allocation197_spill] sm:$0xff]  ;;  %v18687_v7 = vld [vmem:[#allocation8_spill] sm:$0xff]  ;;  %6697 = vst [vmem:[%s15324_s4 + $0xe8] sm:$0xff] %v6217_v48   ;;  %6698 = vst [vmem:[%s15324_s4 + $0xf0] sm:$0xff] %v6222_v40  }
 0x696   :  { %v6242_v34 = vpack.c.bf16 %v18683_v44, %v18682_v41  ;;  %v18685_v60 = vld [vmem:[#allocation221_spill] sm:$0xff]  ;;  %v6252_v22 = vpack.c.bf16 %v18687_v7, %v18686_v5  ;;  %6699 = vst [vmem:[%s15324_s4 + $0xf8] sm:$0xff] %v6227_v58   ;;  %6700 = vst [vmem:[%s15324_s4 + $0x100] sm:$0xff] %v6232_v24   ;;  %v18688_v19 = vld [vmem:[#allocation51_spill] sm:$0xff] }
 0x697   :  { %v6247_v12 = vpack.c.bf16 %v18685_v60, %v18684_v36  ;;  %v18689_v11 = vld [vmem:[#allocation58_spill] sm:$0xff]  ;;  %v18690_v16 = vld [vmem:[#allocation12_spill] sm:$0xff]  ;;  %v18691_v27 = vld [vmem:[#allocation243_spill] sm:$0xff]  ;;  %6701 = vst [vmem:[%s15324_s4 + $0x108] sm:$0xff] %v6237_v29  }
 0x698   :  { %v6257_v1 = vpack.c.bf16 %v18689_v11, %v18688_v19  ;;  %v6262_v41 = vpack.c.bf16 %v18691_v27, %v18690_v16  ;;  %v18692_v44 = vld [vmem:[#allocation14_spill] sm:$0xff]  ;;  %v18694_v60 = vld [vmem:[#allocation83_spill] sm:$0xff]  ;;  %6702 = vst [vmem:[%s15324_s4 + $0x110] sm:$0xff] %v6242_v34   ;;  %6704 = vst [vmem:[%s15324_s4 + $0x120] sm:$0xff] %v6252_v22  }
 0x699   :  { %v6267_v48 = vpack.c.bf16 %v13637_v8, %v18692_v44  ;;  %v18693_v36 = vld [vmem:[#allocation82_spill] sm:$0xff]  ;;  %6703 = vst [vmem:[%s15324_s4 + $0x118] sm:$0xff] %v6247_v12   ;;  %v18696_v24 = vld [vmem:[#allocation15_spill] sm:$0xff]  ;;  %v18697_v5 = vld [vmem:[#allocation245_spill] sm:$0xff] }
 0x69a   :  { %v6272_v40 = vpack.c.bf16 %v18694_v60, %v18693_v36  ;;  %v18695_v8 = vld [vmem:[#allocation86_spill] sm:$0xff]  ;;  %v6282_v7 = vpack.c.bf16 %v18697_v5, %v18696_v24  ;;  %v18698_v19 = vld [vmem:[#allocation17_spill] sm:$0xff]  ;;  %v18700_v16 = vld [vmem:[#allocation87_spill] sm:$0xff]  ;;  %6705 = vst [vmem:[%s15324_s4 + $0x128] sm:$0xff] %v6257_v1  }
 0x69b   :  { %v6277_v58 = vpack.c.bf16 %v13665_v59, %v18695_v8  ;;  %v18699_v29 = vld [vmem:[#allocation18_spill] sm:$0xff]  ;;  %v6292_v34 = vpack.c.bf16 %v18700_v16, %v13699_v10  ;;  %6706 = vst [vmem:[%s15324_s4 + $0x130] sm:$0xff] %v6262_v41   ;;  %6707 = vst [vmem:[%s15324_s4 + $0x138] sm:$0xff] %v6267_v48   ;;  %v18701_v59 = vld [vmem:[#allocation91_spill] sm:$0xff] }
 0x69c   :  { %v6287_v11 = vpack.c.bf16 %v18699_v29, %v18698_v19  ;;  %6708 = vst [vmem:[%s15324_s4 + $0x140] sm:$0xff] %v6272_v40   ;;  %v6297_v12 = vpack.c.bf16 %v13721_v15, %v18701_v59  ;;  %v18702_v10 = vld [vmem:[#allocation95_spill] sm:$0xff]  ;;  %v18704_v44 = vld [vmem:[#allocation20_spill] sm:$0xff]  ;;  %v18705_v1 = vld [vmem:[#allocation21_spill] sm:$0xff] }
 0x69d   :  { %v18703_v22 = vld [vmem:[#allocation247_spill] sm:$0xff]  ;;  %v6307_v36 = vpack.c.bf16 %v18705_v1, %v18704_v44  ;;  %v18706_v60 = vld [vmem:[#allocation249_spill] sm:$0xff]  ;;  %v18707_v8 = vld [vmem:[#allocation98_spill] sm:$0xff]  ;;  %6709 = vst [vmem:[%s15324_s4 + $0x148] sm:$0xff] %v6277_v58  }
 0x69e   :  { %v6302_v27 = vpack.c.bf16 %v18703_v22, %v18702_v10  ;;  %v6312_v41 = vpack.c.bf16 %v18707_v8, %v18706_v60  ;;  %6710 = vst [vmem:[%s15324_s4 + $0x150] sm:$0xff] %v6282_v7   ;;  %6711 = vst [vmem:[%s15324_s4 + $0x158] sm:$0xff] %v6287_v11   ;;  %v18708_v15 = vld [vmem:[#allocation102_spill] sm:$0xff]  ;;  %v18709_v40 = vld [vmem:[#allocation103_spill] sm:$0xff] }
 0x69f   :  { %6712 = vst [vmem:[%s15324_s4 + $0x160] sm:$0xff] %v6292_v34   ;;  %v6317_v48 = vpack.c.bf16 %v13777_v61, %v18708_v15  ;;  %v6322_v24 = vpack.c.bf16 %v18709_v40, %v13783_v9  ;;  %v18710_v5 = vld [vmem:[#allocation23_spill] sm:$0xff]  ;;  %v18711_v58 = vld [vmem:[#allocation24_spill] sm:$0xff]  ;;  %v18713_v16 = vld [vmem:[#allocation26_spill] sm:$0xff] }
 0x6a0   :  { %v6327_v19 = vpack.c.bf16 %v18711_v58, %v18710_v5  ;;  %v18712_v29 = vld [vmem:[#allocation251_spill] sm:$0xff]  ;;  %6713 = vst [vmem:[%s15324_s4 + $0x168] sm:$0xff] %v6297_v12   ;;  %6714 = vst [vmem:[%s15324_s4 + $0x170] sm:$0xff] %v6302_v27   ;;  %v18714_v61 = vld [vmem:[#allocation106_spill] sm:$0xff] }
 0x6a1   :  { %v6332_v7 = vpack.c.bf16 %v18713_v16, %v18712_v29  ;;  %6715 = vst [vmem:[%s15324_s4 + $0x178] sm:$0xff] %v6307_v36   ;;  %6716 = vst [vmem:[%s15324_s4 + $0x180] sm:$0xff] %v6312_v41   ;;  %v6337_v9 = vpack.c.bf16 %v13833_v18, %v18714_v61  ;;  %v18715_v11 = vld [vmem:[#allocation107_spill] sm:$0xff]  ;;  %v18716_v34 = vld [vmem:[#allocation110_spill] sm:$0xff] }
 0x6a2   :  { %v6342_v59 = vpack.c.bf16 %v18716_v34, %v18715_v11  ;;  %v18717_v10 = vld [vmem:[#allocation27_spill] sm:$0xff]  ;;  %v18718_v22 = vld [vmem:[#allocation253_spill] sm:$0xff]  ;;  %6717 = vst [vmem:[%s15324_s4 + $0x188] sm:$0xff] %v6317_v48   ;;  %6718 = vst [vmem:[%s15324_s4 + $0x190] sm:$0xff] %v6322_v24  }
 0x6a3   :  { %v6347_v12 = vpack.c.bf16 %v13861_v52, %v18717_v10  ;;  %v18719_v44 = vld [vmem:[#allocation29_spill] sm:$0xff]  ;;  %6719 = vst [vmem:[%s15324_s4 + $0x198] sm:$0xff] %v6327_v19   ;;  %6720 = vst [vmem:[%s15324_s4 + $0x1a0] sm:$0xff] %v6332_v7   ;;  %v18720_v18 = vld [vmem:[#allocation30_spill] sm:$0xff] }
 0x6a4   :  { %v6352_v27 = vpack.c.bf16 %v18719_v44, %v18718_v22  ;;  %v18721_v52 = vld [vmem:[#allocation114_spill] sm:$0xff]  ;;  %v18722_v36 = vld [vmem:[#allocation115_spill] sm:$0xff]  ;;  %v18725_v15 = vld [vmem:[#allocation33_spill] sm:$0xff]  ;;  %6721 = vst [vmem:[%s15324_s4 + $0x1a8] sm:$0xff] %v6337_v9  }
 0x6a5   :  { %v6357_v1 = vpack.c.bf16 %v18721_v52, %v18720_v18  ;;  %v18723_v60 = vld [vmem:[#allocation119_spill] sm:$0xff]  ;;  %v18726_v40 = vld [vmem:[#allocation34_spill] sm:$0xff]  ;;  %v18727_v5 = vld [vmem:[#allocation257_spill] sm:$0xff]  ;;  %6722 = vst [vmem:[%s15324_s4 + $0x1b0] sm:$0xff] %v6342_v59  }
 0x6a6   :  { %v6362_v8 = vpack.c.bf16 %v18723_v60, %v18722_v36  ;;  %v18724_v41 = vld [vmem:[#allocation255_spill] sm:$0xff]  ;;  %v6372_v24 = vpack.c.bf16 %v18727_v5, %v18726_v40  ;;  %6723 = vst [vmem:[%s15324_s4 + $0x1b8] sm:$0xff] %v6347_v12   ;;  %6724 = vst [vmem:[%s15324_s4 + $0x1c0] sm:$0xff] %v6352_v27   ;;  %v18728_v58 = vld [vmem:[#allocation122_spill] sm:$0xff] }
 0x6a7   :  { %v6367_v48 = vpack.c.bf16 %v18725_v15, %v18724_v41  ;;  %v18729_v19 = vld [vmem:[#allocation123_spill] sm:$0xff]  ;;  %v18730_v16 = vld [vmem:[#allocation126_spill] sm:$0xff]  ;;  %v18733_v9 = vld [vmem:[#allocation40_spill] sm:$0xff]  ;;  %6725 = vst [vmem:[%s15324_s4 + $0x1c8] sm:$0xff] %v6357_v1  }
 0x6a8   :  { %v6377_v29 = vpack.c.bf16 %v18729_v19, %v18728_v58  ;;  %v18731_v7 = vld [vmem:[#allocation127_spill] sm:$0xff]  ;;  %v18732_v11 = vld [vmem:[#allocation38_spill] sm:$0xff]  ;;  %v18734_v10 = vld [vmem:[#allocation41_spill] sm:$0xff]  ;;  %6726 = vst [vmem:[%s15324_s4 + $0x1d0] sm:$0xff] %v6362_v8  }
 0x6a9   :  { %v6382_v61 = vpack.c.bf16 %v18731_v7, %v18730_v16  ;;  %v6387_v34 = vpack.c.bf16 %v18733_v9, %v18732_v11  ;;  %v18735_v22 = vld [vmem:[#allocation44_spill] sm:$0xff]  ;;  %6727 = vst [vmem:[%s15324_s4 + $0x1d8] sm:$0xff] %v6367_v48   ;;  %6728 = vst [vmem:[%s15324_s4 + $0x1e0] sm:$0xff] %v6372_v24   ;;  %v18736_v12 = vld [vmem:[#allocation131_spill] sm:$0xff] }
 0x6aa   :  { %v6392_v59 = vpack.c.bf16 %v18735_v22, %v18734_v10  ;;  %v18737_v44 = vld [vmem:[#allocation134_spill] sm:$0xff]  ;;  %v18738_v18 = vld [vmem:[#allocation260_spill] sm:$0xff]  ;;  %v18739_v52 = vld [vmem:[#allocation261_spill] sm:$0xff]  ;;  %6729 = vst [vmem:[%s15324_s4 + $0x1e8] sm:$0xff] %v6377_v29  }
 0x6ab   :  { %v6397_v27 = vpack.c.bf16 %v18737_v44, %v18736_v12  ;;  %v6402_v36 = vpack.c.bf16 %v18739_v52, %v18738_v18  ;;  %v18740_v60 = vld [vmem:[#allocation262_spill] sm:$0xff]  ;;  %v18741_v1 = vld [vmem:[#allocation263_spill] sm:$0xff]  ;;  %6730 = vst [vmem:[%s15324_s4 + $0x1f0] sm:$0xff] %v6382_v61   ;;  %6731 = vst [vmem:[%s15324_s4 + $0x1f8] sm:$0xff] %v6387_v34  }
 0x6ac   :  { %v6407_v41 = vpack.c.bf16 %v18741_v1, %v18740_v60  ;;  %v18742_v15 = vld [vmem:[#allocation138_spill] sm:$0xff]  ;;  %v18743_v40 = vld [vmem:[#allocation139_spill] sm:$0xff]  ;;  %6732 = vst [vmem:[%s15324_s4 + $0x200] sm:$0xff] %v6392_v59   ;;  %v18746_v58 = vld [vmem:[#allocation264_spill] sm:$0xff] }
 0x6ad   :  { %v6412_v8 = vpack.c.bf16 %v18743_v40, %v18742_v15  ;;  %v18744_v48 = vld [vmem:[#allocation142_spill] sm:$0xff]  ;;  %v18745_v5 = vld [vmem:[#allocation143_spill] sm:$0xff]  ;;  %v18749_v29 = vld [vmem:[#allocation265_spill] sm:$0xff]  ;;  %6733 = vst [vmem:[%s15324_s4 + $0x208] sm:$0xff] %v6397_v27  }
 0x6ae   :  { %v6417_v24 = vpack.c.bf16 %v18745_v5, %v18744_v48  ;;  %v18747_v19 = vld [vmem:[#allocation54_spill] sm:$0xff]  ;;  %v18748_v7 = vld [vmem:[#allocation203_spill] sm:$0xff]  ;;  %6734 = vst [vmem:[%s15324_s4 + $0x210] sm:$0xff] %v6402_v36   ;;  %6735 = vst [vmem:[%s15324_s4 + $0x218] sm:$0xff] %v6407_v41  }
 0x6af   :  { %v6422_v16 = vpack.c.bf16 %v18747_v19, %v18746_v58  ;;  %v6427_v11 = vpack.c.bf16 %v18749_v29, %v18748_v7  ;;  %v18750_v9 = vld [vmem:[#allocation146_spill] sm:$0xff]  ;;  %6736 = vst [vmem:[%s15324_s4 + $0x220] sm:$0xff] %v6412_v8   ;;  %v18752_v34 = vld [vmem:[#allocation151_spill] sm:$0xff]  ;;  %v18756_v52 = vld [vmem:[#allocation65_spill] sm:$0xff] }
 0x6b0   :  { %v18751_v10 = vld [vmem:[#allocation150_spill] sm:$0xff]  ;;  %v18753_v22 = vld [vmem:[#allocation59_spill] sm:$0xff]  ;;  %6737 = vst [vmem:[%s15324_s4 + $0x228] sm:$0xff] %v6417_v24   ;;  %v18760_v41 = vld [vmem:[#allocation268_spill] sm:$0xff] }
 0x6b1   :  { %v6432_v61 = vpack.c.bf16 %v18751_v10, %v18750_v9  ;;  %v6437_v59 = vpack.c.bf16 %v18753_v22, %v18752_v34  ;;  %v18754_v12 = vld [vmem:[#allocation266_spill] sm:$0xff]  ;;  %v18755_v44 = vld [vmem:[#allocation267_spill] sm:$0xff]  ;;  %6738 = vst [vmem:[%s15324_s4 + $0x230] sm:$0xff] %v6422_v16   ;;  %6739 = vst [vmem:[%s15324_s4 + $0x238] sm:$0xff] %v6427_v11  }
 0x6b2   :  { %v6442_v18 = vpack.c.bf16 %v18755_v44, %v18754_v12  ;;  %v18757_v27 = vld [vmem:[#allocation155_spill] sm:$0xff]  ;;  %v18758_v1 = vld [vmem:[#allocation158_spill] sm:$0xff]  ;;  %v18761_v40 = vld [vmem:[#allocation269_spill] sm:$0xff] }
 0x6b3   :  { %v6447_v60 = vpack.c.bf16 %v18757_v27, %v18756_v52  ;;  %v18759_v15 = vld [vmem:[#allocation159_spill] sm:$0xff]  ;;  %6740 = vst [vmem:[%s15324_s4 + $0x240] sm:$0xff] %v6432_v61   ;;  %v6457_v8 = vpack.c.bf16 %v18761_v40, %v18760_v41  ;;  %v18762_v48 = vld [vmem:[#allocation69_spill] sm:$0xff]  ;;  %v18763_v5 = vld [vmem:[#allocation270_spill] sm:$0xff] }
 0x6b4   :  { %v6452_v36 = vpack.c.bf16 %v18759_v15, %v18758_v1  ;;  %v6462_v58 = vpack.c.bf16 %v18763_v5, %v18762_v48  ;;  %v18764_v19 = vld [vmem:[#allocation162_spill] sm:$0xff]  ;;  %v18765_v24 = vld [vmem:[#allocation163_spill] sm:$0xff]  ;;  %6741 = vst [vmem:[%s15324_s4 + $0x248] sm:$0xff] %v6437_v59   ;;  %6742 = vst [vmem:[%s15324_s4 + $0x250] sm:$0xff] %v6442_v18  }
 0x6b5   :  { %v6467_v7 = vpack.c.bf16 %v18765_v24, %v18764_v19  ;;  %v18766_v29 = vld [vmem:[#allocation166_spill] sm:$0xff]  ;;  %v18767_v9 = vld [vmem:[#allocation167_spill] sm:$0xff]  ;;  %6743 = vst [vmem:[%s15324_s4 + $0x258] sm:$0xff] %v6447_v60   ;;  %v18770_v34 = vld [vmem:[#allocation272_spill] sm:$0xff] }
 0x6b6   :  { %v6472_v16 = vpack.c.bf16 %v18767_v9, %v18766_v29  ;;  %6744 = vst [vmem:[%s15324_s4 + $0x260] sm:$0xff] %v6452_v36   ;;  %v18768_v11 = vld [vmem:[#allocation271_spill] sm:$0xff]  ;;  %v18771_v22 = vld [vmem:[#allocation273_spill] sm:$0xff]  ;;  %v18772_v44 = vld [vmem:[#allocation170_spill] sm:$0xff] }
 0x6b7   :  { %v18769_v10 = vld [vmem:[#allocation75_spill] sm:$0xff]  ;;  %v6482_v12 = vpack.c.bf16 %v18771_v22, %v18770_v34  ;;  %v18774_v27 = vld [vmem:[#allocation174_spill] sm:$0xff]  ;;  %6745 = vst [vmem:[%s15324_s4 + $0x268] sm:$0xff] %v6457_v8   ;;  %6746 = vst [vmem:[%s15324_s4 + $0x270] sm:$0xff] %v6462_v58  }
 0x6b8   :  { %v6477_v61 = vpack.c.bf16 %v18769_v10, %v18768_v11  ;;  %v18773_v59 = vld [vmem:[#allocation171_spill] sm:$0xff]  ;;  %6747 = vst [vmem:[%s15324_s4 + $0x278] sm:$0xff] %v6467_v7   ;;  %6748 = vst [vmem:[%s15324_s4 + $0x280] sm:$0xff] %v6472_v16   ;;  %v18776_v60 = vld [vmem:[#allocation80_spill] sm:$0xff] }
 0x6b9   :  { %v6487_v52 = vpack.c.bf16 %v18773_v59, %v18772_v44  ;;  %v18775_v1 = vld [vmem:[#allocation175_spill] sm:$0xff]  ;;  %v18777_v15 = vld [vmem:[#allocation274_spill] sm:$0xff]  ;;  %v18779_v40 = vld [vmem:[#allocation276_spill] sm:$0xff]  ;;  %6750 = vst [vmem:[%s15324_s4 + $0x290] sm:$0xff] %v6482_v12  }
 0x6ba   :  { %v6492_v18 = vpack.c.bf16 %v18775_v1, %v18774_v27  ;;  %v6497_v36 = vpack.c.bf16 %v18777_v15, %v18776_v60  ;;  %v18778_v41 = vld [vmem:[#allocation275_spill] sm:$0xff]  ;;  %v18780_v5 = vld [vmem:[#allocation178_spill] sm:$0xff]  ;;  %6749 = vst [vmem:[%s15324_s4 + $0x288] sm:$0xff] %v6477_v61   ;;  %v18784_v7 = vld [vmem:[#allocation277_spill] sm:$0xff] }
 0x6bb   :  { %v6502_v48 = vpack.c.bf16 %v18779_v40, %v18778_v41  ;;  %v18781_v8 = vld [vmem:[#allocation179_spill] sm:$0xff]  ;;  %v18782_v24 = vld [vmem:[#allocation182_spill] sm:$0xff]  ;;  %6751 = vst [vmem:[%s15324_s4 + $0x298] sm:$0xff] %v6487_v52   ;;  %v18794_v60 = vld [vmem:[#allocation280_spill] sm:$0xff] }
 0x6bc   :  { %v6507_v19 = vpack.c.bf16 %v18781_v8, %v18780_v5  ;;  %v18783_v29 = vld [vmem:[#allocation183_spill] sm:$0xff]  ;;  %6752 = vst [vmem:[%s15324_s4 + $0x2a0] sm:$0xff] %v6492_v18   ;;  %v18785_v9 = vld [vmem:[#allocation278_spill] sm:$0xff]  ;;  %6753 = vst [vmem:[%s15324_s4 + $0x2a8] sm:$0xff] %v6497_v36  }
 0x6bd   :  { %v6512_v58 = vpack.c.bf16 %v18783_v29, %v18782_v24  ;;  %v6517_v16 = vpack.c.bf16 %v18785_v9, %v18784_v7  ;;  %v18786_v11 = vld [vmem:[#allocation94_spill] sm:$0xff]  ;;  %v18787_v10 = vld [vmem:[#allocation67_spill] sm:$0xff]  ;;  %6754 = vst [vmem:[%s15324_s4 + $0x2b0] sm:$0xff] %v6502_v48   ;;  %v18795_v15 = vld [vmem:[#allocation281_spill] sm:$0xff]  ;;  %v6552_v48 = vpack.c.bf16 %v14433_v51, %v14427_v26  ;;  %v6562_v51 = vpack.c.bf16 %v14459_v42, %v14453_v49 }
 0x6be   :  { %v6522_v34 = vpack.c.bf16 %v18787_v10, %v18786_v11  ;;  %v18788_v22 = vld [vmem:[#allocation186_spill] sm:$0xff]  ;;  %v18789_v61 = vld [vmem:[#allocation187_spill] sm:$0xff]  ;;  %6755 = vst [vmem:[%s15324_s4 + $0x2b8] sm:$0xff] %v6507_v19   ;;  %v6542_v41 = vpack.c.bf16 %v18795_v15, %v18794_v60  ;;  %v6567_v26 = vpack.c.bf16 %v14471_v2, %v14465_v47  ;;  %v6572_v24 = vpack.c.bf16 %v14483_v46, %v14477_v56 }
 0x6bf   :  { %v6527_v44 = vpack.c.bf16 %v18789_v61, %v18788_v22  ;;  %v18790_v59 = vld [vmem:[#allocation190_spill] sm:$0xff]  ;;  %v18791_v27 = vld [vmem:[#allocation191_spill] sm:$0xff]  ;;  %6756 = vst [vmem:[%s15324_s4 + $0x2c0] sm:$0xff] %v6512_v58   ;;  %6757 = vst [vmem:[%s15324_s4 + $0x2c8] sm:$0xff] %v6517_v16   ;;  %v6577_v47 = vpack.c.bf16 %v14495_v33, %v14489_v35  ;;  %v6587_v49 = vpack.c.bf16 %v14519_v0, %v14513_v38 }
 0x6c0   :  { %v6532_v12 = vpack.c.bf16 %v18791_v27, %v18790_v59  ;;  %v18792_v52 = vld [vmem:[#allocation279_spill] sm:$0xff]  ;;  %v18796_v40 = vld [vmem:[#allocation194_spill] sm:$0xff]  ;;  %6758 = vst [vmem:[%s15324_s4 + $0x2d0] sm:$0xff] %v6522_v34   ;;  %6762 = vst [vmem:[%s15324_s4 + $0x2f0] sm:$0xff] %v6542_v41   ;;  %v6592_v42 = vpack.c.bf16 %v14531_v43, %v14525_v57  ;;  %v6597_v2 = vpack.c.bf16 %v14543_v53, %v14537_v28 }
 0x6c1   :  { %v18793_v1 = vld [vmem:[#allocation99_spill] sm:$0xff]  ;;  %v18797_v36 = vld [vmem:[#allocation198_spill] sm:$0xff]  ;;  %6759 = vst [vmem:[%s15324_s4 + $0x2d8] sm:$0xff] %v6527_v44   ;;  %6764 = vst [vmem:[%s15324_s4 + $0x300] sm:$0xff] %v6552_v48   ;;  %v6602_v56 = vpack.c.bf16 %v14555_v25, %v14549_v45  ;;  %v6607_v46 = vpack.c.bf16 %v14567_v20, %v14561_v50  ;;  %v6612_v35 = vpack.c.bf16 %v14579_v4, %v14573_v55 }
 0x6c2   :  { %v6537_v18 = vpack.c.bf16 %v18793_v1, %v18792_v52  ;;  %v6547_v5 = vpack.c.bf16 %v18797_v36, %v18796_v40  ;;  %6760 = vst [vmem:[%s15324_s4 + $0x2e0] sm:$0xff] %v6532_v12   ;;  %v18798_v8 = vld [vmem:[#allocation199_spill] sm:$0xff]  ;;  %6766 = vst [vmem:[%s15324_s4 + $0x310] sm:$0xff] %v6562_v51   ;;  %v6617_v33 = vpack.c.bf16 %v14591_v3, %v14585_v30  ;;  %v18799_v43 = vld [vmem:[#allocation206_spill] sm:$0xff] }
 0x6c3   :  { %v6557_v19 = vpack.c.bf16 %v14447_v63, %v18798_v8  ;;  %v6582_v63 = vpack.c.bf16 %v14507_v37, %v14501_v23  ;;  %6767 = vst [vmem:[%s15324_s4 + $0x318] sm:$0xff] %v6567_v26   ;;  %6768 = vst [vmem:[%s15324_s4 + $0x320] sm:$0xff] %v6572_v24   ;;  %v6622_v23 = vpack.c.bf16 %v14603_v31, %v14597_v39  ;;  %v18800_v28 = vld [vmem:[#allocation282_spill] sm:$0xff]  ;;  %v18801_v45 = vld [vmem:[#allocation283_spill] sm:$0xff] }
 0x6c4   :  { %6761 = vst [vmem:[%s15324_s4 + $0x2e8] sm:$0xff] %v6537_v18   ;;  %6763 = vst [vmem:[%s15324_s4 + $0x2f8] sm:$0xff] %v6547_v5   ;;  %v6627_v37 = vpack.c.bf16 %v14615_v6, %v14609_v54  ;;  %v6632_v38 = vpack.c.bf16 %v14627_v14, %v14621_v13  ;;  %v6637_v0 = vpack.c.bf16 %v14639_v62, %v14633_v21  ;;  %v18802_v25 = vld [vmem:[#allocation284_spill] sm:$0xff]  ;;  %v18803_v20 = vld [vmem:[#allocation111_spill] sm:$0xff] }
 0x6c5   :  { %6765 = vst [vmem:[%s15324_s4 + $0x308] sm:$0xff] %v6557_v19   ;;  %6769 = vst [vmem:[%s15324_s4 + $0x328] sm:$0xff] %v6577_v47   ;;  %v6642_v57 = vpack.c.bf16 %v14651_v17, %v14645_v32  ;;  %v6647_v53 = vpack.c.bf16 %v18800_v28, %v18799_v43  ;;  %v6652_v50 = vpack.c.bf16 %v18802_v25, %v18801_v45  ;;  %v18804_v55 = vld [vmem:[#allocation207_spill] sm:$0xff]  ;;  %v18806_v3 = vld [vmem:[#allocation36_spill] sm:$0xff] }
 0x6c6   :  { %6770 = vst [vmem:[%s15324_s4 + $0x330] sm:$0xff] %v6582_v63   ;;  %6771 = vst [vmem:[%s15324_s4 + $0x338] sm:$0xff] %v6587_v49   ;;  %v6657_v4 = vpack.c.bf16 %v18804_v55, %v18803_v20  ;;  %v18805_v30 = vld [vmem:[#allocation35_spill] sm:$0xff]  ;;  %v18807_v31 = vld [vmem:[#allocation42_spill] sm:$0xff] }
 0x6c7   :  { %6772 = vst [vmem:[%s15324_s4 + $0x340] sm:$0xff] %v6592_v42   ;;  %6773 = vst [vmem:[%s15324_s4 + $0x348] sm:$0xff] %v6597_v2   ;;  %v6662_v39 = vpack.c.bf16 %v18806_v3, %v18805_v30  ;;  %v18808_v54 = vld [vmem:[#allocation132_spill] sm:$0xff] }
 0x6c8   :  { %6774 = vst [vmem:[%s15324_s4 + $0x350] sm:$0xff] %v6602_v56   ;;  %6775 = vst [vmem:[%s15324_s4 + $0x358] sm:$0xff] %v6607_v46   ;;  %v6667_v6 = vpack.c.bf16 %v18808_v54, %v18807_v31 }
 0x6c9   :  { %6776 = vst [vmem:[%s15324_s4 + $0x360] sm:$0xff] %v6612_v35   ;;  %6777 = vst [vmem:[%s15324_s4 + $0x368] sm:$0xff] %v6617_v33  }
 0x6ca   :  { %6778 = vst [vmem:[%s15324_s4 + $0x370] sm:$0xff] %v6622_v23   ;;  %6779 = vst [vmem:[%s15324_s4 + $0x378] sm:$0xff] %v6627_v37  }
 0x6cb   :  { %6780 = vst [vmem:[%s15324_s4 + $0x380] sm:$0xff] %v6632_v38   ;;  %6781 = vst [vmem:[%s15324_s4 + $0x388] sm:$0xff] %v6637_v0  }
 0x6cc   :  { %6782 = vst [vmem:[%s15324_s4 + $0x390] sm:$0xff] %v6642_v57   ;;  %6783 = vst [vmem:[%s15324_s4 + $0x398] sm:$0xff] %v6647_v53  }
 0x6cd   :  { %6784 = vst [vmem:[%s15324_s4 + $0x3a0] sm:$0xff] %v6652_v50   ;;  %6785 = vst [vmem:[%s15324_s4 + $0x3a8] sm:$0xff] %v6657_v4  }
 0x6ce   :  { %6786 = vst [vmem:[%s15324_s4 + $0x3b0] sm:$0xff] %v6662_v39   ;;  %6787 = vst [vmem:[%s15324_s4 + $0x3b8] sm:$0xff] %v6667_v6  }

// kernel: classifier_forward.5
= control target key start
LH: loop header
LB: loop body
LE: loop exit
PB: predicated region body
PF: predicated region fallthrough
CT: control target
= control target key end

     0   :  { %v1829_v0 = vmov 0   ;;  %s2937_s1 = inlined_call_operand.vmem [shape: bf16[256,128], index: 1, kind: input, shape index: {}]   ;;  %s2938_s0 = inlined_call_operand.vmem [shape: bf16[392,256], index: 0, kind: input, shape index: {}]   ;;  %s2939_s2 = inlined_call_operand.vmem [shape: f32[1,128], index: 2, kind: input, shape index: {}]   ;;  %s2940_s3 = inlined_call_operand.vmem [shape: f32[1,128], index: 3, kind: input, shape index: {}]   ;;  %s2941_s4 = inlined_call_operand.vmem [shape: bf16[392,128], index: 4, kind: output, shape index: {}]  }
   0x1   :  { %442 = vmatprep.subr.bf16.mxu0 %v1829_v0  ;;  %v1737_v1 = vld [vmem:[%s2937_s1] sm:$0xff]   ;;  %1704 = vmatprep.subr.bf16.mxu1 %v1829_v0  ;;  %v1738_v2 = vld [vmem:[%s2937_s1 + $0x8] sm:$0xff]   ;;  %v1739_v3 = vld [vmem:[%s2937_s1 + $0x10] sm:$0xff]  }
   0x2   :  { %443 = vmatpush1.bf16.msra.mxu0 %v1737_v1  ;;  %1720 = vmatpush1.bf16.msra.mxu1 %v1737_v1  ;;  %v1740_v4 = vld [vmem:[%s2937_s1 + $0x18] sm:$0xff]   ;;  %v1741_v5 = vld [vmem:[%s2937_s1 + $0x20] sm:$0xff]   ;;  %v1742_v7 = vld [vmem:[%s2937_s1 + $0x28] sm:$0xff]  }
   0x3   :  { %444 = vmatprep.subr.bf16.mxu0 %v1829_v0  ;;  %1705 = vmatprep.subr.bf16.mxu1 %v1829_v0  ;;  %v1755_v6 = vld [vmem:[%s2938_s0 + $0x4] ss:$8 sps:$4 sm:$0xff]   ;;  %v1743_v8 = vld [vmem:[%s2937_s1 + $0x30] sm:$0xff]   ;;  %v1744_v9 = vld [vmem:[%s2937_s1 + $0x38] sm:$0xff]  }
   0x4   :  { %474 = vmatprep.mubr.bf16.mxu0 %v1755_v6  ;;  %v1776_v10 = vld [vmem:[%s2938_s0 + $0xd4] ss:$8 sps:$4 sm:$0xff]   ;;  %v1745_v11 = vld [vmem:[%s2937_s1 + $0x40] sm:$0xff]   ;;  %v1746_v12 = vld [vmem:[%s2937_s1 + $0x48] sm:$0xff]  }
   0x5   :  { %578 = vmatprep.mubr.bf16.mxu1 %v1776_v10  ;;  %v1747_v13 = vld [vmem:[%s2937_s1 + $0x50] sm:$0xff]   ;;  %v1748_v14 = vld [vmem:[%s2937_s1 + $0x58] sm:$0xff]   ;;  %v1749_v15 = vld [vmem:[%s2937_s1 + $0x60] sm:$0xff]  }
   0x6   :  { %445 = vmatpush1.bf16.msra.mxu0 %v1738_v2  ;;  %1721 = vmatpush1.bf16.msra.mxu1 %v1738_v2  ;;  %v1750_v16 = vld [vmem:[%s2937_s1 + $0x68] sm:$0xff]   ;;  %v1751_v17 = vld [vmem:[%s2937_s1 + $0x70] sm:$0xff]   ;;  %v1752_v18 = vld [vmem:[%s2937_s1 + $0x78] sm:$0xff]  }
   0x7   :  { %446 = vmatprep.subr.bf16.mxu0 %v1829_v0  ;;  %1706 = vmatprep.subr.bf16.mxu1 %v1829_v0  ;;  %v1753_v19 = vld [vmem:[%s2938_s0] ss:$8 sps:$4 sm:$0xff]   ;;  %v1774_v20 = vld [vmem:[%s2938_s0 + $0xd0] ss:$8 sps:$4 sm:$0xff]   ;;  %v1756_v21 = vld [vmem:[%s2938_s0 + $0x14] ss:$8 sps:$4 sm:$0xff]  }
   0x8   :  { %v1780_v22 = vld [vmem:[%s2938_s0 + $0xe4] ss:$8 sps:$4 sm:$0xff]   ;;  %v1758_v23 = vld [vmem:[%s2938_s0 + $0x10] ss:$8 sps:$4 sm:$0xff]   ;;  %v1782_v24 = vld [vmem:[%s2938_s0 + $0xe0] ss:$8 sps:$4 sm:$0xff]  }
   0x9   :  { %v1759_v25 = vld [vmem:[%s2938_s0 + $0x24] ss:$8 sps:$4 sm:$0xff]   ;;  %v1786_v26 = vld [vmem:[%s2938_s0 + $0xf4] ss:$8 sps:$4 sm:$0xff]   ;;  %v1761_v27 = vld [vmem:[%s2938_s0 + $0x20] ss:$8 sps:$4 sm:$0xff]  }
   0xa   :  { %447 = vmatpush1.bf16.msra.mxu0 %v1739_v3  ;;  %1722 = vmatpush1.bf16.msra.mxu1 %v1739_v3  ;;  %v1788_v28 = vld [vmem:[%s2938_s0 + $0xf0] ss:$8 sps:$4 sm:$0xff]   ;;  %v1762_v29 = vld [vmem:[%s2938_s0 + $0x34] ss:$8 sps:$4 sm:$0xff]   ;;  %v1792_v30 = vld [vmem:[%s2938_s0 + $0x104] ss:$8 sps:$4 sm:$0xff]  }
   0xb   :  { %448 = vmatprep.subr.bf16.mxu0 %v1829_v0  ;;  %1707 = vmatprep.subr.bf16.mxu1 %v1829_v0  ;;  %v1764_v31 = vld [vmem:[%s2938_s0 + $0x30] ss:$8 sps:$4 sm:$0xff]   ;;  %v1794_v32 = vld [vmem:[%s2938_s0 + $0x100] ss:$8 sps:$4 sm:$0xff]   ;;  %v1765_v33 = vld [vmem:[%s2938_s0 + $0x44] ss:$8 sps:$4 sm:$0xff]  }
   0xc   :  { %v1798_v34 = vld [vmem:[%s2938_s0 + $0x114] ss:$8 sps:$4 sm:$0xff]   ;;  %v1767_v35 = vld [vmem:[%s2938_s0 + $0x40] ss:$8 sps:$4 sm:$0xff]   ;;  %v1800_v36 = vld [vmem:[%s2938_s0 + $0x110] ss:$8 sps:$4 sm:$0xff]  }
   0xd   :  { %v1768_v37 = vld [vmem:[%s2938_s0 + $0x54] ss:$8 sps:$4 sm:$0xff]   ;;  %v1804_v38 = vld [vmem:[%s2938_s0 + $0x124] ss:$8 sps:$4 sm:$0xff]   ;;  %v1770_v39 = vld [vmem:[%s2938_s0 + $0x50] ss:$8 sps:$4 sm:$0xff]  }
   0xe   :  { %449 = vmatpush1.bf16.msra.mxu0 %v1740_v4  ;;  %1723 = vmatpush1.bf16.msra.mxu1 %v1740_v4  ;;  %v1806_v40 = vld [vmem:[%s2938_s0 + $0x120] ss:$8 sps:$4 sm:$0xff]   ;;  %v1771_v41 = vld [vmem:[%s2938_s0 + $0x64] ss:$8 sps:$4 sm:$0xff]   ;;  %v1810_v42 = vld [vmem:[%s2938_s0 + $0x134] ss:$8 sps:$4 sm:$0xff]  }
   0xf   :  { %450 = vmatprep.subr.bf16.mxu0 %v1829_v0  ;;  %1708 = vmatprep.subr.bf16.mxu1 %v1829_v0  ;;  %v1773_v43 = vld [vmem:[%s2938_s0 + $0x60] ss:$8 sps:$4 sm:$0xff]   ;;  %v1812_v44 = vld [vmem:[%s2938_s0 + $0x130] ss:$8 sps:$4 sm:$0xff]   ;;  %v1777_v45 = vld [vmem:[%s2938_s0 + $0x74] ss:$8 sps:$4 sm:$0xff]  }
  0x10   :  { %v1813_v46 = vld [vmem:[%s2938_s0 + $0x144] ss:$8 sps:$4 sm:$0xff]   ;;  %v1779_v47 = vld [vmem:[%s2938_s0 + $0x70] ss:$8 sps:$4 sm:$0xff]   ;;  %v1815_v48 = vld [vmem:[%s2938_s0 + $0x140] ss:$8 sps:$4 sm:$0xff]  }
  0x11   :  { %v1783_v49 = vld [vmem:[%s2938_s0 + $0x84] ss:$8 sps:$4 sm:$0xff]   ;;  %v1816_v50 = vld [vmem:[%s2938_s0 + $0x154] ss:$8 sps:$4 sm:$0xff]   ;;  %v1785_v51 = vld [vmem:[%s2938_s0 + $0x80] ss:$8 sps:$4 sm:$0xff]  }
  0x12   :  { %451 = vmatpush1.bf16.msra.mxu0 %v1741_v5  ;;  %1724 = vmatpush1.bf16.msra.mxu1 %v1741_v5  ;;  %v1818_v52 = vld [vmem:[%s2938_s0 + $0x150] ss:$8 sps:$4 sm:$0xff]   ;;  %v1789_v53 = vld [vmem:[%s2938_s0 + $0x94] ss:$8 sps:$4 sm:$0xff]   ;;  %v1819_v54 = vld [vmem:[%s2938_s0 + $0x164] ss:$8 sps:$4 sm:$0xff]  }
  0x13   :  { %452 = vmatprep.subr.bf16.mxu0 %v1829_v0  ;;  %1709 = vmatprep.subr.bf16.mxu1 %v1829_v0  ;;  %v1791_v55 = vld [vmem:[%s2938_s0 + $0x90] ss:$8 sps:$4 sm:$0xff]   ;;  %v1821_v56 = vld [vmem:[%s2938_s0 + $0x160] ss:$8 sps:$4 sm:$0xff]   ;;  %v1795_v57 = vld [vmem:[%s2938_s0 + $0xa4] ss:$8 sps:$4 sm:$0xff]  }
  0x14   :  { %v1822_v58 = vld [vmem:[%s2938_s0 + $0x174] ss:$8 sps:$4 sm:$0xff]   ;;  %v66_v59 = vld [vmem:[%s2938_s0 + $0x180] sm:$0xff]  ;;  %v1824_v61 = vld [vmem:[%s2938_s0 + $0x170] ss:$8 sps:$4 sm:$0xff]  }
  0x15   :  { %v1797_v60 = vld [vmem:[%s2938_s0 + $0xa0] ss:$8 sps:$4 sm:$0xff]   ;;  %v1801_v62 = vld [vmem:[%s2938_s0 + $0xb4] ss:$8 sps:$4 sm:$0xff]   ;;  %v1445_v63 = vcombine.high %v66_v59, %v66_v59  ;;  %v1444_v1 = vcombine.low %v66_v59, %v66_v59  ;;  %v1807_v2 = vld [vmem:[%s2938_s0 + $0xc4] ss:$8 sps:$4 sm:$0xff]  }
  0x16   :  { %453 = vmatpush1.bf16.msra.mxu0 %v1742_v7  ;;  %1725 = vmatpush1.bf16.msra.mxu1 %v1742_v7  ;;  %v1809_v3 = vld [vmem:[%s2938_s0 + $0xc0] ss:$8 sps:$4 sm:$0xff]  }
  0x17   :  { %454 = vmatprep.subr.bf16.mxu0 %v1829_v0  ;;  %1710 = vmatprep.subr.bf16.mxu1 %v1829_v0 }
  0x1a   :  { %455 = vmatpush1.bf16.msra.mxu0 %v1743_v8  ;;  %1726 = vmatpush1.bf16.msra.mxu1 %v1743_v8 }
  0x1b   :  { %456 = vmatprep.subr.bf16.mxu0 %v1829_v0  ;;  %1711 = vmatprep.subr.bf16.mxu1 %v1829_v0 }
  0x1e   :  { %457 = vmatpush1.bf16.msra.mxu0 %v1744_v9  ;;  %1727 = vmatpush1.bf16.msra.mxu1 %v1744_v9 }
  0x1f   :  { %458 = vmatprep.subr.bf16.mxu0 %v1829_v0  ;;  %1712 = vmatprep.subr.bf16.mxu1 %v1829_v0 }
  0x22   :  { %459 = vmatpush1.bf16.msra.mxu0 %v1745_v11  ;;  %1728 = vmatpush1.bf16.msra.mxu1 %v1745_v11 }
  0x23   :  { %460 = vmatprep.subr.bf16.mxu0 %v1829_v0  ;;  %1713 = vmatprep.subr.bf16.mxu1 %v1829_v0 }
  0x26   :  { %461 = vmatpush1.bf16.msra.mxu0 %v1746_v12  ;;  %1729 = vmatpush1.bf16.msra.mxu1 %v1746_v12 }
  0x27   :  { %462 = vmatprep.subr.bf16.mxu0 %v1829_v0  ;;  %1714 = vmatprep.subr.bf16.mxu1 %v1829_v0 }
  0x2a   :  { %463 = vmatpush1.bf16.msra.mxu0 %v1747_v13  ;;  %1730 = vmatpush1.bf16.msra.mxu1 %v1747_v13 }
  0x2b   :  { %464 = vmatprep.subr.bf16.mxu0 %v1829_v0  ;;  %1715 = vmatprep.subr.bf16.mxu1 %v1829_v0 }
  0x2e   :  { %465 = vmatpush1.bf16.msra.mxu0 %v1748_v14  ;;  %1731 = vmatpush1.bf16.msra.mxu1 %v1748_v14 }
  0x2f   :  { %466 = vmatprep.subr.bf16.mxu0 %v1829_v0  ;;  %1716 = vmatprep.subr.bf16.mxu1 %v1829_v0 }
  0x32   :  { %467 = vmatpush1.bf16.msra.mxu0 %v1749_v15  ;;  %1732 = vmatpush1.bf16.msra.mxu1 %v1749_v15 }
  0x33   :  { %468 = vmatprep.subr.bf16.mxu0 %v1829_v0  ;;  %1717 = vmatprep.subr.bf16.mxu1 %v1829_v0 }
  0x36   :  { %469 = vmatpush1.bf16.msra.mxu0 %v1750_v16  ;;  %1733 = vmatpush1.bf16.msra.mxu1 %v1750_v16 }
  0x37   :  { %470 = vmatprep.subr.bf16.mxu0 %v1829_v0  ;;  %1718 = vmatprep.subr.bf16.mxu1 %v1829_v0 }
  0x3a   :  { %471 = vmatpush1.bf16.msra.mxu0 %v1751_v17  ;;  %1734 = vmatpush1.bf16.msra.mxu1 %v1751_v17 }
  0x3b   :  { %472 = vmatprep.subr.bf16.mxu0 %v1829_v0  ;;  %1719 = vmatprep.subr.bf16.mxu1 %v1829_v0  ;;  %v1803_v0 = vld [vmem:[%s2938_s0 + $0xb0] ss:$8 sps:$4 sm:$0xff]  }
  0x3e   :  { %473 = vmatpush1.bf16.msra.mxu0 %v1752_v18  ;;  %1735 = vmatpush1.bf16.msra.mxu1 %v1752_v18 }
  0x41   :  { %475 = vmatmul.mubr.bf16.vlgmr.msra.gmra.mrb[0].mxu0 %v1753_v19  ;;  %579 = vmatmul.mubr.bf16.vlgmr.msra.gmra.mrb[0].mxu1 %v1774_v20 }
  0x42   :  { %482 = vmatprep.mubr.bf16.mxu0 %v1756_v21  ;;  %586 = vmatprep.mubr.bf16.mxu1 %v1780_v22 }
  0x49   :  { %483 = vmatmul.mubr.bf16.gmra.mrb[4].mxu0 %v1758_v23  ;;  %587 = vmatmul.mubr.bf16.gmra.mrb[4].mxu1 %v1782_v24 }
  0x4a   :  { %490 = vmatprep.mubr.bf16.mxu0 %v1759_v25  ;;  %594 = vmatprep.mubr.bf16.mxu1 %v1786_v26 }
  0x51   :  { %491 = vmatmul.mubr.bf16.gmra.mrb[8].mxu0 %v1761_v27  ;;  %595 = vmatmul.mubr.bf16.gmra.mrb[8].mxu1 %v1788_v28 }
  0x52   :  { %498 = vmatprep.mubr.bf16.mxu0 %v1762_v29  ;;  %602 = vmatprep.mubr.bf16.mxu1 %v1792_v30 }
  0x59   :  { %499 = vmatmul.mubr.bf16.gmra.mrb[12].mxu0 %v1764_v31  ;;  %603 = vmatmul.mubr.bf16.gmra.mrb[12].mxu1 %v1794_v32 }
  0x5a   :  { %506 = vmatprep.mubr.bf16.mxu0 %v1765_v33  ;;  %610 = vmatprep.mubr.bf16.mxu1 %v1798_v34 }
  0x61   :  { %507 = vmatmul.mubr.bf16.gmra.mrb[16].mxu0 %v1767_v35  ;;  %611 = vmatmul.mubr.bf16.gmra.mrb[16].mxu1 %v1800_v36 }
  0x62   :  { %514 = vmatprep.mubr.bf16.mxu0 %v1768_v37  ;;  %618 = vmatprep.mubr.bf16.mxu1 %v1804_v38 }
  0x69   :  { %515 = vmatmul.mubr.bf16.gmra.mrb[20].mxu0 %v1770_v39  ;;  %619 = vmatmul.mubr.bf16.gmra.mrb[20].mxu1 %v1806_v40 }
  0x6a   :  { %522 = vmatprep.mubr.bf16.mxu0 %v1771_v41  ;;  %626 = vmatprep.mubr.bf16.mxu1 %v1810_v42 }
  0x71   :  { %523 = vmatmul.mubr.bf16.gmra.mrb[24].mxu0 %v1773_v43  ;;  %627 = vmatmul.mubr.bf16.gmra.mrb[24].mxu1 %v1812_v44 }
  0x72   :  { %530 = vmatprep.mubr.bf16.mxu0 %v1777_v45  ;;  %634 = vmatprep.mubr.bf16.mxu1 %v1813_v46 }
  0x79   :  { %531 = vmatmul.mubr.bf16.gmra.mrb[28].mxu0 %v1779_v47  ;;  %635 = vmatmul.mubr.bf16.gmra.mrb[28].mxu1 %v1815_v48 }
  0x7a   :  { %538 = vmatprep.mubr.bf16.mxu0 %v1783_v49  ;;  %642 = vmatprep.mubr.bf16.mxu1 %v1816_v50 }
  0x81   :  { %539 = vmatmul.mubr.bf16.gmra.mrb[32].mxu0 %v1785_v51  ;;  %643 = vmatmul.mubr.bf16.gmra.mrb[32].mxu1 %v1818_v52 }
  0x82   :  { %546 = vmatprep.mubr.bf16.mxu0 %v1789_v53  ;;  %650 = vmatprep.mubr.bf16.mxu1 %v1819_v54 }
  0x89   :  { %547 = vmatmul.mubr.bf16.gmra.mrb[36].mxu0 %v1791_v55  ;;  %651 = vmatmul.mubr.bf16.gmra.mrb[36].mxu1 %v1821_v56 }
  0x8a   :  { %554 = vmatprep.mubr.bf16.mxu0 %v1795_v57  ;;  %658 = vmatprep.mubr.bf16.mxu1 %v1822_v58 }
  0x91   :  { %555 = vmatmul.mubr.bf16.gmra.mrb[40].mxu0 %v1797_v60  ;;  %659 = vmatmul.mubr.bf16.gmra.mrb[40].mxu1 %v1824_v61 }
  0x92   :  { %562 = vmatprep.mubr.bf16.mxu0 %v1801_v62  ;;  %666 = vmatprep.mubr.bf16.mxu1 %v1445_v63 }
  0x99   :  { %563 = vmatmul.mubr.bf16.gmra.mrb[44].mxu0 %v1803_v0  ;;  %667 = vmatmul.mubr.bf16.gmra.mrb[44].mxu1 %v1444_v1 }
  0x9a   :  { %570 = vmatprep.mubr.bf16.mxu0 %v1807_v2 }
  0xa1   :  { %571 = vmatmul.mubr.bf16.gmra.mrb[48].mxu0 %v1809_v3 }
 0x114   :  { %v2082_v4 = vpop.f32.mrb[0].mxu0  ;;  %v2084_v5 = vpop.f32.mrb[0].mxu1 }
 0x115   :  { %v478_v6 = vpop.f32.mrb[1].mxu0  ;;  %v582_v7 = vpop.f32.mrb[1].mxu1  ;;  %v728_v10 = vmul.f32 %v2082_v4, %v2082_v4 }
 0x116   :  { %v2086_v8 = vpop.f32.mrb[2].mxu0  ;;  %v2088_v9 = vpop.f32.mrb[2].mxu1 }
 0x117   :  { %v674_v11 = vadd.f32 %v2086_v8, %v2082_v4  ;;  %v729_v12 = vmul.f32 %v2086_v8, %v2086_v8  ;;  %v481_v13 = vpop.f32.mrb[3].mxu0  ;;  %v585_v14 = vpop.f32.mrb[3].mxu1 }
 0x119   :  { %v777_v15 = vadd.f32 %v729_v12, %v728_v10 }
 0x11c   :  { %v2096_v16 = vpop.f32.mrb[4].mxu0  ;;  %v2098_v17 = vpop.f32.mrb[4].mxu1 }
 0x11d   :  { %v675_v18 = vadd.f32 %v674_v11, %v2096_v16  ;;  %v730_v19 = vmul.f32 %v2096_v16, %v2096_v16  ;;  %v486_v20 = vpop.f32.mrb[5].mxu0  ;;  %v590_v21 = vpop.f32.mrb[5].mxu1 }
 0x11e   :  { %v2103_v22 = vpop.f32.mrb[6].mxu0  ;;  %v2105_v23 = vpop.f32.mrb[6].mxu1 }
 0x11f   :  { %v778_v24 = vadd.f32 %v777_v15, %v730_v19  ;;  %v676_v25 = vadd.f32 %v675_v18, %v2103_v22  ;;  %v731_v26 = vmul.f32 %v2103_v22, %v2103_v22  ;;  %v489_v27 = vpop.f32.mrb[7].mxu0  ;;  %v593_v28 = vpop.f32.mrb[7].mxu1 }
 0x121   :  { %v779_v29 = vadd.f32 %v778_v24, %v731_v26 }
 0x124   :  { %v2110_v30 = vpop.f32.mrb[8].mxu0  ;;  %v2112_v31 = vpop.f32.mrb[8].mxu1 }
 0x125   :  { %v677_v32 = vadd.f32 %v676_v25, %v2110_v30  ;;  %v732_v33 = vmul.f32 %v2110_v30, %v2110_v30  ;;  %v494_v34 = vpop.f32.mrb[9].mxu0  ;;  %v598_v35 = vpop.f32.mrb[9].mxu1 }
 0x126   :  { %v2117_v36 = vpop.f32.mrb[10].mxu0  ;;  %v2119_v37 = vpop.f32.mrb[10].mxu1 }
 0x127   :  { %v780_v38 = vadd.f32 %v779_v29, %v732_v33  ;;  %v678_v39 = vadd.f32 %v677_v32, %v2117_v36  ;;  %v733_v40 = vmul.f32 %v2117_v36, %v2117_v36  ;;  %v497_v41 = vpop.f32.mrb[11].mxu0  ;;  %v601_v42 = vpop.f32.mrb[11].mxu1 }
 0x129   :  { %v781_v43 = vadd.f32 %v780_v38, %v733_v40 }
 0x12c   :  { %v2124_v44 = vpop.f32.mrb[12].mxu0  ;;  %v2126_v45 = vpop.f32.mrb[12].mxu1 }
 0x12d   :  { %v679_v46 = vadd.f32 %v678_v39, %v2124_v44  ;;  %v734_v47 = vmul.f32 %v2124_v44, %v2124_v44  ;;  %v502_v48 = vpop.f32.mrb[13].mxu0  ;;  %v606_v49 = vpop.f32.mrb[13].mxu1 }
 0x12e   :  { %v2131_v50 = vpop.f32.mrb[14].mxu0  ;;  %v2133_v51 = vpop.f32.mrb[14].mxu1 }
 0x12f   :  { %v782_v52 = vadd.f32 %v781_v43, %v734_v47  ;;  %v680_v53 = vadd.f32 %v679_v46, %v2131_v50  ;;  %v735_v54 = vmul.f32 %v2131_v50, %v2131_v50  ;;  %v505_v55 = vpop.f32.mrb[15].mxu0  ;;  %v609_v56 = vpop.f32.mrb[15].mxu1 }
 0x131   :  { %v783_v57 = vadd.f32 %v782_v52, %v735_v54 }
 0x134   :  { %v2138_v58 = vpop.f32.mrb[16].mxu0  ;;  %v2140_v59 = vpop.f32.mrb[16].mxu1 }
 0x135   :  { %v681_v60 = vadd.f32 %v680_v53, %v2138_v58  ;;  %v736_v61 = vmul.f32 %v2138_v58, %v2138_v58  ;;  %v510_v62 = vpop.f32.mrb[17].mxu0  ;;  %v614_v63 = vpop.f32.mrb[17].mxu1 }
 0x136   :  { %v2145_v0 = vpop.f32.mrb[18].mxu0  ;;  %v2147_v1 = vpop.f32.mrb[18].mxu1 }
 0x137   :  { %v784_v2 = vadd.f32 %v783_v57, %v736_v61  ;;  %v682_v3 = vadd.f32 %v681_v60, %v2145_v0  ;;  %v737_v6 = vmul.f32 %v2145_v0, %v2145_v0  ;;  %v513_v7 = vpop.f32.mrb[19].mxu0  ;;  %v617_v10 = vpop.f32.mrb[19].mxu1 }
 0x139   :  { %v785_v11 = vadd.f32 %v784_v2, %v737_v6 }
 0x13c   :  { %v2152_v12 = vpop.f32.mrb[20].mxu0  ;;  %v2154_v13 = vpop.f32.mrb[20].mxu1 }
 0x13d   :  { %v683_v14 = vadd.f32 %v682_v3, %v2152_v12  ;;  %v738_v15 = vmul.f32 %v2152_v12, %v2152_v12  ;;  %v518_v18 = vpop.f32.mrb[21].mxu0  ;;  %v622_v19 = vpop.f32.mrb[21].mxu1 }
 0x13e   :  { %v2159_v20 = vpop.f32.mrb[22].mxu0  ;;  %v2161_v21 = vpop.f32.mrb[22].mxu1 }
 0x13f   :  { %v786_v24 = vadd.f32 %v785_v11, %v738_v15  ;;  %v684_v25 = vadd.f32 %v683_v14, %v2159_v20  ;;  %v739_v26 = vmul.f32 %v2159_v20, %v2159_v20  ;;  %v521_v27 = vpop.f32.mrb[23].mxu0  ;;  %v625_v28 = vpop.f32.mrb[23].mxu1 }
 0x141   :  { %v787_v29 = vadd.f32 %v786_v24, %v739_v26 }
 0x144   :  { %v2166_v32 = vpop.f32.mrb[24].mxu0  ;;  %v2168_v33 = vpop.f32.mrb[24].mxu1 }
 0x145   :  { %v685_v34 = vadd.f32 %v684_v25, %v2166_v32  ;;  %v740_v35 = vmul.f32 %v2166_v32, %v2166_v32  ;;  %v526_v38 = vpop.f32.mrb[25].mxu0  ;;  %v630_v39 = vpop.f32.mrb[25].mxu1 }
 0x146   :  { %v2173_v40 = vpop.f32.mrb[26].mxu0  ;;  %v2175_v41 = vpop.f32.mrb[26].mxu1 }
 0x147   :  { %v788_v42 = vadd.f32 %v787_v29, %v740_v35  ;;  %v686_v43 = vadd.f32 %v685_v34, %v2173_v40  ;;  %v741_v46 = vmul.f32 %v2173_v40, %v2173_v40  ;;  %v529_v47 = vpop.f32.mrb[27].mxu0  ;;  %v633_v48 = vpop.f32.mrb[27].mxu1 }
 0x149   :  { %v789_v49 = vadd.f32 %v788_v42, %v741_v46 }
 0x14c   :  { %v2180_v52 = vpop.f32.mrb[28].mxu0  ;;  %v2182_v53 = vpop.f32.mrb[28].mxu1 }
 0x14d   :  { %v687_v54 = vadd.f32 %v686_v43, %v2180_v52  ;;  %v742_v55 = vmul.f32 %v2180_v52, %v2180_v52  ;;  %v534_v56 = vpop.f32.mrb[29].mxu0  ;;  %v638_v57 = vpop.f32.mrb[29].mxu1 }
 0x14e   :  { %v2187_v60 = vpop.f32.mrb[30].mxu0  ;;  %v2189_v61 = vpop.f32.mrb[30].mxu1 }
 0x14f   :  { %2971 = vst [vmem:[#allocation2_spill] sm:$0xff] %v2189_v61  ;;  %v790_v62 = vadd.f32 %v789_v49, %v742_v55  ;;  %v688_v63 = vadd.f32 %v687_v54, %v2187_v60  ;;  %v743_v2 = vmul.f32 %v2187_v60, %v2187_v60  ;;  %v537_v3 = vpop.f32.mrb[31].mxu0  ;;  %v641_v6 = vpop.f32.mrb[31].mxu1 }
 0x151   :  { %v791_v7 = vadd.f32 %v790_v62, %v743_v2 }
 0x154   :  { %v2194_v10 = vpop.f32.mrb[32].mxu0  ;;  %v2196_v11 = vpop.f32.mrb[32].mxu1 }
 0x155   :  { %2972 = vst [vmem:[#allocation3_spill] sm:$0xff] %v2196_v11  ;;  %v689_v14 = vadd.f32 %v688_v63, %v2194_v10  ;;  %v744_v15 = vmul.f32 %v2194_v10, %v2194_v10  ;;  %v542_v18 = vpop.f32.mrb[33].mxu0  ;;  %v646_v19 = vpop.f32.mrb[33].mxu1 }
 0x156   :  { %v2201_v24 = vpop.f32.mrb[34].mxu0  ;;  %v2203_v25 = vpop.f32.mrb[34].mxu1 }
 0x157   :  { %2973 = vst [vmem:[#allocation4_spill] sm:$0xff] %v2203_v25  ;;  %v792_v26 = vadd.f32 %v791_v7, %v744_v15  ;;  %v690_v27 = vadd.f32 %v689_v14, %v2201_v24  ;;  %v745_v28 = vmul.f32 %v2201_v24, %v2201_v24  ;;  %v545_v29 = vpop.f32.mrb[35].mxu0  ;;  %v649_v34 = vpop.f32.mrb[35].mxu1 }
 0x159   :  { %v793_v35 = vadd.f32 %v792_v26, %v745_v28 }
 0x15c   :  { %v2208_v38 = vpop.f32.mrb[36].mxu0  ;;  %v2210_v39 = vpop.f32.mrb[36].mxu1 }
 0x15d   :  { %2974 = vst [vmem:[#allocation5_spill] sm:$0xff] %v2210_v39  ;;  %v691_v42 = vadd.f32 %v690_v27, %v2208_v38  ;;  %v746_v43 = vmul.f32 %v2208_v38, %v2208_v38  ;;  %v550_v46 = vpop.f32.mrb[37].mxu0  ;;  %v654_v47 = vpop.f32.mrb[37].mxu1 }
 0x15e   :  { %v2215_v48 = vpop.f32.mrb[38].mxu0  ;;  %v2217_v49 = vpop.f32.mrb[38].mxu1 }
 0x15f   :  { %2975 = vst [vmem:[#allocation6_spill] sm:$0xff] %v2217_v49  ;;  %v794_v54 = vadd.f32 %v793_v35, %v746_v43  ;;  %v692_v55 = vadd.f32 %v691_v42, %v2215_v48  ;;  %v747_v56 = vmul.f32 %v2215_v48, %v2215_v48  ;;  %v553_v57 = vpop.f32.mrb[39].mxu0  ;;  %v657_v62 = vpop.f32.mrb[39].mxu1 }
 0x161   :  { %v795_v63 = vadd.f32 %v794_v54, %v747_v56 }
 0x164   :  { %v2222_v2 = vpop.f32.mrb[40].mxu0  ;;  %v2224_v3 = vpop.f32.mrb[40].mxu1 }
 0x165   :  { %2976 = vst [vmem:[#allocation7_spill] sm:$0xff] %v2224_v3  ;;  %v693_v6 = vadd.f32 %v692_v55, %v2222_v2  ;;  %v748_v7 = vmul.f32 %v2222_v2, %v2222_v2  ;;  %v558_v14 = vpop.f32.mrb[41].mxu0  ;;  %v662_v15 = vpop.f32.mrb[41].mxu1 }
 0x166   :  { %v2229_v18 = vpop.f32.mrb[42].mxu0  ;;  %v2231_v19 = vpop.f32.mrb[42].mxu1 }
 0x167   :  { %2977 = vst [vmem:[#allocation8_spill] sm:$0xff] %v2231_v19  ;;  %v796_v26 = vadd.f32 %v795_v63, %v748_v7  ;;  %v694_v27 = vadd.f32 %v693_v6, %v2229_v18  ;;  %v749_v28 = vmul.f32 %v2229_v18, %v2229_v18  ;;  %v561_v29 = vpop.f32.mrb[43].mxu0  ;;  %v665_v34 = vpop.f32.mrb[43].mxu1 }
 0x169   :  { %v797_v35 = vadd.f32 %v796_v26, %v749_v28 }
 0x16c   :  { %v2236_v42 = vpop.f32.mrb[44].mxu0  ;;  %v2238_v43 = vpop.f32.mrb[44].mxu1 }
 0x16d   :  { %v695_v46 = vadd.f32 %v694_v27, %v2236_v42  ;;  %v750_v47 = vmul.f32 %v2236_v42, %v2236_v42  ;;  %v566_v54 = vpop.f32.mrb[45].mxu0  ;;  %v670_v55 = vpop.f32.mrb[45].mxu1 }
 0x16e   :  { %v2243_v56 = vpop.f32.mrb[46].mxu0  ;;  %v671_v57 = vpop.f32.mrb[46].mxu1  ;;  %v754_v55 = vmul.f32 %v2084_v5, %v2084_v5 }
 0x16f   :  { %v798_v62 = vadd.f32 %v797_v35, %v750_v47  ;;  %v696_v63 = vadd.f32 %v695_v46, %v2243_v56  ;;  %v751_v6 = vmul.f32 %v2243_v56, %v2243_v56  ;;  %v569_v7 = vpop.f32.mrb[47].mxu0  ;;  %v672_v14 = vpop.f32.mrb[47].mxu1 }
 0x170   :  { %v756_v14 = vmul.f32 %v2098_v17, %v2098_v17 }
 0x171   :  { %v799_v15 = vadd.f32 %v798_v62, %v751_v6 }
 0x174   :  { %v2248_v26 = vpop.f32.mrb[48].mxu0 }
 0x175   :  { %v697_v27 = vadd.f32 %v696_v63, %v2248_v26  ;;  %v752_v28 = vmul.f32 %v2248_v26, %v2248_v26  ;;  %v574_v29 = vpop.f32.mrb[49].mxu0  ;;  %v755_v63 = vmul.f32 %v2088_v9, %v2088_v9 }
 0x176   :  { %v2253_v34 = vpop.f32.mrb[50].mxu0 }
 0x177   :  { %v800_v54 = vadd.f32 %v799_v15, %v752_v28  ;;  %v698_v35 = vadd.f32 %v697_v27, %v2253_v34  ;;  %v753_v46 = vmul.f32 %v2253_v34, %v2253_v34  ;;  %v577_v47 = vpop.f32.mrb[51].mxu0  ;;  %v757_v28 = vmul.f32 %v2105_v23, %v2105_v23 }
 0x179   :  { %v699_v57 = vadd.f32 %v698_v35, %v2084_v5  ;;  %v801_v62 = vadd.f32 %v800_v54, %v753_v46  ;;  %v758_v54 = vmul.f32 %v2112_v31, %v2112_v31 }
 0x17b   :  { %v700_v6 = vadd.f32 %v699_v57, %v2088_v9  ;;  %v802_v7 = vadd.f32 %v801_v62, %v754_v55  ;;  %v759_v55 = vmul.f32 %v2119_v37, %v2119_v37 }
 0x17d   :  { %v701_v15 = vadd.f32 %v700_v6, %v2098_v17  ;;  %v803_v27 = vadd.f32 %v802_v7, %v755_v63  ;;  %v760_v63 = vmul.f32 %v2126_v45, %v2126_v45 }
 0x17f   :  { %v702_v29 = vadd.f32 %v701_v15, %v2105_v23  ;;  %v804_v47 = vadd.f32 %v803_v27, %v756_v14  ;;  %v761_v14 = vmul.f32 %v2133_v51, %v2133_v51 }
 0x181   :  { %v703_v35 = vadd.f32 %v702_v29, %v2112_v31  ;;  %v805_v46 = vadd.f32 %v804_v47, %v757_v28  ;;  %v762_v28 = vmul.f32 %v2140_v59, %v2140_v59 }
 0x183   :  { %v704_v57 = vadd.f32 %v703_v35, %v2119_v37  ;;  %v806_v62 = vadd.f32 %v805_v46, %v758_v54  ;;  %v763_v54 = vmul.f32 %v2147_v1, %v2147_v1 }
 0x185   :  { %v807_v6 = vadd.f32 %v806_v62, %v759_v55  ;;  %v705_v7 = vadd.f32 %v704_v57, %v2126_v45  ;;  %v764_v55 = vmul.f32 %v2154_v13, %v2154_v13 }
 0x187   :  { %v706_v15 = vadd.f32 %v705_v7, %v2133_v51  ;;  %v808_v27 = vadd.f32 %v807_v6, %v760_v63  ;;  %v765_v63 = vmul.f32 %v2161_v21, %v2161_v21 }
 0x189   :  { %v707_v29 = vadd.f32 %v706_v15, %v2140_v59  ;;  %v809_v47 = vadd.f32 %v808_v27, %v761_v14  ;;  %v766_v15 = vmul.f32 %v2168_v33, %v2168_v33 }
 0x18b   :  { %v708_v35 = vadd.f32 %v707_v29, %v2147_v1  ;;  %v810_v46 = vadd.f32 %v809_v47, %v762_v28  ;;  %v767_v47 = vmul.f32 %v2175_v41, %v2175_v41 }
 0x18d   :  { %v709_v57 = vadd.f32 %v708_v35, %v2154_v13  ;;  %v811_v62 = vadd.f32 %v810_v46, %v763_v54  ;;  %v768_v46 = vmul.f32 %v2182_v53, %v2182_v53 }
 0x18f   :  { %v710_v6 = vadd.f32 %v709_v57, %v2161_v21  ;;  %v812_v7 = vadd.f32 %v811_v62, %v764_v55  ;;  %v769_v62 = vmul.f32 %v2189_v61, %v2189_v61 }
 0x191   :  { %v711_v14 = vadd.f32 %v710_v6, %v2168_v33  ;;  %v813_v27 = vadd.f32 %v812_v7, %v765_v63  ;;  %v770_v7 = vmul.f32 %v2196_v11, %v2196_v11 }
 0x193   :  { %v814_v29 = vadd.f32 %v813_v27, %v766_v15  ;;  %v712_v28 = vadd.f32 %v711_v14, %v2175_v41  ;;  %v771_v27 = vmul.f32 %v2203_v25, %v2203_v25 }
 0x195   :  { %v815_v35 = vadd.f32 %v814_v29, %v767_v47  ;;  %v713_v54 = vadd.f32 %v712_v28, %v2182_v53  ;;  %v772_v47 = vmul.f32 %v2210_v39, %v2210_v39 }
 0x197   :  { %v816_v57 = vadd.f32 %v815_v35, %v768_v46  ;;  %v714_v55 = vadd.f32 %v713_v54, %v2189_v61  ;;  %v773_v46 = vmul.f32 %v2217_v49, %v2217_v49 }
 0x199   :  { %v817_v6 = vadd.f32 %v816_v57, %v769_v62  ;;  %v715_v63 = vadd.f32 %v714_v55, %v2196_v11  ;;  %v774_v62 = vmul.f32 %v2224_v3, %v2224_v3 }
 0x19b   :  { %v818_v14 = vadd.f32 %v817_v6, %v770_v7  ;;  %v716_v15 = vadd.f32 %v715_v63, %v2203_v25  ;;  %v775_v7 = vmul.f32 %v2231_v19, %v2231_v19 }
 0x19d   :  { %v819_v29 = vadd.f32 %v818_v14, %v771_v27  ;;  %v717_v28 = vadd.f32 %v716_v15, %v2210_v39  ;;  %v776_v14 = vmul.f32 %v2238_v43, %v2238_v43 }
 0x19f   :  { %v820_v35 = vadd.f32 %v819_v29, %v772_v47  ;;  %v718_v54 = vadd.f32 %v717_v28, %v2217_v49 }
 0x1a1   :  { %v821_v57 = vadd.f32 %v820_v35, %v773_v46  ;;  %v719_v55 = vadd.f32 %v718_v54, %v2224_v3 }
 0x1a3   :  { %v822_v6 = vadd.f32 %v821_v57, %v774_v62  ;;  %v720_v63 = vadd.f32 %v719_v55, %v2231_v19  ;;  %v889_v55 = vlaneseq }
 0x1a5   :  { %v823_v15 = vadd.f32 %v822_v6, %v775_v7  ;;  %v721_v27 = vadd.f32 %v720_v63, %v2238_v43  ;;  %v890_v61 = vshrl.u32 %v889_v55, 7  ;;  %v835_v55 = vld [vmem:[%s2939_s2] sm:$0x1] }
 0x1a7   :  { %v722_v29 = vrot.slane %v721_v27, 4  ;;  %v824_v28 = vadd.f32 %v823_v15, %v776_v14 }
 0x1a9   :  { %v723_v47 = vadd.f32 %v722_v29, %v721_v27  ;;  %v825_v35 = vrot.slane %v824_v28, 4 }
 0x1ab   :  { %v724_v54 = vrot.slane %v723_v47, 2  ;;  %v826_v46 = vadd.f32 %v825_v35, %v824_v28 }
 0x1ad   :  { %v725_v49 = vadd.f32 %v724_v54, %v723_v47  ;;  %v827_v3 = vrot.slane %v826_v46, 2 }
 0x1af   :  { %v726_v57 = vrot.slane %v725_v49, 1  ;;  %v828_v62 = vadd.f32 %v827_v3, %v826_v46 }
 0x1b1   :  { %v727_v39 = vadd.f32 %v726_v57, %v725_v49  ;;  %v829_v25 = vrot.slane %v828_v62, 1 }
 0x1b3   :  { %v830_v19 = vadd.f32 %v829_v25, %v828_v62  ;;  %v2327_v11 = vmul.f32 0.0025510204, %v727_v39 }
 0x1b5   :  { %v832_v6 = vmul.f32 0.0025510204, %v830_v19  ;;  %v833_v63 = vmul.f32 %v2327_v11, %v2327_v11  ;;  %v839_v7 = vsub.f32 %v2082_v4, %v2327_v11  ;;  %v840_v14 = vsub.f32 %v2086_v8, %v2327_v11 }
 0x1b6   :  { %v841_v3 = vsub.f32 %v2096_v16, %v2327_v11  ;;  %v842_v49 = vsub.f32 %v2103_v22, %v2327_v11  ;;  %v843_v25 = vsub.f32 %v2110_v30, %v2327_v11  ;;  %v844_v39 = vsub.f32 %v2117_v36, %v2327_v11 }
 0x1b7   :  { %v834_v19 = vsub.f32 %v832_v6, %v833_v63  ;;  %v845_v15 = vsub.f32 %v2124_v44, %v2327_v11  ;;  %v846_v4 = vsub.f32 %v2131_v50, %v2327_v11  ;;  %v847_v8 = vsub.f32 %v2138_v58, %v2327_v11 }
 0x1b8   :  { %v848_v16 = vsub.f32 %v2145_v0, %v2327_v11  ;;  %v849_v22 = vsub.f32 %v2152_v12, %v2327_v11  ;;  %v850_v30 = vsub.f32 %v2159_v20, %v2327_v11  ;;  %v851_v36 = vsub.f32 %v2166_v32, %v2327_v11 }
 0x1b9   :  { %v836_v27 = vadd.f32 1e-05, %v834_v19  ;;  %v852_v44 = vsub.f32 %v2173_v40, %v2327_v11  ;;  %v853_v50 = vsub.f32 %v2180_v52, %v2327_v11  ;;  %v854_v58 = vsub.f32 %v2187_v60, %v2327_v11 }
 0x1ba   :  { %v855_v0 = vsub.f32 %v2194_v10, %v2327_v11  ;;  %v856_v12 = vsub.f32 %v2201_v24, %v2327_v11  ;;  %v857_v20 = vsub.f32 %v2208_v38, %v2327_v11  ;;  %v858_v32 = vsub.f32 %v2215_v48, %v2327_v11 }
 0x1bb   :  { %1827 = vrsqrt.f32 %v836_v27  ;;  %v859_v40 = vsub.f32 %v2222_v2, %v2327_v11  ;;  %v860_v52 = vsub.f32 %v2229_v18, %v2327_v11  ;;  %v861_v60 = vsub.f32 %v2236_v42, %v2327_v11 }
 0x1bc   :  { %v862_v10 = vsub.f32 %v2243_v56, %v2327_v11  ;;  %v863_v24 = vsub.f32 %v2248_v26, %v2327_v11  ;;  %v864_v38 = vsub.f32 %v2253_v34, %v2327_v11  ;;  %v865_v48 = vsub.f32 %v2084_v5, %v2327_v11 }
 0x1bd   :  { %v866_v2 = vsub.f32 %v2088_v9, %v2327_v11  ;;  %v867_v18 = vsub.f32 %v2098_v17, %v2327_v11  ;;  %v868_v42 = vsub.f32 %v2105_v23, %v2327_v11  ;;  %v869_v56 = vsub.f32 %v2112_v31, %v2327_v11 }
 0x1be   :  { %v870_v26 = vsub.f32 %v2119_v37, %v2327_v11  ;;  %v871_v34 = vsub.f32 %v2126_v45, %v2327_v11  ;;  %v872_v5 = vsub.f32 %v2133_v51, %v2327_v11  ;;  %v873_v9 = vsub.f32 %v2140_v59, %v2327_v11  ;;  %v2978_v59 = vld [vmem:[#allocation2_spill] sm:$0xff] }
 0x1bf   :  { %v874_v17 = vsub.f32 %v2147_v1, %v2327_v11  ;;  %v875_v23 = vsub.f32 %v2154_v13, %v2327_v11  ;;  %v876_v31 = vsub.f32 %v2161_v21, %v2327_v11  ;;  %v877_v37 = vsub.f32 %v2168_v33, %v2327_v11  ;;  %v2979_v1 = vld [vmem:[#allocation3_spill] sm:$0xff]  ;;  %v2980_v13 = vld [vmem:[#allocation4_spill] sm:$0xff]  ;;  %v2981_v21 = vld [vmem:[#allocation5_spill] sm:$0xff] }
 0x1c0   :  { %v878_v45 = vsub.f32 %v2175_v41, %v2327_v11  ;;  %v879_v51 = vsub.f32 %v2182_v53, %v2327_v11  ;;  %v880_v29 = vsub.f32 %v2978_v59, %v2327_v11  ;;  %v881_v28 = vsub.f32 %v2979_v1, %v2327_v11  ;;  %v2982_v33 = vld [vmem:[#allocation6_spill] sm:$0xff]  ;;  %v2983_v41 = vld [vmem:[#allocation7_spill] sm:$0xff]  ;;  %v2984_v53 = vld [vmem:[#allocation8_spill] sm:$0xff] }
 0x1c1   :  { %v882_v47 = vsub.f32 %v2980_v13, %v2327_v11  ;;  %v883_v35 = vsub.f32 %v2981_v21, %v2327_v11  ;;  %v884_v54 = vsub.f32 %v2982_v33, %v2327_v11  ;;  %v885_v46 = vsub.f32 %v2983_v41, %v2327_v11 }
 0x1c2   :  { %v886_v57 = vsub.f32 %v2984_v53, %v2327_v11  ;;  %v887_v62 = vsub.f32 %v2238_v43, %v2327_v11  ;;  %v891_v6 = vsub.s32 0, %v890_v61 }
 0x1c5   :  { %v1828_v63 = vpop.eup %1827 }
 0x1c6   :  { %v838_v19 = vmul.f32 %v1828_v63, %v835_v55 }
 0x1c8   :  { %v892_v27 = vrot.slane %v838_v19, %v891_v6 }
 0x1ca   :  { %v894_v59 = vmul.f32 %v892_v27, %v839_v7  ;;  %v895_v1 = vmul.f32 %v892_v27, %v840_v14  ;;  %v896_v13 = vmul.f32 %v892_v27, %v841_v3  ;;  %v897_v21 = vmul.f32 %v892_v27, %v842_v49 }
 0x1cb   :  { %v898_v33 = vmul.f32 %v892_v27, %v843_v25  ;;  %v899_v41 = vmul.f32 %v892_v27, %v844_v39  ;;  %v900_v53 = vmul.f32 %v892_v27, %v845_v15  ;;  %v901_v11 = vmul.f32 %v892_v27, %v846_v4 }
 0x1cc   :  { %v902_v43 = vmul.f32 %v892_v27, %v847_v8  ;;  %v903_v61 = vmul.f32 %v892_v27, %v848_v16  ;;  %v904_v55 = vmul.f32 %v892_v27, %v849_v22  ;;  %v905_v63 = vmul.f32 %v892_v27, %v850_v30 }
 0x1cd   :  { %v906_v6 = vmul.f32 %v892_v27, %v851_v36  ;;  %v907_v19 = vmul.f32 %v892_v27, %v852_v44  ;;  %v908_v7 = vmul.f32 %v892_v27, %v853_v50  ;;  %v909_v14 = vmul.f32 %v892_v27, %v854_v58 }
 0x1ce   :  { %v910_v3 = vmul.f32 %v892_v27, %v855_v0  ;;  %v911_v49 = vmul.f32 %v892_v27, %v856_v12  ;;  %v912_v25 = vmul.f32 %v892_v27, %v857_v20  ;;  %v913_v39 = vmul.f32 %v892_v27, %v858_v32 }
 0x1cf   :  { %v914_v15 = vmul.f32 %v892_v27, %v859_v40  ;;  %v915_v4 = vmul.f32 %v892_v27, %v860_v52  ;;  %v916_v8 = vmul.f32 %v892_v27, %v861_v60  ;;  %v917_v16 = vmul.f32 %v892_v27, %v862_v10 }
 0x1d0   :  { %v918_v22 = vmul.f32 %v892_v27, %v863_v24  ;;  %v919_v30 = vmul.f32 %v892_v27, %v864_v38  ;;  %v920_v36 = vmul.f32 %v892_v27, %v865_v48  ;;  %v921_v44 = vmul.f32 %v892_v27, %v866_v2 }
 0x1d1   :  { %v922_v50 = vmul.f32 %v892_v27, %v867_v18  ;;  %v923_v58 = vmul.f32 %v892_v27, %v868_v42  ;;  %v924_v0 = vmul.f32 %v892_v27, %v869_v56  ;;  %v925_v12 = vmul.f32 %v892_v27, %v870_v26 }
 0x1d2   :  { %v926_v20 = vmul.f32 %v892_v27, %v871_v34  ;;  %v927_v32 = vmul.f32 %v892_v27, %v872_v5  ;;  %v928_v40 = vmul.f32 %v892_v27, %v873_v9  ;;  %v929_v52 = vmul.f32 %v892_v27, %v874_v17  ;;  %v1462_v17 = vld [vmem:[%s2940_s3] ss:$0 sm:$0xff] }
 0x1d3   :  { %v930_v60 = vmul.f32 %v892_v27, %v875_v23  ;;  %v931_v10 = vmul.f32 %v892_v27, %v876_v31  ;;  %v932_v24 = vmul.f32 %v892_v27, %v877_v37  ;;  %v933_v38 = vmul.f32 %v892_v27, %v878_v45 }
 0x1d4   :  { %v934_v48 = vmul.f32 %v892_v27, %v879_v51  ;;  %v935_v2 = vmul.f32 %v892_v27, %v880_v29  ;;  %v936_v18 = vmul.f32 %v892_v27, %v881_v28  ;;  %v937_v42 = vmul.f32 %v892_v27, %v882_v47 }
 0x1d5   :  { %v938_v56 = vmul.f32 %v892_v27, %v883_v35  ;;  %v939_v26 = vmul.f32 %v892_v27, %v884_v54  ;;  %v940_v34 = vmul.f32 %v892_v27, %v885_v46  ;;  %v941_v5 = vmul.f32 %v892_v27, %v886_v57 }
 0x1d6   :  { %v942_v9 = vmul.f32 %v892_v27, %v887_v62  ;;  %v2435_v23 = vadd.f32 %v1462_v17, %v894_v59  ;;  %v2437_v31 = vadd.f32 %v1462_v17, %v895_v1  ;;  %v2439_v37 = vadd.f32 %v1462_v17, %v896_v13 }
 0x1d7   :  { %v2441_v45 = vadd.f32 %v1462_v17, %v897_v21  ;;  %v2443_v51 = vadd.f32 %v1462_v17, %v898_v33  ;;  %v2445_v29 = vadd.f32 %v1462_v17, %v899_v41  ;;  %v2447_v28 = vadd.f32 %v1462_v17, %v900_v53 }
 0x1d8   :  { %v2449_v47 = vadd.f32 %v1462_v17, %v901_v11  ;;  %v2451_v35 = vadd.f32 %v1462_v17, %v902_v43  ;;  %v2453_v54 = vadd.f32 %v1462_v17, %v903_v61  ;;  %v2455_v46 = vadd.f32 %v1462_v17, %v904_v55 }
 0x1d9   :  { %v2457_v57 = vadd.f32 %v1462_v17, %v905_v63  ;;  %v2459_v62 = vadd.f32 %v1462_v17, %v906_v6  ;;  %v2461_v27 = vadd.f32 %v1462_v17, %v907_v19  ;;  %v2463_v59 = vadd.f32 %v1462_v17, %v908_v7 }
 0x1da   :  { %v2465_v1 = vadd.f32 %v1462_v17, %v909_v14  ;;  %v2467_v13 = vadd.f32 %v1462_v17, %v910_v3  ;;  %v2469_v21 = vadd.f32 %v1462_v17, %v911_v49  ;;  %v2471_v33 = vadd.f32 %v1462_v17, %v912_v25 }
 0x1db   :  { %v2473_v41 = vadd.f32 %v1462_v17, %v913_v39  ;;  %v2475_v53 = vadd.f32 %v1462_v17, %v914_v15  ;;  %v2477_v11 = vadd.f32 %v1462_v17, %v915_v4  ;;  %v2479_v43 = vadd.f32 %v1462_v17, %v916_v8 }
 0x1dc   :  { %v2481_v61 = vadd.f32 %v1462_v17, %v917_v16  ;;  %v2483_v55 = vadd.f32 %v1462_v17, %v918_v22  ;;  %v2485_v63 = vadd.f32 %v1462_v17, %v919_v30  ;;  %v2487_v6 = vadd.f32 %v1462_v17, %v920_v36 }
 0x1dd   :  { %2985 = vst [vmem:[#allocation2_spill] sm:$0xff] %v2477_v11  ;;  %v2489_v19 = vadd.f32 %v1462_v17, %v921_v44  ;;  %v2491_v7 = vadd.f32 %v1462_v17, %v922_v50  ;;  %v2493_v14 = vadd.f32 %v1462_v17, %v923_v58  ;;  %v2495_v3 = vadd.f32 %v1462_v17, %v924_v0 }
 0x1de   :  { %2986 = vst [vmem:[#allocation3_spill] sm:$0xff] %v2483_v55  ;;  %v2497_v49 = vadd.f32 %v1462_v17, %v925_v12  ;;  %v2499_v25 = vadd.f32 %v1462_v17, %v926_v20  ;;  %v2501_v39 = vadd.f32 %v1462_v17, %v927_v32  ;;  %v2503_v15 = vadd.f32 %v1462_v17, %v928_v40 }
 0x1df   :  { %2987 = vst [vmem:[#allocation4_spill] sm:$0xff] %v2489_v19  ;;  %2988 = vst [vmem:[#allocation5_spill] sm:$0xff] %v2495_v3  ;;  %v2505_v4 = vadd.f32 %v1462_v17, %v929_v52  ;;  %v2507_v8 = vadd.f32 %v1462_v17, %v930_v60  ;;  %v2509_v16 = vadd.f32 %v1462_v17, %v931_v10  ;;  %vm999_vm0 = vcmp.ge.f32.partialorder %v2435_v23, 0.0 }
 0x1e0   :  { %v2511_v22 = vadd.f32 %v1462_v17, %v932_v24  ;;  %v2513_v30 = vadd.f32 %v1462_v17, %v933_v38  ;;  %v2515_v36 = vadd.f32 %v1462_v17, %v934_v48  ;;  %v2517_v44 = vadd.f32 %v1462_v17, %v935_v2 }
 0x1e1   :  { %2989 = vst [vmem:[#allocation6_spill] sm:$0xff] %v2507_v8  ;;  %2990 = vst [vmem:[#allocation7_spill] sm:$0xff] %v2509_v16  ;;  %v2519_v50 = vadd.f32 %v1462_v17, %v936_v18  ;;  %v2521_v58 = vadd.f32 %v1462_v17, %v937_v42  ;;  %v2523_v0 = vadd.f32 %v1462_v17, %v938_v56  ;;  %vm1000_vm1 = vcmp.ge.f32.partialorder %v2437_v31, 0.0 }
 0x1e2   :  { %2991 = vst [vmem:[#allocation8_spill] sm:$0xff] %v2511_v22  ;;  %2992 = vst [vmem:[#allocation9_spill] sm:$0xff] %v2513_v30  ;;  %v2525_v12 = vadd.f32 %v1462_v17, %v939_v26  ;;  %v2527_v20 = vadd.f32 %v1462_v17, %v940_v34  ;;  %v2529_v32 = vadd.f32 %v1462_v17, %v941_v5  ;;  %vm1001_vm2 = vcmp.ge.f32.partialorder %v2439_v37, 0.0 }
 0x1e3   :  { %2993 = vst [vmem:[#allocation10_spill] sm:$0xff] %v2515_v36  ;;  %2994 = vst [vmem:[#allocation11_spill] sm:$0xff] %v2517_v44  ;;  %vm1002_vm3 = vcmp.ge.f32.partialorder %v2441_v45, 0.0  ;;  %vm1003_vm4 = vcmp.ge.f32.partialorder %v2443_v51, 0.0  ;;  %vm1004_vm5 = vcmp.ge.f32.partialorder %v2445_v29, 0.0  ;;  %vm1005_vm6 = vcmp.ge.f32.partialorder %v2447_v28, 0.0 }
 0x1e4   :  { %2995 = vst [vmem:[#allocation12_spill] sm:$0xff] %v2519_v50  ;;  %vm1006_vm7 = vcmp.ge.f32.partialorder %v2449_v47, 0.0  ;;  %vm1007_vm8 = vcmp.ge.f32.partialorder %v2451_v35, 0.0  ;;  %vm1008_vm9 = vcmp.ge.f32.partialorder %v2453_v54, 0.0  ;;  %v1048_v40 = vmul.f32 0.2, %v2435_v23 }
 0x1e5   :  { %v2542_v52 = vadd.f32 %v1462_v17, %v942_v9  ;;  %vm1009_vm10 = vcmp.ge.f32.partialorder %v2455_v46, 0.0  ;;  %v1049_v60 = vmul.f32 0.2, %v2437_v31  ;;  %v1050_v10 = vmul.f32 0.2, %v2439_v37 }
 0x1e6   :  { %v1051_v24 = vmul.f32 0.2, %v2441_v45  ;;  %vm1010_vm11 = vcmp.ge.f32.partialorder %v2457_v57, 0.0  ;;  %v1052_v38 = vmul.f32 0.2, %v2443_v51  ;;  %v2555_v18 = vsel %vm999_vm0, %v2435_v23, %v1048_v40 }
 0x1e7   :  { %v1053_v48 = vmul.f32 0.2, %v2445_v29  ;;  %v1054_v2 = vmul.f32 0.2, %v2447_v28  ;;  %2996 = vst [vmem:[#allocation13_spill] sm:$0xff] %v2555_v18  ;;  %vm1011_vm12 = vcmp.ge.f32.partialorder %v2459_v62, 0.0  ;;  %v2564_v34 = vsel %vm1000_vm1, %v2437_v31, %v1049_v60 }
 0x1e8   :  { %v1055_v42 = vmul.f32 0.2, %v2449_v47  ;;  %v1056_v56 = vmul.f32 0.2, %v2451_v35  ;;  %v1057_v26 = vmul.f32 0.2, %v2453_v54  ;;  %v2579_v23 = vsel %vm1001_vm2, %v2439_v37, %v1050_v10 }
 0x1e9   :  { %2997 = vst [vmem:[#allocation14_spill] sm:$0xff] %v2564_v34  ;;  %vm1012_vm13 = vcmp.ge.f32.partialorder %v2461_v27, 0.0  ;;  %v2568_v5 = vmul.f32 0.2, %v2455_v46  ;;  %v2571_v9 = vmul.f32 0.2, %v2457_v57  ;;  %v2594_v34 = vsel %vm1002_vm3, %v2441_v45, %v1051_v24 }
 0x1ea   :  { %v2574_v17 = vmul.f32 0.2, %v2459_v62  ;;  %2998 = vst [vmem:[#allocation15_spill] sm:$0xff] %v2579_v23  ;;  %vm1013_vm14 = vcmp.ge.f32.partialorder %v2463_v59, 0.0  ;;  %v2583_v31 = vmul.f32 0.2, %v2461_v27  ;;  %v2612_v45 = vsel %vm1003_vm4, %v2443_v51, %v1052_v38 }
 0x1eb   :  { %v2586_v40 = vmul.f32 0.2, %v2463_v59  ;;  %v2589_v60 = vmul.f32 0.2, %v2465_v1  ;;  %2999 = vst [vmem:[#allocation16_spill] sm:$0xff] %v2594_v34  ;;  %vm1014_vm15 = vcmp.ge.f32.partialorder %v2465_v1, 0.0  ;;  %v2630_v51 = vsel %vm1004_vm5, %v2445_v29, %v1053_v48 }
 0x1ec   :  { %v2601_v37 = vmul.f32 0.2, %v2467_v13  ;;  %v2604_v10 = vmul.f32 0.2, %v2469_v21  ;;  %v2607_v23 = vmul.f32 0.2, %v2471_v33  ;;  %v2648_v29 = vsel %vm1005_vm6, %v2447_v28, %v1054_v2 }
 0x1ed   :  { %3000 = vst [vmem:[#allocation17_spill] sm:$0xff] %v2612_v45  ;;  %vm1018_vm3 = vcmp.ge.f32.partialorder %v2473_v41, 0.0  ;;  %v2619_v24 = vmul.f32 0.2, %v2473_v41  ;;  %v2622_v34 = vmul.f32 0.2, %v2475_v53 }
 0x1ee   :  { %v2625_v18 = vmul.f32 0.2, %v2477_v11  ;;  %3001 = vst [vmem:[#allocation18_spill] sm:$0xff] %v2630_v51  ;;  %vm1022_vm4 = vcmp.ge.f32.partialorder %v2481_v61, 0.0  ;;  %v2637_v38 = vmul.f32 0.2, %v2479_v43 }
 0x1ef   :  { %v2640_v45 = vmul.f32 0.2, %v2481_v61  ;;  %v2643_v11 = vmul.f32 0.2, %v2483_v55  ;;  %3003 = vst [vmem:[#allocation20_spill] sm:$0xff] %v2648_v29  ;;  %vm1029_vm2 = vcmp.ge.f32.partialorder %v2495_v3, 0.0 }
 0x1f0   :  { %v1073_v48 = vmul.f32 0.2, %v2485_v63  ;;  %v1074_v51 = vmul.f32 0.2, %v2487_v6  ;;  %v1075_v55 = vmul.f32 0.2, %v2489_v19  ;;  %v2672_v19 = vsel %vm1007_vm8, %v2451_v35, %v1056_v56 }
 0x1f1   :  { %3002 = vst [vmem:[#allocation19_spill] sm:$0xff] %v2643_v11  ;;  %v2660_v11 = vsel %vm1006_vm7, %v2449_v47, %v1055_v42  ;;  %vm1033_vm1 = vcmp.ge.f32.partialorder %v2503_v15, 0.0  ;;  %v1076_v28 = vmul.f32 0.2, %v2491_v7  ;;  %v1077_v2 = vmul.f32 0.2, %v2493_v14 }
 0x1f2   :  { %3004 = vst [vmem:[#allocation21_spill] sm:$0xff] %v2660_v11  ;;  %v1078_v29 = vmul.f32 0.2, %v2495_v3  ;;  %3005 = vst [vmem:[#allocation22_spill] sm:$0xff] %v2672_v19  ;;  %vm1037_vm0 = vcmp.ge.f32.partialorder %v2511_v22, 0.0  ;;  %v2684_v3 = vsel %vm1008_vm9, %v2453_v54, %v1057_v26  ;;  %vm1038_vm8 = vcmp.ge.f32.partialorder %v2513_v30, 0.0 }
 0x1f3   :  { %v1079_v47 = vmul.f32 0.2, %v2497_v49  ;;  %v1080_v42 = vmul.f32 0.2, %v2499_v25  ;;  %v1081_v11 = vmul.f32 0.2, %v2501_v39  ;;  %v2697_v54 = vsel %vm1009_vm10, %v2455_v46, %v2568_v5 }
 0x1f4   :  { %3006 = vst [vmem:[#allocation23_spill] sm:$0xff] %v2684_v3  ;;  %v1082_v35 = vmul.f32 0.2, %v2503_v15  ;;  %v1083_v56 = vmul.f32 0.2, %v2505_v4  ;;  %3007 = vst [vmem:[#allocation24_spill] sm:$0xff] %v2697_v54  ;;  %v2710_v46 = vsel %vm1010_vm11, %v2457_v57, %v2571_v9 }
 0x1f5   :  { %v1084_v19 = vmul.f32 0.2, %v2507_v8  ;;  %vm1042_vm9 = vcmp.ge.f32.partialorder %v2521_v58, 0.0  ;;  %vm1044_vm6 = vcmp.ge.f32.partialorder %v2525_v12, 0.0  ;;  %vm1045_vm5 = vcmp.ge.f32.partialorder %v2527_v20, 0.0  ;;  %3008 = vst [vmem:[#allocation25_spill] sm:$0xff] %v2710_v46 }
 0x1f6   :  { %v1085_v26 = vmul.f32 0.2, %v2509_v16  ;;  %v1086_v3 = vmul.f32 0.2, %v2511_v22  ;;  %v1087_v8 = vmul.f32 0.2, %v2513_v30  ;;  %v2721_v30 = vsel %vm1011_vm12, %v2459_v62, %v2574_v17 }
 0x1f7   :  { %vm1046_vm10 = vcmp.ge.f32.partialorder %v2529_v32, 0.0  ;;  %vm1047_vm7 = vcmp.ge.f32.partialorder %v2542_v52, 0.0  ;;  %v1088_v5 = vmul.f32 0.2, %v2515_v36  ;;  %v1089_v54 = vmul.f32 0.2, %v2517_v44 }
 0x1f8   :  { %v1090_v16 = vmul.f32 0.2, %v2519_v50  ;;  %v1091_v22 = vmul.f32 0.2, %v2521_v58  ;;  %v1092_v57 = vmul.f32 0.2, %v2523_v0  ;;  %v1110_v46 = vsel %vm1012_vm13, %v2461_v27, %v2583_v31 }
 0x1f9   :  { %v1093_v9 = vmul.f32 0.2, %v2525_v12  ;;  %v1094_v44 = vmul.f32 0.2, %v2527_v20  ;;  %v1095_v50 = vmul.f32 0.2, %v2529_v32  ;;  %v1111_v62 = vsel %vm1013_vm14, %v2463_v59, %v2586_v40 }
 0x1fa   :  { %v1096_v36 = vmul.f32 0.2, %v2542_v52  ;;  %v1112_v17 = vsel %vm1014_vm15, %v2465_v1, %v2589_v60  ;;  %vm3009_vm11 = vcmp.ge.f32.partialorder %v2467_v13, 0.0  ;;  %vm3010_vm12 = vcmp.ge.f32.partialorder %v2469_v21, 0.0  ;;  %v3013_v40 = vld [vmem:[#allocation2_spill] sm:$0xff]  ;;  %v3017_v60 = vld [vmem:[#allocation3_spill] sm:$0xff] }
 0x1fb   :  { %v1113_v27 = vsel %vm3009_vm11, %v2467_v13, %v2601_v37  ;;  %v1114_v31 = vsel %vm3010_vm12, %v2469_v21, %v2604_v10  ;;  %vm3011_vm13 = vcmp.ge.f32.partialorder %v2471_v33, 0.0  ;;  %v1116_v1 = vsel %vm1018_vm3, %v2473_v41, %v2619_v24  ;;  %v3021_v37 = vld [vmem:[#allocation4_spill] sm:$0xff] }
 0x1fc   :  { %v1115_v59 = vsel %vm3011_vm13, %v2471_v33, %v2607_v23  ;;  %vm3012_vm14 = vcmp.ge.f32.partialorder %v2475_v53, 0.0  ;;  %vm3014_vm15 = vcmp.ge.f32.partialorder %v3013_v40, 0.0  ;;  %vm3015_vm11 = vcmp.ge.f32.partialorder %v2479_v43, 0.0  ;;  %v3016_v23 = vld [vmem:[#allocation19_spill] sm:$0xff] }
 0x1fd   :  { %v1117_v13 = vsel %vm3012_vm14, %v2475_v53, %v2622_v34  ;;  %v1118_v21 = vsel %vm3014_vm15, %v3013_v40, %v2625_v18  ;;  %v1119_v33 = vsel %vm3015_vm11, %v2479_v43, %v2637_v38  ;;  %v1120_v41 = vsel %vm1022_vm4, %v2481_v61, %v2640_v45  ;;  %v3025_v45 = vld [vmem:[#allocation5_spill] sm:$0xff]  ;;  %v3032_v38 = vld [vmem:[#allocation7_spill] sm:$0xff] }
 0x1fe   :  { %vm3018_vm3 = vcmp.ge.f32.partialorder %v3017_v60, 0.0  ;;  %vm3019_vm12 = vcmp.ge.f32.partialorder %v2485_v63, 0.0  ;;  %vm3020_vm13 = vcmp.ge.f32.partialorder %v2487_v6, 0.0  ;;  %vm3022_vm14 = vcmp.ge.f32.partialorder %v3021_v37, 0.0 }
 0x1ff   :  { %v1121_v53 = vsel %vm3018_vm3, %v3017_v60, %v3016_v23  ;;  %v1122_v34 = vsel %vm3019_vm12, %v2485_v63, %v1073_v48  ;;  %v1123_v18 = vsel %vm3020_vm13, %v2487_v6, %v1074_v51  ;;  %v1124_v43 = vsel %vm3022_vm14, %v3021_v37, %v1075_v55  ;;  %v3030_v51 = vld [vmem:[#allocation6_spill] sm:$0xff]  ;;  %v3049_v23 = vld [vmem:[#allocation20_spill] sm:$0xff]  ;;  %v3052_v37 = vld [vmem:[#allocation23_spill] sm:$0xff] }
 0x200   :  { %vm3023_vm4 = vcmp.ge.f32.partialorder %v2491_v7, 0.0  ;;  %vm3024_vm15 = vcmp.ge.f32.partialorder %v2493_v14, 0.0  ;;  %v1127_v63 = vsel %vm1029_vm2, %v3025_v45, %v1078_v29  ;;  %vm3026_vm11 = vcmp.ge.f32.partialorder %v2497_v49, 0.0  ;;  %v3034_v29 = vld [vmem:[#allocation8_spill] sm:$0xff]  ;;  %v3036_v48 = vld [vmem:[#allocation10_spill] sm:$0xff] }
 0x201   :  { %v1125_v61 = vsel %vm3023_vm4, %v2491_v7, %v1076_v28  ;;  %v1126_v10 = vsel %vm3024_vm15, %v2493_v14, %v1077_v2  ;;  %v1128_v6 = vsel %vm3026_vm11, %v2497_v49, %v1079_v47  ;;  %vm3027_vm3 = vcmp.ge.f32.partialorder %v2499_v25, 0.0  ;;  %v3038_v28 = vld [vmem:[#allocation11_spill] sm:$0xff]  ;;  %v3040_v2 = vld [vmem:[#allocation12_spill] sm:$0xff]  ;;  %v3051_v60 = vld [vmem:[#allocation22_spill] sm:$0xff] }
 0x202   :  { %v1129_v55 = vsel %vm3027_vm3, %v2499_v25, %v1080_v42  ;;  %vm3028_vm12 = vcmp.ge.f32.partialorder %v2501_v39, 0.0  ;;  %v1131_v14 = vsel %vm1033_vm1, %v2503_v15, %v1082_v35  ;;  %vm3029_vm13 = vcmp.ge.f32.partialorder %v2505_v4, 0.0 }
 0x203   :  { %v1130_v7 = vsel %vm3028_vm12, %v2501_v39, %v1081_v11  ;;  %v1132_v24 = vsel %vm3029_vm13, %v2505_v4, %v1083_v56  ;;  %vm3031_vm2 = vcmp.ge.f32.partialorder %v3030_v51, 0.0  ;;  %vm3033_vm14 = vcmp.ge.f32.partialorder %v3032_v38, 0.0  ;;  %v3035_v39 = vld [vmem:[#allocation9_spill] sm:$0xff]  ;;  %v3044_v56 = vld [vmem:[#allocation14_spill] sm:$0xff] }
 0x204   :  { %v1133_v49 = vsel %vm3031_vm2, %v3030_v51, %v1084_v19  ;;  %v1134_v25 = vsel %vm3033_vm14, %v3032_v38, %v1085_v26  ;;  %v1135_v11 = vsel %vm1037_vm0, %v3034_v29, %v1086_v3  ;;  %v1136_v15 = vsel %vm1038_vm8, %v3035_v39, %v1087_v8  ;;  %v3046_v26 = vld [vmem:[#allocation16_spill] sm:$0xff] }
 0x205   :  { %vm3037_vm1 = vcmp.ge.f32.partialorder %v3036_v48, 0.0  ;;  %vm3039_vm4 = vcmp.ge.f32.partialorder %v3038_v28, 0.0  ;;  %vm3041_vm15 = vcmp.ge.f32.partialorder %v3040_v2, 0.0  ;;  %v1140_v3 = vsel %vm1042_vm9, %v2521_v58, %v1091_v22  ;;  %v3043_v58 = vld [vmem:[#allocation13_spill] sm:$0xff] }
 0x206   :  { %v1137_v4 = vsel %vm3037_vm1, %v3036_v48, %v1088_v5  ;;  %v1138_v19 = vsel %vm3039_vm4, %v3038_v28, %v1089_v54  ;;  %v1139_v47 = vsel %vm3041_vm15, %v3040_v2, %v1090_v16  ;;  %vm3042_vm0 = vcmp.ge.f32.partialorder %v2523_v0, 0.0 }
 0x207   :  { %v1141_v8 = vsel %vm3042_vm0, %v2523_v0, %v1092_v57  ;;  %v1142_v42 = vsel %vm1044_vm6, %v2525_v12, %v1093_v9  ;;  %v1143_v35 = vsel %vm1045_vm5, %v2527_v20, %v1094_v44  ;;  %v1144_v16 = vsel %vm1046_vm10, %v2529_v32, %v1095_v50  ;;  %v3045_v0 = vld [vmem:[#allocation15_spill] sm:$0xff]  ;;  %v3047_v12 = vld [vmem:[#allocation17_spill] sm:$0xff]  ;;  %v3048_v9 = vld [vmem:[#allocation18_spill] sm:$0xff] }
 0x208   :  { %v1145_v22 = vsel %vm1047_vm7, %v2542_v52, %v1096_v36  ;;  %v1564_v54 = vpack.c.bf16 %v3044_v56, %v3043_v58  ;;  %v1569_v5 = vpack.c.bf16 %v3046_v26, %v3045_v0  ;;  %v1574_v40 = vpack.c.bf16 %v3048_v9, %v3047_v12  ;;  %v3050_v44 = vld [vmem:[#allocation21_spill] sm:$0xff]  ;;  %v3053_v36 = vld [vmem:[#allocation24_spill] sm:$0xff] }
 0x209   :  { %v1560_v57 = vpack.c.bf16 %v1145_v22, %v1145_v22  ;;  %v1579_v20 = vpack.c.bf16 %v3050_v44, %v3049_v23  ;;  %v1584_v50 = vpack.c.bf16 %v3052_v37, %v3051_v60  ;;  %v3054_v32 = vld [vmem:[#allocation25_spill] sm:$0xff]  ;;  %v1594_v45 = vpack.c.bf16 %v1110_v46, %v2721_v30 }
 0x20a   :  { %1565 = vst [vmem:[%s2941_s4] sm:$0xff] %v1564_v54   ;;  %1681 = vst [vmem:[%s2941_s4 + $0x8] sm:$0xff] %v1569_v5   ;;  %v1589_v52 = vpack.c.bf16 %v3054_v32, %v3053_v36  ;;  %v1599_v51 = vpack.c.bf16 %v1112_v17, %v1111_v62  ;;  %v1604_v38 = vpack.c.bf16 %v1114_v31, %v1113_v27 }
 0x20b   :  { %1682 = vst [vmem:[%s2941_s4 + $0x10] sm:$0xff] %v1574_v40   ;;  %1683 = vst [vmem:[%s2941_s4 + $0x18] sm:$0xff] %v1579_v20   ;;  %v1609_v29 = vpack.c.bf16 %v1116_v1, %v1115_v59  ;;  %v1614_v39 = vpack.c.bf16 %v1118_v21, %v1117_v13  ;;  %v1619_v48 = vpack.c.bf16 %v1120_v41, %v1119_v33 }
 0x20c   :  { %1684 = vst [vmem:[%s2941_s4 + $0x20] sm:$0xff] %v1584_v50   ;;  %v1624_v28 = vpack.c.bf16 %v1122_v34, %v1121_v53  ;;  %1391 = vst [vmem:[%s2941_s4 + $0xc0] sm:$0xf] %v1560_v57  ;;  %v1629_v30 = vpack.c.bf16 %v1124_v43, %v1123_v18  ;;  %v1634_v46 = vpack.c.bf16 %v1126_v10, %v1125_v61 }
 0x20d   :  { %1685 = vst [vmem:[%s2941_s4 + $0x28] sm:$0xff] %v1589_v52   ;;  %1686 = vst [vmem:[%s2941_s4 + $0x30] sm:$0xff] %v1594_v45   ;;  %v1639_v62 = vpack.c.bf16 %v1128_v6, %v1127_v63  ;;  %v1644_v17 = vpack.c.bf16 %v1130_v7, %v1129_v55  ;;  %v1649_v27 = vpack.c.bf16 %v1132_v24, %v1131_v14 }
 0x20e   :  { %1687 = vst [vmem:[%s2941_s4 + $0x38] sm:$0xff] %v1599_v51   ;;  %1688 = vst [vmem:[%s2941_s4 + $0x40] sm:$0xff] %v1604_v38   ;;  %v1654_v31 = vpack.c.bf16 %v1134_v25, %v1133_v49  ;;  %v1659_v59 = vpack.c.bf16 %v1136_v15, %v1135_v11  ;;  %v1664_v1 = vpack.c.bf16 %v1138_v19, %v1137_v4 }
 0x20f   :  { %1689 = vst [vmem:[%s2941_s4 + $0x48] sm:$0xff] %v1609_v29   ;;  %1690 = vst [vmem:[%s2941_s4 + $0x50] sm:$0xff] %v1614_v39   ;;  %v1669_v13 = vpack.c.bf16 %v1140_v3, %v1139_v47  ;;  %v1674_v21 = vpack.c.bf16 %v1142_v42, %v1141_v8  ;;  %v1679_v33 = vpack.c.bf16 %v1144_v16, %v1143_v35 }
 0x210   :  { %1691 = vst [vmem:[%s2941_s4 + $0x58] sm:$0xff] %v1619_v48   ;;  %1692 = vst [vmem:[%s2941_s4 + $0x60] sm:$0xff] %v1624_v28  }
 0x211   :  { %1693 = vst [vmem:[%s2941_s4 + $0x68] sm:$0xff] %v1629_v30   ;;  %1694 = vst [vmem:[%s2941_s4 + $0x70] sm:$0xff] %v1634_v46  }
 0x212   :  { %1695 = vst [vmem:[%s2941_s4 + $0x78] sm:$0xff] %v1639_v62   ;;  %1696 = vst [vmem:[%s2941_s4 + $0x80] sm:$0xff] %v1644_v17  }
 0x213   :  { %1697 = vst [vmem:[%s2941_s4 + $0x88] sm:$0xff] %v1649_v27   ;;  %1698 = vst [vmem:[%s2941_s4 + $0x90] sm:$0xff] %v1654_v31  }
 0x214   :  { %1699 = vst [vmem:[%s2941_s4 + $0x98] sm:$0xff] %v1659_v59   ;;  %1700 = vst [vmem:[%s2941_s4 + $0xa0] sm:$0xff] %v1664_v1  }
 0x215   :  { %1701 = vst [vmem:[%s2941_s4 + $0xa8] sm:$0xff] %v1669_v13   ;;  %1702 = vst [vmem:[%s2941_s4 + $0xb0] sm:$0xff] %v1674_v21  }
 0x216   :  { %1703 = vst [vmem:[%s2941_s4 + $0xb8] sm:$0xff] %v1679_v33  }

// kernel: classifier_forward.6
= control target key start
LH: loop header
LB: loop body
LE: loop exit
PB: predicated region body
PF: predicated region fallthrough
CT: control target
= control target key end

     0   :  { %s830_s1 = inlined_call_operand.vmem [shape: bf16[512,128], index: 1, kind: input, shape index: {}]   ;;  %s831_s0 = inlined_call_operand.vmem [shape: bf16[32,512], index: 0, kind: input, shape index: {}]   ;;  %s832_s2 = inlined_call_operand.vmem [shape: f32[1,128], index: 2, kind: input, shape index: {}]   ;;  %s833_s3 = inlined_call_operand.vmem [shape: f32[1,128], index: 3, kind: input, shape index: {}]   ;;  %s834_s4 = inlined_call_operand.vmem [shape: bf16[32,128], index: 4, kind: output, shape index: {}]  }
   0x1   :  { %v627_v0 = vld [vmem:[%s830_s1 + $0x40] sm:$0xff]   ;;  %v631_v4 = vld [vmem:[%s830_s1 + $0x48] sm:$0xff]   ;;  %v635_v8 = vld [vmem:[%s830_s1 + $0x50] sm:$0xff]  }
   0x2   :  { %v628_v1 = vld [vmem:[%s830_s1 + $0xc0] sm:$0xff]   ;;  %571 = vmatprep.subr.bf16.mxu0 %v627_v0  ;;  %v632_v5 = vld [vmem:[%s830_s1 + $0xc8] sm:$0xff]   ;;  %v636_v9 = vld [vmem:[%s830_s1 + $0xd0] sm:$0xff]  }
   0x3   :  { %v629_v2 = vld [vmem:[%s830_s1] sm:$0xff]   ;;  %599 = vmatprep.subr.bf16.mxu1 %v628_v1  ;;  %v633_v6 = vld [vmem:[%s830_s1 + $0x8] sm:$0xff]   ;;  %v637_v10 = vld [vmem:[%s830_s1 + $0x10] sm:$0xff]  }
   0x4   :  { %v630_v3 = vld [vmem:[%s830_s1 + $0x80] sm:$0xff]   ;;  %572 = vmatpush3.bf16.msra.mxu0 %v629_v2  ;;  %v634_v7 = vld [vmem:[%s830_s1 + $0x88] sm:$0xff]   ;;  %v638_v11 = vld [vmem:[%s830_s1 + $0x90] sm:$0xff]  }
   0x5   :  { %600 = vmatpush3.bf16.msra.mxu1 %v630_v3  ;;  %573 = vmatprep.subr.bf16.mxu0 %v631_v4  ;;  %v639_v12 = vld [vmem:[%s830_s1 + $0x58] sm:$0xff]   ;;  %v643_v16 = vld [vmem:[%s830_s1 + $0x60] sm:$0xff]   ;;  %v647_v20 = vld [vmem:[%s830_s1 + $0x68] sm:$0xff]  }
   0x6   :  { %601 = vmatprep.subr.bf16.mxu1 %v632_v5  ;;  %v640_v13 = vld [vmem:[%s830_s1 + $0xd8] sm:$0xff]   ;;  %v644_v17 = vld [vmem:[%s830_s1 + $0xe0] sm:$0xff]   ;;  %v648_v21 = vld [vmem:[%s830_s1 + $0xe8] sm:$0xff]  }
   0x7   :  { %v641_v14 = vld [vmem:[%s830_s1 + $0x18] sm:$0xff]   ;;  %v645_v18 = vld [vmem:[%s830_s1 + $0x20] sm:$0xff]   ;;  %v649_v22 = vld [vmem:[%s830_s1 + $0x28] sm:$0xff]  }
   0x8   :  { %574 = vmatpush3.bf16.msra.mxu0 %v633_v6  ;;  %v642_v15 = vld [vmem:[%s830_s1 + $0x98] sm:$0xff]   ;;  %v646_v19 = vld [vmem:[%s830_s1 + $0xa0] sm:$0xff]   ;;  %v650_v23 = vld [vmem:[%s830_s1 + $0xa8] sm:$0xff]  }
   0x9   :  { %602 = vmatpush3.bf16.msra.mxu1 %v634_v7  ;;  %575 = vmatprep.subr.bf16.mxu0 %v635_v8  ;;  %v651_v24 = vld [vmem:[%s830_s1 + $0x70] sm:$0xff]   ;;  %v655_v28 = vld [vmem:[%s830_s1 + $0x78] sm:$0xff]  }
   0xa   :  { %603 = vmatprep.subr.bf16.mxu1 %v636_v9  ;;  %v652_v25 = vld [vmem:[%s830_s1 + $0xf0] sm:$0xff]   ;;  %v656_v29 = vld [vmem:[%s830_s1 + $0xf8] sm:$0xff]  }
   0xb   :  { %v653_v26 = vld [vmem:[%s830_s1 + $0x30] sm:$0xff]   ;;  %v657_v30 = vld [vmem:[%s830_s1 + $0x38] sm:$0xff]  }
   0xc   :  { %576 = vmatpush3.bf16.msra.mxu0 %v637_v10  ;;  %v654_v27 = vld [vmem:[%s830_s1 + $0xb0] sm:$0xff]   ;;  %v658_v31 = vld [vmem:[%s830_s1 + $0xb8] sm:$0xff]  }
   0xd   :  { %604 = vmatpush3.bf16.msra.mxu1 %v638_v11  ;;  %577 = vmatprep.subr.bf16.mxu0 %v639_v12  ;;  %v659_v32 = vld [vmem:[%s831_s0] ss:$16 sps:$4 sm:$0xff]   ;;  %v661_v33 = vld [vmem:[%s831_s0 + $0x4] ss:$16 sps:$4 sm:$0xff]   ;;  %v662_v34 = vld [vmem:[%s831_s0 + $0x8] ss:$16 sps:$4 sm:$0xff]  }
   0xe   :  { %605 = vmatprep.subr.bf16.mxu1 %v640_v13  ;;  %v664_v35 = vld [vmem:[%s831_s0 + $0xc] ss:$16 sps:$4 sm:$0xff]   ;;  %354 = vmatprep.mubr.bf16.mxu0 %v661_v33  ;;  %v665_v36 = vld [vmem:[%s831_s0 + $0x24] ss:$16 sps:$4 sm:$0xff]   ;;  %v669_v38 = vld [vmem:[%s831_s0 + $0x20] ss:$16 sps:$4 sm:$0xff]  }
   0xf   :  { %403 = vmatprep.mubr.bf16.mxu1 %v664_v35  ;;  %v667_v37 = vld [vmem:[%s831_s0 + $0x2c] ss:$16 sps:$4 sm:$0xff]   ;;  %v670_v39 = vld [vmem:[%s831_s0 + $0x28] ss:$16 sps:$4 sm:$0xff]   ;;  %v455_v35 = vlaneseq }
  0x10   :  { %578 = vmatpush3.bf16.msra.mxu0 %v641_v14 }
  0x11   :  { %606 = vmatpush3.bf16.msra.mxu1 %v642_v15  ;;  %579 = vmatprep.subr.bf16.mxu0 %v643_v16 }
  0x12   :  { %607 = vmatprep.subr.bf16.mxu1 %v644_v17 }
  0x14   :  { %580 = vmatpush3.bf16.msra.mxu0 %v645_v18 }
  0x15   :  { %608 = vmatpush3.bf16.msra.mxu1 %v646_v19  ;;  %581 = vmatprep.subr.bf16.mxu0 %v647_v20 }
  0x16   :  { %609 = vmatprep.subr.bf16.mxu1 %v648_v21 }
  0x18   :  { %582 = vmatpush3.bf16.msra.mxu0 %v649_v22 }
  0x19   :  { %610 = vmatpush3.bf16.msra.mxu1 %v650_v23  ;;  %583 = vmatprep.subr.bf16.mxu0 %v651_v24 }
  0x1a   :  { %611 = vmatprep.subr.bf16.mxu1 %v652_v25 }
  0x1c   :  { %584 = vmatpush3.bf16.msra.mxu0 %v653_v26 }
  0x1d   :  { %612 = vmatpush3.bf16.msra.mxu1 %v654_v27  ;;  %585 = vmatprep.subr.bf16.mxu0 %v655_v28 }
  0x1e   :  { %613 = vmatprep.subr.bf16.mxu1 %v656_v29 }
  0x20   :  { %586 = vmatpush3.bf16.msra.mxu0 %v657_v30 }
  0x21   :  { %614 = vmatpush3.bf16.msra.mxu1 %v658_v31 }
  0x23   :  { %355 = vmatmul.mubr.bf16.vlgmr.msra.gmra.mrb[0].mxu0 %v659_v32 }
  0x24   :  { %404 = vmatmul.mubr.bf16.vlgmr.msra.gmra.mrb[0].mxu1 %v662_v34  ;;  %362 = vmatprep.mubr.bf16.mxu0 %v665_v36  ;;  %v456_v36 = vshrl.u32 %v455_v35, 7 }
  0x25   :  { %411 = vmatprep.mubr.bf16.mxu1 %v667_v37  ;;  %v446_v37 = vld [vmem:[%s832_s2] sm:$0x1] }
  0x2b   :  { %363 = vmatmul.mubr.bf16.gmra.mrb[4].mxu0 %v669_v38  ;;  %v457_v38 = vsub.s32 0, %v456_v36 }
  0x2c   :  { %412 = vmatmul.mubr.bf16.gmra.mrb[4].mxu1 %v670_v39 }
  0xf6   :  { %v587_v40 = vpop.f32.mrb[0].mxu0 }
  0xf7   :  { %v615_v41 = vpop.f32.mrb[0].mxu1  ;;  %v588_v42 = vpop.f32.mrb[1].mxu0 }
  0xf8   :  { %v589_v43 = vadd.f32 %v588_v42, %v587_v40  ;;  %v616_v44 = vpop.f32.mrb[1].mxu1  ;;  %v590_v45 = vpop.f32.mrb[2].mxu0  ;;  %v551_v42 = vld [vmem:[%s833_s3] ss:$0 sm:$0xff] }
  0xf9   :  { %v617_v46 = vadd.f32 %v616_v44, %v615_v41  ;;  %v618_v47 = vpop.f32.mrb[2].mxu1  ;;  %v591_v48 = vpop.f32.mrb[3].mxu0 }
  0xfa   :  { %v592_v49 = vadd.f32 %v591_v48, %v590_v45  ;;  %v619_v50 = vpop.f32.mrb[3].mxu1 }
  0xfb   :  { %v406_v51 = vadd.f32 %v617_v46, %v589_v43  ;;  %v620_v52 = vadd.f32 %v619_v50, %v618_v47 }
  0xfd   :  { %v409_v53 = vadd.f32 %v620_v52, %v592_v49  ;;  %v429_v55 = vmul.f32 %v406_v51, %v406_v51 }
  0xfe   :  { %v593_v54 = vpop.f32.mrb[4].mxu0 }
  0xff   :  { %v420_v56 = vadd.f32 %v409_v53, %v406_v51  ;;  %v430_v57 = vmul.f32 %v409_v53, %v409_v53  ;;  %v621_v58 = vpop.f32.mrb[4].mxu1  ;;  %v594_v59 = vpop.f32.mrb[5].mxu0 }
 0x100   :  { %v595_v60 = vadd.f32 %v594_v59, %v593_v54  ;;  %v622_v61 = vpop.f32.mrb[5].mxu1  ;;  %v596_v62 = vpop.f32.mrb[6].mxu0 }
 0x101   :  { %v433_v63 = vadd.f32 %v430_v57, %v429_v55  ;;  %v623_v0 = vadd.f32 %v622_v61, %v621_v58  ;;  %v624_v1 = vpop.f32.mrb[6].mxu1  ;;  %v597_v2 = vpop.f32.mrb[7].mxu0 }
 0x102   :  { %v598_v3 = vadd.f32 %v597_v2, %v596_v62  ;;  %v625_v4 = vpop.f32.mrb[7].mxu1 }
 0x103   :  { %v414_v5 = vadd.f32 %v623_v0, %v595_v60  ;;  %v626_v6 = vadd.f32 %v625_v4, %v624_v1 }
 0x105   :  { %v421_v7 = vadd.f32 %v420_v56, %v414_v5  ;;  %v431_v8 = vmul.f32 %v414_v5, %v414_v5  ;;  %v417_v9 = vadd.f32 %v626_v6, %v598_v3 }
 0x107   :  { %v434_v10 = vadd.f32 %v433_v63, %v431_v8  ;;  %v422_v11 = vadd.f32 %v421_v7, %v417_v9  ;;  %v432_v12 = vmul.f32 %v417_v9, %v417_v9 }
 0x109   :  { %v423_v13 = vrot.slane %v422_v11, 4  ;;  %v435_v14 = vadd.f32 %v434_v10, %v432_v12 }
 0x10b   :  { %v424_v15 = vadd.f32 %v423_v13, %v422_v11  ;;  %v436_v16 = vrot.slane %v435_v14, 4 }
 0x10d   :  { %v425_v17 = vrot.slane %v424_v15, 2  ;;  %v437_v18 = vadd.f32 %v436_v16, %v435_v14 }
 0x10f   :  { %v426_v19 = vadd.f32 %v425_v17, %v424_v15  ;;  %v438_v20 = vrot.slane %v437_v18, 2 }
 0x111   :  { %v427_v21 = vrot.slane %v426_v19, 1  ;;  %v439_v22 = vadd.f32 %v438_v20, %v437_v18 }
 0x113   :  { %v428_v23 = vadd.f32 %v427_v21, %v426_v19  ;;  %v440_v24 = vrot.slane %v439_v22, 1 }
 0x115   :  { %v441_v25 = vadd.f32 %v440_v24, %v439_v22  ;;  %v442_v26 = vmul.f32 0.03125, %v428_v23 }
 0x117   :  { %v443_v27 = vmul.f32 0.03125, %v441_v25  ;;  %v444_v28 = vmul.f32 %v442_v26, %v442_v26  ;;  %v450_v29 = vsub.f32 %v406_v51, %v442_v26  ;;  %v451_v30 = vsub.f32 %v409_v53, %v442_v26 }
 0x118   :  { %v452_v31 = vsub.f32 %v414_v5, %v442_v26  ;;  %v453_v32 = vsub.f32 %v417_v9, %v442_v26 }
 0x119   :  { %v445_v33 = vsub.f32 %v443_v27, %v444_v28 }
 0x11b   :  { %v447_v34 = vadd.f32 1e-05, %v445_v33 }
 0x11d   :  { %671 = vrsqrt.f32 %v447_v34 }
 0x127   :  { %v672_v39 = vpop.eup %671 }
 0x128   :  { %v449_v40 = vmul.f32 %v672_v39, %v446_v37 }
 0x12a   :  { %v458_v41 = vrot.slane %v449_v40, %v457_v38 }
 0x12c   :  { %v460_v43 = vmul.f32 %v458_v41, %v450_v29  ;;  %v461_v44 = vmul.f32 %v458_v41, %v451_v30  ;;  %v462_v45 = vmul.f32 %v458_v41, %v452_v31  ;;  %v463_v46 = vmul.f32 %v458_v41, %v453_v32 }
 0x12e   :  { %v471_v47 = vadd.f32 %v551_v42, %v460_v43  ;;  %v472_v48 = vadd.f32 %v551_v42, %v461_v44  ;;  %v473_v49 = vadd.f32 %v551_v42, %v462_v45  ;;  %v474_v50 = vadd.f32 %v551_v42, %v463_v46 }
 0x130   :  { %vm475_vm0 = vcmp.ge.f32.partialorder %v471_v47, 0.0  ;;  %vm476_vm1 = vcmp.ge.f32.partialorder %v472_v48, 0.0  ;;  %vm477_vm2 = vcmp.ge.f32.partialorder %v473_v49, 0.0  ;;  %vm478_vm3 = vcmp.ge.f32.partialorder %v474_v50, 0.0 }
 0x131   :  { %v479_v51 = vmul.f32 0.2, %v471_v47  ;;  %v480_v52 = vmul.f32 0.2, %v472_v48  ;;  %v481_v53 = vmul.f32 0.2, %v473_v49 }
 0x132   :  { %v482_v54 = vmul.f32 0.2, %v474_v50 }
 0x133   :  { %v483_v55 = vsel %vm475_vm0, %v471_v47, %v479_v51  ;;  %v484_v56 = vsel %vm476_vm1, %v472_v48, %v480_v52  ;;  %v485_v57 = vsel %vm477_vm2, %v473_v49, %v481_v53 }
 0x134   :  { %v486_v58 = vsel %vm478_vm3, %v474_v50, %v482_v54  ;;  %v563_v59 = vpack.c.bf16 %v484_v56, %v483_v55 }
 0x135   :  { %v568_v60 = vpack.c.bf16 %v486_v58, %v485_v57 }
 0x136   :  { %564 = vst [vmem:[%s834_s4] sm:$0xff] %v563_v59  }
 0x137   :  { %570 = vst [vmem:[%s834_s4 + $0x8] sm:$0xff] %v568_v60  }

// kernel: classifier_forward.7
= control target key start
LH: loop header
LB: loop body
LE: loop exit
PB: predicated region body
PF: predicated region fallthrough
CT: control target
= control target key end

     0   :  { %s1194_s1 = inlined_call_operand.vmem [shape: bf16[1024,128], index: 1, kind: input, shape index: {}]   ;;  %s1195_s0 = inlined_call_operand.vmem [shape: bf16[8,1024], index: 0, kind: input, shape index: {}]   ;;  %s1196_s2 = inlined_call_operand.vmem [shape: f32[1,128], index: 2, kind: input, shape index: {}]   ;;  %s1197_s3 = inlined_call_operand.vmem [shape: f32[8,128], index: 3, kind: output, shape index: {}]  }
   0x1   :  { %v892_v0 = vld [vmem:[%s1194_s1 + $0x40] sm:$0xff]   ;;  %v896_v4 = vld [vmem:[%s1194_s1 + $0x48] sm:$0xff]   ;;  %v900_v8 = vld [vmem:[%s1194_s1 + $0x50] sm:$0xff]  }
   0x2   :  { %v893_v1 = vld [vmem:[%s1194_s1 + $0xc0] sm:$0xff]   ;;  %804 = vmatprep.subr.bf16.mxu0 %v892_v0  ;;  %v897_v5 = vld [vmem:[%s1194_s1 + $0xc8] sm:$0xff]   ;;  %v901_v9 = vld [vmem:[%s1194_s1 + $0xd0] sm:$0xff]  }
   0x3   :  { %v894_v2 = vld [vmem:[%s1194_s1] sm:$0xff]   ;;  %826 = vmatprep.subr.bf16.mxu1 %v893_v1  ;;  %v898_v6 = vld [vmem:[%s1194_s1 + $0x8] sm:$0xff]   ;;  %v902_v10 = vld [vmem:[%s1194_s1 + $0x10] sm:$0xff]  }
   0x4   :  { %v895_v3 = vld [vmem:[%s1194_s1 + $0x80] sm:$0xff]   ;;  %805 = vmatpush3.bf16.msra.mxu0 %v894_v2  ;;  %v899_v7 = vld [vmem:[%s1194_s1 + $0x88] sm:$0xff]   ;;  %v903_v11 = vld [vmem:[%s1194_s1 + $0x90] sm:$0xff]  }
   0x5   :  { %827 = vmatpush3.bf16.msra.mxu1 %v895_v3  ;;  %806 = vmatprep.subr.bf16.mxu0 %v896_v4  ;;  %v904_v12 = vld [vmem:[%s1194_s1 + $0x58] sm:$0xff]   ;;  %v908_v16 = vld [vmem:[%s1194_s1 + $0x60] sm:$0xff]   ;;  %v912_v20 = vld [vmem:[%s1194_s1 + $0x68] sm:$0xff]  }
   0x6   :  { %828 = vmatprep.subr.bf16.mxu1 %v897_v5  ;;  %v905_v13 = vld [vmem:[%s1194_s1 + $0xd8] sm:$0xff]   ;;  %v909_v17 = vld [vmem:[%s1194_s1 + $0xe0] sm:$0xff]   ;;  %v913_v21 = vld [vmem:[%s1194_s1 + $0xe8] sm:$0xff]  }
   0x7   :  { %v906_v14 = vld [vmem:[%s1194_s1 + $0x18] sm:$0xff]   ;;  %v910_v18 = vld [vmem:[%s1194_s1 + $0x20] sm:$0xff]   ;;  %v914_v22 = vld [vmem:[%s1194_s1 + $0x28] sm:$0xff]  }
   0x8   :  { %807 = vmatpush3.bf16.msra.mxu0 %v898_v6  ;;  %v907_v15 = vld [vmem:[%s1194_s1 + $0x98] sm:$0xff]   ;;  %v911_v19 = vld [vmem:[%s1194_s1 + $0xa0] sm:$0xff]   ;;  %v915_v23 = vld [vmem:[%s1194_s1 + $0xa8] sm:$0xff]  }
   0x9   :  { %829 = vmatpush3.bf16.msra.mxu1 %v899_v7  ;;  %808 = vmatprep.subr.bf16.mxu0 %v900_v8  ;;  %v916_v24 = vld [vmem:[%s1194_s1 + $0x70] sm:$0xff]   ;;  %v920_v28 = vld [vmem:[%s1194_s1 + $0x78] sm:$0xff]   ;;  %v15_v32 = vld [vmem:[%s1195_s0] sm:$0xff] }
   0xa   :  { %830 = vmatprep.subr.bf16.mxu1 %v901_v9  ;;  %v917_v25 = vld [vmem:[%s1194_s1 + $0xf0] sm:$0xff]   ;;  %v921_v29 = vld [vmem:[%s1194_s1 + $0xf8] sm:$0xff]   ;;  %v16_v33 = vld [vmem:[%s1195_s0 + $0x8] sm:$0xff]  ;;  %v732_v34 = vcombine.low %v15_v32, %v15_v32  ;;  %v733_v35 = vcombine.high %v15_v32, %v15_v32 }
   0xb   :  { %v918_v26 = vld [vmem:[%s1194_s1 + $0x30] sm:$0xff]   ;;  %v922_v30 = vld [vmem:[%s1194_s1 + $0x38] sm:$0xff]   ;;  %v734_v36 = vcombine.low %v16_v33, %v16_v33  ;;  %v735_v37 = vcombine.high %v16_v33, %v16_v33  ;;  %v928_v38 = vld [vmem:[%s1194_s1 + $0x140] sm:$0xff]  }
   0xc   :  { %809 = vmatpush3.bf16.msra.mxu0 %v902_v10  ;;  %v919_v27 = vld [vmem:[%s1194_s1 + $0xb0] sm:$0xff]   ;;  %v923_v31 = vld [vmem:[%s1194_s1 + $0xb8] sm:$0xff]   ;;  %v929_v39 = vld [vmem:[%s1194_s1 + $0x1c0] sm:$0xff]   ;;  %598 = vmatprep.mubr.bf16.mxu0 %v733_v35 }
   0xd   :  { %831 = vmatpush3.bf16.msra.mxu1 %v903_v11  ;;  %810 = vmatprep.subr.bf16.mxu0 %v904_v12  ;;  %v930_v40 = vld [vmem:[%s1194_s1 + $0x100] sm:$0xff]   ;;  %v932_v42 = vld [vmem:[%s1194_s1 + $0x148] sm:$0xff]   ;;  %v936_v46 = vld [vmem:[%s1194_s1 + $0x150] sm:$0xff]  }
   0xe   :  { %832 = vmatprep.subr.bf16.mxu1 %v905_v13  ;;  %638 = vmatprep.mubr.bf16.mxu1 %v735_v37  ;;  %v931_v41 = vld [vmem:[%s1194_s1 + $0x180] sm:$0xff]   ;;  %v933_v43 = vld [vmem:[%s1194_s1 + $0x1c8] sm:$0xff]   ;;  %v937_v47 = vld [vmem:[%s1194_s1 + $0x1d0] sm:$0xff]  }
   0xf   :  { %v934_v44 = vld [vmem:[%s1194_s1 + $0x108] sm:$0xff]   ;;  %v938_v48 = vld [vmem:[%s1194_s1 + $0x110] sm:$0xff]   ;;  %v940_v50 = vld [vmem:[%s1194_s1 + $0x158] sm:$0xff]  }
  0x10   :  { %811 = vmatpush3.bf16.msra.mxu0 %v906_v14  ;;  %v935_v45 = vld [vmem:[%s1194_s1 + $0x188] sm:$0xff]   ;;  %v939_v49 = vld [vmem:[%s1194_s1 + $0x190] sm:$0xff]   ;;  %v941_v51 = vld [vmem:[%s1194_s1 + $0x1d8] sm:$0xff]  }
  0x11   :  { %833 = vmatpush3.bf16.msra.mxu1 %v907_v15  ;;  %812 = vmatprep.subr.bf16.mxu0 %v908_v16  ;;  %v942_v52 = vld [vmem:[%s1194_s1 + $0x118] sm:$0xff]   ;;  %v944_v54 = vld [vmem:[%s1194_s1 + $0x160] sm:$0xff]   ;;  %v948_v58 = vld [vmem:[%s1194_s1 + $0x168] sm:$0xff]  }
  0x12   :  { %834 = vmatprep.subr.bf16.mxu1 %v909_v17  ;;  %v943_v53 = vld [vmem:[%s1194_s1 + $0x198] sm:$0xff]   ;;  %v945_v55 = vld [vmem:[%s1194_s1 + $0x1e0] sm:$0xff]   ;;  %v949_v59 = vld [vmem:[%s1194_s1 + $0x1e8] sm:$0xff]  }
  0x13   :  { %v946_v56 = vld [vmem:[%s1194_s1 + $0x120] sm:$0xff]   ;;  %v950_v60 = vld [vmem:[%s1194_s1 + $0x128] sm:$0xff]   ;;  %v952_v62 = vld [vmem:[%s1194_s1 + $0x170] sm:$0xff]  }
  0x14   :  { %813 = vmatpush3.bf16.msra.mxu0 %v910_v18  ;;  %v947_v57 = vld [vmem:[%s1194_s1 + $0x1a0] sm:$0xff]   ;;  %v951_v61 = vld [vmem:[%s1194_s1 + $0x1a8] sm:$0xff]   ;;  %v953_v63 = vld [vmem:[%s1194_s1 + $0x1f0] sm:$0xff]  }
  0x15   :  { %835 = vmatpush3.bf16.msra.mxu1 %v911_v19  ;;  %814 = vmatprep.subr.bf16.mxu0 %v912_v20  ;;  %v954_v0 = vld [vmem:[%s1194_s1 + $0x130] sm:$0xff]   ;;  %v956_v2 = vld [vmem:[%s1194_s1 + $0x178] sm:$0xff]   ;;  %v731_v14 = vld [vmem:[%s1196_s2] ss:$0 sm:$0xff] }
  0x16   :  { %836 = vmatprep.subr.bf16.mxu1 %v913_v21  ;;  %v955_v1 = vld [vmem:[%s1194_s1 + $0x1b0] sm:$0xff]   ;;  %v957_v3 = vld [vmem:[%s1194_s1 + $0x1f8] sm:$0xff]  }
  0x17   :  { %v958_v4 = vld [vmem:[%s1194_s1 + $0x138] sm:$0xff]   ;;  %v17_v6 = vld [vmem:[%s1195_s0 + $0x10] sm:$0xff] }
  0x18   :  { %815 = vmatpush3.bf16.msra.mxu0 %v914_v22  ;;  %v959_v5 = vld [vmem:[%s1194_s1 + $0x1b8] sm:$0xff]   ;;  %v736_v7 = vcombine.low %v17_v6, %v17_v6  ;;  %v737_v8 = vcombine.high %v17_v6, %v17_v6 }
  0x19   :  { %837 = vmatpush3.bf16.msra.mxu1 %v915_v23  ;;  %816 = vmatprep.subr.bf16.mxu0 %v916_v24  ;;  %v18_v9 = vld [vmem:[%s1195_s0 + $0x18] sm:$0xff] }
  0x1a   :  { %838 = vmatprep.subr.bf16.mxu1 %v917_v25  ;;  %v738_v10 = vcombine.low %v18_v9, %v18_v9  ;;  %v739_v11 = vcombine.high %v18_v9, %v18_v9 }
  0x1c   :  { %817 = vmatpush3.bf16.msra.mxu0 %v918_v26 }
  0x1d   :  { %839 = vmatpush3.bf16.msra.mxu1 %v919_v27  ;;  %818 = vmatprep.subr.bf16.mxu0 %v920_v28 }
  0x1e   :  { %840 = vmatprep.subr.bf16.mxu1 %v921_v29 }
  0x20   :  { %819 = vmatpush3.bf16.msra.mxu0 %v922_v30 }
  0x21   :  { %841 = vmatpush3.bf16.msra.mxu1 %v923_v31  ;;  %848 = vmatprep.subr.bf16.mxu0 %v928_v38 }
  0x22   :  { %870 = vmatprep.subr.bf16.mxu1 %v929_v39 }
  0x23   :  { %599 = vmatmul.mubr.bf16.vlgmr.msra.gmra.mrb[0].mxu0 %v732_v34 }
  0x24   :  { %639 = vmatmul.mubr.bf16.vlgmr.msra.gmra.mrb[0].mxu1 %v734_v36  ;;  %849 = vmatpush3.bf16.msra.mxu0 %v930_v40 }
  0x25   :  { %871 = vmatpush3.bf16.msra.mxu1 %v931_v41  ;;  %850 = vmatprep.subr.bf16.mxu0 %v932_v42 }
  0x26   :  { %872 = vmatprep.subr.bf16.mxu1 %v933_v43  ;;  %678 = vmatprep.mubr.bf16.mxu0 %v737_v8 }
  0x27   :  { %718 = vmatprep.mubr.bf16.mxu1 %v739_v11 }
  0x28   :  { %851 = vmatpush3.bf16.msra.mxu0 %v934_v44 }
  0x29   :  { %873 = vmatpush3.bf16.msra.mxu1 %v935_v45  ;;  %852 = vmatprep.subr.bf16.mxu0 %v936_v46 }
  0x2a   :  { %874 = vmatprep.subr.bf16.mxu1 %v937_v47 }
  0x2c   :  { %853 = vmatpush3.bf16.msra.mxu0 %v938_v48 }
  0x2d   :  { %875 = vmatpush3.bf16.msra.mxu1 %v939_v49  ;;  %854 = vmatprep.subr.bf16.mxu0 %v940_v50 }
  0x2e   :  { %876 = vmatprep.subr.bf16.mxu1 %v941_v51 }
  0x30   :  { %855 = vmatpush3.bf16.msra.mxu0 %v942_v52 }
  0x31   :  { %877 = vmatpush3.bf16.msra.mxu1 %v943_v53  ;;  %856 = vmatprep.subr.bf16.mxu0 %v944_v54 }
  0x32   :  { %878 = vmatprep.subr.bf16.mxu1 %v945_v55 }
  0x34   :  { %857 = vmatpush3.bf16.msra.mxu0 %v946_v56 }
  0x35   :  { %879 = vmatpush3.bf16.msra.mxu1 %v947_v57  ;;  %858 = vmatprep.subr.bf16.mxu0 %v948_v58 }
  0x36   :  { %880 = vmatprep.subr.bf16.mxu1 %v949_v59 }
  0x38   :  { %859 = vmatpush3.bf16.msra.mxu0 %v950_v60 }
  0x39   :  { %881 = vmatpush3.bf16.msra.mxu1 %v951_v61  ;;  %860 = vmatprep.subr.bf16.mxu0 %v952_v62 }
  0x3a   :  { %882 = vmatprep.subr.bf16.mxu1 %v953_v63 }
  0x3c   :  { %861 = vmatpush3.bf16.msra.mxu0 %v954_v0 }
  0x3d   :  { %883 = vmatpush3.bf16.msra.mxu1 %v955_v1  ;;  %862 = vmatprep.subr.bf16.mxu0 %v956_v2 }
  0x3e   :  { %884 = vmatprep.subr.bf16.mxu1 %v957_v3 }
  0x40   :  { %863 = vmatpush3.bf16.msra.mxu0 %v958_v4 }
  0x41   :  { %885 = vmatpush3.bf16.msra.mxu1 %v959_v5 }
  0x43   :  { %679 = vmatmul.mubr.bf16.vlgmr.msra.gmra.mrb[4].mxu0 %v736_v7 }
  0x44   :  { %719 = vmatmul.mubr.bf16.vlgmr.msra.gmra.mrb[4].mxu1 %v738_v10 }
  0xf6   :  { %v820_v12 = vpop.f32.mrb[0].mxu0 }
  0xf7   :  { %v842_v13 = vpop.f32.mrb[0].mxu1  ;;  %v821_v15 = vpop.f32.mrb[1].mxu0 }
  0xf8   :  { %v843_v16 = vpop.f32.mrb[1].mxu1  ;;  %v822_v17 = vadd.f32 %v821_v15, %v820_v12  ;;  %v823_v19 = vpop.f32.mrb[2].mxu0 }
  0xf9   :  { %v844_v18 = vadd.f32 %v843_v16, %v842_v13  ;;  %v845_v20 = vpop.f32.mrb[2].mxu1  ;;  %v824_v21 = vpop.f32.mrb[3].mxu0 }
  0xfa   :  { %v846_v22 = vpop.f32.mrb[3].mxu1  ;;  %v601_v23 = vadd.f32 %v822_v17, %v731_v14 }
  0xfc   :  { %v641_v24 = vadd.f32 %v844_v18, %v601_v23 }
 0x116   :  { %v864_v25 = vpop.f32.mrb[4].mxu0 }
 0x117   :  { %v886_v26 = vpop.f32.mrb[4].mxu1  ;;  %v865_v27 = vpop.f32.mrb[5].mxu0 }
 0x118   :  { %v887_v28 = vpop.f32.mrb[5].mxu1  ;;  %v866_v29 = vadd.f32 %v865_v27, %v864_v25  ;;  %v867_v31 = vpop.f32.mrb[6].mxu0 }
 0x119   :  { %v888_v30 = vadd.f32 %v887_v28, %v886_v26  ;;  %v889_v32 = vpop.f32.mrb[6].mxu1  ;;  %v868_v33 = vpop.f32.mrb[7].mxu0 }
 0x11a   :  { %v890_v34 = vpop.f32.mrb[7].mxu1  ;;  %v681_v35 = vadd.f32 %v866_v29, %v641_v24 }
 0x11c   :  { %v721_v36 = vadd.f32 %v888_v30, %v681_v35 }
 0x11e   :  { %726 = vst [vmem:[%s1197_s3] sm:$0xff] %v721_v36 }

</bundles_post_ra>
